<compile_context>
chip_gen: v7x
topology: tpu7x:2x2x1
jax: 0.10.0
libtpu: 0.0.40
codegen_flags: <defaults>
</compile_context>

<pallas_src>
import functools
import math

import jax
import jax.numpy as jnp
from jax.experimental import pallas as pl
from jax.experimental.pallas import tpu as pltpu


def _round_up(x, m):
    return (x + m - 1) // m * m


def _largest_divisor(n, candidates):
    for c in candidates:
        if n % c == 0:
            return c
    return n


# --------------------------------------------------------------------------
# Pallas kernel #1: fused  out = act((X @ W) * scale + bias) [+ residual]
#   - bf16 MXU operands, f32 accumulation, f32 epilogue, bf16/f32 output
#   - (M, N[, K]) grid, K innermost, (tm, tn) accumulator tile
# --------------------------------------------------------------------------
def _gemm_bn_act_k1_kernel(*refs, act, has_res):
    if has_res:
        x_ref, w_ref, s_ref, b_ref, r_ref, o_ref = refs
    else:
        x_ref, w_ref, s_ref, b_ref, o_ref = refs
        r_ref = None
    y = jnp.dot(x_ref[...], w_ref[...], preferred_element_type=jnp.float32)
    y = y * s_ref[...] + b_ref[...]
    if act:                           # SiLU
        y = y * jax.nn.sigmoid(y)
    if r_ref is not None:             # fused bottleneck residual add
        y = y + r_ref[...].astype(jnp.float32)
    o_ref[...] = y.astype(o_ref.dtype)


def _gemm_bn_act_kernel(*refs, act, has_res):
    if has_res:
        x_ref, w_ref, s_ref, b_ref, r_ref, o_ref, acc_ref = refs
    else:
        x_ref, w_ref, s_ref, b_ref, o_ref, acc_ref = refs
        r_ref = None
    k = pl.program_id(2)

    @pl.when(k == 0)
    def _():
        acc_ref[...] = jnp.zeros_like(acc_ref)

    acc_ref[...] += jnp.dot(x_ref[...], w_ref[...],
                            preferred_element_type=jnp.float32)

    @pl.when(k == pl.num_programs(2) - 1)
    def _():
        y = acc_ref[...] * s_ref[...] + b_ref[...]
        if act:                       # SiLU
            y = y * jax.nn.sigmoid(y)
        if r_ref is not None:         # fused bottleneck residual add
            y = y + r_ref[...].astype(jnp.float32)
        o_ref[...] = y.astype(o_ref.dtype)


def gemm_bn_act(x, w, scale, bias, act, residual=None, out_dtype=jnp.bfloat16):
    """x:(M,K), w:(K,N), scale/bias:(N,) f32, residual:(M,N) or None -> (M,N)."""
    M, K = x.shape
    _, N = w.shape
    Mp = _round_up(M, 8)
    Kp = _round_up(K, 128)
    Np = _round_up(N, 128)

    tm = _largest_divisor(Mp, (2048, 1024, 512, 256, 128, 64, 32, 16, 8))
    tn = _largest_divisor(Np, (256, 128))
    tk = _largest_divisor(Kp, (512, 256, 128))
    # Guarantee >=2 steps on a parallel axis (v7x has 2 TensorCores).
    if Mp // tm == 1 and Np // tn == 1:
        for c in (1024, 512, 256, 128, 64, 32, 16, 8):
            if c < Mp and Mp % c == 0:
                tm = c
                break
    nk = Kp // tk
    assert Mp % tm == 0 and Np % tn == 0 and Kp % tk == 0
    assert tm % 8 == 0 and tn % 128 == 0 and tk % 128 == 0

    # bf16 matmul operands (MXU-native); pad only when needed.
    x = x.astype(jnp.bfloat16)
    w = w.astype(jnp.bfloat16)
    xp = x if (Mp, Kp) == (M, K) else \
        jnp.zeros((Mp, Kp), jnp.bfloat16).at[:M, :K].set(x)
    wp = w if (Kp, Np) == (K, N) else \
        jnp.zeros((Kp, Np), jnp.bfloat16).at[:K, :N].set(w)
    sp = scale.reshape(1, N) if Np == N else \
        jnp.zeros((1, Np), jnp.float32).at[0, :N].set(scale)
    bp = bias.reshape(1, N) if Np == N else \
        jnp.zeros((1, Np), jnp.float32).at[0, :N].set(bias)

    has_res = residual is not None
    extra_in = []
    if has_res:
        r = residual.astype(jnp.bfloat16)
        rp = r if (Mp, Np) == (M, N) else \
            jnp.zeros((Mp, Np), jnp.bfloat16).at[:M, :N].set(r)
        extra_in = [rp]

    out_bytes = Mp * Np * jnp.dtype(out_dtype).itemsize
    cost = pl.CostEstimate(
        flops=2 * Mp * Np * Kp,
        transcendentals=(Mp * Np) if act else 0,
        bytes_accessed=(Mp * Kp * 2 + Kp * Np * 2 + out_bytes
                        + (Mp * Np * 2 if has_res else 0) + 4 * Np * 4))
    cparams = dict(vmem_limit_bytes=48 * 1024 * 1024)

    if nk == 1:
        in_specs = [
            pl.BlockSpec((tm, Kp), lambda i, j: (i, 0)),
            pl.BlockSpec((Kp, tn), lambda i, j: (0, j)),
            pl.BlockSpec((1, tn), lambda i, j: (0, j)),
            pl.BlockSpec((1, tn), lambda i, j: (0, j)),
        ]
        if has_res:
            in_specs.append(pl.BlockSpec((tm, tn), lambda i, j: (i, j)))
        out = pl.pallas_call(
            functools.partial(_gemm_bn_act_k1_kernel, act=act, has_res=has_res),
            out_shape=jax.ShapeDtypeStruct((Mp, Np), out_dtype),
            grid_spec=pltpu.PrefetchScalarGridSpec(
                num_scalar_prefetch=0,
                grid=(Mp // tm, Np // tn),
                in_specs=in_specs,
                out_specs=pl.BlockSpec((tm, tn), lambda i, j: (i, j)),
            ),
            compiler_params=pltpu.CompilerParams(
                dimension_semantics=("parallel", "parallel"), **cparams),
            cost_estimate=cost,
        )(xp, wp, sp, bp, *extra_in)
    else:
        in_specs = [
            pl.BlockSpec((tm, tk), lambda i, j, k: (i, k)),
            pl.BlockSpec((tk, tn), lambda i, j, k: (k, j)),
            pl.BlockSpec((1, tn), lambda i, j, k: (0, j)),
            pl.BlockSpec((1, tn), lambda i, j, k: (0, j)),
        ]
        if has_res:
            in_specs.append(pl.BlockSpec((tm, tn), lambda i, j, k: (i, j)))
        out = pl.pallas_call(
            functools.partial(_gemm_bn_act_kernel, act=act, has_res=has_res),
            out_shape=jax.ShapeDtypeStruct((Mp, Np), out_dtype),
            grid_spec=pltpu.PrefetchScalarGridSpec(
                num_scalar_prefetch=0,
                grid=(Mp // tm, Np // tn, nk),
                in_specs=in_specs,
                out_specs=pl.BlockSpec((tm, tn), lambda i, j, k: (i, j)),
                scratch_shapes=[pltpu.VMEM((tm, tn), jnp.float32)],
            ),
            compiler_params=pltpu.CompilerParams(
                dimension_semantics=("parallel", "parallel", "arbitrary"),
                **cparams),
            cost_estimate=cost,
        )(xp, wp, sp, bp, *extra_in)

    if Mp != M:
        out = out[:M]
    if Np != N:
        out = out[:, :N]
    return out


# --------------------------------------------------------------------------
# Pallas kernel #2: fused SPPF pooling (bf16 in/out, f32 compute in VMEM)
#   emits concat([x, pool5(x), pool9(x), pool13(x)], channel) in one kernel.
#   (pool9 == pool5∘pool5, pool13 == pool5∘pool5∘pool5 for stride-1 max-pools
#    with -inf padding.)  Separable max: along W first, then along H.
# --------------------------------------------------------------------------
def _sppf_pool_kernel(xp_ref, o_ref):
    _, H, W, C4 = o_ref.shape
    C = C4 // 4
    xp = xp_ref[...].astype(jnp.float32)   # (1, H+12, W+12, C), -inf padded

    def wsl(a, off):
        return a[:, :, off:off + W, :]

    def hsl(a, off):
        return a[:, off:off + H, :, :]

    # max along W (incremental 5 -> 9 -> 13 windows)
    col5 = wsl(xp, 4)
    for d in (5, 6, 7, 8):
        col5 = jnp.maximum(col5, wsl(xp, d))
    col9 = col5
    for d in (2, 3, 9, 10):
        col9 = jnp.maximum(col9, wsl(xp, d))
    col13 = col9
    for d in (0, 1, 11, 12):
        col13 = jnp.maximum(col13, wsl(xp, d))

    # max along H
    y1 = hsl(col5, 4)
    for d in (5, 6, 7, 8):
        y1 = jnp.maximum(y1, hsl(col5, d))
    y2 = hsl(col9, 4)
    for d in (5, 6, 7, 8, 2, 3, 9, 10):
        y2 = jnp.maximum(y2, hsl(col9, d))
    y3 = hsl(col13, 4)
    for d in (5, 6, 7, 8, 2, 3, 9, 10, 0, 1, 11, 12):
        y3 = jnp.maximum(y3, hsl(col13, d))

    dt = o_ref.dtype
    o_ref[:, :, :, 0:C] = xp[:, 6:6 + H, 6:6 + W, :].astype(dt)
    o_ref[:, :, :, C:2 * C] = y1.astype(dt)
    o_ref[:, :, :, 2 * C:3 * C] = y2.astype(dt)
    o_ref[:, :, :, 3 * C:4 * C] = y3.astype(dt)


def sppf_pool(x_nhwc):
    N, H, W, C = x_nhwc.shape
    x_nhwc = x_nhwc.astype(jnp.bfloat16)
    xp = jnp.pad(x_nhwc, ((0, 0), (6, 6), (6, 6), (0, 0)),
                 constant_values=-jnp.inf)
    return pl.pallas_call(
        _sppf_pool_kernel,
        out_shape=jax.ShapeDtypeStruct((N, H, W, 4 * C), jnp.bfloat16),
        grid=(N,),
        in_specs=[pl.BlockSpec((1, H + 12, W + 12, C), lambda n: (n, 0, 0, 0))],
        out_specs=pl.BlockSpec((1, H, W, 4 * C), lambda n: (n, 0, 0, 0)),
        compiler_params=pltpu.CompilerParams(
            dimension_semantics=("parallel",)),
    )(xp)


# --------------------------------------------------------------------------
# Conv2d (+ folded BN affine + optional SiLU + optional fused residual)
#   = bf16 im2col glue + Pallas GEMM
# --------------------------------------------------------------------------
def conv2d_bn_act(x, w, scale, bias, stride, pad, act,
                  residual=None, out_dtype=jnp.bfloat16):
    N, H, W, Cin = x.shape
    Cout, _, kh, kw = w.shape
    x = x.astype(jnp.bfloat16)              # no-op when already bf16
    if pad:
        x = jnp.pad(x, ((0, 0), (pad, pad), (pad, pad), (0, 0)))
    Ho = (H + 2 * pad - kh) // stride + 1
    Wo = (W + 2 * pad - kw) // stride + 1
    # TODO(synk): stream kh*kw taps through the K grid axis instead of im2col.
    cols = []
    for dh in range(kh):
        for dw in range(kw):
            cols.append(x[:, dh:dh + stride * (Ho - 1) + 1:stride,
                          dw:dw + stride * (Wo - 1) + 1:stride, :])
    patches = cols[0] if len(cols) == 1 else jnp.concatenate(cols, axis=-1)
    M = N * Ho * Wo
    K = kh * kw * Cin
    xm = patches.reshape(M, K)
    wm = jnp.transpose(w, (2, 3, 1, 0)).reshape(K, Cout)
    rm = None if residual is None else residual.reshape(M, Cout)
    y = gemm_bn_act(xm, wm, scale, bias, act, residual=rm, out_dtype=out_dtype)
    return y.reshape(N, Ho, Wo, Cout)


def upsample2(x):  # nearest, scale_factor=2 (NHWC)
    # TODO(synk): fuse into the consumer GEMM via a row-gather index_map.
    return jnp.repeat(jnp.repeat(x, 2, axis=1), 2, axis=2)


# --------------------------------------------------------------------------
# Deterministic parameter construction (Conv = conv + BN folded to scale/bias)
# --------------------------------------------------------------------------
class KeyGen:
    def __init__(self, key):
        self.key, self.i = key, 0

    def __call__(self):
        k = jax.random.fold_in(self.key, self.i)
        self.i += 1
        return k


def init_conv(kg, c1, c2, k, pad=None):
    fan_in = c1 * k * k
    w = jax.random.normal(kg(), (c2, c1, k, k), jnp.float32) * math.sqrt(2.0 / fan_in)
    scale = 1.0 + 0.05 * jax.random.normal(kg(), (c2,), jnp.float32)
    bias = 0.02 * jax.random.normal(kg(), (c2,), jnp.float32)
    return {'w': w, 'scale': scale, 'bias': bias,
            'pad': (k // 2 if pad is None else pad)}


def init_head(kg, c1, c2):  # plain nn.Conv2d(c1, c2, 1, 1) with bias, no BN/act
    w = jax.random.normal(kg(), (c2, c1, 1, 1), jnp.float32) * math.sqrt(1.0 / c1)
    b = 0.02 * jax.random.normal(kg(), (c2,), jnp.float32)
    return {'w': w, 'scale': jnp.ones((c2,), jnp.float32), 'bias': b, 'pad': 0}


def init_bottleneck(kg, c1, c2, shortcut=True, e=0.5):
    c_ = int(c2 * e)
    return {'cv1': init_conv(kg, c1, c_, 1), 'cv2': init_conv(kg, c_, c2, 3),
            'add': bool(shortcut and c1 == c2)}


def init_c3(kg, c1, c2, n, shortcut=True, e=0.5):
    c_ = int(c2 * e)
    return {'cv1': init_conv(kg, c1, c_, 1), 'cv2': init_conv(kg, c1, c_, 1),
            'cv3': init_conv(kg, 2 * c_, c2, 1),
            'm': [init_bottleneck(kg, c_, c_, shortcut, 1.0) for _ in range(n)]}


def init_sppf(kg, c1, c2):
    c_ = c1 // 2
    return {'cv1': init_conv(kg, c1, c_, 1), 'cv2': init_conv(kg, c_ * 4, c2, 1)}


# Standard YOLOv5-v6.1 CSPDarknet (6x6/s2 stem conv, C3 stages, SPPF tail).
def init_backbone(kg, bc, bd):
    return {
        'stem': init_conv(kg, 3, bc, 6, pad=2),
        'dark2_conv': init_conv(kg, bc, bc * 2, 3),
        'dark2_c3': init_c3(kg, bc * 2, bc * 2, bd),
        'dark3_conv': init_conv(kg, bc * 2, bc * 4, 3),
        'dark3_c3': init_c3(kg, bc * 4, bc * 4, bd * 3),
        'dark4_conv': init_conv(kg, bc * 4, bc * 8, 3),
        'dark4_c3': init_c3(kg, bc * 8, bc * 8, bd * 3),
        'dark5_conv': init_conv(kg, bc * 8, bc * 16, 3),
        'dark5_c3': init_c3(kg, bc * 16, bc * 16, bd),
        'sppf': init_sppf(kg, bc * 16, bc * 16),
    }


def init_yolov5(key, anchor_mask, num_class, phi):
    depth_dict = {'n': 0.33, 's': 0.33, 'm': 0.67, 'l': 1.0, 'x': 1.33}
    width_dict = {'n': 0.25, 's': 0.5, 'm': 0.75, 'l': 1.0, 'x': 1.25}
    dep_mul, wid_mul = depth_dict[phi], width_dict[phi]
    bd = max(round(3 * dep_mul), 1)
    bc = int(64 * wid_mul)
    kg = KeyGen(key)
    return {
        'backbone': init_backbone(kg, bc, bd),
        'conv_for_feat3': init_conv(kg, bc * 16, bc * 8, 1),
        'conv3_for_upsample1': init_c3(kg, bc * 16, bc * 8, bd, shortcut=False),
        'conv_for_feat2': init_conv(kg, bc * 8, bc * 4, 1),
        'conv3_for_upsample2': init_c3(kg, bc * 8, bc * 4, bd, shortcut=False),
        'down_sample1': init_conv(kg, bc * 4, bc * 4, 3),
        'conv3_for_downsample1': init_c3(kg, bc * 8, bc * 8, bd, shortcut=False),
        'down_sample2': init_conv(kg, bc * 8, bc * 8, 3),
        'conv3_for_downsample2': init_c3(kg, bc * 16, bc * 16, bd, shortcut=False),
        'yolo_head_P3': init_head(kg, bc * 4, (num_class + 5) * len(anchor_mask[2])),
        'yolo_head_P4': init_head(kg, bc * 8, (num_class + 5) * len(anchor_mask[1])),
        'yolo_head_P5': init_head(kg, bc * 16, (num_class + 5) * len(anchor_mask[0])),
    }


# --------------------------------------------------------------------------
# Forward pass (mirrors the PyTorch module exactly)
# --------------------------------------------------------------------------
def conv_fwd(p, x, stride=1, act=True, residual=None, out_dtype=jnp.bfloat16):
    return conv2d_bn_act(x, p['w'], p['scale'], p['bias'], stride, p['pad'],
                         act, residual=residual, out_dtype=out_dtype)


def bottleneck_fwd(p, x):
    y = conv_fwd(p['cv1'], x)
    if p['add']:
        # residual add fused into the cv2 GEMM epilogue
        return conv_fwd(p['cv2'], y, residual=x)
    return conv_fwd(p['cv2'], y)


def c3_fwd(p, x):
    # cv1 and cv2 are both 1x1 convs on the same x -> fuse into one GEMM
    # (weight/scale/bias concat happens on constants and folds at compile time).
    c_ = p['cv1']['w'].shape[0]
    w12 = jnp.concatenate([p['cv1']['w'], p['cv2']['w']], axis=0)
    s12 = jnp.concatenate([p['cv1']['scale'], p['cv2']['scale']], axis=0)
    b12 = jnp.concatenate([p['cv1']['bias'], p['cv2']['bias']], axis=0)
    y12 = conv2d_bn_act(x, w12, s12, b12, 1, 0, True)
    y1, y2 = y12[..., :c_], y12[..., c_:]
    for b in p['m']:
        y1 = bottleneck_fwd(b, y1)
    return conv_fwd(p['cv3'], jnp.concatenate([y1, y2], axis=-1))


def sppf_fwd(p, x):
    x = conv_fwd(p['cv1'], x)
    pooled = sppf_pool(x)               # [x, y1, y2, y3] along channels, fused
    return conv_fwd(p['cv2'], pooled)


def backbone_fwd(p, x):
    x = conv_fwd(p['stem'], x, 2)
    x = conv_fwd(p['dark2_conv'], x, 2)
    x = c3_fwd(p['dark2_c3'], x)
    x = conv_fwd(p['dark3_conv'], x, 2)
    x = c3_fwd(p['dark3_c3'], x)
    feat1 = x
    x = conv_fwd(p['dark4_conv'], x, 2)
    x = c3_fwd(p['dark4_c3'], x)
    feat2 = x
    x = conv_fwd(p['dark5_conv'], x, 2)
    x = c3_fwd(p['dark5_c3'], x)
    x = sppf_fwd(p['sppf'], x)
    feat3 = x
    return feat1, feat2, feat3


def yolov5_fwd(params, x_nchw):
    x = jnp.transpose(x_nchw, (0, 2, 3, 1))           # NCHW -> NHWC
    feat1, feat2, feat3 = backbone_fwd(params['backbone'], x)

    p5 = conv_fwd(params['conv_for_feat3'], feat3)
    p5_up = upsample2(p5)
    p4 = jnp.concatenate([p5_up, feat2], axis=-1)
    p4 = c3_fwd(params['conv3_for_upsample1'], p4)
    p4 = conv_fwd(params['conv_for_feat2'], p4)
    p4_up = upsample2(p4)
    p3 = jnp.concatenate([p4_up, feat1], axis=-1)
    p3 = c3_fwd(params['conv3_for_upsample2'], p3)

    p3_out = conv_fwd(params['yolo_head_P3'], p3, act=False, out_dtype=jnp.float32)

    p3 = conv_fwd(params['down_sample1'], p3, 2)
    p4 = jnp.concatenate([p3, p4], axis=-1)
    p4 = c3_fwd(params['conv3_for_downsample1'], p4)
    p4_out = conv_fwd(params['yolo_head_P4'], p4, act=False, out_dtype=jnp.float32)

    p4 = conv_fwd(params['down_sample2'], p4, 2)
    p5 = jnp.concatenate([p4, p5], axis=-1)
    p5 = c3_fwd(params['conv3_for_downsample2'], p5)
    p5_out = conv_fwd(params['yolo_head_P5'], p5, act=False, out_dtype=jnp.float32)

    to_nchw = lambda t: jnp.transpose(t, (0, 3, 1, 2))
    return to_nchw(p5_out), to_nchw(p4_out), to_nchw(p3_out)


# --------------------------------------------------------------------------
if __name__ == "__main__":
    anchor_mask = [[6, 7, 8], [3, 4, 5], [0, 1, 2]]
    num_class = 2
    phi = 'n'            # base_channels = 16, base_depth = 1
    c_out = (num_class + 5) * 3

    key = jax.random.PRNGKey(0)
    params = init_yolov5(key, anchor_mask, num_class, phi)

    x = jax.random.normal(jax.random.fold_in(key, 12345),
                          (2, 3, 64, 64), jnp.float32)   # NCHW input, like PyTorch

    fwd = jax.jit(lambda inp: yolov5_fwd(params, inp))
    p5_out, p4_out, p3_out = fwd(x)
    jax.block_until_ready((p5_out, p4_out, p3_out))

    assert p5_out.shape == (2, c_out, 2, 2)
    assert p4_out.shape == (2, c_out, 4, 4)
    assert p3_out.shape == (2, c_out, 8, 8)
    assert all(bool(jnp.isfinite(t).all()) for t in (p5_out, p4_out, p3_out))
    print("KERNEL_OK")
</pallas_src>

<mosaic_0001>
module attributes {stable_mosaic.version = 11 : i64} {
  func.func @_gemm_bn_act_k1_kernel(%arg0: i32, %arg1: i32, %arg2: memref<1024x128xbf16, #tpu.memory_space<vmem>>, %arg3: memref<128x128xbf16, #tpu.memory_space<vmem>>, %arg4: memref<1x128xf32, #tpu.memory_space<vmem>>, %arg5: memref<1x128xf32, #tpu.memory_space<vmem>>, %arg6: memref<1024x128xbf16, #tpu.memory_space<vmem>>) attributes {dimension_semantics = [#tpu.dimension_semantics<parallel>, #tpu.dimension_semantics<parallel>], iteration_bounds = array<i64: 2, 1>, scalar_prefetch = 0 : i64, scratch_operands = 0 : i64, tpu.core_type = #tpu.core_type<tc>, window_params = [{transform_indices = @transform_0, window_bounds = array<i64: 1024, 128>}, {transform_indices = @transform_1, window_bounds = array<i64: 128, 128>}, {transform_indices = @transform_2, window_bounds = array<i64: 1, 128>}, {transform_indices = @transform_3, window_bounds = array<i64: 1, 128>}, {transform_indices = @transform_4, window_bounds = array<i64: 1024, 128>}]} {
    %c0 = arith.constant 0 : index
    %c0_0 = arith.constant 0 : index
    %0 = vector.load %arg2[%c0, %c0_0] : memref<1024x128xbf16, #tpu.memory_space<vmem>>, vector<1024x128xbf16>
    %c0_1 = arith.constant 0 : index
    %c0_2 = arith.constant 0 : index
    %1 = vector.load %arg3[%c0_1, %c0_2] : memref<128x128xbf16, #tpu.memory_space<vmem>>, vector<128x128xbf16>
    %cst = arith.constant dense<0.000000e+00> : vector<1024x128xf32>
    %2 = tpu.matmul %0, %1, %cst {dimension_numbers = #tpu.dot_dimension_numbers<[1], [0], [0], [1], [0, 0, 1, 1], [], []>} : vector<1024x128xbf16>, vector<128x128xbf16>, vector<1024x128xf32> -> vector<1024x128xf32>
    %c0_3 = arith.constant 0 : index
    %c0_4 = arith.constant 0 : index
    %3 = vector.load %arg4[%c0_3, %c0_4] : memref<1x128xf32, #tpu.memory_space<vmem>>, vector<1x128xf32>
    %4 = vector.broadcast %3 : vector<1x128xf32> to vector<1024x128xf32>
    %5 = arith.mulf %2, %4 : vector<1024x128xf32>
    %c0_5 = arith.constant 0 : index
    %c0_6 = arith.constant 0 : index
    %6 = vector.load %arg5[%c0_5, %c0_6] : memref<1x128xf32, #tpu.memory_space<vmem>>, vector<1x128xf32>
    %7 = vector.broadcast %6 : vector<1x128xf32> to vector<1024x128xf32>
    %8 = arith.addf %5, %7 : vector<1024x128xf32>
    %9 = arith.negf %8 : vector<1024x128xf32>
    %10 = math.exp %9 : vector<1024x128xf32>
    %cst_7 = arith.constant 1.000000e+00 : f32
    %11 = vector.broadcast %cst_7 : f32 to vector<1024x128xf32>
    %12 = arith.addf %11, %10 : vector<1024x128xf32>
    %13 = arith.divf %11, %12 : vector<1024x128xf32>
    %14 = arith.mulf %8, %13 : vector<1024x128xf32>
    %15 = arith.truncf %14 : vector<1024x128xf32> to vector<1024x128xbf16>
    %c0_8 = arith.constant 0 : index
    %c0_9 = arith.constant 0 : index
    %16 = vector.load %arg6[%c0_8, %c0_9] : memref<1024x128xbf16, #tpu.memory_space<vmem>>, vector<1024x128xbf16>
    tpu.vector_store %arg6[%c0_8, %c0_9], %15 {strides = array<i32>} : memref<1024x128xbf16, #tpu.memory_space<vmem>>, vector<1024x128xbf16>,
    return
  }
  func.func @transform_0(%arg0: i32, %arg1: i32) -> (i32, i32) {
    %c0_i32 = arith.constant 0 : i32
    %c0_i32_0 = arith.constant 0 : i32
    return %arg0, %c0_i32 : i32, i32
  }
  func.func @transform_1(%arg0: i32, %arg1: i32) -> (i32, i32) {
    %c0_i32 = arith.constant 0 : i32
    %c0_i32_0 = arith.constant 0 : i32
    return %c0_i32, %arg1 : i32, i32
  }
  func.func @transform_2(%arg0: i32, %arg1: i32) -> (i32, i32) {
    %c0_i32 = arith.constant 0 : i32
    %c0_i32_0 = arith.constant 0 : i32
    return %c0_i32, %arg1 : i32, i32
  }
  func.func @transform_3(%arg0: i32, %arg1: i32) -> (i32, i32) {
    %c0_i32 = arith.constant 0 : i32
    %c0_i32_0 = arith.constant 0 : i32
    return %c0_i32, %arg1 : i32, i32
  }
  func.func @transform_4(%arg0: i32, %arg1: i32) -> (i32, i32) {
    %c0_i32 = arith.constant 0 : i32
    return %arg0, %arg1 : i32, i32
  }
}

module attributes {stable_mosaic.version = 11 : i64} {
  func.func @_gemm_bn_act_k1_kernel(%arg0: i32, %arg1: i32, %arg2: memref<256x256xbf16, #tpu.memory_space<vmem>>, %arg3: memref<256x128xbf16, #tpu.memory_space<vmem>>, %arg4: memref<1x128xf32, #tpu.memory_space<vmem>>, %arg5: memref<1x128xf32, #tpu.memory_space<vmem>>, %arg6: memref<256x128xbf16, #tpu.memory_space<vmem>>) attributes {dimension_semantics = [#tpu.dimension_semantics<parallel>, #tpu.dimension_semantics<parallel>], iteration_bounds = array<i64: 2, 1>, scalar_prefetch = 0 : i64, scratch_operands = 0 : i64, tpu.core_type = #tpu.core_type<tc>, window_params = [{transform_indices = @transform_0, window_bounds = array<i64: 256, 256>}, {transform_indices = @transform_1, window_bounds = array<i64: 256, 128>}, {transform_indices = @transform_2, window_bounds = array<i64: 1, 128>}, {transform_indices = @transform_3, window_bounds = array<i64: 1, 128>}, {transform_indices = @transform_4, window_bounds = array<i64: 256, 128>}]} {
    %c0 = arith.constant 0 : index
    %c0_0 = arith.constant 0 : index
    %0 = vector.load %arg2[%c0, %c0_0] : memref<256x256xbf16, #tpu.memory_space<vmem>>, vector<256x256xbf16>
    %c0_1 = arith.constant 0 : index
    %c0_2 = arith.constant 0 : index
    %1 = vector.load %arg3[%c0_1, %c0_2] : memref<256x128xbf16, #tpu.memory_space<vmem>>, vector<256x128xbf16>
    %cst = arith.constant dense<0.000000e+00> : vector<256x128xf32>
    %2 = tpu.matmul %0, %1, %cst {dimension_numbers = #tpu.dot_dimension_numbers<[1], [0], [0], [1], [0, 0, 1, 1], [], []>} : vector<256x256xbf16>, vector<256x128xbf16>, vector<256x128xf32> -> vector<256x128xf32>
    %c0_3 = arith.constant 0 : index
    %c0_4 = arith.constant 0 : index
    %3 = vector.load %arg4[%c0_3, %c0_4] : memref<1x128xf32, #tpu.memory_space<vmem>>, vector<1x128xf32>
    %4 = vector.broadcast %3 : vector<1x128xf32> to vector<256x128xf32>
    %5 = arith.mulf %2, %4 : vector<256x128xf32>
    %c0_5 = arith.constant 0 : index
    %c0_6 = arith.constant 0 : index
    %6 = vector.load %arg5[%c0_5, %c0_6] : memref<1x128xf32, #tpu.memory_space<vmem>>, vector<1x128xf32>
    %7 = vector.broadcast %6 : vector<1x128xf32> to vector<256x128xf32>
    %8 = arith.addf %5, %7 : vector<256x128xf32>
    %9 = arith.negf %8 : vector<256x128xf32>
    %10 = math.exp %9 : vector<256x128xf32>
    %cst_7 = arith.constant 1.000000e+00 : f32
    %11 = vector.broadcast %cst_7 : f32 to vector<256x128xf32>
    %12 = arith.addf %11, %10 : vector<256x128xf32>
    %13 = arith.divf %11, %12 : vector<256x128xf32>
    %14 = arith.mulf %8, %13 : vector<256x128xf32>
    %15 = arith.truncf %14 : vector<256x128xf32> to vector<256x128xbf16>
    %c0_8 = arith.constant 0 : index
    %c0_9 = arith.constant 0 : index
    %16 = vector.load %arg6[%c0_8, %c0_9] : memref<256x128xbf16, #tpu.memory_space<vmem>>, vector<256x128xbf16>
    tpu.vector_store %arg6[%c0_8, %c0_9], %15 {strides = array<i32>} : memref<256x128xbf16, #tpu.memory_space<vmem>>, vector<256x128xbf16>,
    return
  }
  func.func @transform_0(%arg0: i32, %arg1: i32) -> (i32, i32) {
    %c0_i32 = arith.constant 0 : i32
    %c0_i32_0 = arith.constant 0 : i32
    return %arg0, %c0_i32 : i32, i32
  }
  func.func @transform_1(%arg0: i32, %arg1: i32) -> (i32, i32) {
    %c0_i32 = arith.constant 0 : i32
    %c0_i32_0 = arith.constant 0 : i32
    return %c0_i32, %arg1 : i32, i32
  }
  func.func @transform_2(%arg0: i32, %arg1: i32) -> (i32, i32) {
    %c0_i32 = arith.constant 0 : i32
    %c0_i32_0 = arith.constant 0 : i32
    return %c0_i32, %arg1 : i32, i32
  }
  func.func @transform_3(%arg0: i32, %arg1: i32) -> (i32, i32) {
    %c0_i32 = arith.constant 0 : i32
    %c0_i32_0 = arith.constant 0 : i32
    return %c0_i32, %arg1 : i32, i32
  }
  func.func @transform_4(%arg0: i32, %arg1: i32) -> (i32, i32) {
    %c0_i32 = arith.constant 0 : i32
    return %arg0, %arg1 : i32, i32
  }
}

module attributes {stable_mosaic.version = 11 : i64} {
  func.func @_gemm_bn_act_k1_kernel(%arg0: i32, %arg1: i32, %arg2: memref<256x128xbf16, #tpu.memory_space<vmem>>, %arg3: memref<128x128xbf16, #tpu.memory_space<vmem>>, %arg4: memref<1x128xf32, #tpu.memory_space<vmem>>, %arg5: memref<1x128xf32, #tpu.memory_space<vmem>>, %arg6: memref<256x128xbf16, #tpu.memory_space<vmem>>) attributes {dimension_semantics = [#tpu.dimension_semantics<parallel>, #tpu.dimension_semantics<parallel>], iteration_bounds = array<i64: 2, 1>, scalar_prefetch = 0 : i64, scratch_operands = 0 : i64, tpu.core_type = #tpu.core_type<tc>, window_params = [{transform_indices = @transform_0, window_bounds = array<i64: 256, 128>}, {transform_indices = @transform_1, window_bounds = array<i64: 128, 128>}, {transform_indices = @transform_2, window_bounds = array<i64: 1, 128>}, {transform_indices = @transform_3, window_bounds = array<i64: 1, 128>}, {transform_indices = @transform_4, window_bounds = array<i64: 256, 128>}]} {
    %c0 = arith.constant 0 : index
    %c0_0 = arith.constant 0 : index
    %0 = vector.load %arg2[%c0, %c0_0] : memref<256x128xbf16, #tpu.memory_space<vmem>>, vector<256x128xbf16>
    %c0_1 = arith.constant 0 : index
    %c0_2 = arith.constant 0 : index
    %1 = vector.load %arg3[%c0_1, %c0_2] : memref<128x128xbf16, #tpu.memory_space<vmem>>, vector<128x128xbf16>
    %cst = arith.constant dense<0.000000e+00> : vector<256x128xf32>
    %2 = tpu.matmul %0, %1, %cst {dimension_numbers = #tpu.dot_dimension_numbers<[1], [0], [0], [1], [0, 0, 1, 1], [], []>} : vector<256x128xbf16>, vector<128x128xbf16>, vector<256x128xf32> -> vector<256x128xf32>
    %c0_3 = arith.constant 0 : index
    %c0_4 = arith.constant 0 : index
    %3 = vector.load %arg4[%c0_3, %c0_4] : memref<1x128xf32, #tpu.memory_space<vmem>>, vector<1x128xf32>
    %4 = vector.broadcast %3 : vector<1x128xf32> to vector<256x128xf32>
    %5 = arith.mulf %2, %4 : vector<256x128xf32>
    %c0_5 = arith.constant 0 : index
    %c0_6 = arith.constant 0 : index
    %6 = vector.load %arg5[%c0_5, %c0_6] : memref<1x128xf32, #tpu.memory_space<vmem>>, vector<1x128xf32>
    %7 = vector.broadcast %6 : vector<1x128xf32> to vector<256x128xf32>
    %8 = arith.addf %5, %7 : vector<256x128xf32>
    %9 = arith.negf %8 : vector<256x128xf32>
    %10 = math.exp %9 : vector<256x128xf32>
    %cst_7 = arith.constant 1.000000e+00 : f32
    %11 = vector.broadcast %cst_7 : f32 to vector<256x128xf32>
    %12 = arith.addf %11, %10 : vector<256x128xf32>
    %13 = arith.divf %11, %12 : vector<256x128xf32>
    %14 = arith.mulf %8, %13 : vector<256x128xf32>
    %15 = arith.truncf %14 : vector<256x128xf32> to vector<256x128xbf16>
    %c0_8 = arith.constant 0 : index
    %c0_9 = arith.constant 0 : index
    %16 = vector.load %arg6[%c0_8, %c0_9] : memref<256x128xbf16, #tpu.memory_space<vmem>>, vector<256x128xbf16>
    tpu.vector_store %arg6[%c0_8, %c0_9], %15 {strides = array<i32>} : memref<256x128xbf16, #tpu.memory_space<vmem>>, vector<256x128xbf16>,
    return
  }
  func.func @transform_0(%arg0: i32, %arg1: i32) -> (i32, i32) {
    %c0_i32 = arith.constant 0 : i32
    %c0_i32_0 = arith.constant 0 : i32
    return %arg0, %c0_i32 : i32, i32
  }
  func.func @transform_1(%arg0: i32, %arg1: i32) -> (i32, i32) {
    %c0_i32 = arith.constant 0 : i32
    %c0_i32_0 = arith.constant 0 : i32
    return %c0_i32, %arg1 : i32, i32
  }
  func.func @transform_2(%arg0: i32, %arg1: i32) -> (i32, i32) {
    %c0_i32 = arith.constant 0 : i32
    %c0_i32_0 = arith.constant 0 : i32
    return %c0_i32, %arg1 : i32, i32
  }
  func.func @transform_3(%arg0: i32, %arg1: i32) -> (i32, i32) {
    %c0_i32 = arith.constant 0 : i32
    %c0_i32_0 = arith.constant 0 : i32
    return %c0_i32, %arg1 : i32, i32
  }
  func.func @transform_4(%arg0: i32, %arg1: i32) -> (i32, i32) {
    %c0_i32 = arith.constant 0 : i32
    return %arg0, %arg1 : i32, i32
  }
}

module attributes {stable_mosaic.version = 11 : i64} {
  func.func @_gemm_bn_act_k1_kernel(%arg0: i32, %arg1: i32, %arg2: memref<256x256xbf16, #tpu.memory_space<vmem>>, %arg3: memref<256x128xbf16, #tpu.memory_space<vmem>>, %arg4: memref<1x128xf32, #tpu.memory_space<vmem>>, %arg5: memref<1x128xf32, #tpu.memory_space<vmem>>, %arg6: memref<256x128xbf16, #tpu.memory_space<vmem>>, %arg7: memref<256x128xbf16, #tpu.memory_space<vmem>>) attributes {dimension_semantics = [#tpu.dimension_semantics<parallel>, #tpu.dimension_semantics<parallel>], iteration_bounds = array<i64: 2, 1>, scalar_prefetch = 0 : i64, scratch_operands = 0 : i64, tpu.core_type = #tpu.core_type<tc>, window_params = [{transform_indices = @transform_0, window_bounds = array<i64: 256, 256>}, {transform_indices = @transform_1, window_bounds = array<i64: 256, 128>}, {transform_indices = @transform_2, window_bounds = array<i64: 1, 128>}, {transform_indices = @transform_3, window_bounds = array<i64: 1, 128>}, {transform_indices = @transform_4, window_bounds = array<i64: 256, 128>}, {transform_indices = @transform_5, window_bounds = array<i64: 256, 128>}]} {
    %c0 = arith.constant 0 : index
    %c0_0 = arith.constant 0 : index
    %0 = vector.load %arg2[%c0, %c0_0] : memref<256x256xbf16, #tpu.memory_space<vmem>>, vector<256x256xbf16>
    %c0_1 = arith.constant 0 : index
    %c0_2 = arith.constant 0 : index
    %1 = vector.load %arg3[%c0_1, %c0_2] : memref<256x128xbf16, #tpu.memory_space<vmem>>, vector<256x128xbf16>
    %cst = arith.constant dense<0.000000e+00> : vector<256x128xf32>
    %2 = tpu.matmul %0, %1, %cst {dimension_numbers = #tpu.dot_dimension_numbers<[1], [0], [0], [1], [0, 0, 1, 1], [], []>} : vector<256x256xbf16>, vector<256x128xbf16>, vector<256x128xf32> -> vector<256x128xf32>
    %c0_3 = arith.constant 0 : index
    %c0_4 = arith.constant 0 : index
    %3 = vector.load %arg4[%c0_3, %c0_4] : memref<1x128xf32, #tpu.memory_space<vmem>>, vector<1x128xf32>
    %4 = vector.broadcast %3 : vector<1x128xf32> to vector<256x128xf32>
    %5 = arith.mulf %2, %4 : vector<256x128xf32>
    %c0_5 = arith.constant 0 : index
    %c0_6 = arith.constant 0 : index
    %6 = vector.load %arg5[%c0_5, %c0_6] : memref<1x128xf32, #tpu.memory_space<vmem>>, vector<1x128xf32>
    %7 = vector.broadcast %6 : vector<1x128xf32> to vector<256x128xf32>
    %8 = arith.addf %5, %7 : vector<256x128xf32>
    %9 = arith.negf %8 : vector<256x128xf32>
    %10 = math.exp %9 : vector<256x128xf32>
    %cst_7 = arith.constant 1.000000e+00 : f32
    %11 = vector.broadcast %cst_7 : f32 to vector<256x128xf32>
    %12 = arith.addf %11, %10 : vector<256x128xf32>
    %13 = arith.divf %11, %12 : vector<256x128xf32>
    %14 = arith.mulf %8, %13 : vector<256x128xf32>
    %c0_8 = arith.constant 0 : index
    %c0_9 = arith.constant 0 : index
    %15 = vector.load %arg6[%c0_8, %c0_9] : memref<256x128xbf16, #tpu.memory_space<vmem>>, vector<256x128xbf16>
    %16 = arith.extf %15 : vector<256x128xbf16> to vector<256x128xf32>
    %17 = arith.addf %14, %16 : vector<256x128xf32>
    %18 = arith.truncf %17 : vector<256x128xf32> to vector<256x128xbf16>
    %c0_10 = arith.constant 0 : index
    %c0_11 = arith.constant 0 : index
    %19 = vector.load %arg7[%c0_10, %c0_11] : memref<256x128xbf16, #tpu.memory_space<vmem>>, vector<256x128xbf16>
    tpu.vector_store %arg7[%c0_10, %c0_11], %18 {strides = array<i32>} : memref<256x128xbf16, #tpu.memory_space<vmem>>, vector<256x128xbf16>,
    return
  }
  func.func @transform_0(%arg0: i32, %arg1: i32) -> (i32, i32) {
    %c0_i32 = arith.constant 0 : i32
    %c0_i32_0 = arith.constant 0 : i32
    return %arg0, %c0_i32 : i32, i32
  }
  func.func @transform_1(%arg0: i32, %arg1: i32) -> (i32, i32) {
    %c0_i32 = arith.constant 0 : i32
    %c0_i32_0 = arith.constant 0 : i32
    return %c0_i32, %arg1 : i32, i32
  }
  func.func @transform_2(%arg0: i32, %arg1: i32) -> (i32, i32) {
    %c0_i32 = arith.constant 0 : i32
    %c0_i32_0 = arith.constant 0 : i32
    return %c0_i32, %arg1 : i32, i32
  }
  func.func @transform_3(%arg0: i32, %arg1: i32) -> (i32, i32) {
    %c0_i32 = arith.constant 0 : i32
    %c0_i32_0 = arith.constant 0 : i32
    return %c0_i32, %arg1 : i32, i32
  }
  func.func @transform_4(%arg0: i32, %arg1: i32) -> (i32, i32) {
    %c0_i32 = arith.constant 0 : i32
    return %arg0, %arg1 : i32, i32
  }
  func.func @transform_5(%arg0: i32, %arg1: i32) -> (i32, i32) {
    %c0_i32 = arith.constant 0 : i32
    return %arg0, %arg1 : i32, i32
  }
}

module attributes {stable_mosaic.version = 11 : i64} {
  func.func @_gemm_bn_act_k1_kernel(%arg0: i32, %arg1: i32, %arg2: memref<64x128xbf16, #tpu.memory_space<vmem>>, %arg3: memref<128x128xbf16, #tpu.memory_space<vmem>>, %arg4: memref<1x128xf32, #tpu.memory_space<vmem>>, %arg5: memref<1x128xf32, #tpu.memory_space<vmem>>, %arg6: memref<64x128xbf16, #tpu.memory_space<vmem>>) attributes {dimension_semantics = [#tpu.dimension_semantics<parallel>, #tpu.dimension_semantics<parallel>], iteration_bounds = array<i64: 2, 1>, scalar_prefetch = 0 : i64, scratch_operands = 0 : i64, tpu.core_type = #tpu.core_type<tc>, window_params = [{transform_indices = @transform_0, window_bounds = array<i64: 64, 128>}, {transform_indices = @transform_1, window_bounds = array<i64: 128, 128>}, {transform_indices = @transform_2, window_bounds = array<i64: 1, 128>}, {transform_indices = @transform_3, window_bounds = array<i64: 1, 128>}, {transform_indices = @transform_4, window_bounds = array<i64: 64, 128>}]} {
    %c0 = arith.constant 0 : index
    %c0_0 = arith.constant 0 : index
    %0 = vector.load %arg2[%c0, %c0_0] : memref<64x128xbf16, #tpu.memory_space<vmem>>, vector<64x128xbf16>
    %c0_1 = arith.constant 0 : index
    %c0_2 = arith.constant 0 : index
    %1 = vector.load %arg3[%c0_1, %c0_2] : memref<128x128xbf16, #tpu.memory_space<vmem>>, vector<128x128xbf16>
    %cst = arith.constant dense<0.000000e+00> : vector<64x128xf32>
    %2 = tpu.matmul %0, %1, %cst {dimension_numbers = #tpu.dot_dimension_numbers<[1], [0], [0], [1], [0, 0, 1, 1], [], []>} : vector<64x128xbf16>, vector<128x128xbf16>, vector<64x128xf32> -> vector<64x128xf32>
    %c0_3 = arith.constant 0 : index
    %c0_4 = arith.constant 0 : index
    %3 = vector.load %arg4[%c0_3, %c0_4] : memref<1x128xf32, #tpu.memory_space<vmem>>, vector<1x128xf32>
    %4 = vector.broadcast %3 : vector<1x128xf32> to vector<64x128xf32>
    %5 = arith.mulf %2, %4 : vector<64x128xf32>
    %c0_5 = arith.constant 0 : index
    %c0_6 = arith.constant 0 : index
    %6 = vector.load %arg5[%c0_5, %c0_6] : memref<1x128xf32, #tpu.memory_space<vmem>>, vector<1x128xf32>
    %7 = vector.broadcast %6 : vector<1x128xf32> to vector<64x128xf32>
    %8 = arith.addf %5, %7 : vector<64x128xf32>
    %9 = arith.negf %8 : vector<64x128xf32>
    %10 = math.exp %9 : vector<64x128xf32>
    %cst_7 = arith.constant 1.000000e+00 : f32
    %11 = vector.broadcast %cst_7 : f32 to vector<64x128xf32>
    %12 = arith.addf %11, %10 : vector<64x128xf32>
    %13 = arith.divf %11, %12 : vector<64x128xf32>
    %14 = arith.mulf %8, %13 : vector<64x128xf32>
    %15 = arith.truncf %14 : vector<64x128xf32> to vector<64x128xbf16>
    %c0_8 = arith.constant 0 : index
    %c0_9 = arith.constant 0 : index
    %16 = vector.load %arg6[%c0_8, %c0_9] : memref<64x128xbf16, #tpu.memory_space<vmem>>, vector<64x128xbf16>
    tpu.vector_store %arg6[%c0_8, %c0_9], %15 {strides = array<i32>} : memref<64x128xbf16, #tpu.memory_space<vmem>>, vector<64x128xbf16>,
    return
  }
  func.func @transform_0(%arg0: i32, %arg1: i32) -> (i32, i32) {
    %c0_i32 = arith.constant 0 : i32
    %c0_i32_0 = arith.constant 0 : i32
    return %arg0, %c0_i32 : i32, i32
  }
  func.func @transform_1(%arg0: i32, %arg1: i32) -> (i32, i32) {
    %c0_i32 = arith.constant 0 : i32
    %c0_i32_0 = arith.constant 0 : i32
    return %c0_i32, %arg1 : i32, i32
  }
  func.func @transform_2(%arg0: i32, %arg1: i32) -> (i32, i32) {
    %c0_i32 = arith.constant 0 : i32
    %c0_i32_0 = arith.constant 0 : i32
    return %c0_i32, %arg1 : i32, i32
  }
  func.func @transform_3(%arg0: i32, %arg1: i32) -> (i32, i32) {
    %c0_i32 = arith.constant 0 : i32
    %c0_i32_0 = arith.constant 0 : i32
    return %c0_i32, %arg1 : i32, i32
  }
  func.func @transform_4(%arg0: i32, %arg1: i32) -> (i32, i32) {
    %c0_i32 = arith.constant 0 : i32
    return %arg0, %arg1 : i32, i32
  }
}

module attributes {stable_mosaic.version = 11 : i64} {
  func.func @_gemm_bn_act_kernel(%arg0: i32, %arg1: i32, %arg2: i32, %arg3: memref<64x128xbf16, #tpu.memory_space<vmem>>, %arg4: memref<128x128xbf16, #tpu.memory_space<vmem>>, %arg5: memref<1x128xf32, #tpu.memory_space<vmem>>, %arg6: memref<1x128xf32, #tpu.memory_space<vmem>>, %arg7: memref<64x128xbf16, #tpu.memory_space<vmem>>, %arg8: memref<64x128xf32, #tpu.memory_space<vmem>>) attributes {dimension_semantics = [#tpu.dimension_semantics<parallel>, #tpu.dimension_semantics<parallel>, #tpu.dimension_semantics<arbitrary>], iteration_bounds = array<i64: 2, 1, 3>, scalar_prefetch = 0 : i64, scratch_operands = 1 : i64, tpu.core_type = #tpu.core_type<tc>, window_params = [{transform_indices = @transform_0, window_bounds = array<i64: 64, 128>}, {transform_indices = @transform_1, window_bounds = array<i64: 128, 128>}, {transform_indices = @transform_2, window_bounds = array<i64: 1, 128>}, {transform_indices = @transform_3, window_bounds = array<i64: 1, 128>}, {transform_indices = @transform_4, window_bounds = array<i64: 64, 128>}]} {
    %c0_i32 = arith.constant 0 : i32
    %0 = arith.cmpi eq, %arg2, %c0_i32 : i32
    %1 = arith.extui %0 : i1 to i32
    %c0_i32_0 = arith.constant 0 : i32
    %2 = arith.cmpi ne, %1, %c0_i32_0 : i32
    scf.if %2 {
      %cst_9 = arith.constant 0.000000e+00 : f32
      %12 = vector.broadcast %cst_9 : f32 to vector<64x128xf32>
      %c0_10 = arith.constant 0 : index
      %c0_11 = arith.constant 0 : index
      %13 = vector.load %arg8[%c0_10, %c0_11] : memref<64x128xf32, #tpu.memory_space<vmem>>, vector<64x128xf32>
      tpu.vector_store %arg8[%c0_10, %c0_11], %12 {strides = array<i32>} : memref<64x128xf32, #tpu.memory_space<vmem>>, vector<64x128xf32>,
    } else {
    }
    %c0 = arith.constant 0 : index
    %c0_1 = arith.constant 0 : index
    %3 = vector.load %arg8[%c0, %c0_1] : memref<64x128xf32, #tpu.memory_space<vmem>>, vector<64x128xf32>
    %c0_2 = arith.constant 0 : index
    %c0_3 = arith.constant 0 : index
    %4 = vector.load %arg3[%c0_2, %c0_3] : memref<64x128xbf16, #tpu.memory_space<vmem>>, vector<64x128xbf16>
    %c0_4 = arith.constant 0 : index
    %c0_5 = arith.constant 0 : index
    %5 = vector.load %arg4[%c0_4, %c0_5] : memref<128x128xbf16, #tpu.memory_space<vmem>>, vector<128x128xbf16>
    %cst = arith.constant dense<0.000000e+00> : vector<64x128xf32>
    %6 = tpu.matmul %4, %5, %cst {dimension_numbers = #tpu.dot_dimension_numbers<[1], [0], [0], [1], [0, 0, 1, 1], [], []>} : vector<64x128xbf16>, vector<128x128xbf16>, vector<64x128xf32> -> vector<64x128xf32>
    %7 = arith.addf %3, %6 : vector<64x128xf32>
    %c0_6 = arith.constant 0 : index
    %c0_7 = arith.constant 0 : index
    %8 = vector.load %arg8[%c0_6, %c0_7] : memref<64x128xf32, #tpu.memory_space<vmem>>, vector<64x128xf32>
    tpu.vector_store %arg8[%c0_6, %c0_7], %7 {strides = array<i32>} : memref<64x128xf32, #tpu.memory_space<vmem>>, vector<64x128xf32>,
    %c2_i32 = arith.constant 2 : i32
    %9 = arith.cmpi eq, %arg2, %c2_i32 : i32
    %10 = arith.extui %9 : i1 to i32
    %c0_i32_8 = arith.constant 0 : i32
    %11 = arith.cmpi ne, %10, %c0_i32_8 : i32
    scf.if %11 {
      %c0_9 = arith.constant 0 : index
      %c0_10 = arith.constant 0 : index
      %12 = vector.load %arg8[%c0_9, %c0_10] : memref<64x128xf32, #tpu.memory_space<vmem>>, vector<64x128xf32>
      %c0_11 = arith.constant 0 : index
      %c0_12 = arith.constant 0 : index
      %13 = vector.load %arg5[%c0_11, %c0_12] : memref<1x128xf32, #tpu.memory_space<vmem>>, vector<1x128xf32>
      %14 = vector.broadcast %13 : vector<1x128xf32> to vector<64x128xf32>
      %15 = arith.mulf %12, %14 : vector<64x128xf32>
      %c0_13 = arith.constant 0 : index
      %c0_14 = arith.constant 0 : index
      %16 = vector.load %arg6[%c0_13, %c0_14] : memref<1x128xf32, #tpu.memory_space<vmem>>, vector<1x128xf32>
      %17 = vector.broadcast %16 : vector<1x128xf32> to vector<64x128xf32>
      %18 = arith.addf %15, %17 : vector<64x128xf32>
      %19 = arith.negf %18 : vector<64x128xf32>
      %20 = math.exp %19 : vector<64x128xf32>
      %cst_15 = arith.constant 1.000000e+00 : f32
      %21 = vector.broadcast %cst_15 : f32 to vector<64x128xf32>
      %22 = arith.addf %21, %20 : vector<64x128xf32>
      %23 = arith.divf %21, %22 : vector<64x128xf32>
      %24 = arith.mulf %18, %23 : vector<64x128xf32>
      %25 = arith.truncf %24 : vector<64x128xf32> to vector<64x128xbf16>
      %c0_16 = arith.constant 0 : index
      %c0_17 = arith.constant 0 : index
      %26 = vector.load %arg7[%c0_16, %c0_17] : memref<64x128xbf16, #tpu.memory_space<vmem>>, vector<64x128xbf16>
      tpu.vector_store %arg7[%c0_16, %c0_17], %25 {strides = array<i32>} : memref<64x128xbf16, #tpu.memory_space<vmem>>, vector<64x128xbf16>,
    } else {
    }
    return
  }
  func.func @transform_0(%arg0: i32, %arg1: i32, %arg2: i32) -> (i32, i32) {
    %c0_i32 = arith.constant 0 : i32
    return %arg0, %arg2 : i32, i32
  }
  func.func @transform_1(%arg0: i32, %arg1: i32, %arg2: i32) -> (i32, i32) {
    %c0_i32 = arith.constant 0 : i32
    return %arg2, %arg1 : i32, i32
  }
  func.func @transform_2(%arg0: i32, %arg1: i32, %arg2: i32) -> (i32, i32) {
    %c0_i32 = arith.constant 0 : i32
    %c0_i32_0 = arith.constant 0 : i32
    return %c0_i32, %arg1 : i32, i32
  }
  func.func @transform_3(%arg0: i32, %arg1: i32, %arg2: i32) -> (i32, i32) {
    %c0_i32 = arith.constant 0 : i32
    %c0_i32_0 = arith.constant 0 : i32
    return %c0_i32, %arg1 : i32, i32
  }
  func.func @transform_4(%arg0: i32, %arg1: i32, %arg2: i32) -> (i32, i32) {
    %c0_i32 = arith.constant 0 : i32
    return %arg0, %arg1 : i32, i32
  }
}

module attributes {stable_mosaic.version = 11 : i64} {
  func.func @_gemm_bn_act_kernel(%arg0: i32, %arg1: i32, %arg2: i32, %arg3: memref<64x128xbf16, #tpu.memory_space<vmem>>, %arg4: memref<128x128xbf16, #tpu.memory_space<vmem>>, %arg5: memref<1x128xf32, #tpu.memory_space<vmem>>, %arg6: memref<1x128xf32, #tpu.memory_space<vmem>>, %arg7: memref<64x128xbf16, #tpu.memory_space<vmem>>, %arg8: memref<64x128xbf16, #tpu.memory_space<vmem>>, %arg9: memref<64x128xf32, #tpu.memory_space<vmem>>) attributes {dimension_semantics = [#tpu.dimension_semantics<parallel>, #tpu.dimension_semantics<parallel>, #tpu.dimension_semantics<arbitrary>], iteration_bounds = array<i64: 2, 1, 3>, scalar_prefetch = 0 : i64, scratch_operands = 1 : i64, tpu.core_type = #tpu.core_type<tc>, window_params = [{transform_indices = @transform_0, window_bounds = array<i64: 64, 128>}, {transform_indices = @transform_1, window_bounds = array<i64: 128, 128>}, {transform_indices = @transform_2, window_bounds = array<i64: 1, 128>}, {transform_indices = @transform_3, window_bounds = array<i64: 1, 128>}, {transform_indices = @transform_4, window_bounds = array<i64: 64, 128>}, {transform_indices = @transform_5, window_bounds = array<i64: 64, 128>}]} {
    %c0_i32 = arith.constant 0 : i32
    %0 = arith.cmpi eq, %arg2, %c0_i32 : i32
    %1 = arith.extui %0 : i1 to i32
    %c0_i32_0 = arith.constant 0 : i32
    %2 = arith.cmpi ne, %1, %c0_i32_0 : i32
    scf.if %2 {
      %cst_9 = arith.constant 0.000000e+00 : f32
      %12 = vector.broadcast %cst_9 : f32 to vector<64x128xf32>
      %c0_10 = arith.constant 0 : index
      %c0_11 = arith.constant 0 : index
      %13 = vector.load %arg9[%c0_10, %c0_11] : memref<64x128xf32, #tpu.memory_space<vmem>>, vector<64x128xf32>
      tpu.vector_store %arg9[%c0_10, %c0_11], %12 {strides = array<i32>} : memref<64x128xf32, #tpu.memory_space<vmem>>, vector<64x128xf32>,
    } else {
    }
    %c0 = arith.constant 0 : index
    %c0_1 = arith.constant 0 : index
    %3 = vector.load %arg9[%c0, %c0_1] : memref<64x128xf32, #tpu.memory_space<vmem>>, vector<64x128xf32>
    %c0_2 = arith.constant 0 : index
    %c0_3 = arith.constant 0 : index
    %4 = vector.load %arg3[%c0_2, %c0_3] : memref<64x128xbf16, #tpu.memory_space<vmem>>, vector<64x128xbf16>
    %c0_4 = arith.constant 0 : index
    %c0_5 = arith.constant 0 : index
    %5 = vector.load %arg4[%c0_4, %c0_5] : memref<128x128xbf16, #tpu.memory_space<vmem>>, vector<128x128xbf16>
    %cst = arith.constant dense<0.000000e+00> : vector<64x128xf32>
    %6 = tpu.matmul %4, %5, %cst {dimension_numbers = #tpu.dot_dimension_numbers<[1], [0], [0], [1], [0, 0, 1, 1], [], []>} : vector<64x128xbf16>, vector<128x128xbf16>, vector<64x128xf32> -> vector<64x128xf32>
    %7 = arith.addf %3, %6 : vector<64x128xf32>
    %c0_6 = arith.constant 0 : index
    %c0_7 = arith.constant 0 : index
    %8 = vector.load %arg9[%c0_6, %c0_7] : memref<64x128xf32, #tpu.memory_space<vmem>>, vector<64x128xf32>
    tpu.vector_store %arg9[%c0_6, %c0_7], %7 {strides = array<i32>} : memref<64x128xf32, #tpu.memory_space<vmem>>, vector<64x128xf32>,
    %c2_i32 = arith.constant 2 : i32
    %9 = arith.cmpi eq, %arg2, %c2_i32 : i32
    %10 = arith.extui %9 : i1 to i32
    %c0_i32_8 = arith.constant 0 : i32
    %11 = arith.cmpi ne, %10, %c0_i32_8 : i32
    scf.if %11 {
      %c0_9 = arith.constant 0 : index
      %c0_10 = arith.constant 0 : index
      %12 = vector.load %arg9[%c0_9, %c0_10] : memref<64x128xf32, #tpu.memory_space<vmem>>, vector<64x128xf32>
      %c0_11 = arith.constant 0 : index
      %c0_12 = arith.constant 0 : index
      %13 = vector.load %arg5[%c0_11, %c0_12] : memref<1x128xf32, #tpu.memory_space<vmem>>, vector<1x128xf32>
      %14 = vector.broadcast %13 : vector<1x128xf32> to vector<64x128xf32>
      %15 = arith.mulf %12, %14 : vector<64x128xf32>
      %c0_13 = arith.constant 0 : index
      %c0_14 = arith.constant 0 : index
      %16 = vector.load %arg6[%c0_13, %c0_14] : memref<1x128xf32, #tpu.memory_space<vmem>>, vector<1x128xf32>
      %17 = vector.broadcast %16 : vector<1x128xf32> to vector<64x128xf32>
      %18 = arith.addf %15, %17 : vector<64x128xf32>
      %19 = arith.negf %18 : vector<64x128xf32>
      %20 = math.exp %19 : vector<64x128xf32>
      %cst_15 = arith.constant 1.000000e+00 : f32
      %21 = vector.broadcast %cst_15 : f32 to vector<64x128xf32>
      %22 = arith.addf %21, %20 : vector<64x128xf32>
      %23 = arith.divf %21, %22 : vector<64x128xf32>
      %24 = arith.mulf %18, %23 : vector<64x128xf32>
      %c0_16 = arith.constant 0 : index
      %c0_17 = arith.constant 0 : index
      %25 = vector.load %arg7[%c0_16, %c0_17] : memref<64x128xbf16, #tpu.memory_space<vmem>>, vector<64x128xbf16>
      %26 = arith.extf %25 : vector<64x128xbf16> to vector<64x128xf32>
      %27 = arith.addf %24, %26 : vector<64x128xf32>
      %28 = arith.truncf %27 : vector<64x128xf32> to vector<64x128xbf16>
      %c0_18 = arith.constant 0 : index
      %c0_19 = arith.constant 0 : index
      %29 = vector.load %arg8[%c0_18, %c0_19] : memref<64x128xbf16, #tpu.memory_space<vmem>>, vector<64x128xbf16>
      tpu.vector_store %arg8[%c0_18, %c0_19], %28 {strides = array<i32>} : memref<64x128xbf16, #tpu.memory_space<vmem>>, vector<64x128xbf16>,
    } else {
    }
    return
  }
  func.func @transform_0(%arg0: i32, %arg1: i32, %arg2: i32) -> (i32, i32) {
    %c0_i32 = arith.constant 0 : i32
    return %arg0, %arg2 : i32, i32
  }
  func.func @transform_1(%arg0: i32, %arg1: i32, %arg2: i32) -> (i32, i32) {
    %c0_i32 = arith.constant 0 : i32
    return %arg2, %arg1 : i32, i32
  }
  func.func @transform_2(%arg0: i32, %arg1: i32, %arg2: i32) -> (i32, i32) {
    %c0_i32 = arith.constant 0 : i32
    %c0_i32_0 = arith.constant 0 : i32
    return %c0_i32, %arg1 : i32, i32
  }
  func.func @transform_3(%arg0: i32, %arg1: i32, %arg2: i32) -> (i32, i32) {
    %c0_i32 = arith.constant 0 : i32
    %c0_i32_0 = arith.constant 0 : i32
    return %c0_i32, %arg1 : i32, i32
  }
  func.func @transform_4(%arg0: i32, %arg1: i32, %arg2: i32) -> (i32, i32) {
    %c0_i32 = arith.constant 0 : i32
    return %arg0, %arg1 : i32, i32
  }
  func.func @transform_5(%arg0: i32, %arg1: i32, %arg2: i32) -> (i32, i32) {
    %c0_i32 = arith.constant 0 : i32
    return %arg0, %arg1 : i32, i32
  }
}

module attributes {stable_mosaic.version = 11 : i64} {
  func.func @_gemm_bn_act_k1_kernel(%arg0: i32, %arg1: i32, %arg2: memref<16x128xbf16, #tpu.memory_space<vmem>>, %arg3: memref<128x128xbf16, #tpu.memory_space<vmem>>, %arg4: memref<1x128xf32, #tpu.memory_space<vmem>>, %arg5: memref<1x128xf32, #tpu.memory_space<vmem>>, %arg6: memref<16x128xbf16, #tpu.memory_space<vmem>>) attributes {dimension_semantics = [#tpu.dimension_semantics<parallel>, #tpu.dimension_semantics<parallel>], iteration_bounds = array<i64: 2, 1>, scalar_prefetch = 0 : i64, scratch_operands = 0 : i64, tpu.core_type = #tpu.core_type<tc>, window_params = [{transform_indices = @transform_0, window_bounds = array<i64: 16, 128>}, {transform_indices = @transform_1, window_bounds = array<i64: 128, 128>}, {transform_indices = @transform_2, window_bounds = array<i64: 1, 128>}, {transform_indices = @transform_3, window_bounds = array<i64: 1, 128>}, {transform_indices = @transform_4, window_bounds = array<i64: 16, 128>}]} {
    %c0 = arith.constant 0 : index
    %c0_0 = arith.constant 0 : index
    %0 = vector.load %arg2[%c0, %c0_0] : memref<16x128xbf16, #tpu.memory_space<vmem>>, vector<16x128xbf16>
    %c0_1 = arith.constant 0 : index
    %c0_2 = arith.constant 0 : index
    %1 = vector.load %arg3[%c0_1, %c0_2] : memref<128x128xbf16, #tpu.memory_space<vmem>>, vector<128x128xbf16>
    %cst = arith.constant dense<0.000000e+00> : vector<16x128xf32>
    %2 = tpu.matmul %0, %1, %cst {dimension_numbers = #tpu.dot_dimension_numbers<[1], [0], [0], [1], [0, 0, 1, 1], [], []>} : vector<16x128xbf16>, vector<128x128xbf16>, vector<16x128xf32> -> vector<16x128xf32>
    %c0_3 = arith.constant 0 : index
    %c0_4 = arith.constant 0 : index
    %3 = vector.load %arg4[%c0_3, %c0_4] : memref<1x128xf32, #tpu.memory_space<vmem>>, vector<1x128xf32>
    %4 = vector.broadcast %3 : vector<1x128xf32> to vector<16x128xf32>
    %5 = arith.mulf %2, %4 : vector<16x128xf32>
    %c0_5 = arith.constant 0 : index
    %c0_6 = arith.constant 0 : index
    %6 = vector.load %arg5[%c0_5, %c0_6] : memref<1x128xf32, #tpu.memory_space<vmem>>, vector<1x128xf32>
    %7 = vector.broadcast %6 : vector<1x128xf32> to vector<16x128xf32>
    %8 = arith.addf %5, %7 : vector<16x128xf32>
    %9 = arith.negf %8 : vector<16x128xf32>
    %10 = math.exp %9 : vector<16x128xf32>
    %cst_7 = arith.constant 1.000000e+00 : f32
    %11 = vector.broadcast %cst_7 : f32 to vector<16x128xf32>
    %12 = arith.addf %11, %10 : vector<16x128xf32>
    %13 = arith.divf %11, %12 : vector<16x128xf32>
    %14 = arith.mulf %8, %13 : vector<16x128xf32>
    %15 = arith.truncf %14 : vector<16x128xf32> to vector<16x128xbf16>
    %c0_8 = arith.constant 0 : index
    %c0_9 = arith.constant 0 : index
    %16 = vector.load %arg6[%c0_8, %c0_9] : memref<16x128xbf16, #tpu.memory_space<vmem>>, vector<16x128xbf16>
    tpu.vector_store %arg6[%c0_8, %c0_9], %15 {strides = array<i32>} : memref<16x128xbf16, #tpu.memory_space<vmem>>, vector<16x128xbf16>,
    return
  }
  func.func @transform_0(%arg0: i32, %arg1: i32) -> (i32, i32) {
    %c0_i32 = arith.constant 0 : i32
    %c0_i32_0 = arith.constant 0 : i32
    return %arg0, %c0_i32 : i32, i32
  }
  func.func @transform_1(%arg0: i32, %arg1: i32) -> (i32, i32) {
    %c0_i32 = arith.constant 0 : i32
    %c0_i32_0 = arith.constant 0 : i32
    return %c0_i32, %arg1 : i32, i32
  }
  func.func @transform_2(%arg0: i32, %arg1: i32) -> (i32, i32) {
    %c0_i32 = arith.constant 0 : i32
    %c0_i32_0 = arith.constant 0 : i32
    return %c0_i32, %arg1 : i32, i32
  }
  func.func @transform_3(%arg0: i32, %arg1: i32) -> (i32, i32) {
    %c0_i32 = arith.constant 0 : i32
    %c0_i32_0 = arith.constant 0 : i32
    return %c0_i32, %arg1 : i32, i32
  }
  func.func @transform_4(%arg0: i32, %arg1: i32) -> (i32, i32) {
    %c0_i32 = arith.constant 0 : i32
    return %arg0, %arg1 : i32, i32
  }
}

module attributes {stable_mosaic.version = 11 : i64} {
  func.func @_gemm_bn_act_kernel(%arg0: i32, %arg1: i32, %arg2: i32, %arg3: memref<16x128xbf16, #tpu.memory_space<vmem>>, %arg4: memref<128x128xbf16, #tpu.memory_space<vmem>>, %arg5: memref<1x128xf32, #tpu.memory_space<vmem>>, %arg6: memref<1x128xf32, #tpu.memory_space<vmem>>, %arg7: memref<16x128xbf16, #tpu.memory_space<vmem>>, %arg8: memref<16x128xf32, #tpu.memory_space<vmem>>) attributes {dimension_semantics = [#tpu.dimension_semantics<parallel>, #tpu.dimension_semantics<parallel>, #tpu.dimension_semantics<arbitrary>], iteration_bounds = array<i64: 2, 1, 5>, scalar_prefetch = 0 : i64, scratch_operands = 1 : i64, tpu.core_type = #tpu.core_type<tc>, window_params = [{transform_indices = @transform_0, window_bounds = array<i64: 16, 128>}, {transform_indices = @transform_1, window_bounds = array<i64: 128, 128>}, {transform_indices = @transform_2, window_bounds = array<i64: 1, 128>}, {transform_indices = @transform_3, window_bounds = array<i64: 1, 128>}, {transform_indices = @transform_4, window_bounds = array<i64: 16, 128>}]} {
    %c0_i32 = arith.constant 0 : i32
    %0 = arith.cmpi eq, %arg2, %c0_i32 : i32
    %1 = arith.extui %0 : i1 to i32
    %c0_i32_0 = arith.constant 0 : i32
    %2 = arith.cmpi ne, %1, %c0_i32_0 : i32
    scf.if %2 {
      %cst_9 = arith.constant 0.000000e+00 : f32
      %12 = vector.broadcast %cst_9 : f32 to vector<16x128xf32>
      %c0_10 = arith.constant 0 : index
      %c0_11 = arith.constant 0 : index
      %13 = vector.load %arg8[%c0_10, %c0_11] : memref<16x128xf32, #tpu.memory_space<vmem>>, vector<16x128xf32>
      tpu.vector_store %arg8[%c0_10, %c0_11], %12 {strides = array<i32>} : memref<16x128xf32, #tpu.memory_space<vmem>>, vector<16x128xf32>,
    } else {
    }
    %c0 = arith.constant 0 : index
    %c0_1 = arith.constant 0 : index
    %3 = vector.load %arg8[%c0, %c0_1] : memref<16x128xf32, #tpu.memory_space<vmem>>, vector<16x128xf32>
    %c0_2 = arith.constant 0 : index
    %c0_3 = arith.constant 0 : index
    %4 = vector.load %arg3[%c0_2, %c0_3] : memref<16x128xbf16, #tpu.memory_space<vmem>>, vector<16x128xbf16>
    %c0_4 = arith.constant 0 : index
    %c0_5 = arith.constant 0 : index
    %5 = vector.load %arg4[%c0_4, %c0_5] : memref<128x128xbf16, #tpu.memory_space<vmem>>, vector<128x128xbf16>
    %cst = arith.constant dense<0.000000e+00> : vector<16x128xf32>
    %6 = tpu.matmul %4, %5, %cst {dimension_numbers = #tpu.dot_dimension_numbers<[1], [0], [0], [1], [0, 0, 1, 1], [], []>} : vector<16x128xbf16>, vector<128x128xbf16>, vector<16x128xf32> -> vector<16x128xf32>
    %7 = arith.addf %3, %6 : vector<16x128xf32>
    %c0_6 = arith.constant 0 : index
    %c0_7 = arith.constant 0 : index
    %8 = vector.load %arg8[%c0_6, %c0_7] : memref<16x128xf32, #tpu.memory_space<vmem>>, vector<16x128xf32>
    tpu.vector_store %arg8[%c0_6, %c0_7], %7 {strides = array<i32>} : memref<16x128xf32, #tpu.memory_space<vmem>>, vector<16x128xf32>,
    %c4_i32 = arith.constant 4 : i32
    %9 = arith.cmpi eq, %arg2, %c4_i32 : i32
    %10 = arith.extui %9 : i1 to i32
    %c0_i32_8 = arith.constant 0 : i32
    %11 = arith.cmpi ne, %10, %c0_i32_8 : i32
    scf.if %11 {
      %c0_9 = arith.constant 0 : index
      %c0_10 = arith.constant 0 : index
      %12 = vector.load %arg8[%c0_9, %c0_10] : memref<16x128xf32, #tpu.memory_space<vmem>>, vector<16x128xf32>
      %c0_11 = arith.constant 0 : index
      %c0_12 = arith.constant 0 : index
      %13 = vector.load %arg5[%c0_11, %c0_12] : memref<1x128xf32, #tpu.memory_space<vmem>>, vector<1x128xf32>
      %14 = vector.broadcast %13 : vector<1x128xf32> to vector<16x128xf32>
      %15 = arith.mulf %12, %14 : vector<16x128xf32>
      %c0_13 = arith.constant 0 : index
      %c0_14 = arith.constant 0 : index
      %16 = vector.load %arg6[%c0_13, %c0_14] : memref<1x128xf32, #tpu.memory_space<vmem>>, vector<1x128xf32>
      %17 = vector.broadcast %16 : vector<1x128xf32> to vector<16x128xf32>
      %18 = arith.addf %15, %17 : vector<16x128xf32>
      %19 = arith.negf %18 : vector<16x128xf32>
      %20 = math.exp %19 : vector<16x128xf32>
      %cst_15 = arith.constant 1.000000e+00 : f32
      %21 = vector.broadcast %cst_15 : f32 to vector<16x128xf32>
      %22 = arith.addf %21, %20 : vector<16x128xf32>
      %23 = arith.divf %21, %22 : vector<16x128xf32>
      %24 = arith.mulf %18, %23 : vector<16x128xf32>
      %25 = arith.truncf %24 : vector<16x128xf32> to vector<16x128xbf16>
      %c0_16 = arith.constant 0 : index
      %c0_17 = arith.constant 0 : index
      %26 = vector.load %arg7[%c0_16, %c0_17] : memref<16x128xbf16, #tpu.memory_space<vmem>>, vector<16x128xbf16>
      tpu.vector_store %arg7[%c0_16, %c0_17], %25 {strides = array<i32>} : memref<16x128xbf16, #tpu.memory_space<vmem>>, vector<16x128xbf16>,
    } else {
    }
    return
  }
  func.func @transform_0(%arg0: i32, %arg1: i32, %arg2: i32) -> (i32, i32) {
    %c0_i32 = arith.constant 0 : i32
    return %arg0, %arg2 : i32, i32
  }
  func.func @transform_1(%arg0: i32, %arg1: i32, %arg2: i32) -> (i32, i32) {
    %c0_i32 = arith.constant 0 : i32
    return %arg2, %arg1 : i32, i32
  }
  func.func @transform_2(%arg0: i32, %arg1: i32, %arg2: i32) -> (i32, i32) {
    %c0_i32 = arith.constant 0 : i32
    %c0_i32_0 = arith.constant 0 : i32
    return %c0_i32, %arg1 : i32, i32
  }
  func.func @transform_3(%arg0: i32, %arg1: i32, %arg2: i32) -> (i32, i32) {
    %c0_i32 = arith.constant 0 : i32
    %c0_i32_0 = arith.constant 0 : i32
    return %c0_i32, %arg1 : i32, i32
  }
  func.func @transform_4(%arg0: i32, %arg1: i32, %arg2: i32) -> (i32, i32) {
    %c0_i32 = arith.constant 0 : i32
    return %arg0, %arg1 : i32, i32
  }
}

module attributes {stable_mosaic.version = 11 : i64} {
  func.func @_gemm_bn_act_kernel(%arg0: i32, %arg1: i32, %arg2: i32, %arg3: memref<16x128xbf16, #tpu.memory_space<vmem>>, %arg4: memref<128x128xbf16, #tpu.memory_space<vmem>>, %arg5: memref<1x128xf32, #tpu.memory_space<vmem>>, %arg6: memref<1x128xf32, #tpu.memory_space<vmem>>, %arg7: memref<16x128xbf16, #tpu.memory_space<vmem>>, %arg8: memref<16x128xbf16, #tpu.memory_space<vmem>>, %arg9: memref<16x128xf32, #tpu.memory_space<vmem>>) attributes {dimension_semantics = [#tpu.dimension_semantics<parallel>, #tpu.dimension_semantics<parallel>, #tpu.dimension_semantics<arbitrary>], iteration_bounds = array<i64: 2, 1, 5>, scalar_prefetch = 0 : i64, scratch_operands = 1 : i64, tpu.core_type = #tpu.core_type<tc>, window_params = [{transform_indices = @transform_0, window_bounds = array<i64: 16, 128>}, {transform_indices = @transform_1, window_bounds = array<i64: 128, 128>}, {transform_indices = @transform_2, window_bounds = array<i64: 1, 128>}, {transform_indices = @transform_3, window_bounds = array<i64: 1, 128>}, {transform_indices = @transform_4, window_bounds = array<i64: 16, 128>}, {transform_indices = @transform_5, window_bounds = array<i64: 16, 128>}]} {
    %c0_i32 = arith.constant 0 : i32
    %0 = arith.cmpi eq, %arg2, %c0_i32 : i32
    %1 = arith.extui %0 : i1 to i32
    %c0_i32_0 = arith.constant 0 : i32
    %2 = arith.cmpi ne, %1, %c0_i32_0 : i32
    scf.if %2 {
      %cst_9 = arith.constant 0.000000e+00 : f32
      %12 = vector.broadcast %cst_9 : f32 to vector<16x128xf32>
      %c0_10 = arith.constant 0 : index
      %c0_11 = arith.constant 0 : index
      %13 = vector.load %arg9[%c0_10, %c0_11] : memref<16x128xf32, #tpu.memory_space<vmem>>, vector<16x128xf32>
      tpu.vector_store %arg9[%c0_10, %c0_11], %12 {strides = array<i32>} : memref<16x128xf32, #tpu.memory_space<vmem>>, vector<16x128xf32>,
    } else {
    }
    %c0 = arith.constant 0 : index
    %c0_1 = arith.constant 0 : index
    %3 = vector.load %arg9[%c0, %c0_1] : memref<16x128xf32, #tpu.memory_space<vmem>>, vector<16x128xf32>
    %c0_2 = arith.constant 0 : index
    %c0_3 = arith.constant 0 : index
    %4 = vector.load %arg3[%c0_2, %c0_3] : memref<16x128xbf16, #tpu.memory_space<vmem>>, vector<16x128xbf16>
    %c0_4 = arith.constant 0 : index
    %c0_5 = arith.constant 0 : index
    %5 = vector.load %arg4[%c0_4, %c0_5] : memref<128x128xbf16, #tpu.memory_space<vmem>>, vector<128x128xbf16>
    %cst = arith.constant dense<0.000000e+00> : vector<16x128xf32>
    %6 = tpu.matmul %4, %5, %cst {dimension_numbers = #tpu.dot_dimension_numbers<[1], [0], [0], [1], [0, 0, 1, 1], [], []>} : vector<16x128xbf16>, vector<128x128xbf16>, vector<16x128xf32> -> vector<16x128xf32>
    %7 = arith.addf %3, %6 : vector<16x128xf32>
    %c0_6 = arith.constant 0 : index
    %c0_7 = arith.constant 0 : index
    %8 = vector.load %arg9[%c0_6, %c0_7] : memref<16x128xf32, #tpu.memory_space<vmem>>, vector<16x128xf32>
    tpu.vector_store %arg9[%c0_6, %c0_7], %7 {strides = array<i32>} : memref<16x128xf32, #tpu.memory_space<vmem>>, vector<16x128xf32>,
    %c4_i32 = arith.constant 4 : i32
    %9 = arith.cmpi eq, %arg2, %c4_i32 : i32
    %10 = arith.extui %9 : i1 to i32
    %c0_i32_8 = arith.constant 0 : i32
    %11 = arith.cmpi ne, %10, %c0_i32_8 : i32
    scf.if %11 {
      %c0_9 = arith.constant 0 : index
      %c0_10 = arith.constant 0 : index
      %12 = vector.load %arg9[%c0_9, %c0_10] : memref<16x128xf32, #tpu.memory_space<vmem>>, vector<16x128xf32>
      %c0_11 = arith.constant 0 : index
      %c0_12 = arith.constant 0 : index
      %13 = vector.load %arg5[%c0_11, %c0_12] : memref<1x128xf32, #tpu.memory_space<vmem>>, vector<1x128xf32>
      %14 = vector.broadcast %13 : vector<1x128xf32> to vector<16x128xf32>
      %15 = arith.mulf %12, %14 : vector<16x128xf32>
      %c0_13 = arith.constant 0 : index
      %c0_14 = arith.constant 0 : index
      %16 = vector.load %arg6[%c0_13, %c0_14] : memref<1x128xf32, #tpu.memory_space<vmem>>, vector<1x128xf32>
      %17 = vector.broadcast %16 : vector<1x128xf32> to vector<16x128xf32>
      %18 = arith.addf %15, %17 : vector<16x128xf32>
      %19 = arith.negf %18 : vector<16x128xf32>
      %20 = math.exp %19 : vector<16x128xf32>
      %cst_15 = arith.constant 1.000000e+00 : f32
      %21 = vector.broadcast %cst_15 : f32 to vector<16x128xf32>
      %22 = arith.addf %21, %20 : vector<16x128xf32>
      %23 = arith.divf %21, %22 : vector<16x128xf32>
      %24 = arith.mulf %18, %23 : vector<16x128xf32>
      %c0_16 = arith.constant 0 : index
      %c0_17 = arith.constant 0 : index
      %25 = vector.load %arg7[%c0_16, %c0_17] : memref<16x128xbf16, #tpu.memory_space<vmem>>, vector<16x128xbf16>
      %26 = arith.extf %25 : vector<16x128xbf16> to vector<16x128xf32>
      %27 = arith.addf %24, %26 : vector<16x128xf32>
      %28 = arith.truncf %27 : vector<16x128xf32> to vector<16x128xbf16>
      %c0_18 = arith.constant 0 : index
      %c0_19 = arith.constant 0 : index
      %29 = vector.load %arg8[%c0_18, %c0_19] : memref<16x128xbf16, #tpu.memory_space<vmem>>, vector<16x128xbf16>
      tpu.vector_store %arg8[%c0_18, %c0_19], %28 {strides = array<i32>} : memref<16x128xbf16, #tpu.memory_space<vmem>>, vector<16x128xbf16>,
    } else {
    }
    return
  }
  func.func @transform_0(%arg0: i32, %arg1: i32, %arg2: i32) -> (i32, i32) {
    %c0_i32 = arith.constant 0 : i32
    return %arg0, %arg2 : i32, i32
  }
  func.func @transform_1(%arg0: i32, %arg1: i32, %arg2: i32) -> (i32, i32) {
    %c0_i32 = arith.constant 0 : i32
    return %arg2, %arg1 : i32, i32
  }
  func.func @transform_2(%arg0: i32, %arg1: i32, %arg2: i32) -> (i32, i32) {
    %c0_i32 = arith.constant 0 : i32
    %c0_i32_0 = arith.constant 0 : i32
    return %c0_i32, %arg1 : i32, i32
  }
  func.func @transform_3(%arg0: i32, %arg1: i32, %arg2: i32) -> (i32, i32) {
    %c0_i32 = arith.constant 0 : i32
    %c0_i32_0 = arith.constant 0 : i32
    return %c0_i32, %arg1 : i32, i32
  }
  func.func @transform_4(%arg0: i32, %arg1: i32, %arg2: i32) -> (i32, i32) {
    %c0_i32 = arith.constant 0 : i32
    return %arg0, %arg1 : i32, i32
  }
  func.func @transform_5(%arg0: i32, %arg1: i32, %arg2: i32) -> (i32, i32) {
    %c0_i32 = arith.constant 0 : i32
    return %arg0, %arg1 : i32, i32
  }
}

module attributes {stable_mosaic.version = 11 : i64} {
  func.func @_gemm_bn_act_kernel(%arg0: i32, %arg1: i32, %arg2: i32, %arg3: memref<8x128xbf16, #tpu.memory_space<vmem>>, %arg4: memref<128x256xbf16, #tpu.memory_space<vmem>>, %arg5: memref<1x256xf32, #tpu.memory_space<vmem>>, %arg6: memref<1x256xf32, #tpu.memory_space<vmem>>, %arg7: memref<8x256xbf16, #tpu.memory_space<vmem>>, %arg8: memref<8x256xf32, #tpu.memory_space<vmem>>) attributes {dimension_semantics = [#tpu.dimension_semantics<parallel>, #tpu.dimension_semantics<parallel>, #tpu.dimension_semantics<arbitrary>], iteration_bounds = array<i64: 1, 1, 9>, scalar_prefetch = 0 : i64, scratch_operands = 1 : i64, tpu.core_type = #tpu.core_type<tc>, window_params = [{transform_indices = @transform_0, window_bounds = array<i64: 8, 128>}, {transform_indices = @transform_1, window_bounds = array<i64: 128, 256>}, {transform_indices = @transform_2, window_bounds = array<i64: 1, 256>}, {transform_indices = @transform_3, window_bounds = array<i64: 1, 256>}, {transform_indices = @transform_4, window_bounds = array<i64: 8, 256>}]} {
    %c0_i32 = arith.constant 0 : i32
    %0 = arith.cmpi eq, %arg2, %c0_i32 : i32
    %1 = arith.extui %0 : i1 to i32
    %c0_i32_0 = arith.constant 0 : i32
    %2 = arith.cmpi ne, %1, %c0_i32_0 : i32
    scf.if %2 {
      %cst_9 = arith.constant 0.000000e+00 : f32
      %12 = vector.broadcast %cst_9 : f32 to vector<8x256xf32>
      %c0_10 = arith.constant 0 : index
      %c0_11 = arith.constant 0 : index
      %13 = vector.load %arg8[%c0_10, %c0_11] : memref<8x256xf32, #tpu.memory_space<vmem>>, vector<8x256xf32>
      tpu.vector_store %arg8[%c0_10, %c0_11], %12 {strides = array<i32>} : memref<8x256xf32, #tpu.memory_space<vmem>>, vector<8x256xf32>,
    } else {
    }
    %c0 = arith.constant 0 : index
    %c0_1 = arith.constant 0 : index
    %3 = vector.load %arg8[%c0, %c0_1] : memref<8x256xf32, #tpu.memory_space<vmem>>, vector<8x256xf32>
    %c0_2 = arith.constant 0 : index
    %c0_3 = arith.constant 0 : index
    %4 = vector.load %arg3[%c0_2, %c0_3] : memref<8x128xbf16, #tpu.memory_space<vmem>>, vector<8x128xbf16>
    %c0_4 = arith.constant 0 : index
    %c0_5 = arith.constant 0 : index
    %5 = vector.load %arg4[%c0_4, %c0_5] : memref<128x256xbf16, #tpu.memory_space<vmem>>, vector<128x256xbf16>
    %cst = arith.constant dense<0.000000e+00> : vector<8x256xf32>
    %6 = tpu.matmul %4, %5, %cst {dimension_numbers = #tpu.dot_dimension_numbers<[1], [0], [0], [1], [0, 0, 1, 1], [], []>} : vector<8x128xbf16>, vector<128x256xbf16>, vector<8x256xf32> -> vector<8x256xf32>
    %7 = arith.addf %3, %6 : vector<8x256xf32>
    %c0_6 = arith.constant 0 : index
    %c0_7 = arith.constant 0 : index
    %8 = vector.load %arg8[%c0_6, %c0_7] : memref<8x256xf32, #tpu.memory_space<vmem>>, vector<8x256xf32>
    tpu.vector_store %arg8[%c0_6, %c0_7], %7 {strides = array<i32>} : memref<8x256xf32, #tpu.memory_space<vmem>>, vector<8x256xf32>,
    %c8_i32 = arith.constant 8 : i32
    %9 = arith.cmpi eq, %arg2, %c8_i32 : i32
    %10 = arith.extui %9 : i1 to i32
    %c0_i32_8 = arith.constant 0 : i32
    %11 = arith.cmpi ne, %10, %c0_i32_8 : i32
    scf.if %11 {
      %c0_9 = arith.constant 0 : index
      %c0_10 = arith.constant 0 : index
      %12 = vector.load %arg8[%c0_9, %c0_10] : memref<8x256xf32, #tpu.memory_space<vmem>>, vector<8x256xf32>
      %c0_11 = arith.constant 0 : index
      %c0_12 = arith.constant 0 : index
      %13 = vector.load %arg5[%c0_11, %c0_12] : memref<1x256xf32, #tpu.memory_space<vmem>>, vector<1x256xf32>
      %14 = vector.broadcast %13 : vector<1x256xf32> to vector<8x256xf32>
      %15 = arith.mulf %12, %14 : vector<8x256xf32>
      %c0_13 = arith.constant 0 : index
      %c0_14 = arith.constant 0 : index
      %16 = vector.load %arg6[%c0_13, %c0_14] : memref<1x256xf32, #tpu.memory_space<vmem>>, vector<1x256xf32>
      %17 = vector.broadcast %16 : vector<1x256xf32> to vector<8x256xf32>
      %18 = arith.addf %15, %17 : vector<8x256xf32>
      %19 = arith.negf %18 : vector<8x256xf32>
      %20 = math.exp %19 : vector<8x256xf32>
      %cst_15 = arith.constant 1.000000e+00 : f32
      %21 = vector.broadcast %cst_15 : f32 to vector<8x256xf32>
      %22 = arith.addf %21, %20 : vector<8x256xf32>
      %23 = arith.divf %21, %22 : vector<8x256xf32>
      %24 = arith.mulf %18, %23 : vector<8x256xf32>
      %25 = arith.truncf %24 : vector<8x256xf32> to vector<8x256xbf16>
      %c0_16 = arith.constant 0 : index
      %c0_17 = arith.constant 0 : index
      %26 = vector.load %arg7[%c0_16, %c0_17] : memref<8x256xbf16, #tpu.memory_space<vmem>>, vector<8x256xbf16>
      tpu.vector_store %arg7[%c0_16, %c0_17], %25 {strides = array<i32>} : memref<8x256xbf16, #tpu.memory_space<vmem>>, vector<8x256xbf16>,
    } else {
    }
    return
  }
  func.func @transform_0(%arg0: i32, %arg1: i32, %arg2: i32) -> (i32, i32) {
    %c0_i32 = arith.constant 0 : i32
    return %arg0, %arg2 : i32, i32
  }
  func.func @transform_1(%arg0: i32, %arg1: i32, %arg2: i32) -> (i32, i32) {
    %c0_i32 = arith.constant 0 : i32
    return %arg2, %arg1 : i32, i32
  }
  func.func @transform_2(%arg0: i32, %arg1: i32, %arg2: i32) -> (i32, i32) {
    %c0_i32 = arith.constant 0 : i32
    %c0_i32_0 = arith.constant 0 : i32
    return %c0_i32, %arg1 : i32, i32
  }
  func.func @transform_3(%arg0: i32, %arg1: i32, %arg2: i32) -> (i32, i32) {
    %c0_i32 = arith.constant 0 : i32
    %c0_i32_0 = arith.constant 0 : i32
    return %c0_i32, %arg1 : i32, i32
  }
  func.func @transform_4(%arg0: i32, %arg1: i32, %arg2: i32) -> (i32, i32) {
    %c0_i32 = arith.constant 0 : i32
    return %arg0, %arg1 : i32, i32
  }
}

module attributes {stable_mosaic.version = 11 : i64} {
  func.func @_gemm_bn_act_k1_kernel(%arg0: i32, %arg1: i32, %arg2: memref<8x256xbf16, #tpu.memory_space<vmem>>, %arg3: memref<256x256xbf16, #tpu.memory_space<vmem>>, %arg4: memref<1x256xf32, #tpu.memory_space<vmem>>, %arg5: memref<1x256xf32, #tpu.memory_space<vmem>>, %arg6: memref<8x256xbf16, #tpu.memory_space<vmem>>) attributes {dimension_semantics = [#tpu.dimension_semantics<parallel>, #tpu.dimension_semantics<parallel>], iteration_bounds = array<i64: 1, 1>, scalar_prefetch = 0 : i64, scratch_operands = 0 : i64, tpu.core_type = #tpu.core_type<tc>, window_params = [{transform_indices = @transform_0, window_bounds = array<i64: 8, 256>}, {transform_indices = @transform_1, window_bounds = array<i64: 256, 256>}, {transform_indices = @transform_2, window_bounds = array<i64: 1, 256>}, {transform_indices = @transform_3, window_bounds = array<i64: 1, 256>}, {transform_indices = @transform_4, window_bounds = array<i64: 8, 256>}]} {
    %c0 = arith.constant 0 : index
    %c0_0 = arith.constant 0 : index
    %0 = vector.load %arg2[%c0, %c0_0] : memref<8x256xbf16, #tpu.memory_space<vmem>>, vector<8x256xbf16>
    %c0_1 = arith.constant 0 : index
    %c0_2 = arith.constant 0 : index
    %1 = vector.load %arg3[%c0_1, %c0_2] : memref<256x256xbf16, #tpu.memory_space<vmem>>, vector<256x256xbf16>
    %cst = arith.constant dense<0.000000e+00> : vector<8x256xf32>
    %2 = tpu.matmul %0, %1, %cst {dimension_numbers = #tpu.dot_dimension_numbers<[1], [0], [0], [1], [0, 0, 1, 1], [], []>} : vector<8x256xbf16>, vector<256x256xbf16>, vector<8x256xf32> -> vector<8x256xf32>
    %c0_3 = arith.constant 0 : index
    %c0_4 = arith.constant 0 : index
    %3 = vector.load %arg4[%c0_3, %c0_4] : memref<1x256xf32, #tpu.memory_space<vmem>>, vector<1x256xf32>
    %4 = vector.broadcast %3 : vector<1x256xf32> to vector<8x256xf32>
    %5 = arith.mulf %2, %4 : vector<8x256xf32>
    %c0_5 = arith.constant 0 : index
    %c0_6 = arith.constant 0 : index
    %6 = vector.load %arg5[%c0_5, %c0_6] : memref<1x256xf32, #tpu.memory_space<vmem>>, vector<1x256xf32>
    %7 = vector.broadcast %6 : vector<1x256xf32> to vector<8x256xf32>
    %8 = arith.addf %5, %7 : vector<8x256xf32>
    %9 = arith.negf %8 : vector<8x256xf32>
    %10 = math.exp %9 : vector<8x256xf32>
    %cst_7 = arith.constant 1.000000e+00 : f32
    %11 = vector.broadcast %cst_7 : f32 to vector<8x256xf32>
    %12 = arith.addf %11, %10 : vector<8x256xf32>
    %13 = arith.divf %11, %12 : vector<8x256xf32>
    %14 = arith.mulf %8, %13 : vector<8x256xf32>
    %15 = arith.truncf %14 : vector<8x256xf32> to vector<8x256xbf16>
    %c0_8 = arith.constant 0 : index
    %c0_9 = arith.constant 0 : index
    %16 = vector.load %arg6[%c0_8, %c0_9] : memref<8x256xbf16, #tpu.memory_space<vmem>>, vector<8x256xbf16>
    tpu.vector_store %arg6[%c0_8, %c0_9], %15 {strides = array<i32>} : memref<8x256xbf16, #tpu.memory_space<vmem>>, vector<8x256xbf16>,
    return
  }
  func.func @transform_0(%arg0: i32, %arg1: i32) -> (i32, i32) {
    %c0_i32 = arith.constant 0 : i32
    %c0_i32_0 = arith.constant 0 : i32
    return %arg0, %c0_i32 : i32, i32
  }
  func.func @transform_1(%arg0: i32, %arg1: i32) -> (i32, i32) {
    %c0_i32 = arith.constant 0 : i32
    %c0_i32_0 = arith.constant 0 : i32
    return %c0_i32, %arg1 : i32, i32
  }
  func.func @transform_2(%arg0: i32, %arg1: i32) -> (i32, i32) {
    %c0_i32 = arith.constant 0 : i32
    %c0_i32_0 = arith.constant 0 : i32
    return %c0_i32, %arg1 : i32, i32
  }
  func.func @transform_3(%arg0: i32, %arg1: i32) -> (i32, i32) {
    %c0_i32 = arith.constant 0 : i32
    %c0_i32_0 = arith.constant 0 : i32
    return %c0_i32, %arg1 : i32, i32
  }
  func.func @transform_4(%arg0: i32, %arg1: i32) -> (i32, i32) {
    %c0_i32 = arith.constant 0 : i32
    return %arg0, %arg1 : i32, i32
  }
}

module attributes {stable_mosaic.version = 11 : i64} {
  func.func @_gemm_bn_act_k1_kernel(%arg0: i32, %arg1: i32, %arg2: memref<8x128xbf16, #tpu.memory_space<vmem>>, %arg3: memref<128x128xbf16, #tpu.memory_space<vmem>>, %arg4: memref<1x128xf32, #tpu.memory_space<vmem>>, %arg5: memref<1x128xf32, #tpu.memory_space<vmem>>, %arg6: memref<8x128xbf16, #tpu.memory_space<vmem>>) attributes {dimension_semantics = [#tpu.dimension_semantics<parallel>, #tpu.dimension_semantics<parallel>], iteration_bounds = array<i64: 1, 1>, scalar_prefetch = 0 : i64, scratch_operands = 0 : i64, tpu.core_type = #tpu.core_type<tc>, window_params = [{transform_indices = @transform_0, window_bounds = array<i64: 8, 128>}, {transform_indices = @transform_1, window_bounds = array<i64: 128, 128>}, {transform_indices = @transform_2, window_bounds = array<i64: 1, 128>}, {transform_indices = @transform_3, window_bounds = array<i64: 1, 128>}, {transform_indices = @transform_4, window_bounds = array<i64: 8, 128>}]} {
    %c0 = arith.constant 0 : index
    %c0_0 = arith.constant 0 : index
    %0 = vector.load %arg2[%c0, %c0_0] : memref<8x128xbf16, #tpu.memory_space<vmem>>, vector<8x128xbf16>
    %c0_1 = arith.constant 0 : index
    %c0_2 = arith.constant 0 : index
    %1 = vector.load %arg3[%c0_1, %c0_2] : memref<128x128xbf16, #tpu.memory_space<vmem>>, vector<128x128xbf16>
    %cst = arith.constant dense<0.000000e+00> : vector<8x128xf32>
    %2 = tpu.matmul %0, %1, %cst {dimension_numbers = #tpu.dot_dimension_numbers<[1], [0], [0], [1], [0, 0, 1, 1], [], []>} : vector<8x128xbf16>, vector<128x128xbf16>, vector<8x128xf32> -> vector<8x128xf32>
    %c0_3 = arith.constant 0 : index
    %c0_4 = arith.constant 0 : index
    %3 = vector.load %arg4[%c0_3, %c0_4] : memref<1x128xf32, #tpu.memory_space<vmem>>, vector<1x128xf32>
    %4 = vector.broadcast %3 : vector<1x128xf32> to vector<8x128xf32>
    %5 = arith.mulf %2, %4 : vector<8x128xf32>
    %c0_5 = arith.constant 0 : index
    %c0_6 = arith.constant 0 : index
    %6 = vector.load %arg5[%c0_5, %c0_6] : memref<1x128xf32, #tpu.memory_space<vmem>>, vector<1x128xf32>
    %7 = vector.broadcast %6 : vector<1x128xf32> to vector<8x128xf32>
    %8 = arith.addf %5, %7 : vector<8x128xf32>
    %9 = arith.negf %8 : vector<8x128xf32>
    %10 = math.exp %9 : vector<8x128xf32>
    %cst_7 = arith.constant 1.000000e+00 : f32
    %11 = vector.broadcast %cst_7 : f32 to vector<8x128xf32>
    %12 = arith.addf %11, %10 : vector<8x128xf32>
    %13 = arith.divf %11, %12 : vector<8x128xf32>
    %14 = arith.mulf %8, %13 : vector<8x128xf32>
    %15 = arith.truncf %14 : vector<8x128xf32> to vector<8x128xbf16>
    %c0_8 = arith.constant 0 : index
    %c0_9 = arith.constant 0 : index
    %16 = vector.load %arg6[%c0_8, %c0_9] : memref<8x128xbf16, #tpu.memory_space<vmem>>, vector<8x128xbf16>
    tpu.vector_store %arg6[%c0_8, %c0_9], %15 {strides = array<i32>} : memref<8x128xbf16, #tpu.memory_space<vmem>>, vector<8x128xbf16>,
    return
  }
  func.func @transform_0(%arg0: i32, %arg1: i32) -> (i32, i32) {
    %c0_i32 = arith.constant 0 : i32
    %c0_i32_0 = arith.constant 0 : i32
    return %arg0, %c0_i32 : i32, i32
  }
  func.func @transform_1(%arg0: i32, %arg1: i32) -> (i32, i32) {
    %c0_i32 = arith.constant 0 : i32
    %c0_i32_0 = arith.constant 0 : i32
    return %c0_i32, %arg1 : i32, i32
  }
  func.func @transform_2(%arg0: i32, %arg1: i32) -> (i32, i32) {
    %c0_i32 = arith.constant 0 : i32
    %c0_i32_0 = arith.constant 0 : i32
    return %c0_i32, %arg1 : i32, i32
  }
  func.func @transform_3(%arg0: i32, %arg1: i32) -> (i32, i32) {
    %c0_i32 = arith.constant 0 : i32
    %c0_i32_0 = arith.constant 0 : i32
    return %c0_i32, %arg1 : i32, i32
  }
  func.func @transform_4(%arg0: i32, %arg1: i32) -> (i32, i32) {
    %c0_i32 = arith.constant 0 : i32
    return %arg0, %arg1 : i32, i32
  }
}

module attributes {stable_mosaic.version = 11 : i64} {
  func.func @_gemm_bn_act_k1_kernel(%arg0: i32, %arg1: i32, %arg2: memref<8x256xbf16, #tpu.memory_space<vmem>>, %arg3: memref<256x128xbf16, #tpu.memory_space<vmem>>, %arg4: memref<1x128xf32, #tpu.memory_space<vmem>>, %arg5: memref<1x128xf32, #tpu.memory_space<vmem>>, %arg6: memref<8x128xbf16, #tpu.memory_space<vmem>>) attributes {dimension_semantics = [#tpu.dimension_semantics<parallel>, #tpu.dimension_semantics<parallel>], iteration_bounds = array<i64: 1, 1>, scalar_prefetch = 0 : i64, scratch_operands = 0 : i64, tpu.core_type = #tpu.core_type<tc>, window_params = [{transform_indices = @transform_0, window_bounds = array<i64: 8, 256>}, {transform_indices = @transform_1, window_bounds = array<i64: 256, 128>}, {transform_indices = @transform_2, window_bounds = array<i64: 1, 128>}, {transform_indices = @transform_3, window_bounds = array<i64: 1, 128>}, {transform_indices = @transform_4, window_bounds = array<i64: 8, 128>}]} {
    %c0 = arith.constant 0 : index
    %c0_0 = arith.constant 0 : index
    %0 = vector.load %arg2[%c0, %c0_0] : memref<8x256xbf16, #tpu.memory_space<vmem>>, vector<8x256xbf16>
    %c0_1 = arith.constant 0 : index
    %c0_2 = arith.constant 0 : index
    %1 = vector.load %arg3[%c0_1, %c0_2] : memref<256x128xbf16, #tpu.memory_space<vmem>>, vector<256x128xbf16>
    %cst = arith.constant dense<0.000000e+00> : vector<8x128xf32>
    %2 = tpu.matmul %0, %1, %cst {dimension_numbers = #tpu.dot_dimension_numbers<[1], [0], [0], [1], [0, 0, 1, 1], [], []>} : vector<8x256xbf16>, vector<256x128xbf16>, vector<8x128xf32> -> vector<8x128xf32>
    %c0_3 = arith.constant 0 : index
    %c0_4 = arith.constant 0 : index
    %3 = vector.load %arg4[%c0_3, %c0_4] : memref<1x128xf32, #tpu.memory_space<vmem>>, vector<1x128xf32>
    %4 = vector.broadcast %3 : vector<1x128xf32> to vector<8x128xf32>
    %5 = arith.mulf %2, %4 : vector<8x128xf32>
    %c0_5 = arith.constant 0 : index
    %c0_6 = arith.constant 0 : index
    %6 = vector.load %arg5[%c0_5, %c0_6] : memref<1x128xf32, #tpu.memory_space<vmem>>, vector<1x128xf32>
    %7 = vector.broadcast %6 : vector<1x128xf32> to vector<8x128xf32>
    %8 = arith.addf %5, %7 : vector<8x128xf32>
    %9 = arith.negf %8 : vector<8x128xf32>
    %10 = math.exp %9 : vector<8x128xf32>
    %cst_7 = arith.constant 1.000000e+00 : f32
    %11 = vector.broadcast %cst_7 : f32 to vector<8x128xf32>
    %12 = arith.addf %11, %10 : vector<8x128xf32>
    %13 = arith.divf %11, %12 : vector<8x128xf32>
    %14 = arith.mulf %8, %13 : vector<8x128xf32>
    %15 = arith.truncf %14 : vector<8x128xf32> to vector<8x128xbf16>
    %c0_8 = arith.constant 0 : index
    %c0_9 = arith.constant 0 : index
    %16 = vector.load %arg6[%c0_8, %c0_9] : memref<8x128xbf16, #tpu.memory_space<vmem>>, vector<8x128xbf16>
    tpu.vector_store %arg6[%c0_8, %c0_9], %15 {strides = array<i32>} : memref<8x128xbf16, #tpu.memory_space<vmem>>, vector<8x128xbf16>,
    return
  }
  func.func @transform_0(%arg0: i32, %arg1: i32) -> (i32, i32) {
    %c0_i32 = arith.constant 0 : i32
    %c0_i32_0 = arith.constant 0 : i32
    return %arg0, %c0_i32 : i32, i32
  }
  func.func @transform_1(%arg0: i32, %arg1: i32) -> (i32, i32) {
    %c0_i32 = arith.constant 0 : i32
    %c0_i32_0 = arith.constant 0 : i32
    return %c0_i32, %arg1 : i32, i32
  }
  func.func @transform_2(%arg0: i32, %arg1: i32) -> (i32, i32) {
    %c0_i32 = arith.constant 0 : i32
    %c0_i32_0 = arith.constant 0 : i32
    return %c0_i32, %arg1 : i32, i32
  }
  func.func @transform_3(%arg0: i32, %arg1: i32) -> (i32, i32) {
    %c0_i32 = arith.constant 0 : i32
    %c0_i32_0 = arith.constant 0 : i32
    return %c0_i32, %arg1 : i32, i32
  }
  func.func @transform_4(%arg0: i32, %arg1: i32) -> (i32, i32) {
    %c0_i32 = arith.constant 0 : i32
    return %arg0, %arg1 : i32, i32
  }
}

module attributes {stable_mosaic.version = 11 : i64} {
  func.func @_gemm_bn_act_kernel(%arg0: i32, %arg1: i32, %arg2: i32, %arg3: memref<8x128xbf16, #tpu.memory_space<vmem>>, %arg4: memref<128x128xbf16, #tpu.memory_space<vmem>>, %arg5: memref<1x128xf32, #tpu.memory_space<vmem>>, %arg6: memref<1x128xf32, #tpu.memory_space<vmem>>, %arg7: memref<8x128xbf16, #tpu.memory_space<vmem>>, %arg8: memref<8x128xbf16, #tpu.memory_space<vmem>>, %arg9: memref<8x128xf32, #tpu.memory_space<vmem>>) attributes {dimension_semantics = [#tpu.dimension_semantics<parallel>, #tpu.dimension_semantics<parallel>, #tpu.dimension_semantics<arbitrary>], iteration_bounds = array<i64: 1, 1, 9>, scalar_prefetch = 0 : i64, scratch_operands = 1 : i64, tpu.core_type = #tpu.core_type<tc>, window_params = [{transform_indices = @transform_0, window_bounds = array<i64: 8, 128>}, {transform_indices = @transform_1, window_bounds = array<i64: 128, 128>}, {transform_indices = @transform_2, window_bounds = array<i64: 1, 128>}, {transform_indices = @transform_3, window_bounds = array<i64: 1, 128>}, {transform_indices = @transform_4, window_bounds = array<i64: 8, 128>}, {transform_indices = @transform_5, window_bounds = array<i64: 8, 128>}]} {
    %c0_i32 = arith.constant 0 : i32
    %0 = arith.cmpi eq, %arg2, %c0_i32 : i32
    %1 = arith.extui %0 : i1 to i32
    %c0_i32_0 = arith.constant 0 : i32
    %2 = arith.cmpi ne, %1, %c0_i32_0 : i32
    scf.if %2 {
      %cst_9 = arith.constant 0.000000e+00 : f32
      %12 = vector.broadcast %cst_9 : f32 to vector<8x128xf32>
      %c0_10 = arith.constant 0 : index
      %c0_11 = arith.constant 0 : index
      %13 = vector.load %arg9[%c0_10, %c0_11] : memref<8x128xf32, #tpu.memory_space<vmem>>, vector<8x128xf32>
      tpu.vector_store %arg9[%c0_10, %c0_11], %12 {strides = array<i32>} : memref<8x128xf32, #tpu.memory_space<vmem>>, vector<8x128xf32>,
    } else {
    }
    %c0 = arith.constant 0 : index
    %c0_1 = arith.constant 0 : index
    %3 = vector.load %arg9[%c0, %c0_1] : memref<8x128xf32, #tpu.memory_space<vmem>>, vector<8x128xf32>
    %c0_2 = arith.constant 0 : index
    %c0_3 = arith.constant 0 : index
    %4 = vector.load %arg3[%c0_2, %c0_3] : memref<8x128xbf16, #tpu.memory_space<vmem>>, vector<8x128xbf16>
    %c0_4 = arith.constant 0 : index
    %c0_5 = arith.constant 0 : index
    %5 = vector.load %arg4[%c0_4, %c0_5] : memref<128x128xbf16, #tpu.memory_space<vmem>>, vector<128x128xbf16>
    %cst = arith.constant dense<0.000000e+00> : vector<8x128xf32>
    %6 = tpu.matmul %4, %5, %cst {dimension_numbers = #tpu.dot_dimension_numbers<[1], [0], [0], [1], [0, 0, 1, 1], [], []>} : vector<8x128xbf16>, vector<128x128xbf16>, vector<8x128xf32> -> vector<8x128xf32>
    %7 = arith.addf %3, %6 : vector<8x128xf32>
    %c0_6 = arith.constant 0 : index
    %c0_7 = arith.constant 0 : index
    %8 = vector.load %arg9[%c0_6, %c0_7] : memref<8x128xf32, #tpu.memory_space<vmem>>, vector<8x128xf32>
    tpu.vector_store %arg9[%c0_6, %c0_7], %7 {strides = array<i32>} : memref<8x128xf32, #tpu.memory_space<vmem>>, vector<8x128xf32>,
    %c8_i32 = arith.constant 8 : i32
    %9 = arith.cmpi eq, %arg2, %c8_i32 : i32
    %10 = arith.extui %9 : i1 to i32
    %c0_i32_8 = arith.constant 0 : i32
    %11 = arith.cmpi ne, %10, %c0_i32_8 : i32
    scf.if %11 {
      %c0_9 = arith.constant 0 : index
      %c0_10 = arith.constant 0 : index
      %12 = vector.load %arg9[%c0_9, %c0_10] : memref<8x128xf32, #tpu.memory_space<vmem>>, vector<8x128xf32>
      %c0_11 = arith.constant 0 : index
      %c0_12 = arith.constant 0 : index
      %13 = vector.load %arg5[%c0_11, %c0_12] : memref<1x128xf32, #tpu.memory_space<vmem>>, vector<1x128xf32>
      %14 = vector.broadcast %13 : vector<1x128xf32> to vector<8x128xf32>
      %15 = arith.mulf %12, %14 : vector<8x128xf32>
      %c0_13 = arith.constant 0 : index
      %c0_14 = arith.constant 0 : index
      %16 = vector.load %arg6[%c0_13, %c0_14] : memref<1x128xf32, #tpu.memory_space<vmem>>, vector<1x128xf32>
      %17 = vector.broadcast %16 : vector<1x128xf32> to vector<8x128xf32>
      %18 = arith.addf %15, %17 : vector<8x128xf32>
      %19 = arith.negf %18 : vector<8x128xf32>
      %20 = math.exp %19 : vector<8x128xf32>
      %cst_15 = arith.constant 1.000000e+00 : f32
      %21 = vector.broadcast %cst_15 : f32 to vector<8x128xf32>
      %22 = arith.addf %21, %20 : vector<8x128xf32>
      %23 = arith.divf %21, %22 : vector<8x128xf32>
      %24 = arith.mulf %18, %23 : vector<8x128xf32>
      %c0_16 = arith.constant 0 : index
      %c0_17 = arith.constant 0 : index
      %25 = vector.load %arg7[%c0_16, %c0_17] : memref<8x128xbf16, #tpu.memory_space<vmem>>, vector<8x128xbf16>
      %26 = arith.extf %25 : vector<8x128xbf16> to vector<8x128xf32>
      %27 = arith.addf %24, %26 : vector<8x128xf32>
      %28 = arith.truncf %27 : vector<8x128xf32> to vector<8x128xbf16>
      %c0_18 = arith.constant 0 : index
      %c0_19 = arith.constant 0 : index
      %29 = vector.load %arg8[%c0_18, %c0_19] : memref<8x128xbf16, #tpu.memory_space<vmem>>, vector<8x128xbf16>
      tpu.vector_store %arg8[%c0_18, %c0_19], %28 {strides = array<i32>} : memref<8x128xbf16, #tpu.memory_space<vmem>>, vector<8x128xbf16>,
    } else {
    }
    return
  }
  func.func @transform_0(%arg0: i32, %arg1: i32, %arg2: i32) -> (i32, i32) {
    %c0_i32 = arith.constant 0 : i32
    return %arg0, %arg2 : i32, i32
  }
  func.func @transform_1(%arg0: i32, %arg1: i32, %arg2: i32) -> (i32, i32) {
    %c0_i32 = arith.constant 0 : i32
    return %arg2, %arg1 : i32, i32
  }
  func.func @transform_2(%arg0: i32, %arg1: i32, %arg2: i32) -> (i32, i32) {
    %c0_i32 = arith.constant 0 : i32
    %c0_i32_0 = arith.constant 0 : i32
    return %c0_i32, %arg1 : i32, i32
  }
  func.func @transform_3(%arg0: i32, %arg1: i32, %arg2: i32) -> (i32, i32) {
    %c0_i32 = arith.constant 0 : i32
    %c0_i32_0 = arith.constant 0 : i32
    return %c0_i32, %arg1 : i32, i32
  }
  func.func @transform_4(%arg0: i32, %arg1: i32, %arg2: i32) -> (i32, i32) {
    %c0_i32 = arith.constant 0 : i32
    return %arg0, %arg1 : i32, i32
  }
  func.func @transform_5(%arg0: i32, %arg1: i32, %arg2: i32) -> (i32, i32) {
    %c0_i32 = arith.constant 0 : i32
    return %arg0, %arg1 : i32, i32
  }
}

module attributes {stable_mosaic.version = 11 : i64} {
  func.func @_gemm_bn_act_k1_kernel(%arg0: i32, %arg1: i32, %arg2: memref<8x512xbf16, #tpu.memory_space<vmem>>, %arg3: memref<512x256xbf16, #tpu.memory_space<vmem>>, %arg4: memref<1x256xf32, #tpu.memory_space<vmem>>, %arg5: memref<1x256xf32, #tpu.memory_space<vmem>>, %arg6: memref<8x256xbf16, #tpu.memory_space<vmem>>) attributes {dimension_semantics = [#tpu.dimension_semantics<parallel>, #tpu.dimension_semantics<parallel>], iteration_bounds = array<i64: 1, 1>, scalar_prefetch = 0 : i64, scratch_operands = 0 : i64, tpu.core_type = #tpu.core_type<tc>, window_params = [{transform_indices = @transform_0, window_bounds = array<i64: 8, 512>}, {transform_indices = @transform_1, window_bounds = array<i64: 512, 256>}, {transform_indices = @transform_2, window_bounds = array<i64: 1, 256>}, {transform_indices = @transform_3, window_bounds = array<i64: 1, 256>}, {transform_indices = @transform_4, window_bounds = array<i64: 8, 256>}]} {
    %c0 = arith.constant 0 : index
    %c0_0 = arith.constant 0 : index
    %0 = vector.load %arg2[%c0, %c0_0] : memref<8x512xbf16, #tpu.memory_space<vmem>>, vector<8x512xbf16>
    %c0_1 = arith.constant 0 : index
    %c0_2 = arith.constant 0 : index
    %1 = vector.load %arg3[%c0_1, %c0_2] : memref<512x256xbf16, #tpu.memory_space<vmem>>, vector<512x256xbf16>
    %cst = arith.constant dense<0.000000e+00> : vector<8x256xf32>
    %2 = tpu.matmul %0, %1, %cst {dimension_numbers = #tpu.dot_dimension_numbers<[1], [0], [0], [1], [0, 0, 1, 1], [], []>} : vector<8x512xbf16>, vector<512x256xbf16>, vector<8x256xf32> -> vector<8x256xf32>
    %c0_3 = arith.constant 0 : index
    %c0_4 = arith.constant 0 : index
    %3 = vector.load %arg4[%c0_3, %c0_4] : memref<1x256xf32, #tpu.memory_space<vmem>>, vector<1x256xf32>
    %4 = vector.broadcast %3 : vector<1x256xf32> to vector<8x256xf32>
    %5 = arith.mulf %2, %4 : vector<8x256xf32>
    %c0_5 = arith.constant 0 : index
    %c0_6 = arith.constant 0 : index
    %6 = vector.load %arg5[%c0_5, %c0_6] : memref<1x256xf32, #tpu.memory_space<vmem>>, vector<1x256xf32>
    %7 = vector.broadcast %6 : vector<1x256xf32> to vector<8x256xf32>
    %8 = arith.addf %5, %7 : vector<8x256xf32>
    %9 = arith.negf %8 : vector<8x256xf32>
    %10 = math.exp %9 : vector<8x256xf32>
    %cst_7 = arith.constant 1.000000e+00 : f32
    %11 = vector.broadcast %cst_7 : f32 to vector<8x256xf32>
    %12 = arith.addf %11, %10 : vector<8x256xf32>
    %13 = arith.divf %11, %12 : vector<8x256xf32>
    %14 = arith.mulf %8, %13 : vector<8x256xf32>
    %15 = arith.truncf %14 : vector<8x256xf32> to vector<8x256xbf16>
    %c0_8 = arith.constant 0 : index
    %c0_9 = arith.constant 0 : index
    %16 = vector.load %arg6[%c0_8, %c0_9] : memref<8x256xbf16, #tpu.memory_space<vmem>>, vector<8x256xbf16>
    tpu.vector_store %arg6[%c0_8, %c0_9], %15 {strides = array<i32>} : memref<8x256xbf16, #tpu.memory_space<vmem>>, vector<8x256xbf16>,
    return
  }
  func.func @transform_0(%arg0: i32, %arg1: i32) -> (i32, i32) {
    %c0_i32 = arith.constant 0 : i32
    %c0_i32_0 = arith.constant 0 : i32
    return %arg0, %c0_i32 : i32, i32
  }
  func.func @transform_1(%arg0: i32, %arg1: i32) -> (i32, i32) {
    %c0_i32 = arith.constant 0 : i32
    %c0_i32_0 = arith.constant 0 : i32
    return %c0_i32, %arg1 : i32, i32
  }
  func.func @transform_2(%arg0: i32, %arg1: i32) -> (i32, i32) {
    %c0_i32 = arith.constant 0 : i32
    %c0_i32_0 = arith.constant 0 : i32
    return %c0_i32, %arg1 : i32, i32
  }
  func.func @transform_3(%arg0: i32, %arg1: i32) -> (i32, i32) {
    %c0_i32 = arith.constant 0 : i32
    %c0_i32_0 = arith.constant 0 : i32
    return %c0_i32, %arg1 : i32, i32
  }
  func.func @transform_4(%arg0: i32, %arg1: i32) -> (i32, i32) {
    %c0_i32 = arith.constant 0 : i32
    return %arg0, %arg1 : i32, i32
  }
}

module attributes {stable_mosaic.version = 11 : i64} {
  func.func @_sppf_pool_kernel(%arg0: i32, %arg1: memref<1x14x14x128xbf16, #tpu.memory_space<vmem>>, %arg2: memref<1x2x2x512xbf16, #tpu.memory_space<vmem>>) attributes {dimension_semantics = [#tpu.dimension_semantics<parallel>], iteration_bounds = array<i64: 2>, scalar_prefetch = 0 : i64, scratch_operands = 0 : i64, tpu.core_type = #tpu.core_type<tc>, window_params = [{transform_indices = @transform_0, window_bounds = array<i64: 1, 14, 14, 128>}, {transform_indices = @transform_1, window_bounds = array<i64: 1, 2, 2, 512>}]} {
    %c0 = arith.constant 0 : index
    %c0_0 = arith.constant 0 : index
    %c0_1 = arith.constant 0 : index
    %c0_2 = arith.constant 0 : index
    %0 = vector.load %arg1[%c0, %c0_0, %c0_1, %c0_2] : memref<1x14x14x128xbf16, #tpu.memory_space<vmem>>, vector<1x14x14x128xbf16>
    %1 = arith.extf %0 : vector<1x14x14x128xbf16> to vector<1x14x14x128xf32>
    %2 = vector.extract_strided_slice %1 {offsets = [0, 0, 4, 0], sizes = [1, 14, 2, 128], strides = [1, 1, 1, 1]} : vector<1x14x14x128xf32> to vector<1x14x2x128xf32>
    %3 = vector.extract_strided_slice %1 {offsets = [0, 0, 5, 0], sizes = [1, 14, 2, 128], strides = [1, 1, 1, 1]} : vector<1x14x14x128xf32> to vector<1x14x2x128xf32>
    %4 = arith.maximumf %2, %3 : vector<1x14x2x128xf32>
    %5 = vector.extract_strided_slice %1 {offsets = [0, 0, 6, 0], sizes = [1, 14, 2, 128], strides = [1, 1, 1, 1]} : vector<1x14x14x128xf32> to vector<1x14x2x128xf32>
    %6 = arith.maximumf %4, %5 : vector<1x14x2x128xf32>
    %7 = vector.extract_strided_slice %1 {offsets = [0, 0, 7, 0], sizes = [1, 14, 2, 128], strides = [1, 1, 1, 1]} : vector<1x14x14x128xf32> to vector<1x14x2x128xf32>
    %8 = arith.maximumf %6, %7 : vector<1x14x2x128xf32>
    %9 = vector.extract_strided_slice %1 {offsets = [0, 0, 8, 0], sizes = [1, 14, 2, 128], strides = [1, 1, 1, 1]} : vector<1x14x14x128xf32> to vector<1x14x2x128xf32>
    %10 = arith.maximumf %8, %9 : vector<1x14x2x128xf32>
    %11 = vector.extract_strided_slice %1 {offsets = [0, 0, 2, 0], sizes = [1, 14, 2, 128], strides = [1, 1, 1, 1]} : vector<1x14x14x128xf32> to vector<1x14x2x128xf32>
    %12 = arith.maximumf %10, %11 : vector<1x14x2x128xf32>
    %13 = vector.extract_strided_slice %1 {offsets = [0, 0, 3, 0], sizes = [1, 14, 2, 128], strides = [1, 1, 1, 1]} : vector<1x14x14x128xf32> to vector<1x14x2x128xf32>
    %14 = arith.maximumf %12, %13 : vector<1x14x2x128xf32>
    %15 = vector.extract_strided_slice %1 {offsets = [0, 0, 9, 0], sizes = [1, 14, 2, 128], strides = [1, 1, 1, 1]} : vector<1x14x14x128xf32> to vector<1x14x2x128xf32>
    %16 = arith.maximumf %14, %15 : vector<1x14x2x128xf32>
    %17 = vector.extract_strided_slice %1 {offsets = [0, 0, 10, 0], sizes = [1, 14, 2, 128], strides = [1, 1, 1, 1]} : vector<1x14x14x128xf32> to vector<1x14x2x128xf32>
    %18 = arith.maximumf %16, %17 : vector<1x14x2x128xf32>
    %19 = vector.extract_strided_slice %1 {offsets = [0, 0, 0, 0], sizes = [1, 14, 2, 128], strides = [1, 1, 1, 1]} : vector<1x14x14x128xf32> to vector<1x14x2x128xf32>
    %20 = arith.maximumf %18, %19 : vector<1x14x2x128xf32>
    %21 = vector.extract_strided_slice %1 {offsets = [0, 0, 1, 0], sizes = [1, 14, 2, 128], strides = [1, 1, 1, 1]} : vector<1x14x14x128xf32> to vector<1x14x2x128xf32>
    %22 = arith.maximumf %20, %21 : vector<1x14x2x128xf32>
    %23 = vector.extract_strided_slice %1 {offsets = [0, 0, 11, 0], sizes = [1, 14, 2, 128], strides = [1, 1, 1, 1]} : vector<1x14x14x128xf32> to vector<1x14x2x128xf32>
    %24 = arith.maximumf %22, %23 : vector<1x14x2x128xf32>
    %25 = vector.extract_strided_slice %1 {offsets = [0, 0, 12, 0], sizes = [1, 14, 2, 128], strides = [1, 1, 1, 1]} : vector<1x14x14x128xf32> to vector<1x14x2x128xf32>
    %26 = arith.maximumf %24, %25 : vector<1x14x2x128xf32>
    %27 = vector.extract_strided_slice %10 {offsets = [0, 4, 0, 0], sizes = [1, 2, 2, 128], strides = [1, 1, 1, 1]} : vector<1x14x2x128xf32> to vector<1x2x2x128xf32>
    %28 = vector.extract_strided_slice %10 {offsets = [0, 5, 0, 0], sizes = [1, 2, 2, 128], strides = [1, 1, 1, 1]} : vector<1x14x2x128xf32> to vector<1x2x2x128xf32>
    %29 = arith.maximumf %27, %28 : vector<1x2x2x128xf32>
    %30 = vector.extract_strided_slice %10 {offsets = [0, 6, 0, 0], sizes = [1, 2, 2, 128], strides = [1, 1, 1, 1]} : vector<1x14x2x128xf32> to vector<1x2x2x128xf32>
    %31 = arith.maximumf %29, %30 : vector<1x2x2x128xf32>
    %32 = vector.extract_strided_slice %10 {offsets = [0, 7, 0, 0], sizes = [1, 2, 2, 128], strides = [1, 1, 1, 1]} : vector<1x14x2x128xf32> to vector<1x2x2x128xf32>
    %33 = arith.maximumf %31, %32 : vector<1x2x2x128xf32>
    %34 = vector.extract_strided_slice %10 {offsets = [0, 8, 0, 0], sizes = [1, 2, 2, 128], strides = [1, 1, 1, 1]} : vector<1x14x2x128xf32> to vector<1x2x2x128xf32>
    %35 = arith.maximumf %33, %34 : vector<1x2x2x128xf32>
    %36 = vector.extract_strided_slice %18 {offsets = [0, 4, 0, 0], sizes = [1, 2, 2, 128], strides = [1, 1, 1, 1]} : vector<1x14x2x128xf32> to vector<1x2x2x128xf32>
    %37 = vector.extract_strided_slice %18 {offsets = [0, 5, 0, 0], sizes = [1, 2, 2, 128], strides = [1, 1, 1, 1]} : vector<1x14x2x128xf32> to vector<1x2x2x128xf32>
    %38 = arith.maximumf %36, %37 : vector<1x2x2x128xf32>
    %39 = vector.extract_strided_slice %18 {offsets = [0, 6, 0, 0], sizes = [1, 2, 2, 128], strides = [1, 1, 1, 1]} : vector<1x14x2x128xf32> to vector<1x2x2x128xf32>
    %40 = arith.maximumf %38, %39 : vector<1x2x2x128xf32>
    %41 = vector.extract_strided_slice %18 {offsets = [0, 7, 0, 0], sizes = [1, 2, 2, 128], strides = [1, 1, 1, 1]} : vector<1x14x2x128xf32> to vector<1x2x2x128xf32>
    %42 = arith.maximumf %40, %41 : vector<1x2x2x128xf32>
    %43 = vector.extract_strided_slice %18 {offsets = [0, 8, 0, 0], sizes = [1, 2, 2, 128], strides = [1, 1, 1, 1]} : vector<1x14x2x128xf32> to vector<1x2x2x128xf32>
    %44 = arith.maximumf %42, %43 : vector<1x2x2x128xf32>
    %45 = vector.extract_strided_slice %18 {offsets = [0, 2, 0, 0], sizes = [1, 2, 2, 128], strides = [1, 1, 1, 1]} : vector<1x14x2x128xf32> to vector<1x2x2x128xf32>
    %46 = arith.maximumf %44, %45 : vector<1x2x2x128xf32>
    %47 = vector.extract_strided_slice %18 {offsets = [0, 3, 0, 0], sizes = [1, 2, 2, 128], strides = [1, 1, 1, 1]} : vector<1x14x2x128xf32> to vector<1x2x2x128xf32>
    %48 = arith.maximumf %46, %47 : vector<1x2x2x128xf32>
    %49 = vector.extract_strided_slice %18 {offsets = [0, 9, 0, 0], sizes = [1, 2, 2, 128], strides = [1, 1, 1, 1]} : vector<1x14x2x128xf32> to vector<1x2x2x128xf32>
    %50 = arith.maximumf %48, %49 : vector<1x2x2x128xf32>
    %51 = vector.extract_strided_slice %18 {offsets = [0, 10, 0, 0], sizes = [1, 2, 2, 128], strides = [1, 1, 1, 1]} : vector<1x14x2x128xf32> to vector<1x2x2x128xf32>
    %52 = arith.maximumf %50, %51 : vector<1x2x2x128xf32>
    %53 = vector.extract_strided_slice %26 {offsets = [0, 4, 0, 0], sizes = [1, 2, 2, 128], strides = [1, 1, 1, 1]} : vector<1x14x2x128xf32> to vector<1x2x2x128xf32>
    %54 = vector.extract_strided_slice %26 {offsets = [0, 5, 0, 0], sizes = [1, 2, 2, 128], strides = [1, 1, 1, 1]} : vector<1x14x2x128xf32> to vector<1x2x2x128xf32>
    %55 = arith.maximumf %53, %54 : vector<1x2x2x128xf32>
    %56 = vector.extract_strided_slice %26 {offsets = [0, 6, 0, 0], sizes = [1, 2, 2, 128], strides = [1, 1, 1, 1]} : vector<1x14x2x128xf32> to vector<1x2x2x128xf32>
    %57 = arith.maximumf %55, %56 : vector<1x2x2x128xf32>
    %58 = vector.extract_strided_slice %26 {offsets = [0, 7, 0, 0], sizes = [1, 2, 2, 128], strides = [1, 1, 1, 1]} : vector<1x14x2x128xf32> to vector<1x2x2x128xf32>
    %59 = arith.maximumf %57, %58 : vector<1x2x2x128xf32>
    %60 = vector.extract_strided_slice %26 {offsets = [0, 8, 0, 0], sizes = [1, 2, 2, 128], strides = [1, 1, 1, 1]} : vector<1x14x2x128xf32> to vector<1x2x2x128xf32>
    %61 = arith.maximumf %59, %60 : vector<1x2x2x128xf32>
    %62 = vector.extract_strided_slice %26 {offsets = [0, 2, 0, 0], sizes = [1, 2, 2, 128], strides = [1, 1, 1, 1]} : vector<1x14x2x128xf32> to vector<1x2x2x128xf32>
    %63 = arith.maximumf %61, %62 : vector<1x2x2x128xf32>
    %64 = vector.extract_strided_slice %26 {offsets = [0, 3, 0, 0], sizes = [1, 2, 2, 128], strides = [1, 1, 1, 1]} : vector<1x14x2x128xf32> to vector<1x2x2x128xf32>
    %65 = arith.maximumf %63, %64 : vector<1x2x2x128xf32>
    %66 = vector.extract_strided_slice %26 {offsets = [0, 9, 0, 0], sizes = [1, 2, 2, 128], strides = [1, 1, 1, 1]} : vector<1x14x2x128xf32> to vector<1x2x2x128xf32>
    %67 = arith.maximumf %65, %66 : vector<1x2x2x128xf32>
    %68 = vector.extract_strided_slice %26 {offsets = [0, 10, 0, 0], sizes = [1, 2, 2, 128], strides = [1, 1, 1, 1]} : vector<1x14x2x128xf32> to vector<1x2x2x128xf32>
    %69 = arith.maximumf %67, %68 : vector<1x2x2x128xf32>
    %70 = vector.extract_strided_slice %26 {offsets = [0, 0, 0, 0], sizes = [1, 2, 2, 128], strides = [1, 1, 1, 1]} : vector<1x14x2x128xf32> to vector<1x2x2x128xf32>
    %71 = arith.maximumf %69, %70 : vector<1x2x2x128xf32>
    %72 = vector.extract_strided_slice %26 {offsets = [0, 1, 0, 0], sizes = [1, 2, 2, 128], strides = [1, 1, 1, 1]} : vector<1x14x2x128xf32> to vector<1x2x2x128xf32>
    %73 = arith.maximumf %71, %72 : vector<1x2x2x128xf32>
    %74 = vector.extract_strided_slice %26 {offsets = [0, 11, 0, 0], sizes = [1, 2, 2, 128], strides = [1, 1, 1, 1]} : vector<1x14x2x128xf32> to vector<1x2x2x128xf32>
    %75 = arith.maximumf %73, %74 : vector<1x2x2x128xf32>
    %76 = vector.extract_strided_slice %26 {offsets = [0, 12, 0, 0], sizes = [1, 2, 2, 128], strides = [1, 1, 1, 1]} : vector<1x14x2x128xf32> to vector<1x2x2x128xf32>
    %77 = arith.maximumf %75, %76 : vector<1x2x2x128xf32>
    %78 = vector.extract_strided_slice %1 {offsets = [0, 6, 6, 0], sizes = [1, 2, 2, 128], strides = [1, 1, 1, 1]} : vector<1x14x14x128xf32> to vector<1x2x2x128xf32>
    %79 = arith.truncf %78 : vector<1x2x2x128xf32> to vector<1x2x2x128xbf16>
    %c0_3 = arith.constant 0 : index
    %c0_4 = arith.constant 0 : index
    %c0_5 = arith.constant 0 : index
    %c0_6 = arith.constant 0 : index
    %80 = vector.load %arg2[%c0_3, %c0_4, %c0_5, %c0_6] : memref<1x2x2x512xbf16, #tpu.memory_space<vmem>>, vector<1x2x2x128xbf16>
    tpu.vector_store %arg2[%c0_3, %c0_4, %c0_5, %c0_6], %79 {strides = array<i32>} : memref<1x2x2x512xbf16, #tpu.memory_space<vmem>>, vector<1x2x2x128xbf16>,
    %81 = arith.truncf %35 : vector<1x2x2x128xf32> to vector<1x2x2x128xbf16>
    %c0_7 = arith.constant 0 : index
    %c0_8 = arith.constant 0 : index
    %c0_9 = arith.constant 0 : index
    %c128 = arith.constant 128 : index
    %82 = vector.load %arg2[%c0_7, %c0_8, %c0_9, %c128] : memref<1x2x2x512xbf16, #tpu.memory_space<vmem>>, vector<1x2x2x128xbf16>
    tpu.vector_store %arg2[%c0_7, %c0_8, %c0_9, %c128], %81 {strides = array<i32>} : memref<1x2x2x512xbf16, #tpu.memory_space<vmem>>, vector<1x2x2x128xbf16>,
    %83 = arith.truncf %52 : vector<1x2x2x128xf32> to vector<1x2x2x128xbf16>
    %c0_10 = arith.constant 0 : index
    %c0_11 = arith.constant 0 : index
    %c0_12 = arith.constant 0 : index
    %c256 = arith.constant 256 : index
    %84 = vector.load %arg2[%c0_10, %c0_11, %c0_12, %c256] : memref<1x2x2x512xbf16, #tpu.memory_space<vmem>>, vector<1x2x2x128xbf16>
    tpu.vector_store %arg2[%c0_10, %c0_11, %c0_12, %c256], %83 {strides = array<i32>} : memref<1x2x2x512xbf16, #tpu.memory_space<vmem>>, vector<1x2x2x128xbf16>,
    %85 = arith.truncf %77 : vector<1x2x2x128xf32> to vector<1x2x2x128xbf16>
    %c0_13 = arith.constant 0 : index
    %c0_14 = arith.constant 0 : index
    %c0_15 = arith.constant 0 : index
    %c384 = arith.constant 384 : index
    %86 = vector.load %arg2[%c0_13, %c0_14, %c0_15, %c384] : memref<1x2x2x512xbf16, #tpu.memory_space<vmem>>, vector<1x2x2x128xbf16>
    tpu.vector_store %arg2[%c0_13, %c0_14, %c0_15, %c384], %85 {strides = array<i32>} : memref<1x2x2x512xbf16, #tpu.memory_space<vmem>>, vector<1x2x2x128xbf16>,
    return
  }
  func.func @transform_0(%arg0: i32) -> (i32, i32, i32, i32) {
    %c0_i32 = arith.constant 0 : i32
    %c0_i32_0 = arith.constant 0 : i32
    %c0_i32_1 = arith.constant 0 : i32
    %c0_i32_2 = arith.constant 0 : i32
    return %arg0, %c0_i32, %c0_i32_0, %c0_i32_1 : i32, i32, i32, i32
  }
  func.func @transform_1(%arg0: i32) -> (i32, i32, i32, i32) {
    %c0_i32 = arith.constant 0 : i32
    %c0_i32_0 = arith.constant 0 : i32
    %c0_i32_1 = arith.constant 0 : i32
    %c0_i32_2 = arith.constant 0 : i32
    return %arg0, %c0_i32, %c0_i32_0, %c0_i32_1 : i32, i32, i32, i32
  }
}

module attributes {stable_mosaic.version = 11 : i64} {
  func.func @_gemm_bn_act_k1_kernel(%arg0: i32, %arg1: i32, %arg2: memref<16x256xbf16, #tpu.memory_space<vmem>>, %arg3: memref<256x128xbf16, #tpu.memory_space<vmem>>, %arg4: memref<1x128xf32, #tpu.memory_space<vmem>>, %arg5: memref<1x128xf32, #tpu.memory_space<vmem>>, %arg6: memref<16x128xbf16, #tpu.memory_space<vmem>>) attributes {dimension_semantics = [#tpu.dimension_semantics<parallel>, #tpu.dimension_semantics<parallel>], iteration_bounds = array<i64: 2, 1>, scalar_prefetch = 0 : i64, scratch_operands = 0 : i64, tpu.core_type = #tpu.core_type<tc>, window_params = [{transform_indices = @transform_0, window_bounds = array<i64: 16, 256>}, {transform_indices = @transform_1, window_bounds = array<i64: 256, 128>}, {transform_indices = @transform_2, window_bounds = array<i64: 1, 128>}, {transform_indices = @transform_3, window_bounds = array<i64: 1, 128>}, {transform_indices = @transform_4, window_bounds = array<i64: 16, 128>}]} {
    %c0 = arith.constant 0 : index
    %c0_0 = arith.constant 0 : index
    %0 = vector.load %arg2[%c0, %c0_0] : memref<16x256xbf16, #tpu.memory_space<vmem>>, vector<16x256xbf16>
    %c0_1 = arith.constant 0 : index
    %c0_2 = arith.constant 0 : index
    %1 = vector.load %arg3[%c0_1, %c0_2] : memref<256x128xbf16, #tpu.memory_space<vmem>>, vector<256x128xbf16>
    %cst = arith.constant dense<0.000000e+00> : vector<16x128xf32>
    %2 = tpu.matmul %0, %1, %cst {dimension_numbers = #tpu.dot_dimension_numbers<[1], [0], [0], [1], [0, 0, 1, 1], [], []>} : vector<16x256xbf16>, vector<256x128xbf16>, vector<16x128xf32> -> vector<16x128xf32>
    %c0_3 = arith.constant 0 : index
    %c0_4 = arith.constant 0 : index
    %3 = vector.load %arg4[%c0_3, %c0_4] : memref<1x128xf32, #tpu.memory_space<vmem>>, vector<1x128xf32>
    %4 = vector.broadcast %3 : vector<1x128xf32> to vector<16x128xf32>
    %5 = arith.mulf %2, %4 : vector<16x128xf32>
    %c0_5 = arith.constant 0 : index
    %c0_6 = arith.constant 0 : index
    %6 = vector.load %arg5[%c0_5, %c0_6] : memref<1x128xf32, #tpu.memory_space<vmem>>, vector<1x128xf32>
    %7 = vector.broadcast %6 : vector<1x128xf32> to vector<16x128xf32>
    %8 = arith.addf %5, %7 : vector<16x128xf32>
    %9 = arith.negf %8 : vector<16x128xf32>
    %10 = math.exp %9 : vector<16x128xf32>
    %cst_7 = arith.constant 1.000000e+00 : f32
    %11 = vector.broadcast %cst_7 : f32 to vector<16x128xf32>
    %12 = arith.addf %11, %10 : vector<16x128xf32>
    %13 = arith.divf %11, %12 : vector<16x128xf32>
    %14 = arith.mulf %8, %13 : vector<16x128xf32>
    %15 = arith.truncf %14 : vector<16x128xf32> to vector<16x128xbf16>
    %c0_8 = arith.constant 0 : index
    %c0_9 = arith.constant 0 : index
    %16 = vector.load %arg6[%c0_8, %c0_9] : memref<16x128xbf16, #tpu.memory_space<vmem>>, vector<16x128xbf16>
    tpu.vector_store %arg6[%c0_8, %c0_9], %15 {strides = array<i32>} : memref<16x128xbf16, #tpu.memory_space<vmem>>, vector<16x128xbf16>,
    return
  }
  func.func @transform_0(%arg0: i32, %arg1: i32) -> (i32, i32) {
    %c0_i32 = arith.constant 0 : i32
    %c0_i32_0 = arith.constant 0 : i32
    return %arg0, %c0_i32 : i32, i32
  }
  func.func @transform_1(%arg0: i32, %arg1: i32) -> (i32, i32) {
    %c0_i32 = arith.constant 0 : i32
    %c0_i32_0 = arith.constant 0 : i32
    return %c0_i32, %arg1 : i32, i32
  }
  func.func @transform_2(%arg0: i32, %arg1: i32) -> (i32, i32) {
    %c0_i32 = arith.constant 0 : i32
    %c0_i32_0 = arith.constant 0 : i32
    return %c0_i32, %arg1 : i32, i32
  }
  func.func @transform_3(%arg0: i32, %arg1: i32) -> (i32, i32) {
    %c0_i32 = arith.constant 0 : i32
    %c0_i32_0 = arith.constant 0 : i32
    return %c0_i32, %arg1 : i32, i32
  }
  func.func @transform_4(%arg0: i32, %arg1: i32) -> (i32, i32) {
    %c0_i32 = arith.constant 0 : i32
    return %arg0, %arg1 : i32, i32
  }
}

module attributes {stable_mosaic.version = 11 : i64} {
  func.func @_gemm_bn_act_kernel(%arg0: i32, %arg1: i32, %arg2: i32, %arg3: memref<8x128xbf16, #tpu.memory_space<vmem>>, %arg4: memref<128x128xbf16, #tpu.memory_space<vmem>>, %arg5: memref<1x128xf32, #tpu.memory_space<vmem>>, %arg6: memref<1x128xf32, #tpu.memory_space<vmem>>, %arg7: memref<8x128xbf16, #tpu.memory_space<vmem>>, %arg8: memref<8x128xf32, #tpu.memory_space<vmem>>) attributes {dimension_semantics = [#tpu.dimension_semantics<parallel>, #tpu.dimension_semantics<parallel>, #tpu.dimension_semantics<arbitrary>], iteration_bounds = array<i64: 1, 1, 9>, scalar_prefetch = 0 : i64, scratch_operands = 1 : i64, tpu.core_type = #tpu.core_type<tc>, window_params = [{transform_indices = @transform_0, window_bounds = array<i64: 8, 128>}, {transform_indices = @transform_1, window_bounds = array<i64: 128, 128>}, {transform_indices = @transform_2, window_bounds = array<i64: 1, 128>}, {transform_indices = @transform_3, window_bounds = array<i64: 1, 128>}, {transform_indices = @transform_4, window_bounds = array<i64: 8, 128>}]} {
    %c0_i32 = arith.constant 0 : i32
    %0 = arith.cmpi eq, %arg2, %c0_i32 : i32
    %1 = arith.extui %0 : i1 to i32
    %c0_i32_0 = arith.constant 0 : i32
    %2 = arith.cmpi ne, %1, %c0_i32_0 : i32
    scf.if %2 {
      %cst_9 = arith.constant 0.000000e+00 : f32
      %12 = vector.broadcast %cst_9 : f32 to vector<8x128xf32>
      %c0_10 = arith.constant 0 : index
      %c0_11 = arith.constant 0 : index
      %13 = vector.load %arg8[%c0_10, %c0_11] : memref<8x128xf32, #tpu.memory_space<vmem>>, vector<8x128xf32>
      tpu.vector_store %arg8[%c0_10, %c0_11], %12 {strides = array<i32>} : memref<8x128xf32, #tpu.memory_space<vmem>>, vector<8x128xf32>,
    } else {
    }
    %c0 = arith.constant 0 : index
    %c0_1 = arith.constant 0 : index
    %3 = vector.load %arg8[%c0, %c0_1] : memref<8x128xf32, #tpu.memory_space<vmem>>, vector<8x128xf32>
    %c0_2 = arith.constant 0 : index
    %c0_3 = arith.constant 0 : index
    %4 = vector.load %arg3[%c0_2, %c0_3] : memref<8x128xbf16, #tpu.memory_space<vmem>>, vector<8x128xbf16>
    %c0_4 = arith.constant 0 : index
    %c0_5 = arith.constant 0 : index
    %5 = vector.load %arg4[%c0_4, %c0_5] : memref<128x128xbf16, #tpu.memory_space<vmem>>, vector<128x128xbf16>
    %cst = arith.constant dense<0.000000e+00> : vector<8x128xf32>
    %6 = tpu.matmul %4, %5, %cst {dimension_numbers = #tpu.dot_dimension_numbers<[1], [0], [0], [1], [0, 0, 1, 1], [], []>} : vector<8x128xbf16>, vector<128x128xbf16>, vector<8x128xf32> -> vector<8x128xf32>
    %7 = arith.addf %3, %6 : vector<8x128xf32>
    %c0_6 = arith.constant 0 : index
    %c0_7 = arith.constant 0 : index
    %8 = vector.load %arg8[%c0_6, %c0_7] : memref<8x128xf32, #tpu.memory_space<vmem>>, vector<8x128xf32>
    tpu.vector_store %arg8[%c0_6, %c0_7], %7 {strides = array<i32>} : memref<8x128xf32, #tpu.memory_space<vmem>>, vector<8x128xf32>,
    %c8_i32 = arith.constant 8 : i32
    %9 = arith.cmpi eq, %arg2, %c8_i32 : i32
    %10 = arith.extui %9 : i1 to i32
    %c0_i32_8 = arith.constant 0 : i32
    %11 = arith.cmpi ne, %10, %c0_i32_8 : i32
    scf.if %11 {
      %c0_9 = arith.constant 0 : index
      %c0_10 = arith.constant 0 : index
      %12 = vector.load %arg8[%c0_9, %c0_10] : memref<8x128xf32, #tpu.memory_space<vmem>>, vector<8x128xf32>
      %c0_11 = arith.constant 0 : index
      %c0_12 = arith.constant 0 : index
      %13 = vector.load %arg5[%c0_11, %c0_12] : memref<1x128xf32, #tpu.memory_space<vmem>>, vector<1x128xf32>
      %14 = vector.broadcast %13 : vector<1x128xf32> to vector<8x128xf32>
      %15 = arith.mulf %12, %14 : vector<8x128xf32>
      %c0_13 = arith.constant 0 : index
      %c0_14 = arith.constant 0 : index
      %16 = vector.load %arg6[%c0_13, %c0_14] : memref<1x128xf32, #tpu.memory_space<vmem>>, vector<1x128xf32>
      %17 = vector.broadcast %16 : vector<1x128xf32> to vector<8x128xf32>
      %18 = arith.addf %15, %17 : vector<8x128xf32>
      %19 = arith.negf %18 : vector<8x128xf32>
      %20 = math.exp %19 : vector<8x128xf32>
      %cst_15 = arith.constant 1.000000e+00 : f32
      %21 = vector.broadcast %cst_15 : f32 to vector<8x128xf32>
      %22 = arith.addf %21, %20 : vector<8x128xf32>
      %23 = arith.divf %21, %22 : vector<8x128xf32>
      %24 = arith.mulf %18, %23 : vector<8x128xf32>
      %25 = arith.truncf %24 : vector<8x128xf32> to vector<8x128xbf16>
      %c0_16 = arith.constant 0 : index
      %c0_17 = arith.constant 0 : index
      %26 = vector.load %arg7[%c0_16, %c0_17] : memref<8x128xbf16, #tpu.memory_space<vmem>>, vector<8x128xbf16>
      tpu.vector_store %arg7[%c0_16, %c0_17], %25 {strides = array<i32>} : memref<8x128xbf16, #tpu.memory_space<vmem>>, vector<8x128xbf16>,
    } else {
    }
    return
  }
  func.func @transform_0(%arg0: i32, %arg1: i32, %arg2: i32) -> (i32, i32) {
    %c0_i32 = arith.constant 0 : i32
    return %arg0, %arg2 : i32, i32
  }
  func.func @transform_1(%arg0: i32, %arg1: i32, %arg2: i32) -> (i32, i32) {
    %c0_i32 = arith.constant 0 : i32
    return %arg2, %arg1 : i32, i32
  }
  func.func @transform_2(%arg0: i32, %arg1: i32, %arg2: i32) -> (i32, i32) {
    %c0_i32 = arith.constant 0 : i32
    %c0_i32_0 = arith.constant 0 : i32
    return %c0_i32, %arg1 : i32, i32
  }
  func.func @transform_3(%arg0: i32, %arg1: i32, %arg2: i32) -> (i32, i32) {
    %c0_i32 = arith.constant 0 : i32
    %c0_i32_0 = arith.constant 0 : i32
    return %c0_i32, %arg1 : i32, i32
  }
  func.func @transform_4(%arg0: i32, %arg1: i32, %arg2: i32) -> (i32, i32) {
    %c0_i32 = arith.constant 0 : i32
    return %arg0, %arg1 : i32, i32
  }
}

module attributes {stable_mosaic.version = 11 : i64} {
  func.func @_gemm_bn_act_k1_kernel(%arg0: i32, %arg1: i32, %arg2: memref<8x256xbf16, #tpu.memory_space<vmem>>, %arg3: memref<256x128xbf16, #tpu.memory_space<vmem>>, %arg4: memref<1x128xf32, #tpu.memory_space<vmem>>, %arg5: memref<1x128xf32, #tpu.memory_space<vmem>>, %arg6: memref<8x128xf32, #tpu.memory_space<vmem>>) attributes {dimension_semantics = [#tpu.dimension_semantics<parallel>, #tpu.dimension_semantics<parallel>], iteration_bounds = array<i64: 1, 1>, scalar_prefetch = 0 : i64, scratch_operands = 0 : i64, tpu.core_type = #tpu.core_type<tc>, window_params = [{transform_indices = @transform_0, window_bounds = array<i64: 8, 256>}, {transform_indices = @transform_1, window_bounds = array<i64: 256, 128>}, {transform_indices = @transform_2, window_bounds = array<i64: 1, 128>}, {transform_indices = @transform_3, window_bounds = array<i64: 1, 128>}, {transform_indices = @transform_4, window_bounds = array<i64: 8, 128>}]} {
    %c0 = arith.constant 0 : index
    %c0_0 = arith.constant 0 : index
    %0 = vector.load %arg2[%c0, %c0_0] : memref<8x256xbf16, #tpu.memory_space<vmem>>, vector<8x256xbf16>
    %c0_1 = arith.constant 0 : index
    %c0_2 = arith.constant 0 : index
    %1 = vector.load %arg3[%c0_1, %c0_2] : memref<256x128xbf16, #tpu.memory_space<vmem>>, vector<256x128xbf16>
    %cst = arith.constant dense<0.000000e+00> : vector<8x128xf32>
    %2 = tpu.matmul %0, %1, %cst {dimension_numbers = #tpu.dot_dimension_numbers<[1], [0], [0], [1], [0, 0, 1, 1], [], []>} : vector<8x256xbf16>, vector<256x128xbf16>, vector<8x128xf32> -> vector<8x128xf32>
    %c0_3 = arith.constant 0 : index
    %c0_4 = arith.constant 0 : index
    %3 = vector.load %arg4[%c0_3, %c0_4] : memref<1x128xf32, #tpu.memory_space<vmem>>, vector<1x128xf32>
    %4 = vector.broadcast %3 : vector<1x128xf32> to vector<8x128xf32>
    %5 = arith.mulf %2, %4 : vector<8x128xf32>
    %c0_5 = arith.constant 0 : index
    %c0_6 = arith.constant 0 : index
    %6 = vector.load %arg5[%c0_5, %c0_6] : memref<1x128xf32, #tpu.memory_space<vmem>>, vector<1x128xf32>
    %7 = vector.broadcast %6 : vector<1x128xf32> to vector<8x128xf32>
    %8 = arith.addf %5, %7 : vector<8x128xf32>
    %c0_7 = arith.constant 0 : index
    %c0_8 = arith.constant 0 : index
    %9 = vector.load %arg6[%c0_7, %c0_8] : memref<8x128xf32, #tpu.memory_space<vmem>>, vector<8x128xf32>
    tpu.vector_store %arg6[%c0_7, %c0_8], %8 {strides = array<i32>} : memref<8x128xf32, #tpu.memory_space<vmem>>, vector<8x128xf32>,
    return
  }
  func.func @transform_0(%arg0: i32, %arg1: i32) -> (i32, i32) {
    %c0_i32 = arith.constant 0 : i32
    %c0_i32_0 = arith.constant 0 : i32
    return %arg0, %c0_i32 : i32, i32
  }
  func.func @transform_1(%arg0: i32, %arg1: i32) -> (i32, i32) {
    %c0_i32 = arith.constant 0 : i32
    %c0_i32_0 = arith.constant 0 : i32
    return %c0_i32, %arg1 : i32, i32
  }
  func.func @transform_2(%arg0: i32, %arg1: i32) -> (i32, i32) {
    %c0_i32 = arith.constant 0 : i32
    %c0_i32_0 = arith.constant 0 : i32
    return %c0_i32, %arg1 : i32, i32
  }
  func.func @transform_3(%arg0: i32, %arg1: i32) -> (i32, i32) {
    %c0_i32 = arith.constant 0 : i32
    %c0_i32_0 = arith.constant 0 : i32
    return %c0_i32, %arg1 : i32, i32
  }
  func.func @transform_4(%arg0: i32, %arg1: i32) -> (i32, i32) {
    %c0_i32 = arith.constant 0 : i32
    return %arg0, %arg1 : i32, i32
  }
}

module attributes {stable_mosaic.version = 11 : i64} {
  func.func @_gemm_bn_act_k1_kernel(%arg0: i32, %arg1: i32, %arg2: memref<64x128xbf16, #tpu.memory_space<vmem>>, %arg3: memref<128x128xbf16, #tpu.memory_space<vmem>>, %arg4: memref<1x128xf32, #tpu.memory_space<vmem>>, %arg5: memref<1x128xf32, #tpu.memory_space<vmem>>, %arg6: memref<64x128xf32, #tpu.memory_space<vmem>>) attributes {dimension_semantics = [#tpu.dimension_semantics<parallel>, #tpu.dimension_semantics<parallel>], iteration_bounds = array<i64: 2, 1>, scalar_prefetch = 0 : i64, scratch_operands = 0 : i64, tpu.core_type = #tpu.core_type<tc>, window_params = [{transform_indices = @transform_0, window_bounds = array<i64: 64, 128>}, {transform_indices = @transform_1, window_bounds = array<i64: 128, 128>}, {transform_indices = @transform_2, window_bounds = array<i64: 1, 128>}, {transform_indices = @transform_3, window_bounds = array<i64: 1, 128>}, {transform_indices = @transform_4, window_bounds = array<i64: 64, 128>}]} {
    %c0 = arith.constant 0 : index
    %c0_0 = arith.constant 0 : index
    %0 = vector.load %arg2[%c0, %c0_0] : memref<64x128xbf16, #tpu.memory_space<vmem>>, vector<64x128xbf16>
    %c0_1 = arith.constant 0 : index
    %c0_2 = arith.constant 0 : index
    %1 = vector.load %arg3[%c0_1, %c0_2] : memref<128x128xbf16, #tpu.memory_space<vmem>>, vector<128x128xbf16>
    %cst = arith.constant dense<0.000000e+00> : vector<64x128xf32>
    %2 = tpu.matmul %0, %1, %cst {dimension_numbers = #tpu.dot_dimension_numbers<[1], [0], [0], [1], [0, 0, 1, 1], [], []>} : vector<64x128xbf16>, vector<128x128xbf16>, vector<64x128xf32> -> vector<64x128xf32>
    %c0_3 = arith.constant 0 : index
    %c0_4 = arith.constant 0 : index
    %3 = vector.load %arg4[%c0_3, %c0_4] : memref<1x128xf32, #tpu.memory_space<vmem>>, vector<1x128xf32>
    %4 = vector.broadcast %3 : vector<1x128xf32> to vector<64x128xf32>
    %5 = arith.mulf %2, %4 : vector<64x128xf32>
    %c0_5 = arith.constant 0 : index
    %c0_6 = arith.constant 0 : index
    %6 = vector.load %arg5[%c0_5, %c0_6] : memref<1x128xf32, #tpu.memory_space<vmem>>, vector<1x128xf32>
    %7 = vector.broadcast %6 : vector<1x128xf32> to vector<64x128xf32>
    %8 = arith.addf %5, %7 : vector<64x128xf32>
    %c0_7 = arith.constant 0 : index
    %c0_8 = arith.constant 0 : index
    %9 = vector.load %arg6[%c0_7, %c0_8] : memref<64x128xf32, #tpu.memory_space<vmem>>, vector<64x128xf32>
    tpu.vector_store %arg6[%c0_7, %c0_8], %8 {strides = array<i32>} : memref<64x128xf32, #tpu.memory_space<vmem>>, vector<64x128xf32>,
    return
  }
  func.func @transform_0(%arg0: i32, %arg1: i32) -> (i32, i32) {
    %c0_i32 = arith.constant 0 : i32
    %c0_i32_0 = arith.constant 0 : i32
    return %arg0, %c0_i32 : i32, i32
  }
  func.func @transform_1(%arg0: i32, %arg1: i32) -> (i32, i32) {
    %c0_i32 = arith.constant 0 : i32
    %c0_i32_0 = arith.constant 0 : i32
    return %c0_i32, %arg1 : i32, i32
  }
  func.func @transform_2(%arg0: i32, %arg1: i32) -> (i32, i32) {
    %c0_i32 = arith.constant 0 : i32
    %c0_i32_0 = arith.constant 0 : i32
    return %c0_i32, %arg1 : i32, i32
  }
  func.func @transform_3(%arg0: i32, %arg1: i32) -> (i32, i32) {
    %c0_i32 = arith.constant 0 : i32
    %c0_i32_0 = arith.constant 0 : i32
    return %c0_i32, %arg1 : i32, i32
  }
  func.func @transform_4(%arg0: i32, %arg1: i32) -> (i32, i32) {
    %c0_i32 = arith.constant 0 : i32
    return %arg0, %arg1 : i32, i32
  }
}

module attributes {stable_mosaic.version = 11 : i64} {
  func.func @_gemm_bn_act_k1_kernel(%arg0: i32, %arg1: i32, %arg2: memref<16x128xbf16, #tpu.memory_space<vmem>>, %arg3: memref<128x128xbf16, #tpu.memory_space<vmem>>, %arg4: memref<1x128xf32, #tpu.memory_space<vmem>>, %arg5: memref<1x128xf32, #tpu.memory_space<vmem>>, %arg6: memref<16x128xf32, #tpu.memory_space<vmem>>) attributes {dimension_semantics = [#tpu.dimension_semantics<parallel>, #tpu.dimension_semantics<parallel>], iteration_bounds = array<i64: 2, 1>, scalar_prefetch = 0 : i64, scratch_operands = 0 : i64, tpu.core_type = #tpu.core_type<tc>, window_params = [{transform_indices = @transform_0, window_bounds = array<i64: 16, 128>}, {transform_indices = @transform_1, window_bounds = array<i64: 128, 128>}, {transform_indices = @transform_2, window_bounds = array<i64: 1, 128>}, {transform_indices = @transform_3, window_bounds = array<i64: 1, 128>}, {transform_indices = @transform_4, window_bounds = array<i64: 16, 128>}]} {
    %c0 = arith.constant 0 : index
    %c0_0 = arith.constant 0 : index
    %0 = vector.load %arg2[%c0, %c0_0] : memref<16x128xbf16, #tpu.memory_space<vmem>>, vector<16x128xbf16>
    %c0_1 = arith.constant 0 : index
    %c0_2 = arith.constant 0 : index
    %1 = vector.load %arg3[%c0_1, %c0_2] : memref<128x128xbf16, #tpu.memory_space<vmem>>, vector<128x128xbf16>
    %cst = arith.constant dense<0.000000e+00> : vector<16x128xf32>
    %2 = tpu.matmul %0, %1, %cst {dimension_numbers = #tpu.dot_dimension_numbers<[1], [0], [0], [1], [0, 0, 1, 1], [], []>} : vector<16x128xbf16>, vector<128x128xbf16>, vector<16x128xf32> -> vector<16x128xf32>
    %c0_3 = arith.constant 0 : index
    %c0_4 = arith.constant 0 : index
    %3 = vector.load %arg4[%c0_3, %c0_4] : memref<1x128xf32, #tpu.memory_space<vmem>>, vector<1x128xf32>
    %4 = vector.broadcast %3 : vector<1x128xf32> to vector<16x128xf32>
    %5 = arith.mulf %2, %4 : vector<16x128xf32>
    %c0_5 = arith.constant 0 : index
    %c0_6 = arith.constant 0 : index
    %6 = vector.load %arg5[%c0_5, %c0_6] : memref<1x128xf32, #tpu.memory_space<vmem>>, vector<1x128xf32>
    %7 = vector.broadcast %6 : vector<1x128xf32> to vector<16x128xf32>
    %8 = arith.addf %5, %7 : vector<16x128xf32>
    %c0_7 = arith.constant 0 : index
    %c0_8 = arith.constant 0 : index
    %9 = vector.load %arg6[%c0_7, %c0_8] : memref<16x128xf32, #tpu.memory_space<vmem>>, vector<16x128xf32>
    tpu.vector_store %arg6[%c0_7, %c0_8], %8 {strides = array<i32>} : memref<16x128xf32, #tpu.memory_space<vmem>>, vector<16x128xf32>,
    return
  }
  func.func @transform_0(%arg0: i32, %arg1: i32) -> (i32, i32) {
    %c0_i32 = arith.constant 0 : i32
    %c0_i32_0 = arith.constant 0 : i32
    return %arg0, %c0_i32 : i32, i32
  }
  func.func @transform_1(%arg0: i32, %arg1: i32) -> (i32, i32) {
    %c0_i32 = arith.constant 0 : i32
    %c0_i32_0 = arith.constant 0 : i32
    return %c0_i32, %arg1 : i32, i32
  }
  func.func @transform_2(%arg0: i32, %arg1: i32) -> (i32, i32) {
    %c0_i32 = arith.constant 0 : i32
    %c0_i32_0 = arith.constant 0 : i32
    return %c0_i32, %arg1 : i32, i32
  }
  func.func @transform_3(%arg0: i32, %arg1: i32) -> (i32, i32) {
    %c0_i32 = arith.constant 0 : i32
    %c0_i32_0 = arith.constant 0 : i32
    return %c0_i32, %arg1 : i32, i32
  }
  func.func @transform_4(%arg0: i32, %arg1: i32) -> (i32, i32) {
    %c0_i32 = arith.constant 0 : i32
    return %arg0, %arg1 : i32, i32
  }
}

</mosaic_0001>

<bundles_post_ra>
// kernel: _lambda_.55
= control target key start
LH: loop header
LB: loop body
LE: loop exit
PB: predicated region body
PF: predicated region fallthrough
CT: control target
= control target key end

     0   :  { %s5056_s15 = smov 0   ;;  %s5058_s16 = smov 0   ;;  %s6425_s0 = inlined_call_operand.vmem [shape: bf16[2048,128], index: 0, kind: input, shape index: {}]   ;;  %s6426_s1 = inlined_call_operand.vmem [shape: bf16[128,128], index: 1, kind: input, shape index: {}]   ;;  %s6427_s2 = inlined_call_operand.vmem [shape: f32[1,128], index: 2, kind: input, shape index: {}]   ;;  %s6428_s3 = inlined_call_operand.vmem [shape: f32[1,128], index: 3, kind: input, shape index: {}]   ;;  %s6429_s4 = inlined_call_operand.vmem [shape: bf16[2048,128], index: 4, kind: output, shape index: {}]  }
   0x1   :  { %s5060_s17 = smov 0  }
   0x2 LB: > { %s26_s18 = sadd.s32 1, %s5025_s16  ;;  %p3315_p0 = scmp.ge.s32.totalorder %s5029_s17, 1  ;;  %s5029_s17 = sphi %s5060_s17, %s14_s17   ;;  %s5025_s16 = sphi %s5058_s16, %s6536_s16   ;;  %s5021_s15 = sphi %s5056_s15, %s6535_s15  }
   0x3   : > { %p28_p1 = scmp.ge.s32.totalorder %s26_s18, 2  ;;  %p202_p2 = scmp.lt.s32.totalorder %s5029_s17, 3 }
   0x5   : > { %s6538_s18 = smov (%p28_p1, %s26_s18), 0  ;;  %p203_p3 = pnand %p3315_p0, %p202_p2 }
   0x7   : > { %206 = sbr.rel (%p203_p3) target bundleno = 542 (0x21e), region = 36 }
   0xe   : > { %v4419_v0 = vld [vmem:[%s6426_s1] sm:$0xff]   ;;  %s3316_s21 = sshll.u32 %s5021_s15, 7  ;;  %v4420_v1 = vld [vmem:[%s6426_s1 + $0x8] sm:$0xff]   ;;  %v4421_v2 = vld [vmem:[%s6426_s1 + $0x10] sm:$0xff]  }
   0xf   : > { %p242_p4 = scmp.lt.s32.totalorder %s3316_s21, 255  ;;  %4235 = vmatprep.subr.bf16.mxu0 %v4419_v0  ;;  %4379 = vmatprep.subr.bf16.mxu1 %v4419_v0  ;;  %v4422_v3 = vld [vmem:[%s6426_s1 + $0x18] sm:$0xff]   ;;  %v4423_v6 = vld [vmem:[%s6426_s1 + $0x20] sm:$0xff]   ;;  %v4424_v7 = vld [vmem:[%s6426_s1 + $0x28] sm:$0xff]  }
  0x10   : > { %4236 = vmatpush3.bf16.msra.mxu0 %v4419_v0  ;;  %4387 = vmatpush3.bf16.msra.mxu1 %v4419_v0  ;;  %v4425_v8 = vld [vmem:[%s6426_s1 + $0x30] sm:$0xff]   ;;  %v4426_v9 = vld [vmem:[%s6426_s1 + $0x38] sm:$0xff]  }
  0x11   : > { %s6540_s21 = smov (!%p242_p4, %s3316_s21), 255  ;;  %4237 = vmatprep.subr.bf16.mxu0 %v4420_v1  ;;  %4380 = vmatprep.subr.bf16.mxu1 %v4420_v1 }
  0x12   : > { %s3317_s26 = sshll.u32 %s6540_s21, 2 }
  0x13   : > { %s5091_s29 = scalar_lea.vmem %s6425_s0, %s3317_s26  ;;  %s5341_s24 = scalar_lea.vmem %s6429_s4, %s3317_s26 }
  0x14   : > { %4238 = vmatpush3.bf16.msra.mxu0 %v4420_v1  ;;  %4388 = vmatpush3.bf16.msra.mxu1 %v4420_v1  ;;  %v4427_v4 = vld [vmem:[%s5091_s29] sm:$0xff]   ;;  %v4429_v10 = vld [vmem:[%s5091_s29 + $0x8] sm:$0xff]   ;;  %v4431_v12 = vld [vmem:[%s5091_s29 + $0x10] sm:$0xff]  }
  0x15   : > { %4239 = vmatprep.subr.bf16.mxu0 %v4421_v2  ;;  %4381 = vmatprep.subr.bf16.mxu1 %v4421_v2  ;;  %v4428_v5 = vld [vmem:[%s5091_s29 + $0x100] sm:$0xff]   ;;  %v4430_v11 = vld [vmem:[%s5091_s29 + $0x108] sm:$0xff]   ;;  %v4432_v13 = vld [vmem:[%s5091_s29 + $0x110] sm:$0xff]  }
  0x16   : > { %4251 = vmatprep.mubr.bf16.mxu0 %v4427_v4  ;;  %4315 = vmatprep.mubr.bf16.mxu1 %v4428_v5  ;;  %v4433_v14 = vld [vmem:[%s5091_s29 + $0x18] sm:$0xff]   ;;  %v4435_v16 = vld [vmem:[%s5091_s29 + $0x20] sm:$0xff]   ;;  %v4437_v18 = vld [vmem:[%s5091_s29 + $0x28] sm:$0xff]  }
  0x17   : > { %v4434_v15 = vld [vmem:[%s5091_s29 + $0x118] sm:$0xff]   ;;  %v4436_v17 = vld [vmem:[%s5091_s29 + $0x120] sm:$0xff]   ;;  %v4438_v19 = vld [vmem:[%s5091_s29 + $0x128] sm:$0xff]  }
  0x18   : > { %4240 = vmatpush3.bf16.msra.mxu0 %v4421_v2  ;;  %4389 = vmatpush3.bf16.msra.mxu1 %v4421_v2  ;;  %v4439_v20 = vld [vmem:[%s5091_s29 + $0x30] sm:$0xff]   ;;  %v4441_v22 = vld [vmem:[%s5091_s29 + $0x38] sm:$0xff]   ;;  %v4443_v24 = vld [vmem:[%s5091_s29 + $0x40] sm:$0xff]  }
  0x19   : > { %4241 = vmatprep.subr.bf16.mxu0 %v4422_v3  ;;  %4382 = vmatprep.subr.bf16.mxu1 %v4422_v3  ;;  %v4440_v21 = vld [vmem:[%s5091_s29 + $0x130] sm:$0xff]   ;;  %v4442_v23 = vld [vmem:[%s5091_s29 + $0x138] sm:$0xff]   ;;  %v4444_v25 = vld [vmem:[%s5091_s29 + $0x140] sm:$0xff]  }
  0x1a   : > { %v4445_v26 = vld [vmem:[%s5091_s29 + $0x48] sm:$0xff]   ;;  %v4447_v28 = vld [vmem:[%s5091_s29 + $0x50] sm:$0xff]   ;;  %v4449_v30 = vld [vmem:[%s5091_s29 + $0x58] sm:$0xff]  }
  0x1b   : > { %v4446_v27 = vld [vmem:[%s5091_s29 + $0x148] sm:$0xff]   ;;  %v4448_v29 = vld [vmem:[%s5091_s29 + $0x150] sm:$0xff]   ;;  %v4450_v31 = vld [vmem:[%s5091_s29 + $0x158] sm:$0xff]  }
  0x1c   : > { %4242 = vmatpush3.bf16.msra.mxu0 %v4422_v3  ;;  %4390 = vmatpush3.bf16.msra.mxu1 %v4422_v3  ;;  %v4451_v32 = vld [vmem:[%s5091_s29 + $0x60] sm:$0xff]   ;;  %v4453_v34 = vld [vmem:[%s5091_s29 + $0x68] sm:$0xff]   ;;  %v4455_v36 = vld [vmem:[%s5091_s29 + $0x70] sm:$0xff]  }
  0x1d   : > { %4243 = vmatprep.subr.bf16.mxu0 %v4423_v6  ;;  %4383 = vmatprep.subr.bf16.mxu1 %v4423_v6  ;;  %v4452_v33 = vld [vmem:[%s5091_s29 + $0x160] sm:$0xff]   ;;  %v4454_v35 = vld [vmem:[%s5091_s29 + $0x168] sm:$0xff]   ;;  %v4456_v37 = vld [vmem:[%s5091_s29 + $0x170] sm:$0xff]  }
  0x1e   : > { %v4457_v38 = vld [vmem:[%s5091_s29 + $0x78] sm:$0xff]   ;;  %v4459_v40 = vld [vmem:[%s5091_s29 + $0x80] sm:$0xff]   ;;  %v4461_v42 = vld [vmem:[%s5091_s29 + $0x88] sm:$0xff]  }
  0x1f   : > { %v4458_v39 = vld [vmem:[%s5091_s29 + $0x178] sm:$0xff]   ;;  %v4460_v41 = vld [vmem:[%s5091_s29 + $0x180] sm:$0xff]   ;;  %v4462_v43 = vld [vmem:[%s5091_s29 + $0x188] sm:$0xff]  }
  0x20   : > { %4244 = vmatpush3.bf16.msra.mxu0 %v4423_v6  ;;  %4391 = vmatpush3.bf16.msra.mxu1 %v4423_v6  ;;  %v4463_v44 = vld [vmem:[%s5091_s29 + $0x90] sm:$0xff]   ;;  %v4465_v46 = vld [vmem:[%s5091_s29 + $0x98] sm:$0xff]   ;;  %v4467_v48 = vld [vmem:[%s5091_s29 + $0xa0] sm:$0xff]  }
  0x21   : > { %4245 = vmatprep.subr.bf16.mxu0 %v4424_v7  ;;  %4384 = vmatprep.subr.bf16.mxu1 %v4424_v7  ;;  %v4464_v45 = vld [vmem:[%s5091_s29 + $0x190] sm:$0xff]   ;;  %v4466_v47 = vld [vmem:[%s5091_s29 + $0x198] sm:$0xff]   ;;  %v4468_v49 = vld [vmem:[%s5091_s29 + $0x1a0] sm:$0xff]  }
  0x22   : > { %v4469_v50 = vld [vmem:[%s5091_s29 + $0xa8] sm:$0xff]   ;;  %v4471_v52 = vld [vmem:[%s5091_s29 + $0xb0] sm:$0xff]   ;;  %v4473_v54 = vld [vmem:[%s5091_s29 + $0xb8] sm:$0xff]  }
  0x23   : > { %v4470_v51 = vld [vmem:[%s5091_s29 + $0x1a8] sm:$0xff]   ;;  %v4472_v53 = vld [vmem:[%s5091_s29 + $0x1b0] sm:$0xff]   ;;  %v4474_v55 = vld [vmem:[%s5091_s29 + $0x1b8] sm:$0xff]  }
  0x24   : > { %4246 = vmatpush3.bf16.msra.mxu0 %v4424_v7  ;;  %4392 = vmatpush3.bf16.msra.mxu1 %v4424_v7  ;;  %v4475_v56 = vld [vmem:[%s5091_s29 + $0xc0] sm:$0xff]   ;;  %v4477_v58 = vld [vmem:[%s5091_s29 + $0xc8] sm:$0xff]   ;;  %v4479_v60 = vld [vmem:[%s5091_s29 + $0xd0] sm:$0xff]  }
  0x25   : > { %4247 = vmatprep.subr.bf16.mxu0 %v4425_v8  ;;  %4385 = vmatprep.subr.bf16.mxu1 %v4425_v8  ;;  %v4476_v57 = vld [vmem:[%s5091_s29 + $0x1c0] sm:$0xff]   ;;  %v4478_v59 = vld [vmem:[%s5091_s29 + $0x1c8] sm:$0xff]   ;;  %v4480_v61 = vld [vmem:[%s5091_s29 + $0x1d0] sm:$0xff]  }
  0x26   : > { %v4481_v62 = vld [vmem:[%s5091_s29 + $0xd8] sm:$0xff]   ;;  %v4483_v0 = vld [vmem:[%s5091_s29 + $0xe0] sm:$0xff]   ;;  %v4485_v2 = vld [vmem:[%s5091_s29 + $0xe8] sm:$0xff]  }
  0x27   : > { %v4482_v63 = vld [vmem:[%s5091_s29 + $0x1d8] sm:$0xff]   ;;  %v4484_v1 = vld [vmem:[%s5091_s29 + $0x1e0] sm:$0xff]   ;;  %v4486_v3 = vld [vmem:[%s5091_s29 + $0x1e8] sm:$0xff]  }
  0x28   : > { %4248 = vmatpush3.bf16.msra.mxu0 %v4425_v8  ;;  %4393 = vmatpush3.bf16.msra.mxu1 %v4425_v8  ;;  %v4487_v4 = vld [vmem:[%s5091_s29 + $0xf0] sm:$0xff]   ;;  %v4489_v6 = vld [vmem:[%s5091_s29 + $0xf8] sm:$0xff]   ;;  %v5175_v8 = vld [vmem:[%s6427_s2] ss:$0 sm:$0xff] }
  0x29   : > { %4249 = vmatprep.subr.bf16.mxu0 %v4426_v9  ;;  %4386 = vmatprep.subr.bf16.mxu1 %v4426_v9  ;;  %v4488_v5 = vld [vmem:[%s5091_s29 + $0x1f0] sm:$0xff]   ;;  %v4490_v7 = vld [vmem:[%s5091_s29 + $0x1f8] sm:$0xff]  }
  0x2c   : > { %4250 = vmatpush3.bf16.msra.mxu0 %v4426_v9  ;;  %4394 = vmatpush3.bf16.msra.mxu1 %v4426_v9 }
  0x2f   : > { %4252 = vmatmul.mubr.bf16.vlgmr.msra.gmra.mrb[0].mxu0 %v4429_v10  ;;  %4316 = vmatmul.mubr.bf16.vlgmr.msra.gmra.mrb[0].mxu1 %v4430_v11  ;;  %v5180_v10 = vld [vmem:[%s6428_s3] ss:$0 sm:$0xff] }
  0x30   : > { %4255 = vmatprep.mubr.bf16.mxu0 %v4431_v12  ;;  %4319 = vmatprep.mubr.bf16.mxu1 %v4432_v13 }
  0x37   : > { %4256 = vmatmul.mubr.bf16.gmra.mrb[4].mxu0 %v4433_v14  ;;  %4320 = vmatmul.mubr.bf16.gmra.mrb[4].mxu1 %v4434_v15 }
  0x38   : > { %4259 = vmatprep.mubr.bf16.mxu0 %v4435_v16  ;;  %4323 = vmatprep.mubr.bf16.mxu1 %v4436_v17 }
  0x3f   : > { %4260 = vmatmul.mubr.bf16.gmra.mrb[8].mxu0 %v4437_v18  ;;  %4324 = vmatmul.mubr.bf16.gmra.mrb[8].mxu1 %v4438_v19 }
  0x40   : > { %4263 = vmatprep.mubr.bf16.mxu0 %v4439_v20  ;;  %4327 = vmatprep.mubr.bf16.mxu1 %v4440_v21 }
  0x47   : > { %4264 = vmatmul.mubr.bf16.gmra.mrb[12].mxu0 %v4441_v22  ;;  %4328 = vmatmul.mubr.bf16.gmra.mrb[12].mxu1 %v4442_v23 }
  0x48   : > { %4267 = vmatprep.mubr.bf16.mxu0 %v4443_v24  ;;  %4331 = vmatprep.mubr.bf16.mxu1 %v4444_v25 }
  0x4f   : > { %4268 = vmatmul.mubr.bf16.gmra.mrb[16].mxu0 %v4445_v26  ;;  %4332 = vmatmul.mubr.bf16.gmra.mrb[16].mxu1 %v4446_v27 }
  0x50   : > { %4271 = vmatprep.mubr.bf16.mxu0 %v4447_v28  ;;  %4335 = vmatprep.mubr.bf16.mxu1 %v4448_v29 }
  0x57   : > { %4272 = vmatmul.mubr.bf16.gmra.mrb[20].mxu0 %v4449_v30  ;;  %4336 = vmatmul.mubr.bf16.gmra.mrb[20].mxu1 %v4450_v31 }
  0x58   : > { %4275 = vmatprep.mubr.bf16.mxu0 %v4451_v32  ;;  %4339 = vmatprep.mubr.bf16.mxu1 %v4452_v33 }
  0x5f   : > { %4276 = vmatmul.mubr.bf16.gmra.mrb[24].mxu0 %v4453_v34  ;;  %4340 = vmatmul.mubr.bf16.gmra.mrb[24].mxu1 %v4454_v35 }
  0x60   : > { %4279 = vmatprep.mubr.bf16.mxu0 %v4455_v36  ;;  %4343 = vmatprep.mubr.bf16.mxu1 %v4456_v37 }
  0x67   : > { %4280 = vmatmul.mubr.bf16.gmra.mrb[28].mxu0 %v4457_v38  ;;  %4344 = vmatmul.mubr.bf16.gmra.mrb[28].mxu1 %v4458_v39 }
  0x68   : > { %4283 = vmatprep.mubr.bf16.mxu0 %v4459_v40  ;;  %4347 = vmatprep.mubr.bf16.mxu1 %v4460_v41 }
  0x6f   : > { %4284 = vmatmul.mubr.bf16.gmra.mrb[32].mxu0 %v4461_v42  ;;  %4348 = vmatmul.mubr.bf16.gmra.mrb[32].mxu1 %v4462_v43 }
  0x70   : > { %4287 = vmatprep.mubr.bf16.mxu0 %v4463_v44  ;;  %4351 = vmatprep.mubr.bf16.mxu1 %v4464_v45 }
  0x77   : > { %4288 = vmatmul.mubr.bf16.gmra.mrb[36].mxu0 %v4465_v46  ;;  %4352 = vmatmul.mubr.bf16.gmra.mrb[36].mxu1 %v4466_v47 }
  0x78   : > { %4291 = vmatprep.mubr.bf16.mxu0 %v4467_v48  ;;  %4355 = vmatprep.mubr.bf16.mxu1 %v4468_v49 }
  0x7f   : > { %4292 = vmatmul.mubr.bf16.gmra.mrb[40].mxu0 %v4469_v50  ;;  %4356 = vmatmul.mubr.bf16.gmra.mrb[40].mxu1 %v4470_v51 }
  0x80   : > { %4295 = vmatprep.mubr.bf16.mxu0 %v4471_v52  ;;  %4359 = vmatprep.mubr.bf16.mxu1 %v4472_v53 }
  0x87   : > { %4296 = vmatmul.mubr.bf16.gmra.mrb[44].mxu0 %v4473_v54  ;;  %4360 = vmatmul.mubr.bf16.gmra.mrb[44].mxu1 %v4474_v55 }
  0x88   : > { %4299 = vmatprep.mubr.bf16.mxu0 %v4475_v56  ;;  %4363 = vmatprep.mubr.bf16.mxu1 %v4476_v57 }
  0x8f   : > { %4300 = vmatmul.mubr.bf16.gmra.mrb[48].mxu0 %v4477_v58  ;;  %4364 = vmatmul.mubr.bf16.gmra.mrb[48].mxu1 %v4478_v59 }
  0x90   : > { %4303 = vmatprep.mubr.bf16.mxu0 %v4479_v60  ;;  %4367 = vmatprep.mubr.bf16.mxu1 %v4480_v61 }
  0x97   : > { %4304 = vmatmul.mubr.bf16.gmra.mrb[52].mxu0 %v4481_v62  ;;  %4368 = vmatmul.mubr.bf16.gmra.mrb[52].mxu1 %v4482_v63 }
  0x98   : > { %4307 = vmatprep.mubr.bf16.mxu0 %v4483_v0  ;;  %4371 = vmatprep.mubr.bf16.mxu1 %v4484_v1 }
  0x9f   : > { %4308 = vmatmul.mubr.bf16.gmra.mrb[56].mxu0 %v4485_v2  ;;  %4372 = vmatmul.mubr.bf16.gmra.mrb[56].mxu1 %v4486_v3 }
  0xa0   : > { %4311 = vmatprep.mubr.bf16.mxu0 %v4487_v4  ;;  %4375 = vmatprep.mubr.bf16.mxu1 %v4488_v5 }
  0xa7   : > { %4312 = vmatmul.mubr.bf16.gmra.mrb[60].mxu0 %v4489_v6  ;;  %4376 = vmatmul.mubr.bf16.gmra.mrb[60].mxu1 %v4490_v7 }
 0x102   : > { %v4253_v9 = vpop.f32.mrb[0].mxu0  ;;  %v4317_v11 = vpop.f32.mrb[0].mxu1 }
 0x103   : > { %v1397_v12 = vmul.f32 %v4253_v9, %v5175_v8  ;;  %v1461_v13 = vmul.f32 %v4317_v11, %v5175_v8  ;;  %v877_v14 = vpop.f32.mrb[1].mxu0  ;;  %v1133_v15 = vpop.f32.mrb[1].mxu1 }
 0x104   : > { %v1395_v16 = vmul.f32 %v5175_v8, %v877_v14  ;;  %v1459_v17 = vmul.f32 %v5175_v8, %v1133_v15  ;;  %v4254_v18 = vpop.f32.mrb[2].mxu0  ;;  %v4318_v19 = vpop.f32.mrb[2].mxu1 }
 0x105   : > { %v5187_v20 = vadd.f32 %v5180_v10, %v1397_v12  ;;  %v5190_v21 = vadd.f32 %v5180_v10, %v1461_v13  ;;  %v1398_v22 = vmul.f32 %v4254_v18, %v5175_v8  ;;  %v1462_v23 = vmul.f32 %v4318_v19, %v5175_v8  ;;  %v880_v24 = vpop.f32.mrb[3].mxu0  ;;  %v1136_v25 = vpop.f32.mrb[3].mxu1 }
 0x106   : > { %v5195_v26 = vadd.f32 %v5180_v10, %v1395_v16  ;;  %v5198_v27 = vadd.f32 %v5180_v10, %v1459_v17  ;;  %v1396_v28 = vmul.f32 %v5175_v8, %v880_v24  ;;  %v1460_v29 = vmul.f32 %v5175_v8, %v1136_v25 }
 0x107   : > { %v3396_v30 = vmul.f32 -1.442695, %v5187_v20  ;;  %v3460_v31 = vmul.f32 -1.442695, %v5190_v21  ;;  %v5205_v32 = vadd.f32 %v5180_v10, %v1398_v22  ;;  %v5208_v33 = vadd.f32 %v5180_v10, %v1462_v23 }
 0x108   : > { %v3394_v34 = vmul.f32 -1.442695, %v5195_v26  ;;  %v3458_v35 = vmul.f32 -1.442695, %v5198_v27  ;;  %v5213_v36 = vadd.f32 %v5180_v10, %v1396_v28  ;;  %v5216_v37 = vadd.f32 %v5180_v10, %v1460_v29 }
 0x109   : > { %4491 = vpow2.f32 %v3396_v30  ;;  %v3397_v38 = vmul.f32 -1.442695, %v5205_v32  ;;  %v3461_v39 = vmul.f32 -1.442695, %v5208_v33 }
 0x10a   : > { %4493 = vpow2.f32 %v3460_v31  ;;  %v4257_v40 = vpop.f32.mrb[4].mxu0  ;;  %v4321_v41 = vpop.f32.mrb[4].mxu1  ;;  %v3395_v42 = vmul.f32 -1.442695, %v5213_v36  ;;  %v3459_v47 = vmul.f32 -1.442695, %v5216_v37 }
 0x10b   : > { %4495 = vpow2.f32 %v3394_v34  ;;  %v1401_v43 = vmul.f32 %v4257_v40, %v5175_v8  ;;  %v1465_v44 = vmul.f32 %v4321_v41, %v5175_v8  ;;  %v893_v45 = vpop.f32.mrb[5].mxu0  ;;  %v1149_v46 = vpop.f32.mrb[5].mxu1 }
 0x10c   : > { %4497 = vpow2.f32 %v3458_v35  ;;  %v1399_v48 = vmul.f32 %v5175_v8, %v893_v45  ;;  %v1463_v49 = vmul.f32 %v5175_v8, %v1149_v46  ;;  %v4258_v50 = vpop.f32.mrb[6].mxu0  ;;  %v4322_v51 = vpop.f32.mrb[6].mxu1 }
 0x10d   : > { %4499 = vpow2.f32 %v3397_v38  ;;  %v5227_v52 = vadd.f32 %v5180_v10, %v1401_v43  ;;  %v5230_v53 = vadd.f32 %v5180_v10, %v1465_v44  ;;  %v1402_v54 = vmul.f32 %v4258_v50, %v5175_v8  ;;  %v896_v55 = vpop.f32.mrb[7].mxu0  ;;  %v1152_v56 = vpop.f32.mrb[7].mxu1 }
 0x10e   : > { %4501 = vpow2.f32 %v3461_v39  ;;  %v5234_v57 = vadd.f32 %v5180_v10, %v1399_v48  ;;  %v5237_v58 = vadd.f32 %v5180_v10, %v1463_v49  ;;  %v1466_v59 = vmul.f32 %v4322_v51, %v5175_v8 }
 0x10f   : > { %4503 = vpow2.f32 %v3395_v42  ;;  %v3400_v60 = vmul.f32 -1.442695, %v5227_v52  ;;  %v3464_v61 = vmul.f32 -1.442695, %v5230_v53  ;;  %v5243_v62 = vadd.f32 %v5180_v10, %v1402_v54 }
 0x110   : > { %4505 = vpow2.f32 %v3459_v47  ;;  %v3398_v63 = vmul.f32 -1.442695, %v5234_v57  ;;  %v3462_v0 = vmul.f32 -1.442695, %v5237_v58  ;;  %v1400_v2 = vmul.f32 %v5175_v8, %v896_v55 }
 0x111   : > { %4507 = vpow2.f32 %v3400_v60  ;;  %v3401_v1 = vmul.f32 -1.442695, %v5243_v62  ;;  %v5250_v6 = vadd.f32 %v5180_v10, %v1466_v59  ;;  %v1464_v13 = vmul.f32 %v5175_v8, %v1152_v56 }
 0x112   : > { %4509 = vpow2.f32 %v3464_v61  ;;  %v4261_v3 = vpop.f32.mrb[8].mxu0  ;;  %v4325_v4 = vpop.f32.mrb[8].mxu1  ;;  %v5254_v23 = vadd.f32 %v5180_v10, %v1400_v2 }
 0x113   : > { %v4492_v5 = vpop.eup %4491  ;;  %4511 = vpow2.f32 %v3398_v63  ;;  %v909_v7 = vpop.f32.mrb[9].mxu0  ;;  %v5257_v29 = vmul.f32 -1.442695, %v5250_v6  ;;  %v5260_v34 = vadd.f32 %v5180_v10, %v1464_v13  ;;  %v1405_v35 = vmul.f32 %v4261_v3, %v5175_v8 }
 0x114   : > { %v1165_v9 = vpop.f32.mrb[9].mxu1  ;;  %v4494_v11 = vpop.eup %4493  ;;  %v2044_v12 = vadd.f32 1.0, %v4492_v5  ;;  %4513 = vpow2.f32 %v3462_v0  ;;  %v1469_v40 = vmul.f32 %v4325_v4, %v5175_v8  ;;  %v1403_v41 = vmul.f32 %v5175_v8, %v909_v7 }
 0x115   : > { %v4262_v14 = vpop.f32.mrb[10].mxu0  ;;  %v4326_v15 = vpop.f32.mrb[10].mxu1  ;;  %v2108_v17 = vadd.f32 1.0, %v4494_v11  ;;  %4515 = vpow2.f32 %v3401_v1  ;;  %v3399_v44 = vmul.f32 -1.442695, %v5254_v23  ;;  %v1467_v45 = vmul.f32 %v5175_v8, %v1165_v9 }
 0x116   : > { %v4496_v16 = vpop.eup %4495  ;;  %v912_v18 = vpop.f32.mrb[11].mxu0  ;;  %4517 = vrcp.f32 %v2044_v12  ;;  %v1406_v50 = vmul.f32 %v4262_v14, %v5175_v8  ;;  %v1470_v51 = vmul.f32 %v4326_v15, %v5175_v8  ;;  %v5272_v60 = vadd.f32 %v5180_v10, %v1405_v35 }
 0x117   : > { %v4498_v19 = vpop.eup %4497  ;;  %v2042_v22 = vadd.f32 1.0, %v4496_v16  ;;  %v1168_v24 = vpop.f32.mrb[11].mxu1  ;;  %4519 = vrcp.f32 %v2108_v17  ;;  %v1404_v61 = vmul.f32 %v5175_v8, %v912_v18  ;;  %v5280_v3 = vadd.f32 %v5180_v10, %v1469_v40 }
 0x118   : > { %v4500_v25 = vpop.eup %4499  ;;  %v2106_v28 = vadd.f32 1.0, %v4498_v19  ;;  %v5283_v4 = vadd.f32 %v5180_v10, %v1403_v41  ;;  %v3463_v12 = vmul.f32 -1.442695, %v5260_v34  ;;  %v5291_v13 = vadd.f32 %v5180_v10, %v1467_v45 }
 0x119   : > { %v4502_v30 = vpop.eup %4501  ;;  %4521 = vrcp.f32 %v2042_v22  ;;  %v2045_v31 = vadd.f32 1.0, %v4500_v25  ;;  %v5294_v16 = vadd.f32 %v5180_v10, %v1406_v50  ;;  %v5297_v17 = vadd.f32 %v5180_v10, %v1470_v51 }
 0x11a   : > { %v4504_v38 = vpop.eup %4503  ;;  %4523 = vrcp.f32 %v2106_v28  ;;  %v2109_v39 = vadd.f32 1.0, %v4502_v30  ;;  %v4265_v46 = vpop.f32.mrb[12].mxu0  ;;  %v5300_v22 = vadd.f32 %v5180_v10, %v1404_v61  ;;  %v1468_v25 = vmul.f32 %v5175_v8, %v1168_v24 }
 0x11b   : > { %v4506_v42 = vpop.eup %4505  ;;  %4525 = vrcp.f32 %v2045_v31  ;;  %v2043_v43 = vadd.f32 1.0, %v4504_v38  ;;  %v4329_v47 = vpop.f32.mrb[12].mxu1  ;;  %v3404_v30 = vmul.f32 -1.442695, %v5272_v60  ;;  %v3468_v31 = vmul.f32 -1.442695, %v5280_v3 }
 0x11c   : > { %v4508_v48 = vpop.eup %4507  ;;  %4527 = vrcp.f32 %v2109_v39  ;;  %v2107_v49 = vadd.f32 1.0, %v4506_v42  ;;  %v925_v54 = vpop.f32.mrb[13].mxu0  ;;  %v3402_v35 = vmul.f32 -1.442695, %v5283_v4  ;;  %v3466_v39 = vmul.f32 -1.442695, %v5291_v13 }
 0x11d   : > { %v5269_v55 = vpop.f32.mrb[13].mxu1  ;;  %v4510_v56 = vpop.eup %4509  ;;  %4529 = vrcp.f32 %v2043_v43  ;;  %v2048_v59 = vadd.f32 1.0, %v4508_v48  ;;  %v1409_v40 = vmul.f32 %v4265_v46, %v5175_v8  ;;  %v1473_v41 = vmul.f32 %v4329_v47, %v5175_v8 }
 0x11e   : > { %v5275_v63 = vpop.f32.mrb[14].mxu0  ;;  %v5277_v0 = vpop.f32.mrb[14].mxu1  ;;  %4531 = vrcp.f32 %v2107_v49  ;;  %v2112_v2 = vadd.f32 1.0, %v4510_v56  ;;  %v3405_v45 = vmul.f32 -1.442695, %v5294_v16  ;;  %v5323_v56 = vadd.f32 %v5180_v10, %v1468_v25 }
 0x11f   : > { %v4512_v1 = vpop.eup %4511  ;;  %v5285_v5 = vpop.f32.mrb[15].mxu0  ;;  %4533 = vrcp.f32 %v2048_v59  ;;  %v3469_v48 = vmul.f32 -1.442695, %v5297_v17  ;;  %v3403_v47 = vmul.f32 -1.442695, %v5300_v22 }
 0x120   : > { %v5287_v7 = vpop.f32.mrb[15].mxu1  ;;  %v4514_v9 = vpop.eup %4513  ;;  %v2046_v11 = vadd.f32 1.0, %v4512_v1  ;;  %4535 = vrcp.f32 %v2112_v2 }
 0x121   : > { %v4516_v14 = vpop.eup %4515  ;;  %v2110_v15 = vadd.f32 1.0, %v4514_v9  ;;  %v1407_v9 = vmul.f32 %v5175_v8, %v925_v54 }
 0x122   : > { %v4518_v18 = vpop.eup %4517  ;;  %4537 = vrcp.f32 %v2046_v11  ;;  %v2049_v19 = vadd.f32 1.0, %v4516_v14  ;;  %v5309_v42 = vpop.f32.mrb[16].mxu0 }
 0x123   : > { %v4520_v28 = vpop.eup %4519  ;;  %4539 = vrcp.f32 %v2110_v15  ;;  %v5311_v43 = vpop.f32.mrb[16].mxu1  ;;  %v2428_v46 = vmul.f32 %v4518_v18, %v5187_v20 }
 0x124   : > { %v4522_v38 = vpop.eup %4521  ;;  %4541 = vrcp.f32 %v2049_v19  ;;  %v5316_v49 = vpop.f32.mrb[17].mxu0  ;;  %v2492_v1 = vmul.f32 %v4520_v28, %v5190_v21  ;;  %v5345_v21 = vadd.f32 %v5180_v10, %v1409_v40 }
 0x125   : > { %v4524_v24 = vpop.eup %4523  ;;  %4543 = vpow2.f32 %v5257_v29  ;;  %v5318_v50 = vpop.f32.mrb[17].mxu1 }
 0x126   : > { %v4526_v51 = vpop.eup %4525  ;;  %4545 = vpow2.f32 %v3399_v44  ;;  %v5325_v59 = vpop.f32.mrb[18].mxu0  ;;  %v2490_v25 = vmul.f32 %v4524_v24, %v5198_v27  ;;  %v1471_v27 = vmul.f32 %v5175_v8, %v5269_v55  ;;  %v1410_v55 = vmul.f32 %v5275_v63, %v5175_v8 }
 0x127   : > { %v5327_v29 = vpop.f32.mrb[18].mxu1  ;;  %v4528_v61 = vpop.eup %4527  ;;  %v2429_v2 = vmul.f32 %v4526_v51, %v5205_v32  ;;  %4547 = vpow2.f32 %v3463_v12  ;;  %v5348_v32 = vadd.f32 %v5180_v10, %v1473_v41  ;;  %v2426_v12 = vmul.f32 %v4522_v38, %v5195_v26 }
 0x128   : > { %v5332_v11 = vpop.f32.mrb[19].mxu0  ;;  %v5334_v20 = vpop.f32.mrb[19].mxu1  ;;  %v2493_v14 = vmul.f32 %v4528_v61, %v5208_v33  ;;  %4549 = vpow2.f32 %v3404_v30  ;;  %v3467_v41 = vmul.f32 -1.442695, %v5323_v56 }
 0x129   : > { %v4530_v44 = vpop.eup %4529  ;;  %v3788_v15 = vpack.c.bf16 %v2429_v2, %v2428_v46  ;;  %4551 = vpow2.f32 %v3468_v31  ;;  %v5374_v46 = vadd.f32 %v5180_v10, %v1407_v9 }
 0x12a   : > { %v4532_v54 = vpop.eup %4531  ;;  %v2427_v18 = vmul.f32 %v4530_v44, %v5213_v36  ;;  %v3948_v28 = vpack.c.bf16 %v2493_v14, %v2492_v1  ;;  %4553 = vpow2.f32 %v3402_v35  ;;  %v3408_v36 = vmul.f32 -1.442695, %v5345_v21  ;;  %v5360_v31 = vpop.f32.mrb[20].mxu0 }
 0x12b   : > { %v4534_v19 = vpop.eup %4533  ;;  %v2491_v33 = vmul.f32 %v4532_v54, %v5216_v37  ;;  %4100 = vst [vmem:[%s5341_s24 + $0x8] sm:$0xff] %v3788_v15   ;;  %4555 = vpow2.f32 %v3466_v39  ;;  %v5362_v37 = vpop.f32.mrb[20].mxu1  ;;  %v3472_v39 = vmul.f32 -1.442695, %v5348_v32  ;;  %v1474_v14 = vmul.f32 %v5277_v0, %v5175_v8 }
 0x12c   : > { %v4536_v30 = vpop.eup %4535  ;;  %v3783_v40 = vpack.c.bf16 %v2427_v18, %v2426_v12  ;;  %4132 = vst [vmem:[%s5341_s24 + $0x108] sm:$0xff] %v3948_v28   ;;  %4557 = vpow2.f32 %v3405_v45  ;;  %v5368_v24 = vpop.f32.mrb[21].mxu0  ;;  %v2432_v2 = vmul.f32 %v4534_v19, %v5227_v52  ;;  %v5391_v12 = vadd.f32 %v5180_v10, %v1471_v27 }
 0x12d   : > { %v4538_v26 = vpop.eup %4537  ;;  %v3943_v38 = vpack.c.bf16 %v2491_v33, %v2490_v25  ;;  %4559 = vpow2.f32 %v3469_v48  ;;  %v5370_v51 = vpop.f32.mrb[21].mxu1  ;;  %v5394_v0 = vadd.f32 %v5180_v10, %v1410_v55  ;;  %v5398_v33 = vmul.f32 -1.442695, %v5374_v46 }
 0x12e   : > { %v5364_v35 = vpop.eup %4539  ;;  %3784 = vst [vmem:[%s5341_s24] sm:$0xff] %v3783_v40   ;;  %4561 = vpow2.f32 %v3403_v47  ;;  %v5378_v61 = vpop.f32.mrb[22].mxu0  ;;  %v5401_v40 = vadd.f32 %v5180_v10, %v1474_v14  ;;  %v1408_v27 = vmul.f32 %v5175_v8, %v5285_v5  ;;  %v5422_v5 = vmul.f32 %v4538_v26, %v5234_v57 }
 0x12f   : > { %v4542_v45 = vpop.eup %4541  ;;  %4131 = vst [vmem:[%s5341_s24 + $0x100] sm:$0xff] %v3943_v38   ;;  %v5380_v1 = vpop.f32.mrb[22].mxu1  ;;  %4563 = vpow2.f32 %v3467_v41 }
 0x130   : > { %v4544_v48 = vpop.eup %4543  ;;  %v2433_v44 = vmul.f32 %v4542_v45, %v5243_v62  ;;  %v5386_v47 = vpop.f32.mrb[23].mxu0  ;;  %4565 = vpow2.f32 %v3408_v36  ;;  %v5404_v36 = vmul.f32 -1.442695, %v5391_v12 }
 0x131   : > { %v5388_v9 = vpop.f32.mrb[23].mxu1  ;;  %v4546_v54 = vpop.eup %4545  ;;  %v2113_v63 = vadd.f32 1.0, %v4544_v48  ;;  %4567 = vpow2.f32 %v3472_v39  ;;  %v5413_v48 = vmul.f32 %v4536_v30, %v5230_v53 }
 0x132   : > { %v4548_v15 = vpop.eup %4547  ;;  %v3798_v18 = vpack.c.bf16 %v2433_v44, %v2432_v2  ;;  %v2047_v52 = vadd.f32 1.0, %v4546_v54  ;;  %v5408_v39 = vpop.f32.mrb[24].mxu0  ;;  %v1472_v44 = vmul.f32 %v5175_v8, %v5287_v7 }
 0x133   : > { %v4550_v62 = vpop.eup %4549  ;;  %4569 = vrcp.f32 %v2113_v63  ;;  %v2111_v19 = vadd.f32 1.0, %v4548_v15  ;;  %v5410_v45 = vpop.f32.mrb[24].mxu1 }
 0x134   : > { %v4552_v25 = vpop.eup %4551  ;;  %4102 = vst [vmem:[%s5341_s24 + $0x18] sm:$0xff] %v3798_v18   ;;  %4571 = vrcp.f32 %v2047_v52  ;;  %v2052_v28 = vadd.f32 1.0, %v4550_v62  ;;  %v5417_v14 = vpop.f32.mrb[25].mxu0  ;;  %v5425_v18 = vmul.f32 -1.442695, %v5394_v0 }
 0x135   : > { %v4554_v41 = vpop.eup %4553  ;;  %4573 = vrcp.f32 %v2111_v19  ;;  %v2116_v38 = vadd.f32 1.0, %v4552_v25  ;;  %v5419_v54 = vpop.f32.mrb[25].mxu1  ;;  %v5432_v62 = vmul.f32 -1.442695, %v5401_v40  ;;  %v1413_v19 = vmul.f32 %v5309_v42, %v5175_v8 }
 0x136   : > { %v4556_v55 = vpop.eup %4555  ;;  %4575 = vrcp.f32 %v2052_v28  ;;  %v2050_v2 = vadd.f32 1.0, %v4554_v41  ;;  %v5427_v53 = vpop.f32.mrb[26].mxu0  ;;  %v5442_v28 = vmul.f32 %v5364_v35, %v5237_v58  ;;  %v1477_v42 = vmul.f32 %v5311_v43, %v5175_v8 }
 0x137   : > { %v4558_v63 = vpop.eup %4557  ;;  %4577 = vrcp.f32 %v2116_v38  ;;  %v2114_v15 = vadd.f32 1.0, %v4556_v55  ;;  %v5429_v30 = vpop.f32.mrb[26].mxu1  ;;  %v5445_v38 = vadd.f32 %v5180_v10, %v1408_v27  ;;  %v1411_v58 = vmul.f32 %v5175_v8, %v5316_v49 }
 0x138   : > { %v4560_v52 = vpop.eup %4559  ;;  %4579 = vrcp.f32 %v2050_v2  ;;  %v2053_v7 = vadd.f32 1.0, %v4558_v63  ;;  %v5436_v57 = vpop.f32.mrb[27].mxu0  ;;  %v5448_v63 = vadd.f32 %v5180_v10, %v1472_v44  ;;  %v1475_v35 = vmul.f32 %v5175_v8, %v5318_v50 }
 0x139   : > { %6431 = vst [vmem:[#allocation2_spill] sm:$0xff] %v5436_v57  ;;  %v5438_v26 = vpop.f32.mrb[27].mxu1  ;;  %v4562_v25 = vpop.eup %4561  ;;  %4581 = vrcp.f32 %v2114_v15  ;;  %v2117_v41 = vadd.f32 1.0, %v4560_v52  ;;  %v5457_v52 = vadd.f32 %v5180_v10, %v1413_v19  ;;  %v1414_v44 = vmul.f32 %v5325_v59, %v5175_v8 }
 0x13a   : > { %6432 = vst [vmem:[#allocation3_spill] sm:$0xff] %v5438_v26  ;;  %v4564_v55 = vpop.eup %4563  ;;  %4583 = vrcp.f32 %v2053_v7  ;;  %v2051_v2 = vadd.f32 1.0, %v4562_v25  ;;  %v3407_v25 = vmul.f32 -1.442695, %v5445_v38  ;;  %v1478_v49 = vmul.f32 %v5327_v29, %v5175_v8  ;;  %v5466_v50 = vpop.f32.mrb[28].mxu1 }
 0x13b   : > { %v4566_v26 = vpop.eup %4565  ;;  %4585 = vrcp.f32 %v2117_v41  ;;  %v2115_v57 = vadd.f32 1.0, %v4564_v55  ;;  %v5464_v41 = vpop.f32.mrb[28].mxu0  ;;  %6433 = vst [vmem:[#allocation4_spill] sm:$0xff] %v5466_v50  ;;  %v5470_v19 = vadd.f32 %v5180_v10, %v1477_v42  ;;  %v1412_v59 = vmul.f32 %v5175_v8, %v5332_v11 }
 0x13c   : > { %v4568_v27 = vpop.eup %4567  ;;  %4587 = vrcp.f32 %v2051_v2  ;;  %v2056_v15 = vadd.f32 1.0, %v4566_v26  ;;  %v5476_v2 = vpop.f32.mrb[29].mxu1  ;;  %v5480_v50 = vadd.f32 %v5180_v10, %v1411_v58 }
 0x13d   : > { %v4570_v7 = vpop.eup %4569  ;;  %4589 = vrcp.f32 %v2115_v57  ;;  %v2120_v43 = vadd.f32 1.0, %v4568_v27  ;;  %v5474_v57 = vpop.f32.mrb[29].mxu0  ;;  %6434 = vst [vmem:[#allocation5_spill] sm:$0xff] %v5476_v2 }
 0x13e   : > { %v4572_v55 = vpop.eup %4571  ;;  %v2497_v26 = vmul.f32 %v4570_v7, %v5250_v6  ;;  %4591 = vrcp.f32 %v2056_v15  ;;  %v5483_v6 = vadd.f32 %v5180_v10, %v1475_v35  ;;  %v5485_v42 = vpop.f32.mrb[30].mxu0 }
 0x13f   : > { %v4574_v27 = vpop.eup %4573  ;;  %v2431_v29 = vmul.f32 %v4572_v55, %v5254_v23  ;;  %4593 = vrcp.f32 %v2120_v43  ;;  %v5487_v15 = vpop.f32.mrb[30].mxu1  ;;  %v5493_v23 = vadd.f32 %v5180_v10, %v1414_v44 }
 0x140   : > { %6435 = vst [vmem:[#allocation6_spill] sm:$0xff] %v5483_v6  ;;  %6436 = vst [vmem:[#allocation7_spill] sm:$0xff] %v5487_v15  ;;  %v4576_v11 = vpop.eup %4575  ;;  %v3958_v7 = vpack.c.bf16 %v2497_v26, %v5413_v48  ;;  %v2495_v2 = vmul.f32 %v4574_v27, %v5260_v34  ;;  %4595 = vpow2.f32 %v5398_v33  ;;  %v5495_v58 = vpop.f32.mrb[31].mxu0  ;;  %v3471_v48 = vmul.f32 -1.442695, %v5448_v63 }
 0x141   : > { %6437 = vst [vmem:[#allocation8_spill] sm:$0xff] %v5495_v58  ;;  %v5497_v35 = vpop.f32.mrb[31].mxu1  ;;  %v4578_v43 = vpop.eup %4577  ;;  %v3793_v55 = vpack.c.bf16 %v2431_v29, %v5422_v5  ;;  %4597 = vpow2.f32 %v5404_v36  ;;  %v5503_v34 = vadd.f32 %v5180_v10, %v1478_v49  ;;  %v3412_v26 = vmul.f32 -1.442695, %v5457_v52 }
 0x142   : > { %6438 = vst [vmem:[#allocation9_spill] sm:$0xff] %v5497_v35  ;;  %v4580_v33 = vpop.eup %4579  ;;  %4134 = vst [vmem:[%s5341_s24 + $0x118] sm:$0xff] %v3958_v7   ;;  %v3953_v44 = vpack.c.bf16 %v2495_v2, %v5442_v28  ;;  %4599 = vpow2.f32 %v5425_v18  ;;  %v5510_v27 = vadd.f32 %v5180_v10, %v1412_v59  ;;  %v3476_v36 = vmul.f32 -1.442695, %v5470_v19  ;;  %v5524_v35 = vpop.f32.mrb[32].mxu0 }
 0x143   : > { %v4582_v5 = vpop.eup %4581  ;;  %4101 = vst [vmem:[%s5341_s24 + $0x10] sm:$0xff] %v3793_v55   ;;  %4601 = vpow2.f32 %v5432_v62  ;;  %v3410_v49 = vmul.f32 -1.442695, %v5480_v50  ;;  %v3474_v28 = vmul.f32 -1.442695, %v5483_v6  ;;  %v1476_v2 = vmul.f32 %v5175_v8, %v5334_v20  ;;  %v5526_v58 = vpop.f32.mrb[32].mxu1 }
 0x144   : > { %v4584_v29 = vpop.eup %4583  ;;  %4133 = vst [vmem:[%s5341_s24 + $0x110] sm:$0xff] %v3953_v44   ;;  %4603 = vpow2.f32 %v3407_v25  ;;  %v3413_v18 = vmul.f32 -1.442695, %v5493_v23  ;;  %v2436_v7 = vmul.f32 %v4576_v11, %v5272_v60  ;;  %v3477_v62 = vmul.f32 -1.442695, %v5503_v34  ;;  %6439 = vst [vmem:[#allocation10_spill] sm:$0xff] %v5526_v58 }
 0x145   : > { %v4586_v59 = vpop.eup %4585  ;;  %v2437_v55 = vmul.f32 %v4584_v29, %v5294_v16  ;;  %4605 = vpow2.f32 %v3471_v48  ;;  %v2500_v44 = vmul.f32 %v4578_v43, %v5280_v3  ;;  %v3411_v20 = vmul.f32 -1.442695, %v5510_v27  ;;  %v5531_v15 = vpop.f32.mrb[33].mxu0 }
 0x146   : > { %v4588_v25 = vpop.eup %4587  ;;  %v2501_v6 = vmul.f32 %v4586_v59, %v5297_v17  ;;  %4607 = vpow2.f32 %v3412_v26  ;;  %v5533_v60 = vpop.f32.mrb[33].mxu1  ;;  %v2434_v11 = vmul.f32 %v4580_v33, %v5283_v4  ;;  %v2498_v43 = vmul.f32 %v4582_v5, %v5291_v13 }
 0x147   : > { %6440 = vst [vmem:[#allocation11_spill] sm:$0xff] %v5533_v60  ;;  %v4590_v16 = vpop.eup %4589  ;;  %v3808_v48 = vpack.c.bf16 %v2437_v55, %v2436_v7  ;;  %v2435_v29 = vmul.f32 %v4588_v25, %v5300_v22  ;;  %4609 = vpow2.f32 %v3476_v36  ;;  %v5537_v58 = vpop.f32.mrb[34].mxu0  ;;  %v1417_v36 = vmul.f32 %v5360_v31, %v5175_v8 }
 0x148   : > { %v5539_v3 = vpop.f32.mrb[34].mxu1  ;;  %v5541_v17 = vpop.eup %4591  ;;  %v3968_v26 = vpack.c.bf16 %v2501_v6, %v2500_v44  ;;  %v2499_v59 = vmul.f32 %v4590_v16, %v5323_v56  ;;  %4611 = vpow2.f32 %v3410_v49  ;;  %v1481_v56 = vmul.f32 %v5362_v37, %v5175_v8 }
 0x149   : > { %v5545_v60 = vpop.f32.mrb[35].mxu0  ;;  %v5547_v4 = vpop.f32.mrb[35].mxu1  ;;  %4104 = vst [vmem:[%s5341_s24 + $0x28] sm:$0xff] %v3808_v48   ;;  %v3803_v33 = vpack.c.bf16 %v2435_v29, %v2434_v11  ;;  %4613 = vpow2.f32 %v3474_v28  ;;  %v1415_v49 = vmul.f32 %v5175_v8, %v5368_v24  ;;  %v5562_v31 = vadd.f32 %v5180_v10, %v1476_v2 }
 0x14a   : > { %v5549_v22 = vpop.eup %4593  ;;  %4136 = vst [vmem:[%s5341_s24 + $0x128] sm:$0xff] %v3968_v26   ;;  %v3963_v13 = vpack.c.bf16 %v2499_v59, %v2498_v43  ;;  %4615 = vpow2.f32 %v3413_v18  ;;  %v5565_v44 = vadd.f32 %v5180_v10, %v1417_v36  ;;  %v5567_v37 = vpop.f32.mrb[36].mxu0  ;;  %v5572_v11 = vadd.f32 %v5180_v10, %v1481_v56 }
 0x14b   : > { %v4596_v7 = vpop.eup %4595  ;;  %4103 = vst [vmem:[%s5341_s24 + $0x20] sm:$0xff] %v3803_v33   ;;  %4617 = vpow2.f32 %v3477_v62  ;;  %v5569_v16 = vpop.f32.mrb[36].mxu1  ;;  %v1479_v2 = vmul.f32 %v5175_v8, %v5370_v51  ;;  %v5581_v26 = vadd.f32 %v5180_v10, %v1415_v49  ;;  %v1418_v59 = vmul.f32 %v5378_v61, %v5175_v8 }
 0x14c   : > { %v4598_v6 = vpop.eup %4597  ;;  %v2054_v5 = vadd.f32 1.0, %v4596_v7  ;;  %4135 = vst [vmem:[%s5341_s24 + $0x120] sm:$0xff] %v3963_v13   ;;  %4619 = vpow2.f32 %v3411_v20  ;;  %v5576_v20 = vpop.f32.mrb[37].mxu0  ;;  %v3475_v51 = vmul.f32 -1.442695, %v5562_v31  ;;  %v1482_v13 = vmul.f32 %v5380_v1, %v5175_v8 }
 0x14d   : > { %v4600_v55 = vpop.eup %4599  ;;  %v2118_v28 = vadd.f32 1.0, %v4598_v6  ;;  %v5578_v48 = vpop.f32.mrb[37].mxu1  ;;  %v1416_v61 = vmul.f32 %v5175_v8, %v5386_v47  ;;  %v5601_v1 = vadd.f32 %v5180_v10, %v1479_v2 }
 0x14e   : > { %v4602_v25 = vpop.eup %4601  ;;  %4621 = vrcp.f32 %v2054_v5  ;;  %v2057_v18 = vadd.f32 1.0, %v4600_v55  ;;  %6441 = vst [vmem:[#allocation12_spill] sm:$0xff] %v5578_v48  ;;  %v5585_v33 = vpop.f32.mrb[38].mxu0  ;;  %v3416_v55 = vmul.f32 -1.442695, %v5565_v44 }
 0x14f   : > { %v4604_v62 = vpop.eup %4603  ;;  %4623 = vrcp.f32 %v2118_v28  ;;  %v2121_v24 = vadd.f32 1.0, %v4602_v25  ;;  %6442 = vst [vmem:[#allocation13_spill] sm:$0xff] %v5585_v33  ;;  %v5590_v56 = vpop.f32.mrb[38].mxu1 }
 0x150   : > { %v4606_v29 = vpop.eup %4605  ;;  %4625 = vrcp.f32 %v2057_v18  ;;  %v2055_v43 = vadd.f32 1.0, %v4604_v62  ;;  %6443 = vst [vmem:[#allocation14_spill] sm:$0xff] %v5590_v56  ;;  %v5592_v6 = vpop.f32.mrb[39].mxu0  ;;  %v3480_v62 = vmul.f32 -1.442695, %v5572_v11 }
 0x151   : > { %v4608_v36 = vpop.eup %4607  ;;  %4627 = vrcp.f32 %v2121_v24  ;;  %v2119_v7 = vadd.f32 1.0, %v4606_v29  ;;  %6444 = vst [vmem:[#allocation15_spill] sm:$0xff] %v5592_v6  ;;  %v5597_v28 = vpop.f32.mrb[39].mxu1 }
 0x152   : > { %v4610_v5 = vpop.eup %4609  ;;  %4629 = vrcp.f32 %v2055_v43  ;;  %v2060_v49 = vadd.f32 1.0, %v4608_v36  ;;  %6445 = vst [vmem:[#allocation16_spill] sm:$0xff] %v5597_v28  ;;  %v3414_v43 = vmul.f32 -1.442695, %v5581_v26  ;;  %v5605_v36 = vadd.f32 %v5180_v10, %v1418_v59  ;;  %v5617_v59 = vpop.f32.mrb[40].mxu0 }
 0x153   : > { %v4612_v25 = vpop.eup %4611  ;;  %4631 = vrcp.f32 %v2119_v7  ;;  %v2124_v18 = vadd.f32 1.0, %v4610_v5  ;;  %v5608_v28 = vadd.f32 %v5180_v10, %v1482_v13  ;;  %v1480_v7 = vmul.f32 %v5175_v8, %v5388_v9  ;;  %6446 = vst [vmem:[#allocation17_spill] sm:$0xff] %v5617_v59  ;;  %v5622_v9 = vpop.f32.mrb[40].mxu1 }
 0x154   : > { %v4614_v24 = vpop.eup %4613  ;;  %4633 = vrcp.f32 %v2060_v49  ;;  %v2058_v29 = vadd.f32 1.0, %v4612_v25  ;;  %v5613_v49 = vadd.f32 %v5180_v10, %v1416_v61  ;;  %v1421_v25 = vmul.f32 %v5408_v39, %v5175_v8  ;;  %6447 = vst [vmem:[#allocation18_spill] sm:$0xff] %v5622_v9  ;;  %v5629_v59 = vpop.f32.mrb[41].mxu1 }
 0x155   : > { %v4616_v6 = vpop.eup %4615  ;;  %4635 = vrcp.f32 %v2124_v18  ;;  %v2122_v47 = vadd.f32 1.0, %v4614_v24  ;;  %v3478_v13 = vmul.f32 -1.442695, %v5601_v1  ;;  %v1485_v24 = vmul.f32 %v5410_v45, %v5175_v8  ;;  %6449 = vst [vmem:[#allocation20_spill] sm:$0xff] %v5629_v59 }
 0x156   : > { %v4618_v5 = vpop.eup %4617  ;;  %4637 = vrcp.f32 %v2058_v29  ;;  %v2061_v2 = vadd.f32 1.0, %v4616_v6  ;;  %v5624_v29 = vpop.f32.mrb[41].mxu0  ;;  %v3417_v33 = vmul.f32 -1.442695, %v5605_v36  ;;  %v1419_v39 = vmul.f32 %v5175_v8, %v5417_v14 }
 0x157   : > { %v4620_v56 = vpop.eup %4619  ;;  %4639 = vrcp.f32 %v2122_v47  ;;  %v2125_v18 = vadd.f32 1.0, %v4618_v5  ;;  %6448 = vst [vmem:[#allocation19_spill] sm:$0xff] %v5624_v29  ;;  %v5631_v47 = vpop.f32.mrb[42].mxu0  ;;  %v2440_v45 = vmul.f32 %v5541_v17, %v5345_v21  ;;  %v2504_v9 = vmul.f32 %v5549_v22, %v5348_v32 }
 0x158   : > { %v4622_v6 = vpop.eup %4621  ;;  %4641 = vrcp.f32 %v2061_v2  ;;  %v2059_v61 = vadd.f32 1.0, %v4620_v56  ;;  %6450 = vst [vmem:[#allocation21_spill] sm:$0xff] %v5631_v47  ;;  %v3481_v2 = vmul.f32 -1.442695, %v5608_v28  ;;  %v5638_v56 = vpop.f32.mrb[42].mxu1  ;;  %v5644_v47 = vadd.f32 %v5180_v10, %v1480_v7 }
 0x159   : > { %v4624_v5 = vpop.eup %4623  ;;  %4643 = vrcp.f32 %v2125_v18  ;;  %v5640_v29 = vpop.f32.mrb[43].mxu0  ;;  %v3415_v14 = vmul.f32 -1.442695, %v5613_v49  ;;  %v5647_v59 = vadd.f32 %v5180_v10, %v1421_v25  ;;  %v5653_v22 = vadd.f32 %v5180_v10, %v1485_v24 }
 0x15a   : > { %6451 = vst [vmem:[#allocation22_spill] sm:$0xff] %v5640_v29  ;;  %v4626_v48 = vpop.eup %4625  ;;  %4645 = vrcp.f32 %v2059_v61  ;;  %v5649_v21 = vpop.f32.mrb[43].mxu1  ;;  %v1483_v18 = vmul.f32 %v5175_v8, %v5419_v54  ;;  %v5659_v7 = vadd.f32 %v5180_v10, %v1419_v39  ;;  %v1422_v25 = vmul.f32 %v5427_v53, %v5175_v8 }
 0x15b   : > { %6452 = vst [vmem:[#allocation23_spill] sm:$0xff] %v5649_v21  ;;  %v4628_v32 = vpop.eup %4627  ;;  %v2441_v17 = vmul.f32 %v4626_v48, %v5394_v0  ;;  %4647 = vpow2.f32 %v3475_v51  ;;  %v2438_v0 = vmul.f32 %v4622_v6, %v5374_v46  ;;  %v2502_v54 = vmul.f32 %v4624_v5, %v5391_v12  ;;  %v5667_v39 = vpop.f32.mrb[44].mxu0 }
 0x15c   : > { %v4630_v61 = vpop.eup %4629  ;;  %v2505_v29 = vmul.f32 %v4628_v32, %v5401_v40  ;;  %4649 = vpow2.f32 %v3416_v55  ;;  %v5669_v32 = vpop.f32.mrb[44].mxu1  ;;  %v3479_v53 = vmul.f32 -1.442695, %v5644_v47 }
 0x15d   : > { %v4632_v21 = vpop.eup %4631  ;;  %v3818_v48 = vpack.c.bf16 %v2441_v17, %v2440_v45  ;;  %v2439_v51 = vmul.f32 %v4630_v61, %v5445_v38  ;;  %4651 = vpow2.f32 %v3480_v62  ;;  %v5674_v38 = vadd.f32 %v5180_v10, %v1483_v18  ;;  %v5676_v62 = vpop.f32.mrb[45].mxu0  ;;  %v5699_v17 = vld [vmem:[%s6428_s3] ss:$0 sm:$0xff] }
 0x15e   : > { %v4634_v24 = vpop.eup %4633  ;;  %v3978_v40 = vpack.c.bf16 %v2505_v29, %v2504_v9  ;;  %v2503_v55 = vmul.f32 %v4632_v21, %v5448_v63  ;;  %4653 = vpow2.f32 %v3414_v43  ;;  %v5678_v12 = vpop.f32.mrb[45].mxu1  ;;  %v3420_v9 = vmul.f32 -1.442695, %v5647_v59 }
 0x15f   : > { %v4636_v8 = vpop.eup %4635  ;;  %4106 = vst [vmem:[%s5341_s24 + $0x38] sm:$0xff] %v3818_v48   ;;  %v3813_v46 = vpack.c.bf16 %v2439_v51, %v2438_v0  ;;  %4655 = vpow2.f32 %v3478_v13  ;;  %v5682_v29 = vpop.f32.mrb[46].mxu0  ;;  %v3484_v10 = vmul.f32 -1.442695, %v5653_v22  ;;  %v5702_v18 = vadd.f32 %v5699_v17, %v1422_v25 }
 0x160   : > { %v4638_v63 = vpop.eup %4637  ;;  %4138 = vst [vmem:[%s5341_s24 + $0x138] sm:$0xff] %v3978_v40   ;;  %v3973_v43 = vpack.c.bf16 %v2503_v55, %v2502_v54  ;;  %4657 = vpow2.f32 %v3417_v33  ;;  %6453 = vst [vmem:[#allocation24_spill] sm:$0xff] %v5682_v29  ;;  %v5684_v6 = vpop.f32.mrb[46].mxu1  ;;  %v3418_v33 = vmul.f32 -1.442695, %v5659_v7  ;;  %v2508_v25 = vmul.f32 %v4636_v8, %v5470_v19  ;;  %v6457_v55 = vld [vmem:[#allocation2_spill] sm:$0xff] }
 0x161   : > { %6454 = vst [vmem:[#allocation25_spill] sm:$0xff] %v5684_v6  ;;  %v5686_v13 = vpop.eup %4639  ;;  %4105 = vst [vmem:[%s5341_s24 + $0x30] sm:$0xff] %v3813_v46   ;;  %4659 = vpow2.f32 %v3481_v2  ;;  %v5690_v5 = vpop.f32.mrb[47].mxu0  ;;  %v5707_v2 = vld [vmem:[%s6427_s2] ss:$0 sm:$0xff] }
 0x162   : > { %6455 = vst [vmem:[#allocation26_spill] sm:$0xff] %v5690_v5  ;;  %v5692_v45 = vpop.f32.mrb[47].mxu1  ;;  %v4642_v21 = vpop.eup %4641  ;;  %4137 = vst [vmem:[%s5341_s24 + $0x130] sm:$0xff] %v3973_v43   ;;  %4661 = vpow2.f32 %v3415_v14  ;;  %v1486_v61 = vmul.f32 %v5707_v2, %v5429_v30  ;;  %v2444_v14 = vmul.f32 %v4634_v24, %v5457_v52  ;;  %v3482_v51 = vmul.f32 -1.442695, %v5674_v38 }
 0x163   : > { %6456 = vst [vmem:[#allocation27_spill] sm:$0xff] %v5692_v45  ;;  %v4644_v0 = vpop.eup %4643  ;;  %v2445_v48 = vmul.f32 %v4642_v21, %v5493_v23  ;;  %4663 = vpow2.f32 %v3479_v53  ;;  %v1420_v46 = vmul.f32 %v5707_v2, %v6457_v55  ;;  %v2442_v30 = vmul.f32 %v4638_v63, %v5480_v50  ;;  %v5725_v8 = vpop.f32.mrb[48].mxu1 }
 0x164   : > { %v4646_v54 = vpop.eup %4645  ;;  %v2509_v40 = vmul.f32 %v4644_v0, %v5503_v34  ;;  %4665 = vpow2.f32 %v3420_v9  ;;  %v5721_v19 = vadd.f32 %v5699_v17, %v1486_v61  ;;  %v5723_v34 = vpop.f32.mrb[48].mxu0  ;;  %6459 = vst [vmem:[#allocation28_spill] sm:$0xff] %v5725_v8 }
 0x165   : > { %v4648_v43 = vpop.eup %4647  ;;  %v3828_v45 = vpack.c.bf16 %v2445_v48, %v2444_v14  ;;  %v2443_v52 = vmul.f32 %v4646_v54, %v5510_v27  ;;  %4667 = vpow2.f32 %v3484_v10  ;;  %6458 = vst [vmem:[#allocation2_spill] sm:$0xff] %v5723_v34  ;;  %v6460_v27 = vld [vmem:[#allocation3_spill] sm:$0xff]  ;;  %v5730_v21 = vpop.f32.mrb[49].mxu0  ;;  %v1425_v14 = vmul.f32 %v5707_v2, %v5464_v41 }
 0x166   : > { %v4650_v23 = vpop.eup %4649  ;;  %v3988_v24 = vpack.c.bf16 %v2509_v40, %v2508_v25  ;;  %v2123_v53 = vadd.f32 1.0, %v4648_v43  ;;  %4669 = vpow2.f32 %v3418_v33  ;;  %v1484_v10 = vmul.f32 %v5707_v2, %v6460_v27  ;;  %6461 = vst [vmem:[#allocation3_spill] sm:$0xff] %v5730_v21  ;;  %v5732_v0 = vpop.f32.mrb[49].mxu1 }
 0x167   : > { %v4652_v9 = vpop.eup %4651  ;;  %4108 = vst [vmem:[%s5341_s24 + $0x48] sm:$0xff] %v3828_v45   ;;  %v3823_v50 = vpack.c.bf16 %v2443_v52, %v2442_v30  ;;  %v2064_v63 = vadd.f32 1.0, %v4650_v23  ;;  %4671 = vpow2.f32 %v3482_v51  ;;  %6462 = vst [vmem:[#allocation29_spill] sm:$0xff] %v5732_v0  ;;  %v5737_v48 = vpop.f32.mrb[50].mxu0  ;;  %v5743_v25 = vadd.f32 %v5699_v17, %v1420_v46  ;;  %v6467_v46 = vld [vmem:[#allocation4_spill] sm:$0xff]  ;;  %v6477_v0 = vld [vmem:[#allocation6_spill] sm:$0xff] }
 0x168   : > { %v4654_v33 = vpop.eup %4653  ;;  %4140 = vst [vmem:[%s5341_s24 + $0x148] sm:$0xff] %v3988_v24   ;;  %4673 = vrcp.f32 %v2123_v53  ;;  %v2128_v61 = vadd.f32 1.0, %v4652_v9  ;;  %6463 = vst [vmem:[#allocation30_spill] sm:$0xff] %v5737_v48  ;;  %v5739_v45 = vpop.f32.mrb[50].mxu1  ;;  %v3421_v41 = vmul.f32 -1.442695, %v5702_v18  ;;  %v5754_v53 = vadd.f32 %v5699_v17, %v1484_v10 }
 0x169   : > { %6464 = vst [vmem:[#allocation31_spill] sm:$0xff] %v5739_v45  ;;  %v4656_v54 = vpop.eup %4655  ;;  %4107 = vst [vmem:[%s5341_s24 + $0x40] sm:$0xff] %v3823_v50   ;;  %4675 = vrcp.f32 %v2064_v63  ;;  %v2062_v51 = vadd.f32 1.0, %v4654_v33  ;;  %v5745_v40 = vpop.f32.mrb[51].mxu0  ;;  %v5751_v52 = vmul.f32 -1.442695, %v5721_v19  ;;  %v1489_v9 = vmul.f32 %v5707_v2, %v6467_v46 }
 0x16a   : > { %6465 = vst [vmem:[#allocation32_spill] sm:$0xff] %v5745_v40  ;;  %v5747_v55 = vpop.f32.mrb[51].mxu1  ;;  %v4658_v43 = vpop.eup %4657  ;;  %4677 = vrcp.f32 %v2128_v61  ;;  %v2126_v30 = vadd.f32 1.0, %v4656_v54  ;;  %v5759_v27 = vadd.f32 %v5699_v17, %v1425_v14  ;;  %v1423_v33 = vmul.f32 %v5707_v2, %v5474_v57 }
 0x16b   : > { %6466 = vst [vmem:[#allocation33_spill] sm:$0xff] %v5747_v55  ;;  %v4660_v23 = vpop.eup %4659  ;;  %4679 = vrcp.f32 %v2062_v51  ;;  %v2065_v24 = vadd.f32 1.0, %v4658_v43  ;;  %v3419_v51 = vmul.f32 -1.442695, %v5743_v25  ;;  %v6468_v43 = vld [vmem:[#allocation5_spill] sm:$0xff]  ;;  %v5770_v40 = vpop.f32.mrb[52].mxu0  ;;  %v5775_v45 = vadd.f32 %v5699_v17, %v1489_v9 }
 0x16c   : > { %v4662_v50 = vpop.eup %4661  ;;  %4681 = vrcp.f32 %v2126_v30  ;;  %v2129_v63 = vadd.f32 1.0, %v4660_v23  ;;  %v1487_v10 = vmul.f32 %v5707_v2, %v6468_v43  ;;  %v1426_v30 = vmul.f32 %v5707_v2, %v5485_v42  ;;  %v6469_v23 = vld [vmem:[#allocation7_spill] sm:$0xff]  ;;  %6470 = vst [vmem:[#allocation4_spill] sm:$0xff] %v5770_v40  ;;  %v5772_v57 = vpop.f32.mrb[52].mxu1  ;;  %v6472_v43 = vld [vmem:[#allocation8_spill] sm:$0xff] }
 0x16d   : > { %v4664_v61 = vpop.eup %4663  ;;  %4683 = vrcp.f32 %v2065_v24  ;;  %v2063_v54 = vadd.f32 1.0, %v4662_v50  ;;  %v1490_v14 = vmul.f32 %v5707_v2, %v6469_v23  ;;  %6471 = vst [vmem:[#allocation5_spill] sm:$0xff] %v5772_v57  ;;  %v5781_v48 = vpop.f32.mrb[53].mxu1  ;;  %v3483_v40 = vmul.f32 -1.442695, %v5754_v53 }
 0x16e   : > { %v4666_v55 = vpop.eup %4665  ;;  %4685 = vrcp.f32 %v2129_v63  ;;  %v2127_v46 = vadd.f32 1.0, %v4664_v61  ;;  %v1424_v63 = vmul.f32 %v5707_v2, %v6472_v43  ;;  %v5779_v61 = vpop.f32.mrb[53].mxu0  ;;  %6474 = vst [vmem:[#allocation8_spill] sm:$0xff] %v5781_v48  ;;  %v5785_v57 = vadd.f32 %v5699_v17, %v1423_v33 }
 0x16f   : > { %v4668_v24 = vpop.eup %4667  ;;  %4687 = vrcp.f32 %v2063_v54  ;;  %v2068_v50 = vadd.f32 1.0, %v4666_v55  ;;  %6473 = vst [vmem:[#allocation7_spill] sm:$0xff] %v5779_v61  ;;  %v5787_v54 = vpop.f32.mrb[54].mxu0  ;;  %v2506_v43 = vmul.f32 %v5686_v13, %v6477_v0  ;;  %v5794_v48 = vadd.f32 %v5699_v17, %v1487_v10  ;;  %v6480_v10 = vld [vmem:[#allocation9_spill] sm:$0xff] }
 0x170   : > { %v4670_v42 = vpop.eup %4669  ;;  %4689 = vrcp.f32 %v2127_v46  ;;  %v2132_v23 = vadd.f32 1.0, %v4668_v24  ;;  %6475 = vst [vmem:[#allocation34_spill] sm:$0xff] %v5787_v54  ;;  %v5789_v55 = vpop.f32.mrb[54].mxu1  ;;  %v5801_v54 = vadd.f32 %v5699_v17, %v1426_v30  ;;  %v5808_v0 = vadd.f32 %v5699_v17, %v1424_v63 }
 0x171   : > { %6476 = vst [vmem:[#allocation35_spill] sm:$0xff] %v5789_v55  ;;  %v4672_v9 = vpop.eup %4671  ;;  %4691 = vrcp.f32 %v2068_v50  ;;  %v2066_v61 = vadd.f32 1.0, %v4670_v42  ;;  %v5796_v46 = vpop.f32.mrb[55].mxu0  ;;  %v5804_v55 = vadd.f32 %v5699_v17, %v1490_v14  ;;  %v1488_v50 = vmul.f32 %v5707_v2, %v6480_v10 }
 0x172   : > { %6478 = vst [vmem:[#allocation6_spill] sm:$0xff] %v5796_v46  ;;  %v5798_v24 = vpop.f32.mrb[55].mxu1  ;;  %v4674_v21 = vpop.eup %4673  ;;  %4693 = vrcp.f32 %v2132_v23  ;;  %v2130_v33 = vadd.f32 1.0, %v4672_v9  ;;  %v3424_v23 = vmul.f32 -1.442695, %v5759_v27  ;;  %v1429_v14 = vmul.f32 %v5707_v2, %v5524_v35 }
 0x173   : > { %6479 = vst [vmem:[#allocation36_spill] sm:$0xff] %v5798_v24  ;;  %v4676_v8 = vpop.eup %4675  ;;  %v2507_v13 = vmul.f32 %v4674_v21, %v5562_v31  ;;  %4695 = vrcp.f32 %v2066_v61  ;;  %v3488_v30 = vmul.f32 -1.442695, %v5775_v45  ;;  %v3422_v31 = vmul.f32 -1.442695, %v5785_v57  ;;  %v5821_v10 = vpop.f32.mrb[56].mxu0 }
 0x174   : > { %v4678_v42 = vpop.eup %4677  ;;  %4697 = vrcp.f32 %v2130_v33  ;;  %v3486_v21 = vmul.f32 -1.442695, %v5794_v48  ;;  %v3425_v61 = vmul.f32 -1.442695, %v5801_v54  ;;  %v3489_v33 = vmul.f32 -1.442695, %v5804_v55 }
 0x175   : > { %v4680_v9 = vpop.eup %4679  ;;  %v3983_v24 = vpack.c.bf16 %v2507_v13, %v2506_v43  ;;  %4699 = vpow2.f32 %v3421_v41  ;;  %6481 = vst [vmem:[#allocation9_spill] sm:$0xff] %v5821_v10  ;;  %v5823_v46 = vpop.f32.mrb[56].mxu1  ;;  %v3423_v35 = vmul.f32 -1.442695, %v5808_v0  ;;  %v5828_v41 = vadd.f32 %v5699_v17, %v1488_v50  ;;  %v6483_v43 = vld [vmem:[#allocation10_spill] sm:$0xff] }
 0x176   : > { %v4682_v63 = vpop.eup %4681  ;;  %4701 = vpow2.f32 %v5751_v52  ;;  %6482 = vst [vmem:[#allocation37_spill] sm:$0xff] %v5823_v46  ;;  %v1493_v13 = vmul.f32 %v5707_v2, %v6483_v43  ;;  %v5832_v52 = vpop.f32.mrb[57].mxu0  ;;  %v2448_v10 = vmul.f32 %v4676_v8, %v5565_v44  ;;  %v2512_v43 = vmul.f32 %v4678_v42, %v5572_v11 }
 0x177   : > { %v4684_v34 = vpop.eup %4683  ;;  %4139 = vst [vmem:[%s5341_s24 + $0x140] sm:$0xff] %v3983_v24   ;;  %4703 = vpow2.f32 %v3419_v51  ;;  %6484 = vst [vmem:[#allocation10_spill] sm:$0xff] %v5832_v52  ;;  %v5834_v5 = vpop.f32.mrb[57].mxu1  ;;  %v5839_v51 = vadd.f32 %v5699_v17, %v1429_v14  ;;  %v1427_v44 = vmul.f32 %v5707_v2, %v5531_v15 }
 0x178   : > { %v4686_v6 = vpop.eup %4685  ;;  %v2449_v46 = vmul.f32 %v4684_v34, %v5605_v36  ;;  %4705 = vpow2.f32 %v3483_v40  ;;  %v5841_v24 = vpop.f32.mrb[58].mxu0  ;;  %v2446_v40 = vmul.f32 %v4680_v9, %v5581_v26  ;;  %v3487_v26 = vmul.f32 -1.442695, %v5828_v41 }
 0x179   : > { %v5843_v50 = vpop.f32.mrb[58].mxu1  ;;  %v4688_v29 = vpop.eup %4687  ;;  %v2513_v52 = vmul.f32 %v4686_v6, %v5608_v28  ;;  %4707 = vpow2.f32 %v3424_v23  ;;  %v2510_v28 = vmul.f32 %v4682_v63, %v5601_v1  ;;  %v3428_v1 = vmul.f32 -1.442695, %v5839_v51 }
 0x17a   : > { %6485 = vst [vmem:[#allocation38_spill] sm:$0xff] %v5843_v50  ;;  %v5849_v8 = vpop.f32.mrb[59].mxu0  ;;  %v5851_v36 = vpop.f32.mrb[59].mxu1  ;;  %v3838_v14 = vpack.c.bf16 %v2449_v46, %v2448_v10  ;;  %v2447_v50 = vmul.f32 %v4688_v29, %v5613_v49  ;;  %4709 = vpow2.f32 %v3488_v30  ;;  %v6486_v29 = vld [vmem:[#allocation11_spill] sm:$0xff]  ;;  %v5878_v63 = vadd.f32 %v5699_v17, %v1493_v13 }
 0x17b   : > { %v4690_v34 = vpop.eup %4689  ;;  %v3998_v6 = vpack.c.bf16 %v2513_v52, %v2512_v43  ;;  %4711 = vpow2.f32 %v3422_v31  ;;  %v1491_v30 = vmul.f32 %v5707_v2, %v6486_v29  ;;  %v5872_v9 = vpop.f32.mrb[60].mxu0 }
 0x17c   : > { %v5855_v11 = vpop.eup %4691  ;;  %v2511_v15 = vmul.f32 %v4690_v34, %v5644_v47  ;;  %4110 = vst [vmem:[%s5341_s24 + $0x58] sm:$0xff] %v3838_v14   ;;  %v3833_v23 = vpack.c.bf16 %v2447_v50, %v2446_v40  ;;  %4713 = vpow2.f32 %v3486_v21  ;;  %v5874_v31 = vpop.f32.mrb[60].mxu1  ;;  %v1494_v34 = vmul.f32 %v5707_v2, %v5539_v3 }
 0x17d   : > { %v5859_v42 = vpop.eup %4693  ;;  %4142 = vst [vmem:[%s5341_s24 + $0x158] sm:$0xff] %v3998_v6   ;;  %4715 = vpow2.f32 %v3425_v61  ;;  %v5881_v61 = vadd.f32 %v5699_v17, %v1427_v44  ;;  %v5883_v10 = vpop.f32.mrb[61].mxu0  ;;  %v5896_v14 = vadd.f32 %v5699_v17, %v1491_v30 }
 0x17e   : > { %v5863_v46 = vpop.eup %4695  ;;  %v3993_v49 = vpack.c.bf16 %v2511_v15, %v2510_v28  ;;  %4109 = vst [vmem:[%s5341_s24 + $0x50] sm:$0xff] %v3833_v23   ;;  %4717 = vpow2.f32 %v3489_v33  ;;  %6487 = vst [vmem:[#allocation11_spill] sm:$0xff] %v5883_v10  ;;  %v5885_v52 = vpop.f32.mrb[61].mxu1  ;;  %v1430_v33 = vmul.f32 %v5707_v2, %v5537_v58  ;;  %v1428_v28 = vmul.f32 %v5707_v2, %v5545_v60 }
 0x17f   : > { %v5869_v47 = vpop.eup %4697  ;;  %4719 = vpow2.f32 %v3423_v35  ;;  %6488 = vst [vmem:[#allocation39_spill] sm:$0xff] %v5885_v52  ;;  %v5891_v35 = vpop.f32.mrb[62].mxu0 }
 0x180   : > { %v4700_v21 = vpop.eup %4699  ;;  %4141 = vst [vmem:[%s5341_s24 + $0x150] sm:$0xff] %v3993_v49   ;;  %4721 = vpow2.f32 %v3487_v26  ;;  %6489 = vst [vmem:[#allocation40_spill] sm:$0xff] %v5891_v35  ;;  %v5893_v13 = vpop.f32.mrb[62].mxu1  ;;  %v3492_v49 = vmul.f32 -1.442695, %v5878_v63  ;;  %v5909_v60 = vadd.f32 %v5699_v17, %v1430_v33  ;;  %v1433_v33 = vmul.f32 %v5707_v2, %v5567_v37 }
 0x181   : > { %v4702_v50 = vpop.eup %4701  ;;  %v2069_v43 = vadd.f32 1.0, %v4700_v21  ;;  %6490 = vst [vmem:[#allocation41_spill] sm:$0xff] %v5893_v13  ;;  %4723 = vpow2.f32 %v3428_v1  ;;  %v5900_v6 = vpop.f32.mrb[63].mxu0  ;;  %v5906_v1 = vmul.f32 -1.442695, %v5881_v61  ;;  %v5912_v21 = vadd.f32 %v5699_v17, %v1494_v34 }
 0x182   : > { %v4704_v40 = vpop.eup %4703  ;;  %v2133_v44 = vadd.f32 1.0, %v4702_v50  ;;  %6491 = vst [vmem:[#allocation42_spill] sm:$0xff] %v5900_v6  ;;  %v5902_v15 = vpop.f32.mrb[63].mxu1 }
 0x183   : > { %6492 = vst [vmem:[#allocation43_spill] sm:$0xff] %v5902_v15  ;;  %v4706_v58 = vpop.eup %4705  ;;  %4725 = vrcp.f32 %v2069_v43  ;;  %v2067_v3 = vadd.f32 1.0, %v4704_v40  ;;  %v3490_v40 = vmul.f32 -1.442695, %v5896_v14 }
 0x184   : > { %v4708_v23 = vpop.eup %4707  ;;  %4727 = vrcp.f32 %v2133_v44  ;;  %v2131_v26 = vadd.f32 1.0, %v4706_v58  ;;  %v5916_v44 = vadd.f32 %v5699_v17, %v1428_v28 }
 0x185   : > { %v4710_v29 = vpop.eup %4709  ;;  %4729 = vrcp.f32 %v2067_v3  ;;  %v2072_v30 = vadd.f32 1.0, %v4708_v23  ;;  %v1492_v3 = vmul.f32 %v5707_v2, %v5547_v4 }
 0x186   : > { %v4712_v50 = vpop.eup %4711  ;;  %4731 = vrcp.f32 %v2131_v26  ;;  %v2136_v43 = vadd.f32 1.0, %v4710_v29  ;;  %v1497_v26 = vmul.f32 %v5707_v2, %v5569_v16  ;;  %v1431_v29 = vmul.f32 %v5707_v2, %v5576_v20 }
 0x187   : > { %v4714_v58 = vpop.eup %4713  ;;  %4733 = vrcp.f32 %v2072_v30  ;;  %v2070_v15 = vadd.f32 1.0, %v4712_v50  ;;  %v3429_v30 = vmul.f32 -1.442695, %v5909_v60  ;;  %v3493_v50 = vmul.f32 -1.442695, %v5912_v21 }
 0x188   : > { %v4716_v23 = vpop.eup %4715  ;;  %4735 = vrcp.f32 %v2136_v43  ;;  %v2134_v34 = vadd.f32 1.0, %v4714_v58  ;;  %v3427_v37 = vmul.f32 -1.442695, %v5916_v44  ;;  %v6493_v43 = vld [vmem:[#allocation12_spill] sm:$0xff]  ;;  %v5932_v20 = vadd.f32 %v5699_v17, %v1492_v3 }
 0x189   : > { %v4718_v28 = vpop.eup %4717  ;;  %4737 = vrcp.f32 %v2070_v15  ;;  %v2073_v6 = vadd.f32 1.0, %v4716_v23  ;;  %v1495_v58 = vmul.f32 %v5707_v2, %v6493_v43  ;;  %v5935_v15 = vadd.f32 %v5699_v17, %v1433_v33 }
 0x18a   : > { %v4720_v4 = vpop.eup %4719  ;;  %4739 = vrcp.f32 %v2134_v34  ;;  %v2137_v13 = vadd.f32 1.0, %v4718_v28  ;;  %v5938_v34 = vadd.f32 %v5699_v17, %v1497_v26  ;;  %v5941_v28 = vadd.f32 %v5699_v17, %v1431_v29 }
 0x18b   : > { %v4722_v35 = vpop.eup %4721  ;;  %4741 = vrcp.f32 %v2073_v6  ;;  %v2071_v16 = vadd.f32 1.0, %v4720_v4  ;;  %v2452_v6 = vmul.f32 %v5855_v11, %v5647_v59  ;;  %v2516_v3 = vmul.f32 %v5859_v42, %v5653_v22  ;;  %v6495_v22 = vld [vmem:[#allocation14_spill] sm:$0xff] }
 0x18c   : > { %v4724_v23 = vpop.eup %4723  ;;  %4743 = vrcp.f32 %v2137_v13  ;;  %v2135_v52 = vadd.f32 1.0, %v4722_v35  ;;  %v5949_v35 = vadd.f32 %v5699_v17, %v1495_v58  ;;  %v6494_v13 = vld [vmem:[#allocation13_spill] sm:$0xff]  ;;  %v2450_v59 = vmul.f32 %v5863_v46, %v5659_v7  ;;  %v6496_v7 = vld [vmem:[#allocation15_spill] sm:$0xff] }
 0x18d   : > { %v4726_v10 = vpop.eup %4725  ;;  %4745 = vrcp.f32 %v2071_v16  ;;  %v2076_v4 = vadd.f32 1.0, %v4724_v23  ;;  %v1434_v26 = vmul.f32 %v5707_v2, %v6494_v13  ;;  %v1498_v42 = vmul.f32 %v5707_v2, %v6495_v22 }
 0x18e   : > { %v4728_v33 = vpop.eup %4727  ;;  %v2453_v43 = vmul.f32 %v4726_v10, %v5702_v18  ;;  %4747 = vrcp.f32 %v2135_v52  ;;  %v2514_v18 = vmul.f32 %v5869_v47, %v5674_v38  ;;  %v3491_v38 = vmul.f32 -1.442695, %v5932_v20 }
 0x18f   : > { %v4730_v29 = vpop.eup %4729  ;;  %v2517_v11 = vmul.f32 %v4728_v33, %v5721_v19  ;;  %4749 = vrcp.f32 %v2076_v4  ;;  %v1432_v19 = vmul.f32 %v5707_v2, %v6496_v7  ;;  %v3430_v33 = vmul.f32 -1.442695, %v5941_v28 }
 0x190   : > { %v4732_v16 = vpop.eup %4731  ;;  %v3848_v10 = vpack.c.bf16 %v2453_v43, %v2452_v6  ;;  %v2451_v52 = vmul.f32 %v4730_v29, %v5743_v25  ;;  %4751 = vpow2.f32 %v3492_v49  ;;  %v5968_v25 = vadd.f32 %v5699_v17, %v1434_v26 }
 0x191   : > { %v4734_v58 = vpop.eup %4733  ;;  %v4008_v23 = vpack.c.bf16 %v2517_v11, %v2516_v3  ;;  %v2515_v13 = vmul.f32 %v4732_v16, %v5754_v53  ;;  %4753 = vpow2.f32 %v5906_v1  ;;  %v3432_v53 = vmul.f32 -1.442695, %v5935_v15 }
 0x192   : > { %v4736_v46 = vpop.eup %4735  ;;  %4112 = vst [vmem:[%s5341_s24 + $0x68] sm:$0xff] %v3848_v10   ;;  %v3843_v4 = vpack.c.bf16 %v2451_v52, %v2450_v59  ;;  %4755 = vpow2.f32 %v3490_v40  ;;  %v5973_v1 = vadd.f32 %v5699_v17, %v1498_v42  ;;  %v3496_v3 = vmul.f32 -1.442695, %v5938_v34 }
 0x193   : > { %v4738_v47 = vpop.eup %4737  ;;  %4144 = vst [vmem:[%s5341_s24 + $0x168] sm:$0xff] %v4008_v23   ;;  %v4003_v49 = vpack.c.bf16 %v2515_v13, %v2514_v18  ;;  %4757 = vpow2.f32 %v3429_v30  ;;  %v3494_v43 = vmul.f32 -1.442695, %v5949_v35  ;;  %v5981_v26 = vadd.f32 %v5699_v17, %v1432_v19  ;;  %v6497_v13 = vld [vmem:[#allocation16_spill] sm:$0xff] }
 0x194   : > { %v4740_v6 = vpop.eup %4739  ;;  %4111 = vst [vmem:[%s5341_s24 + $0x60] sm:$0xff] %v3843_v4   ;;  %4759 = vpow2.f32 %v3493_v50  ;;  %v2456_v29 = vmul.f32 %v4734_v58, %v5759_v27  ;;  %v3433_v50 = vmul.f32 -1.442695, %v5968_v25  ;;  %v2520_v22 = vmul.f32 %v4736_v46, %v5775_v45 }
 0x195   : > { %v4742_v40 = vpop.eup %4741  ;;  %4143 = vst [vmem:[%s5341_s24 + $0x160] sm:$0xff] %v4003_v49   ;;  %4761 = vpow2.f32 %v3427_v37  ;;  %v3497_v42 = vmul.f32 -1.442695, %v5973_v1  ;;  %v2454_v18 = vmul.f32 %v4738_v47, %v5785_v57  ;;  %v2518_v52 = vmul.f32 %v4740_v6, %v5794_v48  ;;  %v6498_v6 = vld [vmem:[#allocation17_spill] sm:$0xff] }
 0x196   : > { %v4744_v30 = vpop.eup %4743  ;;  %v2457_v59 = vmul.f32 %v4742_v40, %v5801_v54  ;;  %4763 = vpow2.f32 %v3491_v38  ;;  %v1496_v57 = vmul.f32 %v5707_v2, %v6497_v13  ;;  %v3431_v38 = vmul.f32 -1.442695, %v5981_v26 }
 0x197   : > { %v4746_v11 = vpop.eup %4745  ;;  %v2521_v37 = vmul.f32 %v4744_v30, %v5804_v55  ;;  %4765 = vpow2.f32 %v3432_v53 }
 0x198   : > { %v4748_v16 = vpop.eup %4747  ;;  %v3858_v10 = vpack.c.bf16 %v2457_v59, %v2456_v29  ;;  %v2455_v27 = vmul.f32 %v4746_v11, %v5808_v0  ;;  %4767 = vpow2.f32 %v3496_v3  ;;  %v6003_v53 = vadd.f32 %v5699_v17, %v1496_v57  ;;  %v6500_v29 = vld [vmem:[#allocation19_spill] sm:$0xff] }
 0x199   : > { %v5991_v54 = vpop.eup %4749  ;;  %v4018_v58 = vpack.c.bf16 %v2521_v37, %v2520_v22  ;;  %v2519_v45 = vmul.f32 %v4748_v16, %v5828_v41  ;;  %4769 = vpow2.f32 %v3430_v33  ;;  %v1437_v3 = vmul.f32 %v5707_v2, %v6498_v6  ;;  %v6501_v22 = vld [vmem:[#allocation20_spill] sm:$0xff] }
 0x19a   : > { %v4752_v55 = vpop.eup %4751  ;;  %4114 = vst [vmem:[%s5341_s24 + $0x78] sm:$0xff] %v3858_v10   ;;  %v3853_v23 = vpack.c.bf16 %v2455_v27, %v2454_v18  ;;  %4771 = vpow2.f32 %v3494_v43  ;;  %v6499_v43 = vld [vmem:[#allocation18_spill] sm:$0xff]  ;;  %v1435_v59 = vmul.f32 %v5707_v2, %v6500_v29  ;;  %v1499_v37 = vmul.f32 %v5707_v2, %v6501_v22 }
 0x19b   : > { %v4754_v7 = vpop.eup %4753  ;;  %4146 = vst [vmem:[%s5341_s24 + $0x178] sm:$0xff] %v4018_v58   ;;  %v4013_v0 = vpack.c.bf16 %v2519_v45, %v2518_v52  ;;  %v2140_v19 = vadd.f32 1.0, %v4752_v55  ;;  %4773 = vpow2.f32 %v3433_v50  ;;  %v1501_v30 = vmul.f32 %v5707_v2, %v6499_v43  ;;  %v6503_v52 = vld [vmem:[#allocation22_spill] sm:$0xff] }
 0x19c   : > { %v4756_v46 = vpop.eup %4755  ;;  %4113 = vst [vmem:[%s5341_s24 + $0x70] sm:$0xff] %v3853_v23   ;;  %v2074_v48 = vadd.f32 1.0, %v4754_v7  ;;  %4775 = vpow2.f32 %v3497_v42  ;;  %v6502_v42 = vld [vmem:[#allocation21_spill] sm:$0xff]  ;;  %v1502_v27 = vmul.f32 %v5707_v2, %v5638_v56  ;;  %v1436_v58 = vmul.f32 %v5707_v2, %v6503_v52 }
 0x19d   : > { %v4758_v4 = vpop.eup %4757  ;;  %4145 = vst [vmem:[%s5341_s24 + $0x170] sm:$0xff] %v4013_v0   ;;  %4777 = vrcp.f32 %v2140_v19  ;;  %v2138_v41 = vadd.f32 1.0, %v4756_v46  ;;  %v1438_v16 = vmul.f32 %v5707_v2, %v6502_v42  ;;  %v3495_v23 = vmul.f32 -1.442695, %v6003_v53 }
 0x19e   : > { %v4760_v47 = vpop.eup %4759  ;;  %4779 = vrcp.f32 %v2074_v48  ;;  %v2077_v49 = vadd.f32 1.0, %v4758_v4  ;;  %v6021_v13 = vadd.f32 %v5699_v17, %v1437_v3  ;;  %v6024_v0 = vadd.f32 %v5699_v17, %v1501_v30 }
 0x19f   : > { %v4762_v40 = vpop.eup %4761  ;;  %4781 = vrcp.f32 %v2138_v41  ;;  %v2141_v33 = vadd.f32 1.0, %v4760_v47  ;;  %v6027_v19 = vadd.f32 %v5699_v17, %v1435_v59  ;;  %v6030_v48 = vadd.f32 %v5699_v17, %v1499_v37 }
 0x1a0   : > { %v4764_v50 = vpop.eup %4763  ;;  %4783 = vrcp.f32 %v2077_v49  ;;  %v2075_v11 = vadd.f32 1.0, %v4762_v40  ;;  %v6033_v4 = vadd.f32 %v5699_v17, %v1438_v16  ;;  %v6036_v49 = vadd.f32 %v5699_v17, %v1502_v27 }
 0x1a1   : > { %v4766_v18 = vpop.eup %4765  ;;  %4785 = vrcp.f32 %v2141_v33  ;;  %v2139_v10 = vadd.f32 1.0, %v4764_v50  ;;  %v6039_v6 = vadd.f32 %v5699_v17, %v1436_v58  ;;  %v6504_v33 = vld [vmem:[#allocation23_spill] sm:$0xff]  ;;  %v1441_v30 = vmul.f32 %v5707_v2, %v5667_v39 }
 0x1a2   : > { %v4768_v45 = vpop.eup %4767  ;;  %4787 = vrcp.f32 %v2075_v11  ;;  %v2080_v55 = vadd.f32 1.0, %v4766_v18  ;;  %v1500_v43 = vmul.f32 %v5707_v2, %v6504_v33  ;;  %v3436_v50 = vmul.f32 -1.442695, %v6021_v13 }
 0x1a3   : > { %v4770_v57 = vpop.eup %4769  ;;  %4789 = vrcp.f32 %v2139_v10  ;;  %v2144_v7 = vadd.f32 1.0, %v4768_v45  ;;  %v1505_v11 = vmul.f32 %v5707_v2, %v5669_v32  ;;  %v3500_v37 = vmul.f32 -1.442695, %v6024_v0 }
 0x1a4   : > { %v4772_v56 = vpop.eup %4771  ;;  %4791 = vrcp.f32 %v2080_v55  ;;  %v2078_v46 = vadd.f32 1.0, %v4770_v57  ;;  %v3434_v42 = vmul.f32 -1.442695, %v6027_v19  ;;  %v1439_v16 = vmul.f32 %v5707_v2, %v5676_v62 }
 0x1a5   : > { %v4774_v41 = vpop.eup %4773  ;;  %4793 = vrcp.f32 %v2144_v7  ;;  %v2142_v47 = vadd.f32 1.0, %v4772_v56  ;;  %v3498_v39 = vmul.f32 -1.442695, %v6030_v48  ;;  %v3437_v10 = vmul.f32 -1.442695, %v6033_v4 }
 0x1a6   : > { %v4776_v3 = vpop.eup %4775  ;;  %4795 = vrcp.f32 %v2078_v46  ;;  %v2081_v40 = vadd.f32 1.0, %v4774_v41  ;;  %v3501_v27 = vmul.f32 -1.442695, %v6036_v49  ;;  %v3435_v32 = vmul.f32 -1.442695, %v6039_v6 }
 0x1a7   : > { %v4778_v29 = vpop.eup %4777  ;;  %4797 = vrcp.f32 %v2142_v47  ;;  %v2145_v59 = vadd.f32 1.0, %v4776_v3  ;;  %v6057_v58 = vadd.f32 %v5699_v17, %v1500_v43  ;;  %v6060_v45 = vadd.f32 %v5699_v17, %v1441_v30 }
 0x1a8   : > { %v4780_v22 = vpop.eup %4779  ;;  %4799 = vrcp.f32 %v2081_v40  ;;  %v2460_v62 = vmul.f32 %v5991_v54, %v5839_v51  ;;  %v6066_v7 = vadd.f32 %v5699_v17, %v1505_v11  ;;  %v6071_v41 = vadd.f32 %v5699_v17, %v1439_v16  ;;  %v6505_v11 = vld [vmem:[#allocation24_spill] sm:$0xff] }
 0x1a9   : > { %v4782_v18 = vpop.eup %4781  ;;  %4801 = vrcp.f32 %v2145_v59  ;;  %v2458_v3 = vmul.f32 %v4780_v22, %v5881_v61  ;;  %v3499_v61 = vmul.f32 -1.442695, %v6057_v58  ;;  %v1503_v43 = vmul.f32 %v5707_v2, %v5678_v12 }
 0x1aa   : > { %v4784_v52 = vpop.eup %4783  ;;  %4803 = vpow2.f32 %v3431_v38  ;;  %v2524_v38 = vmul.f32 %v4778_v29, %v5878_v63  ;;  %v1442_v12 = vmul.f32 %v5707_v2, %v6505_v11 }
 0x1ab   : > { %v4786_v55 = vpop.eup %4785  ;;  %v2461_v57 = vmul.f32 %v4784_v52, %v5909_v60  ;;  %4805 = vpow2.f32 %v3495_v23  ;;  %v2522_v23 = vmul.f32 %v4782_v18, %v5896_v14  ;;  %v3440_v14 = vmul.f32 -1.442695, %v6060_v45 }
 0x1ac   : > { %v4788_v56 = vpop.eup %4787  ;;  %v2525_v46 = vmul.f32 %v4786_v55, %v5912_v21  ;;  %4807 = vpow2.f32 %v3436_v50  ;;  %v3438_v50 = vmul.f32 -1.442695, %v6071_v41  ;;  %v6096_v16 = vadd.f32 %v5699_v17, %v1503_v43 }
 0x1ad   : > { %v4790_v47 = vpop.eup %4789  ;;  %v3868_v51 = vpack.c.bf16 %v2461_v57, %v2460_v62  ;;  %v2459_v60 = vmul.f32 %v4788_v56, %v5916_v44  ;;  %4809 = vpow2.f32 %v3500_v37 }
 0x1ae   : > { %v4792_v54 = vpop.eup %4791  ;;  %v4028_v40 = vpack.c.bf16 %v2525_v46, %v2524_v38  ;;  %v2523_v63 = vmul.f32 %v4790_v47, %v5932_v20  ;;  %4811 = vpow2.f32 %v3434_v42  ;;  %v3504_v20 = vmul.f32 -1.442695, %v6066_v7 }
 0x1af   : > { %v4794_v21 = vpop.eup %4793  ;;  %4116 = vst [vmem:[%s5341_s24 + $0x88] sm:$0xff] %v3868_v51   ;;  %v3863_v33 = vpack.c.bf16 %v2459_v60, %v2458_v3  ;;  %4813 = vpow2.f32 %v3498_v39  ;;  %v2464_v37 = vmul.f32 %v4792_v54, %v5935_v15  ;;  %v6508_v51 = vld [vmem:[#allocation27_spill] sm:$0xff] }
 0x1b0   : > { %v6081_v44 = vpop.eup %4795  ;;  %4148 = vst [vmem:[%s5341_s24 + $0x188] sm:$0xff] %v4028_v40   ;;  %v4023_v30 = vpack.c.bf16 %v2523_v63, %v2522_v23  ;;  %4815 = vpow2.f32 %v3437_v10  ;;  %v2528_v39 = vmul.f32 %v4794_v21, %v5938_v34  ;;  %v6105_v34 = vadd.f32 %v5699_v17, %v1442_v12 }
 0x1b1   : > { %v6085_v29 = vpop.eup %4797  ;;  %4115 = vst [vmem:[%s5341_s24 + $0x80] sm:$0xff] %v3863_v33   ;;  %4817 = vpow2.f32 %v3501_v27  ;;  %v6506_v27 = vld [vmem:[#allocation25_spill] sm:$0xff]  ;;  %v1504_v60 = vmul.f32 %v5707_v2, %v6508_v51  ;;  %v3502_v40 = vmul.f32 -1.442695, %v6096_v16 }
 0x1b2   : > { %v4800_v59 = vpop.eup %4799  ;;  %4147 = vst [vmem:[%s5341_s24 + $0x180] sm:$0xff] %v4023_v30   ;;  %4819 = vpow2.f32 %v3435_v32  ;;  %v1506_v52 = vmul.f32 %v5707_v2, %v6506_v27 }
 0x1b3   : > { %v4802_v22 = vpop.eup %4801  ;;  %v2465_v42 = vmul.f32 %v4800_v59, %v5968_v25  ;;  %4821 = vpow2.f32 %v3499_v61  ;;  %v6507_v25 = vld [vmem:[#allocation26_spill] sm:$0xff]  ;;  %v3441_v61 = vmul.f32 -1.442695, %v6105_v34 }
 0x1b4   : > { %v4804_v18 = vpop.eup %4803  ;;  %v2529_v10 = vmul.f32 %v4802_v22, %v5973_v1  ;;  %4823 = vpow2.f32 %v3440_v14  ;;  %v1440_v62 = vmul.f32 %v5707_v2, %v6507_v25  ;;  %v6113_v63 = vadd.f32 %v5699_v17, %v1506_v52  ;;  %v6512_v52 = vld [vmem:[#allocation29_spill] sm:$0xff] }
 0x1b5   : > { %v4806_v32 = vpop.eup %4805  ;;  %v3878_v55 = vpack.c.bf16 %v2465_v42, %v2464_v37  ;;  %v2079_v15 = vadd.f32 1.0, %v4804_v18  ;;  %4825 = vpow2.f32 %v3504_v20  ;;  %v6509_v20 = vld [vmem:[#allocation2_spill] sm:$0xff]  ;;  %v6124_v37 = vadd.f32 %v5699_v17, %v1504_v60  ;;  %v6511_v42 = vld [vmem:[#allocation3_spill] sm:$0xff] }
 0x1b6   : > { %v4808_v57 = vpop.eup %4807  ;;  %v4038_v56 = vpack.c.bf16 %v2529_v10, %v2528_v39  ;;  %v2143_v38 = vadd.f32 1.0, %v4806_v32  ;;  %4827 = vpow2.f32 %v3438_v50  ;;  %v6117_v43 = vadd.f32 %v5699_v17, %v1440_v62  ;;  %v6510_v50 = vld [vmem:[#allocation28_spill] sm:$0xff]  ;;  %v6513_v62 = vld [vmem:[#allocation30_spill] sm:$0xff]  ;;  %v6514_v60 = vld [vmem:[#allocation31_spill] sm:$0xff] }
 0x1b7   : > { %v4810_v1 = vpop.eup %4809  ;;  %4118 = vst [vmem:[%s5341_s24 + $0x98] sm:$0xff] %v3878_v55   ;;  %4829 = vrcp.f32 %v2079_v15  ;;  %v2084_v46 = vadd.f32 1.0, %v4808_v57  ;;  %v1445_v59 = vmul.f32 %v5707_v2, %v6509_v20  ;;  %v1509_v11 = vmul.f32 %v5707_v2, %v6510_v50 }
 0x1b8   : > { %v4812_v47 = vpop.eup %4811  ;;  %4150 = vst [vmem:[%s5341_s24 + $0x198] sm:$0xff] %v4038_v56   ;;  %4831 = vrcp.f32 %v2143_v38  ;;  %v2148_v3 = vadd.f32 1.0, %v4810_v1  ;;  %v1443_v18 = vmul.f32 %v5707_v2, %v6511_v42  ;;  %v3505_v27 = vmul.f32 -1.442695, %v6113_v63 }
 0x1b9   : > { %v4814_v54 = vpop.eup %4813  ;;  %4833 = vrcp.f32 %v2084_v46  ;;  %v2082_v23 = vadd.f32 1.0, %v4812_v47  ;;  %v1507_v32 = vmul.f32 %v5707_v2, %v6512_v52  ;;  %v3439_v25 = vmul.f32 -1.442695, %v6117_v43 }
 0x1ba   : > { %v4816_v21 = vpop.eup %4815  ;;  %4835 = vrcp.f32 %v2148_v3  ;;  %v2146_v33 = vadd.f32 1.0, %v4814_v54  ;;  %v1446_v57 = vmul.f32 %v5707_v2, %v6513_v62  ;;  %v6135_v1 = vadd.f32 %v5699_v17, %v1445_v59 }
 0x1bb   : > { %v4818_v30 = vpop.eup %4817  ;;  %4837 = vrcp.f32 %v2082_v23  ;;  %v2085_v14 = vadd.f32 1.0, %v4816_v21  ;;  %v6138_v46 = vadd.f32 %v5699_v17, %v1509_v11  ;;  %v6141_v51 = vadd.f32 %v5699_v17, %v1443_v18  ;;  %v6516_v18 = vld [vmem:[#allocation33_spill] sm:$0xff] }
 0x1bc   : > { %v4820_v12 = vpop.eup %4819  ;;  %4839 = vrcp.f32 %v2146_v33  ;;  %v2149_v22 = vadd.f32 1.0, %v4818_v30  ;;  %v1510_v54 = vmul.f32 %v5707_v2, %v6514_v60  ;;  %v6146_v33 = vadd.f32 %v5699_v17, %v1507_v32  ;;  %v6515_v30 = vld [vmem:[#allocation32_spill] sm:$0xff] }
 0x1bd   : > { %v4822_v39 = vpop.eup %4821  ;;  %4841 = vrcp.f32 %v2085_v14  ;;  %v2083_v10 = vadd.f32 1.0, %v4820_v12  ;;  %v1444_v14 = vmul.f32 %v5707_v2, %v6515_v30  ;;  %v2462_v59 = vmul.f32 %v6081_v44, %v5941_v28 }
 0x1be   : > { %v4824_v55 = vpop.eup %4823  ;;  %4843 = vrcp.f32 %v2149_v22  ;;  %v2147_v15 = vadd.f32 1.0, %v4822_v39  ;;  %v6154_v11 = vadd.f32 %v5699_v17, %v1446_v57  ;;  %v2526_v22 = vmul.f32 %v6085_v29, %v5949_v35  ;;  %v6165_v17 = vld [vmem:[%s6428_s3] ss:$0 sm:$0xff] }
 0x1bf   : > { %v4826_v56 = vpop.eup %4825  ;;  %4845 = vrcp.f32 %v2083_v10  ;;  %v2088_v38 = vadd.f32 1.0, %v4824_v55  ;;  %v1508_v39 = vmul.f32 %v5707_v2, %v6516_v18  ;;  %v3503_v28 = vmul.f32 -1.442695, %v6124_v37 }
 0x1c0   : > { %v4828_v47 = vpop.eup %4827  ;;  %4847 = vrcp.f32 %v2147_v15  ;;  %v2152_v3 = vadd.f32 1.0, %v4826_v56  ;;  %v6168_v35 = vadd.f32 %v6165_v17, %v1510_v54  ;;  %v3444_v44 = vmul.f32 -1.442695, %v6135_v1 }
 0x1c1   : > { %v4830_v23 = vpop.eup %4829  ;;  %4849 = vrcp.f32 %v2088_v38  ;;  %v2086_v21 = vadd.f32 1.0, %v4828_v47  ;;  %v6172_v2 = vadd.f32 %v6165_v17, %v1444_v14  ;;  %v3442_v32 = vmul.f32 -1.442695, %v6141_v51 }
 0x1c2   : > { %v4832_v20 = vpop.eup %4831  ;;  %v2463_v50 = vmul.f32 %v4830_v23, %v5981_v26  ;;  %4851 = vrcp.f32 %v2152_v3  ;;  %v3506_v15 = vmul.f32 -1.442695, %v6146_v33  ;;  %v3445_v62 = vmul.f32 -1.442695, %v6154_v11 }
 0x1c3   : > { %v4834_v12 = vpop.eup %4833  ;;  %v2527_v42 = vmul.f32 %v4832_v20, %v6003_v53  ;;  %4853 = vrcp.f32 %v2086_v21  ;;  %v3443_v60 = vmul.f32 -1.442695, %v6172_v2 }
 0x1c4   : > { %v4836_v10 = vpop.eup %4835  ;;  %v3873_v52 = vpack.c.bf16 %v2463_v50, %v2462_v59  ;;  %4855 = vpow2.f32 %v3502_v40  ;;  %v3508_v40 = vmul.f32 -1.442695, %v6138_v46  ;;  %v2468_v56 = vmul.f32 %v4834_v12, %v6021_v13  ;;  %v6517_v59 = vld [vmem:[#allocation4_spill] sm:$0xff]  ;;  %v6518_v12 = vld [vmem:[#allocation5_spill] sm:$0xff] }
 0x1c5   : > { %v4838_v26 = vpop.eup %4837  ;;  %v4033_v53 = vpack.c.bf16 %v2527_v42, %v2526_v22  ;;  %4857 = vpow2.f32 %v3441_v61  ;;  %v6181_v61 = vadd.f32 %v6165_v17, %v1508_v39  ;;  %v2532_v3 = vmul.f32 %v4836_v10, %v6024_v0 }
 0x1c6   : > { %v4840_v29 = vpop.eup %4839  ;;  %4117 = vst [vmem:[%s5341_s24 + $0x90] sm:$0xff] %v3873_v52   ;;  %4859 = vpow2.f32 %v3505_v27  ;;  %v3509_v27 = vmul.f32 -1.442695, %v6168_v35  ;;  %v2466_v23 = vmul.f32 %v4838_v26, %v6027_v19 }
 0x1c7   : > { %v4842_v55 = vpop.eup %4841  ;;  %4149 = vst [vmem:[%s5341_s24 + $0x190] sm:$0xff] %v4033_v53   ;;  %4861 = vpow2.f32 %v3439_v25  ;;  %v2530_v30 = vmul.f32 %v4840_v29, %v6030_v48  ;;  %v3507_v19 = vmul.f32 -1.442695, %v6181_v61  ;;  %v6519_v29 = vld [vmem:[#allocation7_spill] sm:$0xff] }
 0x1c8   : > { %v4844_v57 = vpop.eup %4843  ;;  %v2469_v38 = vmul.f32 %v4842_v55, %v6033_v4  ;;  %4863 = vpow2.f32 %v3503_v28 }
 0x1c9   : > { %v4846_v47 = vpop.eup %4845  ;;  %v2533_v25 = vmul.f32 %v4844_v57, %v6036_v49  ;;  %4865 = vpow2.f32 %v3444_v44  ;;  %v6521_v57 = vld [vmem:[#allocation34_spill] sm:$0xff] }
 0x1ca   : > { %v4848_v54 = vpop.eup %4847  ;;  %v3888_v21 = vpack.c.bf16 %v2469_v38, %v2468_v56  ;;  %v2467_v13 = vmul.f32 %v4846_v47, %v6039_v6  ;;  %4867 = vpow2.f32 %v3508_v40  ;;  %v6202_v6 = vld [vmem:[%s6427_s2] ss:$0 sm:$0xff]  ;;  %v6522_v47 = vld [vmem:[#allocation35_spill] sm:$0xff] }
 0x1cb   : > { %v6191_v4 = vpop.eup %4849  ;;  %v4048_v14 = vpack.c.bf16 %v2533_v25, %v2532_v3  ;;  %v2531_v0 = vmul.f32 %v4848_v54, %v6057_v58  ;;  %4869 = vpow2.f32 %v3442_v32  ;;  %v1449_v48 = vmul.f32 %v6202_v6, %v6517_v59 }
 0x1cc   : > { %v6195_v49 = vpop.eup %4851  ;;  %4120 = vst [vmem:[%s5341_s24 + $0xa8] sm:$0xff] %v3888_v21   ;;  %v3883_v20 = vpack.c.bf16 %v2467_v13, %v2466_v23  ;;  %4871 = vpow2.f32 %v3506_v15  ;;  %v1513_v22 = vmul.f32 %v6202_v6, %v6518_v12  ;;  %v1447_v40 = vmul.f32 %v6202_v6, %v6519_v29  ;;  %v6520_v15 = vld [vmem:[#allocation8_spill] sm:$0xff]  ;;  %v6523_v23 = vld [vmem:[#allocation6_spill] sm:$0xff] }
 0x1cd   : > { %v6206_v50 = vpop.eup %4853  ;;  %4152 = vst [vmem:[%s5341_s24 + $0x1a8] sm:$0xff] %v4048_v14   ;;  %v4043_v58 = vpack.c.bf16 %v2531_v0, %v2530_v30  ;;  %4873 = vpow2.f32 %v3445_v62  ;;  %v6214_v28 = vadd.f32 %v6165_v17, %v1449_v48  ;;  %v1511_v62 = vmul.f32 %v6202_v6, %v6520_v15 }
 0x1ce   : > { %v4856_v42 = vpop.eup %4855  ;;  %4119 = vst [vmem:[%s5341_s24 + $0xa0] sm:$0xff] %v3883_v20   ;;  %4875 = vpow2.f32 %v3509_v27  ;;  %v6217_v44 = vadd.f32 %v6165_v17, %v1513_v22  ;;  %v1450_v56 = vmul.f32 %v6202_v6, %v6521_v57  ;;  %v1514_v3 = vmul.f32 %v6202_v6, %v6522_v47 }
 0x1cf   : > { %v4858_v18 = vpop.eup %4857  ;;  %4151 = vst [vmem:[%s5341_s24 + $0x1a0] sm:$0xff] %v4043_v58   ;;  %v2150_v39 = vadd.f32 1.0, %v4856_v42  ;;  %4877 = vpow2.f32 %v3443_v60  ;;  %v3448_v54 = vmul.f32 -1.442695, %v6214_v28  ;;  %v1448_v21 = vmul.f32 %v6202_v6, %v6523_v23  ;;  %v6524_v42 = vld [vmem:[#allocation36_spill] sm:$0xff] }
 0x1d0   : > { %v4860_v10 = vpop.eup %4859  ;;  %v2089_v52 = vadd.f32 1.0, %v4858_v18  ;;  %4879 = vpow2.f32 %v3507_v19  ;;  %v3512_v14 = vmul.f32 -1.442695, %v6217_v44  ;;  %v6232_v0 = vadd.f32 %v6165_v17, %v1447_v40 }
 0x1d1   : > { %v4862_v26 = vpop.eup %4861  ;;  %4881 = vrcp.f32 %v2150_v39  ;;  %v2153_v53 = vadd.f32 1.0, %v4860_v10  ;;  %v6235_v59 = vadd.f32 %v6165_v17, %v1511_v62  ;;  %v6238_v48 = vadd.f32 %v6165_v17, %v1450_v56 }
 0x1d2   : > { %v4864_v32 = vpop.eup %4863  ;;  %4883 = vrcp.f32 %v2089_v52  ;;  %v2087_v55 = vadd.f32 1.0, %v4862_v26  ;;  %v6241_v22 = vadd.f32 %v6165_v17, %v1514_v3  ;;  %v1512_v18 = vmul.f32 %v6202_v6, %v6524_v42  ;;  %v6525_v26 = vld [vmem:[#allocation9_spill] sm:$0xff] }
 0x1d3   : > { %v4866_v38 = vpop.eup %4865  ;;  %4885 = vrcp.f32 %v2153_v53  ;;  %v2151_v27 = vadd.f32 1.0, %v4864_v32  ;;  %v6246_v52 = vadd.f32 %v6165_v17, %v1448_v21  ;;  %v1453_v53 = vmul.f32 %v6202_v6, %v6525_v26 }
 0x1d4   : > { %v4868_v25 = vpop.eup %4867  ;;  %4887 = vrcp.f32 %v2087_v55  ;;  %v2092_v60 = vadd.f32 1.0, %v4866_v38  ;;  %v3446_v32 = vmul.f32 -1.442695, %v6232_v0  ;;  %v6526_v55 = vld [vmem:[#allocation37_spill] sm:$0xff]  ;;  %v3510_v56 = vmul.f32 -1.442695, %v6235_v59 }
 0x1d5   : > { %v4870_v13 = vpop.eup %4869  ;;  %4889 = vrcp.f32 %v2151_v27  ;;  %v2156_v30 = vadd.f32 1.0, %v4868_v25  ;;  %v1517_v15 = vmul.f32 %v6202_v6, %v6526_v55  ;;  %v3449_v38 = vmul.f32 -1.442695, %v6238_v48 }
 0x1d6   : > { %v4872_v20 = vpop.eup %4871  ;;  %4891 = vrcp.f32 %v2092_v60  ;;  %v2090_v19 = vadd.f32 1.0, %v4870_v13  ;;  %v3513_v3 = vmul.f32 -1.442695, %v6241_v22  ;;  %v6257_v25 = vadd.f32 %v6165_v17, %v1512_v18  ;;  %v6527_v13 = vld [vmem:[#allocation10_spill] sm:$0xff] }
 0x1d7   : > { %v4874_v58 = vpop.eup %4873  ;;  %4893 = vrcp.f32 %v2156_v30  ;;  %v2154_v12 = vadd.f32 1.0, %v4872_v20  ;;  %v3447_v23 = vmul.f32 -1.442695, %v6246_v52  ;;  %v6261_v21 = vadd.f32 %v6165_v17, %v1453_v53 }
 0x1d8   : > { %v4876_v39 = vpop.eup %4875  ;;  %4895 = vrcp.f32 %v2090_v19  ;;  %v2093_v10 = vadd.f32 1.0, %v4874_v58  ;;  %v1451_v30 = vmul.f32 %v6202_v6, %v6527_v13  ;;  %v2472_v19 = vmul.f32 %v6191_v4, %v6060_v45 }
 0x1d9   : > { %v4878_v29 = vpop.eup %4877  ;;  %4897 = vrcp.f32 %v2154_v12  ;;  %v2157_v40 = vadd.f32 1.0, %v4876_v39  ;;  %v6269_v12 = vadd.f32 %v6165_v17, %v1517_v15  ;;  %v2536_v18 = vmul.f32 %v6195_v49, %v6066_v7 }
 0x1da   : > { %v4880_v62 = vpop.eup %4879  ;;  %4899 = vrcp.f32 %v2093_v10  ;;  %v2091_v57 = vadd.f32 1.0, %v4878_v29  ;;  %v1454_v10 = vmul.f32 %v6202_v6, %v5841_v24  ;;  %v2470_v45 = vmul.f32 %v6206_v50, %v6071_v41 }
 0x1db   : > { %v4882_v27 = vpop.eup %4881  ;;  %4901 = vrcp.f32 %v2157_v40  ;;  %v2155_v47 = vadd.f32 1.0, %v4880_v62  ;;  %v3511_v41 = vmul.f32 -1.442695, %v6257_v25  ;;  %v6284_v49 = vadd.f32 %v6165_v17, %v1451_v30 }
 0x1dc   : > { %v4884_v60 = vpop.eup %4883  ;;  %4903 = vrcp.f32 %v2091_v57  ;;  %v2534_v29 = vmul.f32 %v4882_v27, %v6096_v16  ;;  %v3452_v16 = vmul.f32 -1.442695, %v6261_v21  ;;  %v1515_v55 = vmul.f32 %v6202_v6, %v5834_v5 }
 0x1dd   : > { %v4886_v20 = vpop.eup %4885  ;;  %v2473_v58 = vmul.f32 %v4884_v60, %v6105_v34  ;;  %4905 = vrcp.f32 %v2155_v47 }
 0x1de   : > { %v4888_v42 = vpop.eup %4887  ;;  %v2537_v39 = vmul.f32 %v4886_v20, %v6113_v63  ;;  %4907 = vpow2.f32 %v3448_v54  ;;  %v6289_v54 = vadd.f32 %v6165_v17, %v1454_v10 }
 0x1df   : > { %v4890_v26 = vpop.eup %4889  ;;  %v3898_v34 = vpack.c.bf16 %v2473_v58, %v2472_v19  ;;  %v2471_v4 = vmul.f32 %v4888_v42, %v6117_v43  ;;  %4909 = vpow2.f32 %v3512_v14  ;;  %v3516_v14 = vmul.f32 -1.442695, %v6269_v12  ;;  %v6528_v58 = vld [vmem:[#allocation38_spill] sm:$0xff] }
 0x1e0   : > { %v4892_v53 = vpop.eup %4891  ;;  %v4058_v40 = vpack.c.bf16 %v2537_v39, %v2536_v18  ;;  %v2535_v7 = vmul.f32 %v4890_v26, %v6124_v37  ;;  %4911 = vpow2.f32 %v3446_v32 }
 0x1e1   : > { %v4894_v63 = vpop.eup %4893  ;;  %4122 = vst [vmem:[%s5341_s24 + $0xb8] sm:$0xff] %v3898_v34   ;;  %v3893_v24 = vpack.c.bf16 %v2471_v4, %v2470_v45  ;;  %4913 = vpow2.f32 %v3510_v56  ;;  %v2476_v62 = vmul.f32 %v4892_v53, %v6135_v1  ;;  %v3450_v56 = vmul.f32 -1.442695, %v6284_v49 }
 0x1e2   : > { %v4896_v43 = vpop.eup %4895  ;;  %4154 = vst [vmem:[%s5341_s24 + $0x1b8] sm:$0xff] %v4058_v40   ;;  %v4053_v50 = vpack.c.bf16 %v2535_v7, %v2534_v29  ;;  %4915 = vpow2.f32 %v3449_v38  ;;  %v2540_v27 = vmul.f32 %v4894_v63, %v6138_v46  ;;  %v1516_v63 = vmul.f32 %v6202_v6, %v5851_v36 }
 0x1e3   : > { %v4898_v37 = vpop.eup %4897  ;;  %4121 = vst [vmem:[%s5341_s24 + $0xb0] sm:$0xff] %v3893_v24   ;;  %4917 = vpow2.f32 %v3513_v3  ;;  %v3453_v3 = vmul.f32 -1.442695, %v6289_v54  ;;  %v2474_v5 = vmul.f32 %v4896_v43, %v6141_v51  ;;  %v1457_v43 = vmul.f32 %v6202_v6, %v5872_v9 }
 0x1e4   : > { %v4900_v32 = vpop.eup %4899  ;;  %4153 = vst [vmem:[%s5341_s24 + $0x1b0] sm:$0xff] %v4053_v50   ;;  %4919 = vpow2.f32 %v3447_v23  ;;  %v2538_v13 = vmul.f32 %v4898_v37, %v6146_v33  ;;  %v1521_v50 = vmul.f32 %v6202_v6, %v5874_v31 }
 0x1e5   : > { %v4902_v15 = vpop.eup %4901  ;;  %v2477_v57 = vmul.f32 %v4900_v32, %v6154_v11  ;;  %4921 = vpow2.f32 %v3511_v41 }
 0x1e6   : > { %v4904_v38 = vpop.eup %4903  ;;  %v2541_v47 = vmul.f32 %v4902_v15, %v6168_v35  ;;  %4923 = vpow2.f32 %v3452_v16  ;;  %v6307_v35 = vadd.f32 %v6165_v17, %v1515_v55  ;;  %v6530_v55 = vld [vmem:[#allocation39_spill] sm:$0xff] }
 0x1e7   : > { %v4906_v60 = vpop.eup %4905  ;;  %v3908_v23 = vpack.c.bf16 %v2477_v57, %v2476_v62  ;;  %v2475_v1 = vmul.f32 %v4904_v38, %v6172_v2  ;;  %4925 = vpow2.f32 %v3516_v14  ;;  %v1518_v2 = vmul.f32 %v6202_v6, %v6528_v58  ;;  %v6529_v14 = vld [vmem:[#allocation11_spill] sm:$0xff]  ;;  %v6531_v57 = vld [vmem:[#allocation40_spill] sm:$0xff]  ;;  %v6532_v38 = vld [vmem:[#allocation41_spill] sm:$0xff] }
 0x1e8   : > { %v4908_v11 = vpop.eup %4907  ;;  %v4068_v30 = vpack.c.bf16 %v2541_v47, %v2540_v27  ;;  %v2539_v46 = vmul.f32 %v4906_v60, %v6181_v61  ;;  %4927 = vpow2.f32 %v3450_v56  ;;  %v1452_v61 = vmul.f32 %v6202_v6, %v5849_v8 }
 0x1e9   : > { %v4910_v20 = vpop.eup %4909  ;;  %4124 = vst [vmem:[%s5341_s24 + $0xc8] sm:$0xff] %v3908_v23   ;;  %v3903_v19 = vpack.c.bf16 %v2475_v1, %v2474_v5  ;;  %v2096_v51 = vadd.f32 1.0, %v4908_v11  ;;  %4929 = vpow2.f32 %v3453_v3  ;;  %v3514_v53 = vmul.f32 -1.442695, %v6307_v35  ;;  %v6533_v5 = vld [vmem:[#allocation42_spill] sm:$0xff] }
 0x1ea   : > { %v4912_v42 = vpop.eup %4911  ;;  %4156 = vst [vmem:[%s5341_s24 + $0x1c8] sm:$0xff] %v4068_v30   ;;  %v4063_v18 = vpack.c.bf16 %v2539_v46, %v2538_v13  ;;  %v2160_v33 = vadd.f32 1.0, %v4910_v20  ;;  %v6319_v29 = vadd.f32 %v6165_v17, %v1518_v2  ;;  %v6322_v8 = vadd.f32 %v6165_v17, %v1452_v61 }
 0x1eb   : > { %v4914_v39 = vpop.eup %4913  ;;  %4123 = vst [vmem:[%s5341_s24 + $0xc0] sm:$0xff] %v3903_v19   ;;  %4931 = vrcp.f32 %v2096_v51  ;;  %v2094_v10 = vadd.f32 1.0, %v4912_v42  ;;  %v1455_v32 = vmul.f32 %v6202_v6, %v6529_v14  ;;  %v1519_v15 = vmul.f32 %v6202_v6, %v6530_v55 }
 0x1ec   : > { %v4916_v26 = vpop.eup %4915  ;;  %4155 = vst [vmem:[%s5341_s24 + $0x1c0] sm:$0xff] %v4063_v18   ;;  %4933 = vrcp.f32 %v2160_v33  ;;  %v2158_v45 = vadd.f32 1.0, %v4914_v39  ;;  %v1458_v56 = vmul.f32 %v6202_v6, %v6531_v57  ;;  %v1522_v9 = vmul.f32 %v6202_v6, %v6532_v38  ;;  %v6534_v18 = vld [vmem:[#allocation43_spill] sm:$0xff] }
 0x1ed   : > { %v4918_v34 = vpop.eup %4917  ;;  %4935 = vrcp.f32 %v2094_v10  ;;  %v2097_v4 = vadd.f32 1.0, %v4916_v26  ;;  %v6339_v27 = vadd.f32 %v6165_v17, %v1516_v63  ;;  %v3517_v3 = vmul.f32 -1.442695, %v6319_v29 }
 0x1ee   : > { %v4920_v40 = vpop.eup %4919  ;;  %4937 = vrcp.f32 %v2158_v45  ;;  %v2161_v7 = vadd.f32 1.0, %v4918_v34  ;;  %v6343_v60 = vadd.f32 %v6165_v17, %v1457_v43  ;;  %v1456_v23 = vmul.f32 %v6202_v6, %v6533_v5 }
 0x1ef   : > { %v4922_v24 = vpop.eup %4921  ;;  %4939 = vrcp.f32 %v2097_v4  ;;  %v2095_v41 = vadd.f32 1.0, %v4920_v40  ;;  %v3451_v11 = vmul.f32 -1.442695, %v6322_v8  ;;  %v6349_v13 = vadd.f32 %v6165_v17, %v1521_v50 }
 0x1f0   : > { %v4924_v16 = vpop.eup %4923  ;;  %4941 = vrcp.f32 %v2161_v7  ;;  %v2159_v37 = vadd.f32 1.0, %v4922_v24  ;;  %v6352_v30 = vadd.f32 %v6165_v17, %v1455_v32  ;;  %v6355_v46 = vadd.f32 %v6165_v17, %v1519_v15 }
 0x1f1   : > { %v4926_v62 = vpop.eup %4925  ;;  %4943 = vrcp.f32 %v2095_v41  ;;  %v2100_v36 = vadd.f32 1.0, %v4924_v16  ;;  %v6358_v51 = vadd.f32 %v6165_v17, %v1458_v56  ;;  %v6361_v58 = vadd.f32 %v6165_v17, %v1522_v9 }
 0x1f2   : > { %4945 = vrcp.f32 %v2159_v37  ;;  %v2164_v31 = vadd.f32 1.0, %v4926_v62  ;;  %v4928_v47 = vpop.eup %4927  ;;  %v3515_v42 = vmul.f32 -1.442695, %v6339_v27  ;;  %v1520_v33 = vmul.f32 %v6202_v6, %v6534_v18 }
 0x1f3   : > { %4947 = vpow2.f32 %v3514_v53  ;;  %v4930_v1 = vpop.eup %4929  ;;  %v3456_v39 = vmul.f32 -1.442695, %v6343_v60  ;;  %v6368_v10 = vadd.f32 %v6165_v17, %v1456_v23  ;;  %v3520_v45 = vmul.f32 -1.442695, %v6349_v13 }
 0x1f4   : > { %4949 = vrcp.f32 %v2100_v36  ;;  %v2101_v19 = vadd.f32 1.0, %v4930_v1  ;;  %v3454_v34 = vmul.f32 -1.442695, %v6352_v30  ;;  %v3518_v53 = vmul.f32 -1.442695, %v6355_v46 }
 0x1f5   : > { %v4932_v20 = vpop.eup %4931  ;;  %4951 = vrcp.f32 %v2164_v31  ;;  %v3457_v40 = vmul.f32 -1.442695, %v6358_v51  ;;  %v3521_v6 = vmul.f32 -1.442695, %v6361_v58  ;;  %v6378_v41 = vadd.f32 %v6165_v17, %v1520_v33 }
 0x1f6   : > { %v4934_v2 = vpop.eup %4933  ;;  %4953 = vrcp.f32 %v2101_v19  ;;  %v2480_v63 = vmul.f32 %v4932_v20, %v6214_v28  ;;  %v3455_v37 = vmul.f32 -1.442695, %v6368_v10  ;;  %v2098_v57 = vadd.f32 1.0, %v4928_v47 }
 0x1f7   : > { %v4936_v61 = vpop.eup %4935  ;;  %4955 = vpow2.f32 %v3517_v3  ;;  %v2544_v50 = vmul.f32 %v4934_v2, %v6217_v44  ;;  %v3519_v62 = vmul.f32 -1.442695, %v6378_v41 }
 0x1f8   : > { %v4938_v26 = vpop.eup %4937  ;;  %4957 = vpow2.f32 %v3451_v11  ;;  %v2478_v32 = vmul.f32 %v4936_v61, %v6232_v0 }
 0x1f9   : > { %v4940_v4 = vpop.eup %4939  ;;  %4959 = vpow2.f32 %v3515_v42  ;;  %v2542_v55 = vmul.f32 %v4938_v26, %v6235_v59 }
 0x1fa   : > { %v4942_v7 = vpop.eup %4941  ;;  %v2481_v24 = vmul.f32 %v4940_v4, %v6238_v48  ;;  %4961 = vpow2.f32 %v3456_v39 }
 0x1fb   : > { %v4944_v43 = vpop.eup %4943  ;;  %v2545_v16 = vmul.f32 %v4942_v7, %v6241_v22  ;;  %4963 = vpow2.f32 %v3520_v45 }
 0x1fc   : > { %v4946_v14 = vpop.eup %4945  ;;  %v3918_v28 = vpack.c.bf16 %v2481_v24, %v2480_v63  ;;  %v2479_v48 = vmul.f32 %v4944_v43, %v6246_v52  ;;  %4965 = vpow2.f32 %v3454_v34 }
 0x1fd   : > { %v4948_v17 = vpop.eup %4947  ;;  %v4078_v15 = vpack.c.bf16 %v2545_v16, %v2544_v50  ;;  %v2543_v44 = vmul.f32 %v4946_v14, %v6257_v25  ;;  %4967 = vpow2.f32 %v3518_v53 }
 0x1fe   : > { %4126 = vst [vmem:[%s5341_s24 + $0xd8] sm:$0xff] %v3918_v28   ;;  %v3913_v22 = vpack.c.bf16 %v2479_v48, %v2478_v32  ;;  %v4950_v36 = vpop.eup %4949  ;;  %4969 = vpow2.f32 %v3457_v40  ;;  %v2162_v56 = vadd.f32 1.0, %v4948_v17 }
 0x1ff   : > { %4158 = vst [vmem:[%s5341_s24 + $0x1d8] sm:$0xff] %v4078_v15   ;;  %v4073_v0 = vpack.c.bf16 %v2543_v44, %v2542_v55  ;;  %v4952_v52 = vpop.eup %4951  ;;  %4971 = vpow2.f32 %v3521_v6  ;;  %v2484_v38 = vmul.f32 %v4950_v36, %v6261_v21 }
 0x200   : > { %4125 = vst [vmem:[%s5341_s24 + $0xd0] sm:$0xff] %v3913_v22   ;;  %v4954_v59 = vpop.eup %4953  ;;  %4973 = vpow2.f32 %v3455_v37  ;;  %v2548_v24 = vmul.f32 %v4952_v52, %v6269_v12 }
 0x201   : > { %4157 = vst [vmem:[%s5341_s24 + $0x1d0] sm:$0xff] %v4073_v0   ;;  %v4956_v25 = vpop.eup %4955  ;;  %v2485_v9 = vmul.f32 %v4954_v59, %v6289_v54  ;;  %4975 = vpow2.f32 %v3519_v62 }
 0x202   : > { %v4958_v31 = vpop.eup %4957  ;;  %4977 = vrcp.f32 %v2098_v57  ;;  %v2165_v3 = vadd.f32 1.0, %v4956_v25 }
 0x203   : > { %v4960_v5 = vpop.eup %4959  ;;  %4979 = vrcp.f32 %v2162_v56  ;;  %v3928_v47 = vpack.c.bf16 %v2485_v9, %v2484_v38  ;;  %v2099_v23 = vadd.f32 1.0, %v4958_v31 }
 0x204   : > { %v4962_v1 = vpop.eup %4961  ;;  %4981 = vrcp.f32 %v2165_v3  ;;  %v2163_v11 = vadd.f32 1.0, %v4960_v5 }
 0x205   : > { %v4964_v20 = vpop.eup %4963  ;;  %4128 = vst [vmem:[%s5341_s24 + $0xe8] sm:$0xff] %v3928_v47   ;;  %4983 = vrcp.f32 %v2099_v23  ;;  %v2104_v19 = vadd.f32 1.0, %v4962_v1 }
 0x206   : > { %v4966_v2 = vpop.eup %4965  ;;  %4985 = vrcp.f32 %v2163_v11  ;;  %v2168_v21 = vadd.f32 1.0, %v4964_v20 }
 0x207   : > { %v4968_v42 = vpop.eup %4967  ;;  %4987 = vrcp.f32 %v2104_v19  ;;  %v2102_v54 = vadd.f32 1.0, %v4966_v2 }
 0x208   : > { %v4970_v18 = vpop.eup %4969  ;;  %4989 = vrcp.f32 %v2168_v21  ;;  %v2166_v33 = vadd.f32 1.0, %v4968_v42 }
 0x209   : > { %v4972_v61 = vpop.eup %4971  ;;  %4991 = vrcp.f32 %v2102_v54  ;;  %v2105_v39 = vadd.f32 1.0, %v4970_v18 }
 0x20a   : > { %v4974_v26 = vpop.eup %4973  ;;  %4993 = vrcp.f32 %v2166_v33  ;;  %v2169_v45 = vadd.f32 1.0, %v4972_v61 }
 0x20b   : > { %v4976_v34 = vpop.eup %4975  ;;  %4995 = vrcp.f32 %v2105_v39  ;;  %v2103_v4 = vadd.f32 1.0, %v4974_v26 }
 0x20c   : > { %v4978_v53 = vpop.eup %4977  ;;  %4997 = vrcp.f32 %v2169_v45  ;;  %v2167_v40 = vadd.f32 1.0, %v4976_v34 }
 0x20d   : > { %v4980_v6 = vpop.eup %4979  ;;  %4999 = vrcp.f32 %v2103_v4  ;;  %v2482_v16 = vmul.f32 %v4978_v53, %v6284_v49 }
 0x20e   : > { %v4982_v7 = vpop.eup %4981  ;;  %5001 = vrcp.f32 %v2167_v40  ;;  %v2546_v32 = vmul.f32 %v4980_v6, %v6307_v35 }
 0x20f   : > { %v4984_v63 = vpop.eup %4983  ;;  %v2549_v43 = vmul.f32 %v4982_v7, %v6319_v29 }
 0x210   : > { %v4986_v50 = vpop.eup %4985  ;;  %v2483_v37 = vmul.f32 %v4984_v63, %v6322_v8 }
 0x211   : > { %v4988_v14 = vpop.eup %4987  ;;  %v4088_v28 = vpack.c.bf16 %v2549_v43, %v2548_v24  ;;  %v2547_v48 = vmul.f32 %v4986_v50, %v6339_v27 }
 0x212   : > { %v4990_v17 = vpop.eup %4989  ;;  %v3923_v55 = vpack.c.bf16 %v2483_v37, %v2482_v16  ;;  %v2488_v8 = vmul.f32 %v4988_v14, %v6343_v60 }
 0x213   : > { %v4992_v15 = vpop.eup %4991  ;;  %4160 = vst [vmem:[%s5341_s24 + $0x1e8] sm:$0xff] %v4088_v28   ;;  %v4083_v44 = vpack.c.bf16 %v2547_v48, %v2546_v32  ;;  %v2552_v27 = vmul.f32 %v4990_v17, %v6349_v13 }
 0x214   : > { %v4994_v12 = vpop.eup %4993  ;;  %4127 = vst [vmem:[%s5341_s24 + $0xe0] sm:$0xff] %v3923_v55   ;;  %v2486_v0 = vmul.f32 %v4992_v15, %v6352_v30 }
 0x215   : > { %v4996_v29 = vpop.eup %4995  ;;  %4159 = vst [vmem:[%s5341_s24 + $0x1e0] sm:$0xff] %v4083_v44   ;;  %v2550_v56 = vmul.f32 %v4994_v12, %v6355_v46 }
 0x216   : > { %v4998_v49 = vpop.eup %4997  ;;  %v2489_v35 = vmul.f32 %v4996_v29, %v6358_v51 }
 0x217   : > { %v5000_v22 = vpop.eup %4999  ;;  %v2553_v62 = vmul.f32 %v4998_v49, %v6361_v58 }
 0x218   : > { %v5002_v36 = vpop.eup %5001  ;;  %v3938_v57 = vpack.c.bf16 %v2489_v35, %v2488_v8  ;;  %v2487_v52 = vmul.f32 %v5000_v22, %v6368_v10 }
 0x219   : > { %v4098_v59 = vpack.c.bf16 %v2553_v62, %v2552_v27  ;;  %v2551_v60 = vmul.f32 %v5002_v36, %v6378_v41 }
 0x21a   : > { %4130 = vst [vmem:[%s5341_s24 + $0xf8] sm:$0xff] %v3938_v57   ;;  %v3933_v25 = vpack.c.bf16 %v2487_v52, %v2486_v0 }
 0x21b   : > { %4162 = vst [vmem:[%s5341_s24 + $0x1f8] sm:$0xff] %v4098_v59   ;;  %v4093_v51 = vpack.c.bf16 %v2551_v60, %v2550_v56 }
 0x21c   : > { %4129 = vst [vmem:[%s5341_s24 + $0xf0] sm:$0xff] %v3933_v25  }
 0x21d   : > { %4161 = vst [vmem:[%s5341_s24 + $0x1f0] sm:$0xff] %v4093_v51  }
 0x21e PF: > { %s14_s17 = sadd.s32 1, %s5029_s17   ;;  %s6535_s15 = smov %s5025_s16 }
 0x21f   : > { %p11_p5 = scmp.ge.s32.totalorder %s14_s17, 4   ;;  %s6536_s16 = smov %s6538_s18 }
 0x221   :  { %13 = sbr.rel (!%p11_p5) target bundleno = 2 (0x2), region = 75 }

// kernel: _lambda_.56
= control target key start
LH: loop header
LB: loop body
LE: loop exit
PB: predicated region body
PF: predicated region fallthrough
CT: control target
= control target key end

     0   :  { %s1977_s15 = smov 0   ;;  %s1979_s16 = smov 0   ;;  %s2316_s0 = inlined_call_operand.vmem [shape: bf16[512,256], index: 0, kind: input, shape index: {}]   ;;  %s2317_s1 = inlined_call_operand.vmem [shape: bf16[256,128], index: 1, kind: input, shape index: {}]   ;;  %s2318_s2 = inlined_call_operand.vmem [shape: f32[1,128], index: 2, kind: input, shape index: {}]   ;;  %s2319_s3 = inlined_call_operand.vmem [shape: f32[1,128], index: 3, kind: input, shape index: {}]   ;;  %s2320_s4 = inlined_call_operand.vmem [shape: bf16[512,128], index: 4, kind: output, shape index: {}]  }
   0x1   :  { %s1981_s17 = smov 0  }
   0x2 LB: > { %s26_s18 = sadd.s32 1, %s1946_s16  ;;  %p1334_p0 = scmp.ge.s32.totalorder %s1950_s17, 1  ;;  %s1950_s17 = sphi %s1981_s17, %s14_s17   ;;  %s1946_s16 = sphi %s1979_s16, %s2322_s16   ;;  %s1942_s15 = sphi %s1977_s15, %s2321_s15  }
   0x3   : > { %p28_p1 = scmp.ge.s32.totalorder %s26_s18, 2  ;;  %p203_p2 = scmp.lt.s32.totalorder %s1950_s17, 3 }
   0x5   : > { %s2324_s18 = smov (%p28_p1, %s26_s18), 0  ;;  %p204_p3 = pnand %p1334_p0, %p203_p2 }
   0x6   : > { %v1736_v0 = vld [vmem:[%s2317_s1 + $0x40] sm:$0xff] (!%p204_p3)   ;;  %s1335_s21 = sshll.u32 (!%p204_p3), %s1942_s15, 5  ;;  %v1738_v2 = vld [vmem:[%s2317_s1 + $0x48] sm:$0xff] (!%p204_p3)   ;;  %v1740_v4 = vld [vmem:[%s2317_s1 + $0x50] sm:$0xff] (!%p204_p3)  }
   0x7   : > { %207 = sbr.rel (%p204_p3) target bundleno = 359 (0x167), region = 36  ;;  %v1737_v1 = vld [vmem:[%s2317_s1] sm:$0xff] (!%p204_p3)   ;;  %1584 = vmatprep.subr.bf16.mxu0 (!%p204_p3), %v1736_v0  ;;  %1696 = vmatprep.subr.bf16.mxu1 (!%p204_p3), %v1736_v0  ;;  %v1739_v3 = vld [vmem:[%s2317_s1 + $0x8] sm:$0xff] (!%p204_p3)   ;;  %p244_p4 = scmp.lt.s32.totalorder (!%p204_p3), %s1335_s21, 63  ;;  %v1741_v5 = vld [vmem:[%s2317_s1 + $0x10] sm:$0xff] (!%p204_p3)  }
   0x8   : > { %1585 = vmatpush3.bf16.msra.mxu0 (!%p204_p3), %v1737_v1  ;;  %1704 = vmatpush3.bf16.msra.mxu1 (!%p204_p3), %v1737_v1  ;;  %v1742_v6 = vld [vmem:[%s2317_s1 + $0x58] sm:$0xff] (!%p204_p3)   ;;  %v1744_v8 = vld [vmem:[%s2317_s1 + $0x60] sm:$0xff] (!%p204_p3)   ;;  %v1746_v10 = vld [vmem:[%s2317_s1 + $0x68] sm:$0xff] (!%p204_p3)  }
   0x9   : > { %1586 = vmatprep.subr.bf16.mxu0 (!%p204_p3), %v1738_v2  ;;  %1697 = vmatprep.subr.bf16.mxu1 (!%p204_p3), %v1738_v2  ;;  %v1743_v7 = vld [vmem:[%s2317_s1 + $0x18] sm:$0xff] (!%p204_p3)   ;;  %v1745_v9 = vld [vmem:[%s2317_s1 + $0x20] sm:$0xff] (!%p204_p3)   ;;  %v1747_v13 = vld [vmem:[%s2317_s1 + $0x28] sm:$0xff] (!%p204_p3)  }
   0xa   : > { %v1748_v14 = vld [vmem:[%s2317_s1 + $0x70] sm:$0xff] (!%p204_p3)   ;;  %v1750_v16 = vld [vmem:[%s2317_s1 + $0x78] sm:$0xff] (!%p204_p3)   ;;  %v2086_v51 = vld [vmem:[%s2318_s2] ss:$0 sm:$0xff] (!%p204_p3) }
   0xb   : > { %v1749_v15 = vld [vmem:[%s2317_s1 + $0x30] sm:$0xff] (!%p204_p3)   ;;  %v1751_v17 = vld [vmem:[%s2317_s1 + $0x38] sm:$0xff] (!%p204_p3)   ;;  %v2091_v57 = vld [vmem:[%s2319_s3] ss:$0 sm:$0xff] (!%p204_p3) }
   0xc   : > { %1587 = vmatpush3.bf16.msra.mxu0 (!%p204_p3), %v1739_v3  ;;  %1705 = vmatpush3.bf16.msra.mxu1 (!%p204_p3), %v1739_v3 }
   0xd   : > { %1588 = vmatprep.subr.bf16.mxu0 (!%p204_p3), %v1740_v4  ;;  %1698 = vmatprep.subr.bf16.mxu1 (!%p204_p3), %v1740_v4 }
   0xe   : > { %s2326_s21 = smov (!%p244_p4, %s1335_s21), 63 }
   0xf   : > { %s1456_s10 = sshll.u32 %s2326_s21, 3  ;;  %s1339_s12 = sshll.u32 %s2326_s21, 2 }
  0x10   : > { %1589 = vmatpush3.bf16.msra.mxu0 %v1741_v5  ;;  %1706 = vmatpush3.bf16.msra.mxu1 %v1741_v5  ;;  %s2028_s15 = scalar_lea.vmem %s2316_s0, %s1456_s10  ;;  %s2181_s14 = scalar_lea.vmem %s2320_s4, %s1339_s12 }
  0x11   : > { %1590 = vmatprep.subr.bf16.mxu0 %v1742_v6  ;;  %1699 = vmatprep.subr.bf16.mxu1 %v1742_v6  ;;  %v1754_v11 = vld [vmem:[%s2028_s15 + $0x4] ss:$8 sps:$4 sm:$0xff]   ;;  %v1752_v18 = vld [vmem:[%s2028_s15] ss:$8 sps:$4 sm:$0xff]   ;;  %v1758_v20 = vld [vmem:[%s2028_s15 + $0x14] ss:$8 sps:$4 sm:$0xff]  }
  0x12   : > { %v1757_v12 = vld [vmem:[%s2028_s15 + $0x84] ss:$8 sps:$4 sm:$0xff]   ;;  %622 = vmatprep.mubr.bf16.mxu0 %v1754_v11  ;;  %v1755_v19 = vld [vmem:[%s2028_s15 + $0x80] ss:$8 sps:$4 sm:$0xff]   ;;  %v1760_v21 = vld [vmem:[%s2028_s15 + $0x94] ss:$8 sps:$4 sm:$0xff]  }
  0x13   : > { %686 = vmatprep.mubr.bf16.mxu1 %v1757_v12  ;;  %v1762_v22 = vld [vmem:[%s2028_s15 + $0x10] ss:$8 sps:$4 sm:$0xff]   ;;  %v1764_v24 = vld [vmem:[%s2028_s15 + $0x24] ss:$8 sps:$4 sm:$0xff]   ;;  %v1768_v26 = vld [vmem:[%s2028_s15 + $0x20] ss:$8 sps:$4 sm:$0xff]  }
  0x14   : > { %1591 = vmatpush3.bf16.msra.mxu0 %v1743_v7  ;;  %1707 = vmatpush3.bf16.msra.mxu1 %v1743_v7  ;;  %v1763_v23 = vld [vmem:[%s2028_s15 + $0x90] ss:$8 sps:$4 sm:$0xff]   ;;  %v1766_v25 = vld [vmem:[%s2028_s15 + $0xa4] ss:$8 sps:$4 sm:$0xff]   ;;  %v1769_v27 = vld [vmem:[%s2028_s15 + $0xa0] ss:$8 sps:$4 sm:$0xff]  }
  0x15   : > { %1592 = vmatprep.subr.bf16.mxu0 %v1744_v8  ;;  %1700 = vmatprep.subr.bf16.mxu1 %v1744_v8  ;;  %v1770_v28 = vld [vmem:[%s2028_s15 + $0x34] ss:$8 sps:$4 sm:$0xff]   ;;  %v1774_v30 = vld [vmem:[%s2028_s15 + $0x30] ss:$8 sps:$4 sm:$0xff]   ;;  %v1776_v32 = vld [vmem:[%s2028_s15 + $0x44] ss:$8 sps:$4 sm:$0xff]  }
  0x16   : > { %v1772_v29 = vld [vmem:[%s2028_s15 + $0xb4] ss:$8 sps:$4 sm:$0xff]   ;;  %v1775_v31 = vld [vmem:[%s2028_s15 + $0xb0] ss:$8 sps:$4 sm:$0xff]   ;;  %v1778_v33 = vld [vmem:[%s2028_s15 + $0xc4] ss:$8 sps:$4 sm:$0xff]  }
  0x17   : > { %v1780_v34 = vld [vmem:[%s2028_s15 + $0x40] ss:$8 sps:$4 sm:$0xff]   ;;  %v1782_v36 = vld [vmem:[%s2028_s15 + $0x54] ss:$8 sps:$4 sm:$0xff]   ;;  %v1786_v38 = vld [vmem:[%s2028_s15 + $0x50] ss:$8 sps:$4 sm:$0xff]  }
  0x18   : > { %1593 = vmatpush3.bf16.msra.mxu0 %v1745_v9  ;;  %1708 = vmatpush3.bf16.msra.mxu1 %v1745_v9  ;;  %v1781_v35 = vld [vmem:[%s2028_s15 + $0xc0] ss:$8 sps:$4 sm:$0xff]   ;;  %v1784_v37 = vld [vmem:[%s2028_s15 + $0xd4] ss:$8 sps:$4 sm:$0xff]   ;;  %v1787_v39 = vld [vmem:[%s2028_s15 + $0xd0] ss:$8 sps:$4 sm:$0xff]  }
  0x19   : > { %1594 = vmatprep.subr.bf16.mxu0 %v1746_v10  ;;  %1701 = vmatprep.subr.bf16.mxu1 %v1746_v10  ;;  %v1788_v40 = vld [vmem:[%s2028_s15 + $0x64] ss:$8 sps:$4 sm:$0xff]   ;;  %v1792_v42 = vld [vmem:[%s2028_s15 + $0x60] ss:$8 sps:$4 sm:$0xff]   ;;  %v1794_v44 = vld [vmem:[%s2028_s15 + $0x74] ss:$8 sps:$4 sm:$0xff]  }
  0x1a   : > { %v1790_v41 = vld [vmem:[%s2028_s15 + $0xe4] ss:$8 sps:$4 sm:$0xff]   ;;  %v1793_v43 = vld [vmem:[%s2028_s15 + $0xe0] ss:$8 sps:$4 sm:$0xff]   ;;  %v1796_v45 = vld [vmem:[%s2028_s15 + $0xf4] ss:$8 sps:$4 sm:$0xff]  }
  0x1b   : > { %v1798_v46 = vld [vmem:[%s2028_s15 + $0x70] ss:$8 sps:$4 sm:$0xff]  }
  0x1c   : > { %1595 = vmatpush3.bf16.msra.mxu0 %v1747_v13  ;;  %1709 = vmatpush3.bf16.msra.mxu1 %v1747_v13  ;;  %v1799_v47 = vld [vmem:[%s2028_s15 + $0xf0] ss:$8 sps:$4 sm:$0xff]  }
  0x1d   : > { %1596 = vmatprep.subr.bf16.mxu0 %v1748_v14  ;;  %1702 = vmatprep.subr.bf16.mxu1 %v1748_v14 }
  0x20   : > { %1597 = vmatpush3.bf16.msra.mxu0 %v1749_v15  ;;  %1710 = vmatpush3.bf16.msra.mxu1 %v1749_v15 }
  0x21   : > { %1598 = vmatprep.subr.bf16.mxu0 %v1750_v16  ;;  %1703 = vmatprep.subr.bf16.mxu1 %v1750_v16 }
  0x24   : > { %1599 = vmatpush3.bf16.msra.mxu0 %v1751_v17  ;;  %1711 = vmatpush3.bf16.msra.mxu1 %v1751_v17 }
  0x27   : > { %623 = vmatmul.mubr.bf16.vlgmr.msra.gmra.mrb[0].mxu0 %v1752_v18  ;;  %687 = vmatmul.mubr.bf16.vlgmr.msra.gmra.mrb[0].mxu1 %v1755_v19 }
  0x28   : > { %630 = vmatprep.mubr.bf16.mxu0 %v1758_v20  ;;  %694 = vmatprep.mubr.bf16.mxu1 %v1760_v21 }
  0x2f   : > { %631 = vmatmul.mubr.bf16.gmra.mrb[4].mxu0 %v1762_v22  ;;  %695 = vmatmul.mubr.bf16.gmra.mrb[4].mxu1 %v1763_v23 }
  0x30   : > { %638 = vmatprep.mubr.bf16.mxu0 %v1764_v24  ;;  %702 = vmatprep.mubr.bf16.mxu1 %v1766_v25 }
  0x37   : > { %639 = vmatmul.mubr.bf16.gmra.mrb[8].mxu0 %v1768_v26  ;;  %703 = vmatmul.mubr.bf16.gmra.mrb[8].mxu1 %v1769_v27 }
  0x38   : > { %646 = vmatprep.mubr.bf16.mxu0 %v1770_v28  ;;  %710 = vmatprep.mubr.bf16.mxu1 %v1772_v29 }
  0x3f   : > { %647 = vmatmul.mubr.bf16.gmra.mrb[12].mxu0 %v1774_v30  ;;  %711 = vmatmul.mubr.bf16.gmra.mrb[12].mxu1 %v1775_v31 }
  0x40   : > { %654 = vmatprep.mubr.bf16.mxu0 %v1776_v32  ;;  %718 = vmatprep.mubr.bf16.mxu1 %v1778_v33 }
  0x47   : > { %655 = vmatmul.mubr.bf16.gmra.mrb[16].mxu0 %v1780_v34  ;;  %719 = vmatmul.mubr.bf16.gmra.mrb[16].mxu1 %v1781_v35 }
  0x48   : > { %662 = vmatprep.mubr.bf16.mxu0 %v1782_v36  ;;  %726 = vmatprep.mubr.bf16.mxu1 %v1784_v37 }
  0x4f   : > { %663 = vmatmul.mubr.bf16.gmra.mrb[20].mxu0 %v1786_v38  ;;  %727 = vmatmul.mubr.bf16.gmra.mrb[20].mxu1 %v1787_v39 }
  0x50   : > { %670 = vmatprep.mubr.bf16.mxu0 %v1788_v40  ;;  %734 = vmatprep.mubr.bf16.mxu1 %v1790_v41 }
  0x57   : > { %671 = vmatmul.mubr.bf16.gmra.mrb[24].mxu0 %v1792_v42  ;;  %735 = vmatmul.mubr.bf16.gmra.mrb[24].mxu1 %v1793_v43 }
  0x58   : > { %678 = vmatprep.mubr.bf16.mxu0 %v1794_v44  ;;  %742 = vmatprep.mubr.bf16.mxu1 %v1796_v45 }
  0x5f   : > { %679 = vmatmul.mubr.bf16.gmra.mrb[28].mxu0 %v1798_v46  ;;  %743 = vmatmul.mubr.bf16.gmra.mrb[28].mxu1 %v1799_v47 }
  0xfa   : > { %v1600_v48 = vpop.f32.mrb[0].mxu0  ;;  %v1648_v49 = vpop.f32.mrb[0].mxu1 }
  0xfb   : > { %v1601_v50 = vpop.f32.mrb[1].mxu0  ;;  %v1649_v52 = vpop.f32.mrb[1].mxu1 }
  0xfc   : > { %v1602_v53 = vadd.f32 %v1601_v50, %v1600_v48  ;;  %v1650_v54 = vadd.f32 %v1649_v52, %v1648_v49  ;;  %v1603_v55 = vpop.f32.mrb[2].mxu0  ;;  %v1651_v56 = vpop.f32.mrb[2].mxu1 }
  0xfd   : > { %v1604_v58 = vpop.f32.mrb[3].mxu0  ;;  %v1652_v59 = vpop.f32.mrb[3].mxu1 }
  0xfe   : > { %v758_v60 = vmul.f32 %v1602_v53, %v2086_v51  ;;  %v774_v61 = vmul.f32 %v1650_v54, %v2086_v51  ;;  %v1605_v62 = vadd.f32 %v1604_v58, %v1603_v55  ;;  %v1653_v63 = vadd.f32 %v1652_v59, %v1651_v56 }
 0x100   : > { %v2096_v0 = vadd.f32 %v2091_v57, %v758_v60  ;;  %v2099_v1 = vadd.f32 %v2091_v57, %v774_v61  ;;  %v759_v2 = vmul.f32 %v1605_v62, %v2086_v51  ;;  %v775_v3 = vmul.f32 %v1653_v63, %v2086_v51 }
 0x102   : > { %v1390_v4 = vmul.f32 -1.442695, %v2096_v0  ;;  %v1406_v5 = vmul.f32 -1.442695, %v2099_v1  ;;  %v2106_v6 = vadd.f32 %v2091_v57, %v759_v2  ;;  %v2109_v7 = vadd.f32 %v2091_v57, %v775_v3  ;;  %v1606_v8 = vpop.f32.mrb[4].mxu0  ;;  %v1654_v9 = vpop.f32.mrb[4].mxu1 }
 0x103   : > { %v1607_v10 = vpop.f32.mrb[5].mxu0  ;;  %v1655_v11 = vpop.f32.mrb[5].mxu1 }
 0x104   : > { %1800 = vpow2.f32 %v1390_v4  ;;  %v1391_v12 = vmul.f32 -1.442695, %v2106_v6  ;;  %v1407_v13 = vmul.f32 -1.442695, %v2109_v7  ;;  %v1608_v14 = vadd.f32 %v1607_v10, %v1606_v8  ;;  %v1609_v15 = vpop.f32.mrb[6].mxu0  ;;  %v1657_v16 = vpop.f32.mrb[6].mxu1 }
 0x105   : > { %1802 = vpow2.f32 %v1406_v5  ;;  %v1656_v17 = vadd.f32 %v1655_v11, %v1654_v9  ;;  %v1610_v18 = vpop.f32.mrb[7].mxu0  ;;  %v1658_v19 = vpop.f32.mrb[7].mxu1 }
 0x106   : > { %1804 = vpow2.f32 %v1391_v12  ;;  %v760_v20 = vmul.f32 %v1608_v14, %v2086_v51  ;;  %v1611_v21 = vadd.f32 %v1610_v18, %v1609_v15  ;;  %v1659_v22 = vadd.f32 %v1658_v19, %v1657_v16 }
 0x107   : > { %1806 = vpow2.f32 %v1407_v13  ;;  %v776_v23 = vmul.f32 %v1656_v17, %v2086_v51 }
 0x108   : > { %v2116_v24 = vadd.f32 %v2091_v57, %v760_v20  ;;  %v761_v25 = vmul.f32 %v1611_v21, %v2086_v51  ;;  %v777_v26 = vmul.f32 %v1659_v22, %v2086_v51 }
 0x109   : > { %v2121_v27 = vadd.f32 %v2091_v57, %v776_v23 }
 0x10a   : > { %v1392_v28 = vmul.f32 -1.442695, %v2116_v24  ;;  %v2125_v29 = vadd.f32 %v2091_v57, %v761_v25  ;;  %v2128_v30 = vadd.f32 %v2091_v57, %v777_v26  ;;  %v1612_v31 = vpop.f32.mrb[8].mxu0  ;;  %v1660_v32 = vpop.f32.mrb[8].mxu1 }
 0x10b   : > { %v1408_v33 = vmul.f32 -1.442695, %v2121_v27  ;;  %v1613_v34 = vpop.f32.mrb[9].mxu0  ;;  %v1661_v35 = vpop.f32.mrb[9].mxu1 }
 0x10c   : > { %1808 = vpow2.f32 %v1392_v28  ;;  %v1393_v36 = vmul.f32 -1.442695, %v2125_v29  ;;  %v1409_v37 = vmul.f32 -1.442695, %v2128_v30  ;;  %v1614_v38 = vadd.f32 %v1613_v34, %v1612_v31  ;;  %v1615_v39 = vpop.f32.mrb[10].mxu0  ;;  %v1663_v40 = vpop.f32.mrb[10].mxu1 }
 0x10d   : > { %1810 = vpow2.f32 %v1408_v33  ;;  %v1662_v41 = vadd.f32 %v1661_v35, %v1660_v32  ;;  %v1616_v42 = vpop.f32.mrb[11].mxu0  ;;  %v1664_v43 = vpop.f32.mrb[11].mxu1 }
 0x10e   : > { %v1801_v44 = vpop.eup %1800  ;;  %1812 = vpow2.f32 %v1393_v36  ;;  %v762_v45 = vmul.f32 %v1614_v38, %v2086_v51  ;;  %v1617_v46 = vadd.f32 %v1616_v42, %v1615_v39  ;;  %v1665_v47 = vadd.f32 %v1664_v43, %v1663_v40 }
 0x10f   : > { %v1803_v48 = vpop.eup %1802  ;;  %v925_v49 = vadd.f32 1.0, %v1801_v44  ;;  %1814 = vpow2.f32 %v1409_v37  ;;  %v778_v50 = vmul.f32 %v1662_v41, %v2086_v51 }
 0x110   : > { %v1805_v52 = vpop.eup %1804  ;;  %v941_v53 = vadd.f32 1.0, %v1803_v48  ;;  %v2136_v54 = vadd.f32 %v2091_v57, %v762_v45  ;;  %v763_v55 = vmul.f32 %v1617_v46, %v2086_v51  ;;  %v779_v56 = vmul.f32 %v1665_v47, %v2086_v51 }
 0x111   : > { %v1807_v58 = vpop.eup %1806  ;;  %1816 = vrcp.f32 %v925_v49  ;;  %v926_v59 = vadd.f32 1.0, %v1805_v52  ;;  %v2141_v60 = vadd.f32 %v2091_v57, %v778_v50 }
 0x112   : > { %1818 = vrcp.f32 %v941_v53  ;;  %v942_v61 = vadd.f32 1.0, %v1807_v58  ;;  %v1394_v62 = vmul.f32 -1.442695, %v2136_v54  ;;  %v2145_v63 = vadd.f32 %v2091_v57, %v763_v55  ;;  %v1618_v2 = vpop.f32.mrb[12].mxu0  ;;  %v1666_v3 = vpop.f32.mrb[12].mxu1 }
 0x113   : > { %1820 = vrcp.f32 %v926_v59  ;;  %v1410_v4 = vmul.f32 -1.442695, %v2141_v60  ;;  %v2149_v5 = vadd.f32 %v2091_v57, %v779_v56  ;;  %v1619_v8 = vpop.f32.mrb[13].mxu0  ;;  %v1667_v9 = vpop.f32.mrb[13].mxu1 }
 0x114   : > { %1822 = vrcp.f32 %v942_v61  ;;  %v1395_v10 = vmul.f32 -1.442695, %v2145_v63  ;;  %v1620_v11 = vadd.f32 %v1619_v8, %v1618_v2  ;;  %v1668_v12 = vadd.f32 %v1667_v9, %v1666_v3  ;;  %v1621_v13 = vpop.f32.mrb[14].mxu0  ;;  %v1669_v14 = vpop.f32.mrb[14].mxu1 }
 0x115   : > { %1824 = vpow2.f32 %v1394_v62  ;;  %v1411_v15 = vmul.f32 -1.442695, %v2149_v5  ;;  %v1622_v16 = vpop.f32.mrb[15].mxu0  ;;  %v1670_v17 = vpop.f32.mrb[15].mxu1 }
 0x116   : > { %v1809_v18 = vpop.eup %1808  ;;  %1826 = vpow2.f32 %v1410_v4  ;;  %v764_v19 = vmul.f32 %v1620_v11, %v2086_v51  ;;  %v780_v20 = vmul.f32 %v1668_v12, %v2086_v51  ;;  %v1623_v21 = vadd.f32 %v1622_v16, %v1621_v13 }
 0x117   : > { %v1811_v22 = vpop.eup %1810  ;;  %v927_v23 = vadd.f32 1.0, %v1809_v18  ;;  %1828 = vpow2.f32 %v1395_v10  ;;  %v1671_v25 = vadd.f32 %v1670_v17, %v1669_v14 }
 0x118   : > { %v1813_v26 = vpop.eup %1812  ;;  %v943_v28 = vadd.f32 1.0, %v1811_v22  ;;  %1830 = vpow2.f32 %v1411_v15  ;;  %v2156_v31 = vadd.f32 %v2091_v57, %v764_v19  ;;  %v2159_v32 = vadd.f32 %v2091_v57, %v780_v20 }
 0x119   : > { %v1815_v33 = vpop.eup %1814  ;;  %1832 = vrcp.f32 %v927_v23  ;;  %v928_v34 = vadd.f32 1.0, %v1813_v26  ;;  %v765_v35 = vmul.f32 %v1623_v21, %v2086_v51  ;;  %v781_v36 = vmul.f32 %v1671_v25, %v2086_v51 }
 0x11a   : > { %1834 = vrcp.f32 %v943_v28  ;;  %v944_v37 = vadd.f32 1.0, %v1815_v33  ;;  %v1396_v38 = vmul.f32 -1.442695, %v2156_v31  ;;  %v1412_v39 = vmul.f32 -1.442695, %v2159_v32  ;;  %v1624_v40 = vpop.f32.mrb[16].mxu0 }
 0x11b   : > { %v1817_v41 = vpop.eup %1816  ;;  %1836 = vrcp.f32 %v928_v34  ;;  %v2166_v42 = vadd.f32 %v2091_v57, %v765_v35  ;;  %v2169_v43 = vadd.f32 %v2091_v57, %v781_v36  ;;  %v1672_v44 = vpop.f32.mrb[16].mxu1 }
 0x11c   : > { %v1625_v45 = vpop.f32.mrb[17].mxu0  ;;  %v1819_v46 = vpop.eup %1818  ;;  %v1021_v47 = vmul.f32 %v1817_v41, %v2096_v0  ;;  %1838 = vrcp.f32 %v944_v37 }
 0x11d   : > { %v1626_v48 = vadd.f32 %v1625_v45, %v1624_v40  ;;  %v1673_v49 = vpop.f32.mrb[17].mxu1  ;;  %v1627_v50 = vpop.f32.mrb[18].mxu0  ;;  %v1037_v53 = vmul.f32 %v1819_v46, %v2099_v1  ;;  %1840 = vpow2.f32 %v1396_v38  ;;  %v1397_v55 = vmul.f32 -1.442695, %v2166_v42 }
 0x11e   : > { %v1821_v52 = vpop.eup %1820  ;;  %v1413_v56 = vmul.f32 -1.442695, %v2169_v43  ;;  %v1675_v58 = vpop.f32.mrb[18].mxu1  ;;  %1842 = vpow2.f32 %v1412_v39  ;;  %v1674_v2 = vadd.f32 %v1673_v49, %v1672_v44 }
 0x11f   : > { %v1628_v59 = vpop.f32.mrb[19].mxu0  ;;  %v1823_v61 = vpop.eup %1822  ;;  %v1022_v62 = vmul.f32 %v1821_v52, %v2106_v6  ;;  %v766_v0 = vmul.f32 %v1626_v48, %v2086_v51  ;;  %1844 = vpow2.f32 %v1397_v55 }
 0x120   : > { %v1676_v3 = vpop.f32.mrb[19].mxu1  ;;  %v1825_v4 = vpop.eup %1824  ;;  %v1038_v1 = vmul.f32 %v1823_v61, %v2109_v7  ;;  %v1629_v8 = vadd.f32 %v1628_v59, %v1627_v50  ;;  %1846 = vpow2.f32 %v1413_v56  ;;  %v782_v16 = vmul.f32 %v1674_v2, %v2086_v51 }
 0x121   : > { %v1677_v9 = vadd.f32 %v1676_v3, %v1675_v58  ;;  %v1827_v10 = vpop.eup %1826  ;;  %v1492_v11 = vpack.c.bf16 %v1022_v62, %v1021_v47  ;;  %v929_v6 = vadd.f32 1.0, %v1825_v4  ;;  %v2185_v12 = vadd.f32 %v2091_v57, %v766_v0 }
 0x122   : > { %v1829_v13 = vpop.eup %1828  ;;  %v1532_v14 = vpack.c.bf16 %v1038_v1, %v1037_v53  ;;  %v945_v15 = vadd.f32 1.0, %v1827_v10  ;;  %v767_v17 = vmul.f32 %v1629_v8, %v2086_v51  ;;  %v1630_v21 = vpop.f32.mrb[20].mxu0  ;;  %v2194_v26 = vadd.f32 %v2091_v57, %v782_v16 }
 0x123   : > { %v1831_v18 = vpop.eup %1830  ;;  %1493 = vst [vmem:[%s2181_s14] sm:$0xff] %v1492_v11   ;;  %1848 = vrcp.f32 %v929_v6  ;;  %v930_v7 = vadd.f32 1.0, %v1829_v13  ;;  %v1398_v19 = vmul.f32 -1.442695, %v2185_v12  ;;  %v783_v20 = vmul.f32 %v1677_v9, %v2086_v51  ;;  %v1678_v22 = vpop.f32.mrb[20].mxu1 }
 0x124   : > { %v1833_v23 = vpop.eup %1832  ;;  %1576 = vst [vmem:[%s2181_s14 + $0x40] sm:$0xff] %v1532_v14   ;;  %1850 = vrcp.f32 %v945_v15  ;;  %v946_v25 = vadd.f32 1.0, %v1831_v18  ;;  %v2197_v28 = vadd.f32 %v2091_v57, %v767_v17  ;;  %v1631_v33 = vpop.f32.mrb[21].mxu0  ;;  %v1414_v45 = vmul.f32 -1.442695, %v2194_v26 }
 0x125   : > { %v1679_v34 = vpop.f32.mrb[21].mxu1  ;;  %v1835_v35 = vpop.eup %1834  ;;  %v1023_v36 = vmul.f32 %v1833_v23, %v2116_v24  ;;  %1852 = vrcp.f32 %v930_v7  ;;  %v2201_v37 = vadd.f32 %v2091_v57, %v783_v20  ;;  %v1632_v38 = vadd.f32 %v1631_v33, %v1630_v21 }
 0x126   : > { %v1633_v39 = vpop.f32.mrb[22].mxu0  ;;  %v1681_v40 = vpop.f32.mrb[22].mxu1  ;;  %v1039_v44 = vmul.f32 %v1835_v35, %v2121_v27  ;;  %1854 = vrcp.f32 %v946_v25  ;;  %v1399_v46 = vmul.f32 -1.442695, %v2197_v28  ;;  %v1680_v27 = vadd.f32 %v1679_v34, %v1678_v22 }
 0x127   : > { %v1837_v41 = vpop.eup %1836  ;;  %v1634_v47 = vpop.f32.mrb[23].mxu0  ;;  %1856 = vpow2.f32 %v1398_v19  ;;  %v1415_v50 = vmul.f32 -1.442695, %v2201_v37  ;;  %v768_v52 = vmul.f32 %v1632_v38, %v2086_v51 }
 0x128   : > { %v1682_v48 = vpop.f32.mrb[23].mxu1  ;;  %v1839_v49 = vpop.eup %1838  ;;  %v1024_v24 = vmul.f32 %v1837_v41, %v2125_v29  ;;  %1858 = vpow2.f32 %v1414_v45  ;;  %v1635_v56 = vadd.f32 %v1634_v47, %v1633_v39  ;;  %v784_v3 = vmul.f32 %v1680_v27, %v2086_v51 }
 0x129   : > { %v1841_v53 = vpop.eup %1840  ;;  %v1040_v55 = vmul.f32 %v1839_v49, %v2128_v30  ;;  %1860 = vpow2.f32 %v1399_v46  ;;  %v2211_v62 = vadd.f32 %v2091_v57, %v768_v52  ;;  %v1683_v13 = vadd.f32 %v1682_v48, %v1681_v40 }
 0x12a   : > { %v1843_v58 = vpop.eup %1842  ;;  %v1497_v59 = vpack.c.bf16 %v1024_v24, %v1023_v36  ;;  %v931_v61 = vadd.f32 1.0, %v1841_v53  ;;  %1862 = vpow2.f32 %v1415_v50  ;;  %v769_v8 = vmul.f32 %v1635_v56, %v2086_v51  ;;  %v1636_v9 = vpop.f32.mrb[24].mxu0 }
 0x12b   : > { %v1845_v29 = vpop.eup %1844  ;;  %v1537_v0 = vpack.c.bf16 %v1040_v55, %v1039_v44  ;;  %v947_v2 = vadd.f32 1.0, %v1843_v58  ;;  %v1400_v1 = vmul.f32 -1.442695, %v2211_v62  ;;  %v1684_v10 = vpop.f32.mrb[24].mxu1  ;;  %v2219_v6 = vadd.f32 %v2091_v57, %v784_v3 }
 0x12c   : > { %v1847_v4 = vpop.eup %1846  ;;  %1569 = vst [vmem:[%s2181_s14 + $0x8] sm:$0xff] %v1497_v59   ;;  %1864 = vrcp.f32 %v931_v61  ;;  %v932_v30 = vadd.f32 1.0, %v1845_v29  ;;  %v1637_v14 = vpop.f32.mrb[25].mxu0  ;;  %v2222_v17 = vadd.f32 %v2091_v57, %v769_v8  ;;  %v785_v25 = vmul.f32 %v1683_v13, %v2086_v51 }
 0x12d   : > { %1577 = vst [vmem:[%s2181_s14 + $0x48] sm:$0xff] %v1537_v0   ;;  %1866 = vrcp.f32 %v947_v2  ;;  %v948_v11 = vadd.f32 1.0, %v1847_v4  ;;  %v1685_v15 = vpop.f32.mrb[25].mxu1  ;;  %v1849_v16 = vpop.eup %1848  ;;  %v1638_v18 = vadd.f32 %v1637_v14, %v1636_v9  ;;  %v1416_v23 = vmul.f32 -1.442695, %v2219_v6 }
 0x12e   : > { %1868 = vrcp.f32 %v932_v30  ;;  %v1686_v7 = vadd.f32 %v1685_v15, %v1684_v10  ;;  %v1639_v19 = vpop.f32.mrb[26].mxu0  ;;  %v1687_v20 = vpop.f32.mrb[26].mxu1  ;;  %v1025_v22 = vmul.f32 %v1849_v16, %v2136_v54  ;;  %v1401_v38 = vmul.f32 -1.442695, %v2222_v17 }
 0x12f   : > { %v1851_v21 = vpop.eup %1850  ;;  %1870 = vrcp.f32 %v948_v11  ;;  %v1640_v33 = vpop.f32.mrb[27].mxu0  ;;  %v770_v39 = vmul.f32 %v1638_v18, %v2086_v51  ;;  %v2232_v54 = vadd.f32 %v2091_v57, %v785_v25 }
 0x130   : > { %v1688_v34 = vpop.f32.mrb[27].mxu1  ;;  %v1853_v35 = vpop.eup %1852  ;;  %v1041_v36 = vmul.f32 %v1851_v21, %v2141_v60  ;;  %1872 = vpow2.f32 %v1400_v1  ;;  %v786_v44 = vmul.f32 %v1686_v7, %v2086_v51  ;;  %v1641_v47 = vadd.f32 %v1640_v33, %v1639_v19 }
 0x131   : > { %v1855_v40 = vpop.eup %1854  ;;  %v1026_v41 = vmul.f32 %v1853_v35, %v2145_v63  ;;  %1874 = vpow2.f32 %v1416_v23  ;;  %v2237_v60 = vadd.f32 %v2091_v57, %v770_v39  ;;  %v1417_v63 = vmul.f32 -1.442695, %v2232_v54 }
 0x132   : > { %v1857_v45 = vpop.eup %1856  ;;  %v1042_v46 = vmul.f32 %v1855_v40, %v2149_v5  ;;  %1876 = vpow2.f32 %v1401_v38  ;;  %v2241_v50 = vadd.f32 %v2091_v57, %v786_v44  ;;  %v771_v27 = vmul.f32 %v1641_v47, %v2086_v51  ;;  %v1642_v56 = vpop.f32.mrb[28].mxu0 }
 0x133   : > { %v1859_v48 = vpop.eup %1858  ;;  %v1502_v49 = vpack.c.bf16 %v1026_v41, %v1025_v22  ;;  %v933_v24 = vadd.f32 1.0, %v1857_v45  ;;  %v1402_v5 = vmul.f32 -1.442695, %v2237_v60  ;;  %v1690_v58 = vpop.f32.mrb[28].mxu1  ;;  %v1689_v0 = vadd.f32 %v1688_v34, %v1687_v20 }
 0x134   : > { %v1861_v52 = vpop.eup %1860  ;;  %v1542_v53 = vpack.c.bf16 %v1042_v46, %v1041_v36  ;;  %v949_v55 = vadd.f32 1.0, %v1859_v48  ;;  %v1418_v29 = vmul.f32 -1.442695, %v2241_v50  ;;  %v1643_v2 = vpop.f32.mrb[29].mxu0  ;;  %v2249_v1 = vadd.f32 %v2091_v57, %v771_v27 }
 0x135   : > { %v1863_v59 = vpop.eup %1862  ;;  %1570 = vst [vmem:[%s2181_s14 + $0x10] sm:$0xff] %v1502_v49   ;;  %1878 = vrcp.f32 %v933_v24  ;;  %v934_v61 = vadd.f32 1.0, %v1861_v52  ;;  %v1691_v3 = vpop.f32.mrb[29].mxu1  ;;  %v1644_v8 = vadd.f32 %v1643_v2, %v1642_v56  ;;  %v787_v14 = vmul.f32 %v1689_v0, %v2086_v51 }
 0x136   : > { %v1865_v4 = vpop.eup %1864  ;;  %1578 = vst [vmem:[%s2181_s14 + $0x50] sm:$0xff] %v1542_v53   ;;  %1880 = vrcp.f32 %v949_v55  ;;  %v950_v30 = vadd.f32 1.0, %v1863_v59  ;;  %v1645_v9 = vpop.f32.mrb[30].mxu0  ;;  %v1692_v15 = vadd.f32 %v1691_v3, %v1690_v58  ;;  %v1403_v20 = vmul.f32 -1.442695, %v2249_v1 }
 0x137   : > { %v1693_v10 = vpop.f32.mrb[30].mxu1  ;;  %v1867_v11 = vpop.eup %1866  ;;  %v1027_v13 = vmul.f32 %v1865_v4, %v2156_v31  ;;  %1882 = vrcp.f32 %v934_v61  ;;  %v772_v21 = vmul.f32 %v1644_v8, %v2086_v51  ;;  %v2258_v31 = vadd.f32 %v2091_v57, %v787_v14 }
 0x138   : > { %v1646_v16 = vpop.f32.mrb[31].mxu0  ;;  %v1694_v18 = vpop.f32.mrb[31].mxu1  ;;  %v1043_v19 = vmul.f32 %v1867_v11, %v2159_v32  ;;  %1884 = vrcp.f32 %v950_v30  ;;  %v788_v25 = vmul.f32 %v1692_v15, %v2086_v51 }
 0x139   : > { %v1869_v7 = vpop.eup %1868  ;;  %1886 = vpow2.f32 %v1417_v63  ;;  %v2263_v32 = vadd.f32 %v2091_v57, %v772_v21  ;;  %v1647_v35 = vadd.f32 %v1646_v16, %v1645_v9  ;;  %v1419_v41 = vmul.f32 -1.442695, %v2258_v31 }
 0x13a   : > { %v1871_v22 = vpop.eup %1870  ;;  %v1028_v23 = vmul.f32 %v1869_v7, %v2166_v42  ;;  %1888 = vpow2.f32 %v1402_v5  ;;  %v2269_v45 = vadd.f32 %v2091_v57, %v788_v25  ;;  %v1695_v48 = vadd.f32 %v1694_v18, %v1693_v10 }
 0x13b   : > { %v1873_v33 = vpop.eup %1872  ;;  %v1044_v34 = vmul.f32 %v1871_v22, %v2169_v43  ;;  %1890 = vpow2.f32 %v1418_v29  ;;  %v1404_v44 = vmul.f32 -1.442695, %v2263_v32  ;;  %v773_v46 = vmul.f32 %v1647_v35, %v2086_v51 }
 0x13c   : > { %v1875_v36 = vpop.eup %1874  ;;  %v1507_v38 = vpack.c.bf16 %v1028_v23, %v1027_v13  ;;  %v935_v39 = vadd.f32 1.0, %v1873_v33  ;;  %1892 = vpow2.f32 %v1403_v20  ;;  %v1420_v52 = vmul.f32 -1.442695, %v2269_v45 }
 0x13d   : > { %v1877_v42 = vpop.eup %1876  ;;  %v1547_v40 = vpack.c.bf16 %v1044_v34, %v1043_v19  ;;  %v951_v47 = vadd.f32 1.0, %v1875_v36  ;;  %v2274_v24 = vadd.f32 %v2091_v57, %v773_v46  ;;  %v789_v53 = vmul.f32 %v1695_v48, %v2086_v51 }
 0x13e   : > { %1571 = vst [vmem:[%s2181_s14 + $0x18] sm:$0xff] %v1507_v38   ;;  %1894 = vrcp.f32 %v935_v39  ;;  %v936_v43 = vadd.f32 1.0, %v1877_v42 }
 0x13f   : > { %1579 = vst [vmem:[%s2181_s14 + $0x58] sm:$0xff] %v1547_v40   ;;  %v1879_v49 = vpop.eup %1878  ;;  %v1405_v5 = vmul.f32 -1.442695, %v2274_v24  ;;  %v2282_v59 = vadd.f32 %v2091_v57, %v789_v53 }
 0x140   : > { %1896 = vrcp.f32 %v936_v43  ;;  %v1881_v63 = vpop.eup %1880  ;;  %v1029_v56 = vmul.f32 %v1879_v49, %v2185_v12 }
 0x141   : > { %1898 = vpow2.f32 %v1419_v41  ;;  %v1883_v55 = vpop.eup %1882  ;;  %v1045_v29 = vmul.f32 %v1881_v63, %v2194_v26  ;;  %v1421_v57 = vmul.f32 -1.442695, %v2282_v59 }
 0x142   : > { %1900 = vpow2.f32 %v1404_v44  ;;  %v1885_v27 = vpop.eup %1884  ;;  %v1030_v58 = vmul.f32 %v1883_v55, %v2197_v28 }
 0x143   : > { %1902 = vrcp.f32 %v951_v47  ;;  %v1887_v61 = vpop.eup %1886  ;;  %v1046_v51 = vmul.f32 %v1885_v27, %v2201_v37 }
 0x144   : > { %1904 = vpow2.f32 %v1405_v5  ;;  %v1889_v0 = vpop.eup %1888  ;;  %v1512_v2 = vpack.c.bf16 %v1030_v58, %v1029_v56  ;;  %v952_v3 = vadd.f32 1.0, %v1887_v61 }
 0x145   : > { %1906 = vpow2.f32 %v1420_v52  ;;  %v1891_v4 = vpop.eup %1890  ;;  %v1552_v12 = vpack.c.bf16 %v1046_v51, %v1045_v29  ;;  %v937_v30 = vadd.f32 1.0, %v1889_v0 }
 0x146   : > { %v1893_v8 = vpop.eup %1892  ;;  %1572 = vst [vmem:[%s2181_s14 + $0x20] sm:$0xff] %v1512_v2   ;;  %1908 = vrcp.f32 %v952_v3  ;;  %v953_v9 = vadd.f32 1.0, %v1891_v4 }
 0x147   : > { %1580 = vst [vmem:[%s2181_s14 + $0x60] sm:$0xff] %v1552_v12   ;;  %1910 = vrcp.f32 %v937_v30  ;;  %v938_v26 = vadd.f32 1.0, %v1893_v8 }
 0x148   : > { %v1895_v28 = vpop.eup %1894 }
 0x149   : > { %1912 = vrcp.f32 %v938_v26  ;;  %v1031_v11 = vmul.f32 %v1895_v28, %v2211_v62 }
 0x14a   : > { %v1897_v37 = vpop.eup %1896  ;;  %1914 = vpow2.f32 %v1421_v57 }
 0x14b   : > { %v1899_v10 = vpop.eup %1898  ;;  %v1032_v13 = vmul.f32 %v1897_v37, %v2222_v17  ;;  %1916 = vrcp.f32 %v953_v9 }
 0x14c   : > { %v1901_v14 = vpop.eup %1900  ;;  %v954_v15 = vadd.f32 1.0, %v1899_v10 }
 0x14d   : > { %v1903_v16 = vpop.eup %1902  ;;  %v1517_v18 = vpack.c.bf16 %v1032_v13, %v1031_v11  ;;  %v939_v7 = vadd.f32 1.0, %v1901_v14 }
 0x14e   : > { %v1905_v19 = vpop.eup %1904  ;;  %1918 = vrcp.f32 %v954_v15  ;;  %v1047_v62 = vmul.f32 %v1903_v16, %v2219_v6 }
 0x14f   : > { %v1907_v20 = vpop.eup %1906  ;;  %1573 = vst [vmem:[%s2181_s14 + $0x28] sm:$0xff] %v1517_v18   ;;  %1920 = vrcp.f32 %v939_v7  ;;  %v940_v21 = vadd.f32 1.0, %v1905_v19 }
 0x150   : > { %v1909_v22 = vpop.eup %1908  ;;  %v955_v25 = vadd.f32 1.0, %v1907_v20 }
 0x151   : > { %1922 = vrcp.f32 %v940_v21  ;;  %v1911_v23 = vpop.eup %1910  ;;  %v1048_v17 = vmul.f32 %v1909_v22, %v2232_v54 }
 0x152   : > { %v1033_v36 = vmul.f32 %v1911_v23, %v2237_v60  ;;  %1924 = vrcp.f32 %v955_v25 }
 0x153   : > { %v1913_v33 = vpop.eup %1912  ;;  %v1557_v34 = vpack.c.bf16 %v1048_v17, %v1047_v62 }
 0x154   : > { %v1915_v35 = vpop.eup %1914  ;;  %v1034_v38 = vmul.f32 %v1913_v33, %v2249_v1 }
 0x155   : > { %v1917_v39 = vpop.eup %1916  ;;  %1581 = vst [vmem:[%s2181_s14 + $0x68] sm:$0xff] %v1557_v34   ;;  %v956_v42 = vadd.f32 1.0, %v1915_v35 }
 0x156   : > { %v1522_v40 = vpack.c.bf16 %v1034_v38, %v1033_v36  ;;  %v1049_v54 = vmul.f32 %v1917_v39, %v2241_v50 }
 0x157   : > { %1926 = vrcp.f32 %v956_v42 }
 0x158   : > { %v1919_v41 = vpop.eup %1918  ;;  %1574 = vst [vmem:[%s2181_s14 + $0x30] sm:$0xff] %v1522_v40  }
 0x159   : > { %v1921_v6 = vpop.eup %1920  ;;  %v1050_v44 = vmul.f32 %v1919_v41, %v2258_v31 }
 0x15a   : > { %v1035_v1 = vmul.f32 %v1921_v6, %v2263_v32 }
 0x15b   : > { %v1923_v43 = vpop.eup %1922  ;;  %v1562_v60 = vpack.c.bf16 %v1050_v44, %v1049_v54 }
 0x15c   : > { %v1036_v46 = vmul.f32 %v1923_v43, %v2274_v24  ;;  %v1925_v48 = vpop.eup %1924 }
 0x15d   : > { %1582 = vst [vmem:[%s2181_s14 + $0x70] sm:$0xff] %v1562_v60   ;;  %v1051_v63 = vmul.f32 %v1925_v48, %v2269_v45 }
 0x15e   : > { %v1527_v47 = vpack.c.bf16 %v1036_v46, %v1035_v1 }
 0x160   : > { %1575 = vst [vmem:[%s2181_s14 + $0x38] sm:$0xff] %v1527_v47  }
 0x161   : > { %v1927_v49 = vpop.eup %1926 }
 0x162   : > { %v1052_v52 = vmul.f32 %v1927_v49, %v2282_v59 }
 0x164   : > { %v1567_v53 = vpack.c.bf16 %v1052_v52, %v1051_v63 }
 0x166   : > { %1583 = vst [vmem:[%s2181_s14 + $0x78] sm:$0xff] %v1567_v53  }
 0x167 PF: > { %s14_s17 = sadd.s32 1, %s1950_s17   ;;  %s2321_s15 = smov %s1946_s16 }
 0x168   : > { %p11_p5 = scmp.ge.s32.totalorder %s14_s17, 4   ;;  %s2322_s16 = smov %s2324_s18 }
 0x16a   :  { %13 = sbr.rel (!%p11_p5) target bundleno = 2 (0x2), region = 75 }

// kernel: _lambda_.57
= control target key start
LH: loop header
LB: loop body
LE: loop exit
PB: predicated region body
PF: predicated region fallthrough
CT: control target
= control target key end

     0   :  { %s1740_s15 = smov 0   ;;  %s1742_s16 = smov 0   ;;  %s2072_s0 = inlined_call_operand.vmem [shape: bf16[512,128], index: 0, kind: input, shape index: {}]   ;;  %s2073_s1 = inlined_call_operand.vmem [shape: bf16[128,128], index: 1, kind: input, shape index: {}]   ;;  %s2074_s2 = inlined_call_operand.vmem [shape: f32[1,128], index: 2, kind: input, shape index: {}]   ;;  %s2075_s3 = inlined_call_operand.vmem [shape: f32[1,128], index: 3, kind: input, shape index: {}]   ;;  %s2076_s4 = inlined_call_operand.vmem [shape: bf16[512,128], index: 4, kind: output, shape index: {}]  }
   0x1   :  { %s1744_s17 = smov 0  }
   0x2 LB: > { %s26_s18 = sadd.s32 1, %s1709_s16  ;;  %p1203_p0 = scmp.ge.s32.totalorder %s1713_s17, 1  ;;  %s1713_s17 = sphi %s1744_s17, %s14_s17   ;;  %s1709_s16 = sphi %s1742_s16, %s2078_s16   ;;  %s1705_s15 = sphi %s1740_s15, %s2077_s15  }
   0x3   : > { %p28_p1 = scmp.ge.s32.totalorder %s26_s18, 2  ;;  %p202_p2 = scmp.lt.s32.totalorder %s1713_s17, 3 }
   0x5   : > { %s2080_s18 = smov (%p28_p1, %s26_s18), 0  ;;  %p203_p3 = pnand %p1203_p0, %p202_p2 }
   0x6   : > { %v1539_v0 = vld [vmem:[%s2073_s1] sm:$0xff] (!%p203_p3)   ;;  %s1204_s21 = sshll.u32 (!%p203_p3), %s1705_s15, 5  ;;  %v1540_v1 = vld [vmem:[%s2073_s1 + $0x8] sm:$0xff] (!%p203_p3)   ;;  %v1541_v2 = vld [vmem:[%s2073_s1 + $0x10] sm:$0xff] (!%p203_p3)  }
   0x7   : > { %206 = sbr.rel (%p203_p3) target bundleno = 343 (0x157), region = 36  ;;  %p242_p4 = scmp.lt.s32.totalorder (!%p203_p3), %s1204_s21, 63  ;;  %1451 = vmatprep.subr.bf16.mxu0 (!%p203_p3), %v1539_v0  ;;  %1499 = vmatprep.subr.bf16.mxu1 (!%p203_p3), %v1539_v0  ;;  %v1542_v3 = vld [vmem:[%s2073_s1 + $0x18] sm:$0xff] (!%p203_p3)   ;;  %v1543_v6 = vld [vmem:[%s2073_s1 + $0x20] sm:$0xff] (!%p203_p3)   ;;  %v1544_v7 = vld [vmem:[%s2073_s1 + $0x28] sm:$0xff] (!%p203_p3)  }
   0x8   : > { %1452 = vmatpush3.bf16.msra.mxu0 (!%p203_p3), %v1539_v0  ;;  %1507 = vmatpush3.bf16.msra.mxu1 (!%p203_p3), %v1539_v0  ;;  %v1545_v8 = vld [vmem:[%s2073_s1 + $0x30] sm:$0xff] (!%p203_p3)   ;;  %v1546_v9 = vld [vmem:[%s2073_s1 + $0x38] sm:$0xff] (!%p203_p3)   ;;  %v1811_v24 = vld [vmem:[%s2074_s2] ss:$0 sm:$0xff] (!%p203_p3) }
   0x9   : > { %1453 = vmatprep.subr.bf16.mxu0 (!%p203_p3), %v1540_v1  ;;  %1500 = vmatprep.subr.bf16.mxu1 (!%p203_p3), %v1540_v1  ;;  %v1816_v26 = vld [vmem:[%s2075_s3] ss:$0 sm:$0xff] (!%p203_p3) }
   0xc   : > { %1454 = vmatpush3.bf16.msra.mxu0 (!%p203_p3), %v1540_v1  ;;  %1508 = vmatpush3.bf16.msra.mxu1 (!%p203_p3), %v1540_v1 }
   0xd   : > { %1455 = vmatprep.subr.bf16.mxu0 (!%p203_p3), %v1541_v2  ;;  %1501 = vmatprep.subr.bf16.mxu1 (!%p203_p3), %v1541_v2 }
   0xe   : > { %s2082_s21 = smov (!%p242_p4, %s1204_s21), 63 }
   0xf   : > { %s1205_s26 = sshll.u32 %s2082_s21, 2 }
  0x10   : > { %s1775_s29 = scalar_lea.vmem %s2072_s0, %s1205_s26  ;;  %1456 = vmatpush3.bf16.msra.mxu0 %v1541_v2  ;;  %1509 = vmatpush3.bf16.msra.mxu1 %v1541_v2  ;;  %s1962_s24 = scalar_lea.vmem %s2076_s4, %s1205_s26 }
  0x11   : > { %v1547_v4 = vld [vmem:[%s1775_s29] sm:$0xff]   ;;  %1457 = vmatprep.subr.bf16.mxu0 %v1542_v3  ;;  %1502 = vmatprep.subr.bf16.mxu1 %v1542_v3  ;;  %v1549_v10 = vld [vmem:[%s1775_s29 + $0x8] sm:$0xff]   ;;  %v1551_v12 = vld [vmem:[%s1775_s29 + $0x10] sm:$0xff]  }
  0x12   : > { %v1548_v5 = vld [vmem:[%s1775_s29 + $0x40] sm:$0xff]   ;;  %1467 = vmatprep.mubr.bf16.mxu0 %v1547_v4  ;;  %v1550_v11 = vld [vmem:[%s1775_s29 + $0x48] sm:$0xff]   ;;  %v1552_v13 = vld [vmem:[%s1775_s29 + $0x50] sm:$0xff]  }
  0x13   : > { %1483 = vmatprep.mubr.bf16.mxu1 %v1548_v5  ;;  %v1553_v14 = vld [vmem:[%s1775_s29 + $0x18] sm:$0xff]   ;;  %v1555_v16 = vld [vmem:[%s1775_s29 + $0x20] sm:$0xff]   ;;  %v1557_v18 = vld [vmem:[%s1775_s29 + $0x28] sm:$0xff]  }
  0x14   : > { %1458 = vmatpush3.bf16.msra.mxu0 %v1542_v3  ;;  %1510 = vmatpush3.bf16.msra.mxu1 %v1542_v3  ;;  %v1554_v15 = vld [vmem:[%s1775_s29 + $0x58] sm:$0xff]   ;;  %v1556_v17 = vld [vmem:[%s1775_s29 + $0x60] sm:$0xff]   ;;  %v1558_v19 = vld [vmem:[%s1775_s29 + $0x68] sm:$0xff]  }
  0x15   : > { %1459 = vmatprep.subr.bf16.mxu0 %v1543_v6  ;;  %1503 = vmatprep.subr.bf16.mxu1 %v1543_v6  ;;  %v1559_v20 = vld [vmem:[%s1775_s29 + $0x30] sm:$0xff]   ;;  %v1561_v22 = vld [vmem:[%s1775_s29 + $0x38] sm:$0xff]  }
  0x16   : > { %v1560_v21 = vld [vmem:[%s1775_s29 + $0x70] sm:$0xff]   ;;  %v1562_v23 = vld [vmem:[%s1775_s29 + $0x78] sm:$0xff]  }
  0x18   : > { %1460 = vmatpush3.bf16.msra.mxu0 %v1543_v6  ;;  %1511 = vmatpush3.bf16.msra.mxu1 %v1543_v6 }
  0x19   : > { %1461 = vmatprep.subr.bf16.mxu0 %v1544_v7  ;;  %1504 = vmatprep.subr.bf16.mxu1 %v1544_v7 }
  0x1c   : > { %1462 = vmatpush3.bf16.msra.mxu0 %v1544_v7  ;;  %1512 = vmatpush3.bf16.msra.mxu1 %v1544_v7 }
  0x1d   : > { %1463 = vmatprep.subr.bf16.mxu0 %v1545_v8  ;;  %1505 = vmatprep.subr.bf16.mxu1 %v1545_v8 }
  0x20   : > { %1464 = vmatpush3.bf16.msra.mxu0 %v1545_v8  ;;  %1513 = vmatpush3.bf16.msra.mxu1 %v1545_v8 }
  0x21   : > { %1465 = vmatprep.subr.bf16.mxu0 %v1546_v9  ;;  %1506 = vmatprep.subr.bf16.mxu1 %v1546_v9 }
  0x24   : > { %1466 = vmatpush3.bf16.msra.mxu0 %v1546_v9  ;;  %1514 = vmatpush3.bf16.msra.mxu1 %v1546_v9 }
  0x27   : > { %1468 = vmatmul.mubr.bf16.vlgmr.msra.gmra.mrb[0].mxu0 %v1549_v10  ;;  %1484 = vmatmul.mubr.bf16.vlgmr.msra.gmra.mrb[0].mxu1 %v1550_v11 }
  0x28   : > { %1471 = vmatprep.mubr.bf16.mxu0 %v1551_v12  ;;  %1487 = vmatprep.mubr.bf16.mxu1 %v1552_v13 }
  0x2f   : > { %1472 = vmatmul.mubr.bf16.gmra.mrb[4].mxu0 %v1553_v14  ;;  %1488 = vmatmul.mubr.bf16.gmra.mrb[4].mxu1 %v1554_v15 }
  0x30   : > { %1475 = vmatprep.mubr.bf16.mxu0 %v1555_v16  ;;  %1491 = vmatprep.mubr.bf16.mxu1 %v1556_v17 }
  0x37   : > { %1476 = vmatmul.mubr.bf16.gmra.mrb[8].mxu0 %v1557_v18  ;;  %1492 = vmatmul.mubr.bf16.gmra.mrb[8].mxu1 %v1558_v19 }
  0x38   : > { %1479 = vmatprep.mubr.bf16.mxu0 %v1559_v20  ;;  %1495 = vmatprep.mubr.bf16.mxu1 %v1560_v21 }
  0x3f   : > { %1480 = vmatmul.mubr.bf16.gmra.mrb[12].mxu0 %v1561_v22  ;;  %1496 = vmatmul.mubr.bf16.gmra.mrb[12].mxu1 %v1562_v23 }
  0xfa   : > { %v1469_v25 = vpop.f32.mrb[0].mxu0  ;;  %v1485_v27 = vpop.f32.mrb[0].mxu1 }
  0xfb   : > { %v629_v28 = vmul.f32 %v1469_v25, %v1811_v24  ;;  %v645_v29 = vmul.f32 %v1485_v27, %v1811_v24  ;;  %v493_v30 = vpop.f32.mrb[1].mxu0  ;;  %v557_v31 = vpop.f32.mrb[1].mxu1 }
  0xfc   : > { %v627_v32 = vmul.f32 %v1811_v24, %v493_v30  ;;  %v643_v33 = vmul.f32 %v1811_v24, %v557_v31  ;;  %v1470_v34 = vpop.f32.mrb[2].mxu0  ;;  %v1486_v35 = vpop.f32.mrb[2].mxu1 }
  0xfd   : > { %v1823_v36 = vadd.f32 %v1816_v26, %v629_v28  ;;  %v1826_v37 = vadd.f32 %v1816_v26, %v645_v29  ;;  %v630_v38 = vmul.f32 %v1470_v34, %v1811_v24  ;;  %v646_v39 = vmul.f32 %v1486_v35, %v1811_v24  ;;  %v496_v40 = vpop.f32.mrb[3].mxu0  ;;  %v560_v41 = vpop.f32.mrb[3].mxu1 }
  0xfe   : > { %v1831_v42 = vadd.f32 %v1816_v26, %v627_v32  ;;  %v1834_v43 = vadd.f32 %v1816_v26, %v643_v33  ;;  %v628_v44 = vmul.f32 %v1811_v24, %v496_v40  ;;  %v644_v45 = vmul.f32 %v1811_v24, %v560_v41 }
  0xff   : > { %v1236_v46 = vmul.f32 -1.442695, %v1823_v36  ;;  %v1252_v47 = vmul.f32 -1.442695, %v1826_v37  ;;  %v1841_v48 = vadd.f32 %v1816_v26, %v630_v38  ;;  %v1844_v49 = vadd.f32 %v1816_v26, %v646_v39 }
 0x100   : > { %v1234_v50 = vmul.f32 -1.442695, %v1831_v42  ;;  %v1250_v51 = vmul.f32 -1.442695, %v1834_v43  ;;  %v1849_v52 = vadd.f32 %v1816_v26, %v628_v44  ;;  %v1852_v53 = vadd.f32 %v1816_v26, %v644_v45 }
 0x101   : > { %1563 = vpow2.f32 %v1236_v46  ;;  %v1237_v54 = vmul.f32 -1.442695, %v1841_v48  ;;  %v1253_v55 = vmul.f32 -1.442695, %v1844_v49 }
 0x102   : > { %1565 = vpow2.f32 %v1252_v47  ;;  %v1473_v56 = vpop.f32.mrb[4].mxu0  ;;  %v1489_v57 = vpop.f32.mrb[4].mxu1  ;;  %v1235_v58 = vmul.f32 -1.442695, %v1849_v52  ;;  %v1251_v63 = vmul.f32 -1.442695, %v1852_v53 }
 0x103   : > { %1567 = vpow2.f32 %v1234_v50  ;;  %v633_v59 = vmul.f32 %v1473_v56, %v1811_v24  ;;  %v649_v60 = vmul.f32 %v1489_v57, %v1811_v24  ;;  %v509_v61 = vpop.f32.mrb[5].mxu0  ;;  %v573_v62 = vpop.f32.mrb[5].mxu1 }
 0x104   : > { %1569 = vpow2.f32 %v1250_v51  ;;  %v631_v0 = vmul.f32 %v1811_v24, %v509_v61  ;;  %v647_v1 = vmul.f32 %v1811_v24, %v573_v62  ;;  %v1474_v2 = vpop.f32.mrb[6].mxu0  ;;  %v1490_v3 = vpop.f32.mrb[6].mxu1 }
 0x105   : > { %1571 = vpow2.f32 %v1237_v54  ;;  %v1863_v4 = vadd.f32 %v1816_v26, %v633_v59  ;;  %v1866_v5 = vadd.f32 %v1816_v26, %v649_v60  ;;  %v634_v6 = vmul.f32 %v1474_v2, %v1811_v24  ;;  %v512_v7 = vpop.f32.mrb[7].mxu0  ;;  %v576_v8 = vpop.f32.mrb[7].mxu1 }
 0x106   : > { %1573 = vpow2.f32 %v1253_v55  ;;  %v1870_v9 = vadd.f32 %v1816_v26, %v631_v0  ;;  %v1873_v10 = vadd.f32 %v1816_v26, %v647_v1  ;;  %v650_v11 = vmul.f32 %v1490_v3, %v1811_v24 }
 0x107   : > { %1575 = vpow2.f32 %v1235_v58  ;;  %v1240_v12 = vmul.f32 -1.442695, %v1863_v4  ;;  %v1256_v13 = vmul.f32 -1.442695, %v1866_v5  ;;  %v1879_v14 = vadd.f32 %v1816_v26, %v634_v6 }
 0x108   : > { %1577 = vpow2.f32 %v1251_v63  ;;  %v1238_v15 = vmul.f32 -1.442695, %v1870_v9  ;;  %v1254_v16 = vmul.f32 -1.442695, %v1873_v10  ;;  %v1885_v21 = vadd.f32 %v1816_v26, %v650_v11 }
 0x109   : > { %1579 = vpow2.f32 %v1240_v12  ;;  %v1241_v17 = vmul.f32 -1.442695, %v1879_v14  ;;  %v632_v28 = vmul.f32 %v1811_v24, %v512_v7  ;;  %v648_v29 = vmul.f32 %v1811_v24, %v576_v8 }
 0x10a   : > { %1581 = vpow2.f32 %v1256_v13  ;;  %v1477_v18 = vpop.f32.mrb[8].mxu0  ;;  %v1493_v19 = vpop.f32.mrb[8].mxu1  ;;  %v1890_v44 = vmul.f32 -1.442695, %v1885_v21 }
 0x10b   : > { %v1564_v20 = vpop.eup %1563  ;;  %1583 = vpow2.f32 %v1238_v15  ;;  %v525_v22 = vpop.f32.mrb[9].mxu0  ;;  %v1893_v47 = vadd.f32 %v1816_v26, %v632_v28  ;;  %v1896_v50 = vadd.f32 %v1816_v26, %v648_v29  ;;  %v637_v55 = vmul.f32 %v1477_v18, %v1811_v24 }
 0x10c   : > { %v589_v23 = vpop.f32.mrb[9].mxu1  ;;  %v1566_v25 = vpop.eup %1565  ;;  %v796_v27 = vadd.f32 1.0, %v1564_v20  ;;  %1585 = vpow2.f32 %v1254_v16  ;;  %v653_v56 = vmul.f32 %v1493_v19, %v1811_v24  ;;  %v635_v59 = vmul.f32 %v1811_v24, %v525_v22 }
 0x10d   : > { %v1478_v30 = vpop.f32.mrb[10].mxu0  ;;  %v1494_v31 = vpop.f32.mrb[10].mxu1  ;;  %v812_v33 = vadd.f32 1.0, %v1566_v25  ;;  %1587 = vpow2.f32 %v1241_v17  ;;  %v651_v60 = vmul.f32 %v1811_v24, %v589_v23  ;;  %v1239_v11 = vmul.f32 -1.442695, %v1893_v47 }
 0x10e   : > { %v1568_v32 = vpop.eup %1567  ;;  %v528_v34 = vpop.f32.mrb[11].mxu0  ;;  %1589 = vrcp.f32 %v796_v27  ;;  %v638_v1 = vmul.f32 %v1478_v30, %v1811_v24  ;;  %v654_v2 = vmul.f32 %v1494_v31, %v1811_v24  ;;  %v1915_v18 = vadd.f32 %v1816_v26, %v637_v55 }
 0x10f   : > { %v1570_v35 = vpop.eup %1569  ;;  %v794_v38 = vadd.f32 1.0, %v1568_v32  ;;  %v592_v39 = vpop.f32.mrb[11].mxu1  ;;  %1591 = vrcp.f32 %v812_v33  ;;  %v636_v12 = vmul.f32 %v1811_v24, %v528_v34  ;;  %v1918_v19 = vadd.f32 %v1816_v26, %v653_v56 }
 0x110   : > { %v1572_v40 = vpop.eup %1571  ;;  %v810_v41 = vadd.f32 1.0, %v1570_v35  ;;  %v1925_v27 = vadd.f32 %v1816_v26, %v635_v59  ;;  %v1928_v28 = vadd.f32 %v1816_v26, %v651_v60  ;;  %v1931_v31 = vadd.f32 %v1816_v26, %v638_v1 }
 0x111   : > { %v1574_v45 = vpop.eup %1573  ;;  %1593 = vrcp.f32 %v794_v38  ;;  %v797_v46 = vadd.f32 1.0, %v1572_v40  ;;  %v1934_v32 = vadd.f32 %v1816_v26, %v654_v2  ;;  %v1937_v35 = vadd.f32 %v1816_v26, %v636_v12 }
 0x112   : > { %v1576_v51 = vpop.eup %1575  ;;  %1595 = vrcp.f32 %v810_v41  ;;  %v813_v54 = vadd.f32 1.0, %v1574_v45  ;;  %v1481_v61 = vpop.f32.mrb[12].mxu0  ;;  %v652_v38 = vmul.f32 %v1811_v24, %v592_v39  ;;  %v1255_v41 = vmul.f32 -1.442695, %v1896_v50 }
 0x113   : > { %v1578_v57 = vpop.eup %1577  ;;  %1597 = vrcp.f32 %v797_v46  ;;  %v795_v58 = vadd.f32 1.0, %v1576_v51  ;;  %v1497_v62 = vpop.f32.mrb[12].mxu1  ;;  %v1244_v45 = vmul.f32 -1.442695, %v1915_v18  ;;  %v1260_v51 = vmul.f32 -1.442695, %v1918_v19 }
 0x114   : > { %v1580_v63 = vpop.eup %1579  ;;  %1599 = vrcp.f32 %v813_v54  ;;  %v811_v0 = vadd.f32 1.0, %v1578_v57  ;;  %v1904_v3 = vpop.f32.mrb[13].mxu0  ;;  %v641_v54 = vmul.f32 %v1481_v61, %v1811_v24  ;;  %v657_v55 = vmul.f32 %v1497_v62, %v1811_v24 }
 0x115   : > { %v1906_v6 = vpop.f32.mrb[13].mxu1  ;;  %v1582_v7 = vpop.eup %1581  ;;  %1601 = vrcp.f32 %v795_v58  ;;  %v800_v8 = vadd.f32 1.0, %v1580_v63  ;;  %v1242_v39 = vmul.f32 -1.442695, %v1925_v27  ;;  %v1258_v57 = vmul.f32 -1.442695, %v1928_v28 }
 0x116   : > { %v1910_v13 = vpop.f32.mrb[14].mxu0  ;;  %v1912_v15 = vpop.f32.mrb[14].mxu1  ;;  %1603 = vrcp.f32 %v811_v0  ;;  %v816_v17 = vadd.f32 1.0, %v1582_v7  ;;  %v1245_v58 = vmul.f32 -1.442695, %v1931_v31  ;;  %v1952_v61 = vadd.f32 %v1816_v26, %v652_v38 }
 0x117   : > { %v1584_v16 = vpop.eup %1583  ;;  %v1920_v20 = vpop.f32.mrb[15].mxu0  ;;  %1605 = vrcp.f32 %v800_v8  ;;  %v1261_v60 = vmul.f32 -1.442695, %v1934_v32  ;;  %v1243_v63 = vmul.f32 -1.442695, %v1937_v35  ;;  %v1966_v8 = vadd.f32 %v1816_v26, %v641_v54 }
 0x118   : > { %v1922_v22 = vpop.f32.mrb[15].mxu1  ;;  %v1586_v23 = vpop.eup %1585  ;;  %v798_v25 = vadd.f32 1.0, %v1584_v16  ;;  %1607 = vrcp.f32 %v816_v17 }
 0x119   : > { %v1588_v29 = vpop.eup %1587  ;;  %v814_v30 = vadd.f32 1.0, %v1586_v23 }
 0x11a   : > { %v1590_v33 = vpop.eup %1589  ;;  %1609 = vrcp.f32 %v798_v25  ;;  %v801_v34 = vadd.f32 1.0, %v1588_v29 }
 0x11b   : > { %v1592_v40 = vpop.eup %1591  ;;  %1611 = vrcp.f32 %v814_v30  ;;  %v892_v0 = vmul.f32 %v1590_v33, %v1823_v36  ;;  %v1969_v36 = vadd.f32 %v1816_v26, %v657_v55  ;;  %v1248_v33 = vmul.f32 -1.442695, %v1966_v8 }
 0x11c   : > { %v1594_v46 = vpop.eup %1593  ;;  %1613 = vrcp.f32 %v801_v34 }
 0x11d   : > { %v1596_v56 = vpop.eup %1595  ;;  %1615 = vpow2.f32 %v1890_v44  ;;  %v908_v44 = vmul.f32 %v1592_v40, %v1826_v37 }
 0x11e   : > { %v1598_v59 = vpop.eup %1597  ;;  %1617 = vpow2.f32 %v1239_v11  ;;  %v906_v17 = vmul.f32 %v1596_v56, %v1834_v43 }
 0x11f   : > { %v1600_v62 = vpop.eup %1599  ;;  %v893_v1 = vmul.f32 %v1598_v59, %v1841_v48  ;;  %1619 = vpow2.f32 %v1255_v41  ;;  %v890_v48 = vmul.f32 %v1594_v46, %v1831_v42  ;;  %v1259_v42 = vmul.f32 -1.442695, %v1952_v61 }
 0x120   : > { %v1602_v2 = vpop.eup %1601  ;;  %v909_v7 = vmul.f32 %v1600_v62, %v1844_v49  ;;  %1621 = vpow2.f32 %v1244_v45 }
 0x121   : > { %v1604_v37 = vpop.eup %1603  ;;  %v1340_v11 = vpack.c.bf16 %v893_v1, %v892_v0  ;;  %v891_v12 = vmul.f32 %v1602_v2, %v1849_v52  ;;  %1623 = vpow2.f32 %v1260_v51  ;;  %v642_v0 = vmul.f32 %v1910_v13, %v1811_v24 }
 0x122   : > { %v1606_v16 = vpop.eup %1605  ;;  %v1380_v49 = vpack.c.bf16 %v909_v7, %v908_v44  ;;  %v907_v23 = vmul.f32 %v1604_v37, %v1852_v53  ;;  %1625 = vpow2.f32 %v1242_v39  ;;  %v1264_v53 = vmul.f32 -1.442695, %v1969_v36 }
 0x123   : > { %v1975_v25 = vpop.eup %1607  ;;  %1412 = vst [vmem:[%s1962_s24 + $0x8] sm:$0xff] %v1340_v11   ;;  %v1335_v29 = vpack.c.bf16 %v891_v12, %v890_v48  ;;  %1627 = vpow2.f32 %v1258_v57  ;;  %v896_v40 = vmul.f32 %v1606_v16, %v1863_v4  ;;  %v639_v4 = vmul.f32 %v1811_v24, %v1904_v3 }
 0x124   : > { %v1979_v30 = vpop.eup %1609  ;;  %1420 = vst [vmem:[%s1962_s24 + $0x48] sm:$0xff] %v1380_v49   ;;  %v1375_v52 = vpack.c.bf16 %v907_v23, %v906_v17  ;;  %1629 = vpow2.f32 %v1245_v58  ;;  %v658_v2 = vmul.f32 %v1912_v15, %v1811_v24  ;;  %v656_v12 = vmul.f32 %v1811_v24, %v1922_v22 }
 0x125   : > { %v1983_v43 = vpop.eup %1611  ;;  %1336 = vst [vmem:[%s1962_s24] sm:$0xff] %v1335_v29   ;;  %1631 = vpow2.f32 %v1261_v60  ;;  %v655_v60 = vmul.f32 %v1811_v24, %v1906_v6  ;;  %v2000_v37 = vadd.f32 %v1816_v26, %v639_v4  ;;  %v640_v6 = vmul.f32 %v1811_v24, %v1920_v20 }
 0x126   : > { %v1614_v34 = vpop.eup %1613  ;;  %1419 = vst [vmem:[%s1962_s24 + $0x40] sm:$0xff] %v1375_v52   ;;  %1633 = vpow2.f32 %v1243_v63  ;;  %v2010_v17 = vadd.f32 %v1816_v26, %v642_v0  ;;  %v2013_v20 = vadd.f32 %v1816_v26, %v658_v2 }
 0x127   : > { %v1616_v38 = vpop.eup %1615  ;;  %v897_v41 = vmul.f32 %v1614_v34, %v1879_v14  ;;  %1635 = vpow2.f32 %v1259_v42  ;;  %v2005_v13 = vadd.f32 %v1816_v26, %v655_v60  ;;  %v1246_v42 = vmul.f32 -1.442695, %v2000_v37 }
 0x128   : > { %v1618_v45 = vpop.eup %1617  ;;  %v817_v46 = vadd.f32 1.0, %v1616_v38  ;;  %1637 = vpow2.f32 %v1248_v33  ;;  %v2017_v52 = vadd.f32 %v1816_v26, %v640_v6  ;;  %v2021_v33 = vadd.f32 %v1816_v26, %v656_v12 }
 0x129   : > { %v1620_v51 = vpop.eup %1619  ;;  %v1350_v54 = vpack.c.bf16 %v897_v41, %v896_v40  ;;  %v799_v55 = vadd.f32 1.0, %v1618_v45  ;;  %1639 = vpow2.f32 %v1264_v53  ;;  %v1262_v22 = vmul.f32 -1.442695, %v2005_v13 }
 0x12a   : > { %v1622_v56 = vpop.eup %1621  ;;  %1641 = vrcp.f32 %v817_v46  ;;  %v815_v39 = vadd.f32 1.0, %v1620_v51  ;;  %v912_v34 = vmul.f32 %v1975_v25, %v1866_v5  ;;  %v1249_v40 = vmul.f32 -1.442695, %v2010_v17 }
 0x12b   : > { %v1624_v57 = vpop.eup %1623  ;;  %1414 = vst [vmem:[%s1962_s24 + $0x18] sm:$0xff] %v1350_v54   ;;  %1643 = vrcp.f32 %v799_v55  ;;  %v804_v58 = vadd.f32 1.0, %v1622_v56  ;;  %v894_v45 = vmul.f32 %v1979_v30, %v1870_v9  ;;  %v910_v46 = vmul.f32 %v1983_v43, %v1873_v10 }
 0x12c   : > { %v1626_v59 = vpop.eup %1625  ;;  %1645 = vrcp.f32 %v815_v39  ;;  %v820_v14 = vadd.f32 1.0, %v1624_v57  ;;  %v1265_v26 = vmul.f32 -1.442695, %v2013_v20  ;;  %v1263_v9 = vmul.f32 -1.442695, %v2021_v33 }
 0x12d   : > { %v1628_v63 = vpop.eup %1627  ;;  %1647 = vrcp.f32 %v804_v58  ;;  %v802_v62 = vadd.f32 1.0, %v1626_v59 }
 0x12e   : > { %v1630_v44 = vpop.eup %1629  ;;  %1649 = vrcp.f32 %v820_v14  ;;  %v818_v1 = vadd.f32 1.0, %v1628_v63 }
 0x12f   : > { %v1632_v7 = vpop.eup %1631  ;;  %1651 = vrcp.f32 %v802_v62  ;;  %v805_v3 = vadd.f32 1.0, %v1630_v44 }
 0x130   : > { %v1634_v48 = vpop.eup %1633  ;;  %1653 = vrcp.f32 %v818_v1  ;;  %v821_v11 = vadd.f32 1.0, %v1632_v7 }
 0x131   : > { %v1636_v16 = vpop.eup %1635  ;;  %1655 = vrcp.f32 %v805_v3  ;;  %v803_v15 = vadd.f32 1.0, %v1634_v48 }
 0x132   : > { %v1638_v49 = vpop.eup %1637  ;;  %1657 = vrcp.f32 %v821_v11  ;;  %v819_v23 = vadd.f32 1.0, %v1636_v16 }
 0x133   : > { %v1640_v29 = vpop.eup %1639  ;;  %1659 = vrcp.f32 %v803_v15  ;;  %v808_v0 = vadd.f32 1.0, %v1638_v49 }
 0x134   : > { %v1642_v24 = vpop.eup %1641  ;;  %1661 = vrcp.f32 %v819_v23  ;;  %v824_v1 = vadd.f32 1.0, %v1640_v29 }
 0x135   : > { %v1644_v53 = vpop.eup %1643  ;;  %v913_v38 = vmul.f32 %v1642_v24, %v1885_v21  ;;  %1663 = vpow2.f32 %v1246_v42  ;;  %v1247_v21 = vmul.f32 -1.442695, %v2017_v52 }
 0x136   : > { %v1646_v41 = vpop.eup %1645  ;;  %v895_v51 = vmul.f32 %v1644_v53, %v1893_v47  ;;  %1665 = vpow2.f32 %v1262_v22 }
 0x137   : > { %v1648_v54 = vpop.eup %1647  ;;  %v1390_v55 = vpack.c.bf16 %v913_v38, %v912_v34  ;;  %v911_v5 = vmul.f32 %v1646_v41, %v1896_v50  ;;  %1667 = vpow2.f32 %v1249_v40 }
 0x138   : > { %v1650_v25 = vpop.eup %1649  ;;  %v1345_v56 = vpack.c.bf16 %v895_v51, %v894_v45  ;;  %1669 = vpow2.f32 %v1265_v26  ;;  %v900_v50 = vmul.f32 %v1648_v54, %v1915_v18 }
 0x139   : > { %v1652_v30 = vpop.eup %1651  ;;  %1422 = vst [vmem:[%s1962_s24 + $0x58] sm:$0xff] %v1390_v55   ;;  %v1385_v10 = vpack.c.bf16 %v911_v5, %v910_v46  ;;  %1671 = vpow2.f32 %v1247_v21  ;;  %v916_v4 = vmul.f32 %v1650_v25, %v1918_v19 }
 0x13a   : > { %v1654_v47 = vpop.eup %1653  ;;  %1413 = vst [vmem:[%s1962_s24 + $0x10] sm:$0xff] %v1345_v56   ;;  %1673 = vpow2.f32 %v1263_v9  ;;  %v898_v60 = vmul.f32 %v1652_v30, %v1925_v27 }
 0x13b   : > { %v1656_v43 = vpop.eup %1655  ;;  %1421 = vst [vmem:[%s1962_s24 + $0x50] sm:$0xff] %v1385_v10   ;;  %v914_v18 = vmul.f32 %v1654_v47, %v1928_v28  ;;  %1675 = vrcp.f32 %v808_v0 }
 0x13c   : > { %v1658_v39 = vpop.eup %1657  ;;  %v901_v57 = vmul.f32 %v1656_v43, %v1931_v31  ;;  %1677 = vrcp.f32 %v824_v1 }
 0x13d   : > { %v1660_v58 = vpop.eup %1659  ;;  %v917_v59 = vmul.f32 %v1658_v39, %v1934_v32 }
 0x13e   : > { %v1662_v14 = vpop.eup %1661  ;;  %v1360_v63 = vpack.c.bf16 %v901_v57, %v900_v50  ;;  %v899_v62 = vmul.f32 %v1660_v58, %v1937_v35 }
 0x13f   : > { %v1400_v44 = vpack.c.bf16 %v917_v59, %v916_v4  ;;  %v915_v31 = vmul.f32 %v1662_v14, %v1952_v61  ;;  %v1664_v19 = vpop.eup %1663 }
 0x140   : > { %1416 = vst [vmem:[%s1962_s24 + $0x28] sm:$0xff] %v1360_v63   ;;  %v1355_v2 = vpack.c.bf16 %v899_v62, %v898_v60  ;;  %v1666_v7 = vpop.eup %1665  ;;  %v806_v27 = vadd.f32 1.0, %v1664_v19 }
 0x141   : > { %1424 = vst [vmem:[%s1962_s24 + $0x68] sm:$0xff] %v1400_v44   ;;  %v1395_v32 = vpack.c.bf16 %v915_v31, %v914_v18  ;;  %v1668_v3 = vpop.eup %1667  ;;  %v822_v35 = vadd.f32 1.0, %v1666_v7 }
 0x142   : > { %1415 = vst [vmem:[%s1962_s24 + $0x20] sm:$0xff] %v1355_v2   ;;  %v1670_v6 = vpop.eup %1669  ;;  %1679 = vrcp.f32 %v806_v27  ;;  %v809_v28 = vadd.f32 1.0, %v1668_v3 }
 0x143   : > { %1423 = vst [vmem:[%s1962_s24 + $0x60] sm:$0xff] %v1395_v32   ;;  %v1672_v48 = vpop.eup %1671  ;;  %1681 = vrcp.f32 %v822_v35  ;;  %v825_v61 = vadd.f32 1.0, %v1670_v6 }
 0x144   : > { %v1674_v11 = vpop.eup %1673  ;;  %1683 = vrcp.f32 %v809_v28  ;;  %v807_v12 = vadd.f32 1.0, %v1672_v48 }
 0x145   : > { %1685 = vrcp.f32 %v825_v61  ;;  %v823_v16 = vadd.f32 1.0, %v1674_v11  ;;  %v1676_v15 = vpop.eup %1675 }
 0x146   : > { %1687 = vrcp.f32 %v807_v12  ;;  %v1678_v49 = vpop.eup %1677  ;;  %v904_v22 = vmul.f32 %v1676_v15, %v1966_v8 }
 0x147   : > { %1689 = vrcp.f32 %v823_v16  ;;  %v920_v38 = vmul.f32 %v1678_v49, %v1969_v36 }
 0x14c   : > { %v1680_v23 = vpop.eup %1679 }
 0x14d   : > { %v1682_v29 = vpop.eup %1681  ;;  %v902_v45 = vmul.f32 %v1680_v23, %v2000_v37 }
 0x14e   : > { %v1684_v42 = vpop.eup %1683  ;;  %v918_v26 = vmul.f32 %v1682_v29, %v2005_v13 }
 0x14f   : > { %v1686_v24 = vpop.eup %1685  ;;  %v905_v53 = vmul.f32 %v1684_v42, %v2010_v17 }
 0x150   : > { %v1688_v34 = vpop.eup %1687  ;;  %v921_v40 = vmul.f32 %v1686_v24, %v2013_v20 }
 0x151   : > { %v1690_v41 = vpop.eup %1689  ;;  %v1370_v46 = vpack.c.bf16 %v905_v53, %v904_v22  ;;  %v903_v51 = vmul.f32 %v1688_v34, %v2017_v52 }
 0x152   : > { %v1410_v54 = vpack.c.bf16 %v921_v40, %v920_v38  ;;  %v919_v8 = vmul.f32 %v1690_v41, %v2021_v33 }
 0x153   : > { %1418 = vst [vmem:[%s1962_s24 + $0x38] sm:$0xff] %v1370_v46   ;;  %v1365_v55 = vpack.c.bf16 %v903_v51, %v902_v45 }
 0x154   : > { %1426 = vst [vmem:[%s1962_s24 + $0x78] sm:$0xff] %v1410_v54   ;;  %v1405_v17 = vpack.c.bf16 %v919_v8, %v918_v26 }
 0x155   : > { %1417 = vst [vmem:[%s1962_s24 + $0x30] sm:$0xff] %v1365_v55  }
 0x156   : > { %1425 = vst [vmem:[%s1962_s24 + $0x70] sm:$0xff] %v1405_v17  }
 0x157 PF: > { %s14_s17 = sadd.s32 1, %s1713_s17   ;;  %s2077_s15 = smov %s1709_s16 }
 0x158   : > { %p11_p5 = scmp.ge.s32.totalorder %s14_s17, 4   ;;  %s2078_s16 = smov %s2080_s18 }
 0x15a   :  { %13 = sbr.rel (!%p11_p5) target bundleno = 2 (0x2), region = 75 }

// kernel: _lambda_.59
= control target key start
LH: loop header
LB: loop body
LE: loop exit
PB: predicated region body
PF: predicated region fallthrough
CT: control target
= control target key end

     0   :  { %s2234_s18 = smov 0   ;;  %s2236_s19 = smov 0   ;;  %s2662_s0 = inlined_call_operand.vmem [shape: bf16[512,256], index: 0, kind: input, shape index: {}]   ;;  %s2663_s1 = inlined_call_operand.vmem [shape: bf16[256,128], index: 1, kind: input, shape index: {}]   ;;  %s2664_s2 = inlined_call_operand.vmem [shape: f32[1,128], index: 2, kind: input, shape index: {}]   ;;  %s2665_s3 = inlined_call_operand.vmem [shape: f32[1,128], index: 3, kind: input, shape index: {}]   ;;  %s2666_s4 = inlined_call_operand.vmem [shape: bf16[512,128], index: 4, kind: input, shape index: {}]   ;;  %s2667_s5 = inlined_call_operand.vmem [shape: bf16[512,128], index: 5, kind: output, shape index: {}]  }
   0x1   :  { %s2238_s20 = smov 0  }
   0x2 LB: > { %s27_s21 = sadd.s32 1, %s2198_s19  ;;  %p1505_p0 = scmp.ge.s32.totalorder %s2202_s20, 1  ;;  %s2202_s20 = sphi %s2238_s20, %s15_s20   ;;  %s2198_s19 = sphi %s2236_s19, %s2669_s19   ;;  %s2194_s18 = sphi %s2234_s18, %s2668_s18  }
   0x3   : > { %p29_p1 = scmp.ge.s32.totalorder %s27_s21, 2  ;;  %p244_p2 = scmp.lt.s32.totalorder %s2202_s20, 3 }
   0x5   : > { %s2671_s21 = smov (%p29_p1, %s27_s21), 0  ;;  %p245_p3 = pnand %p1505_p0, %p244_p2 }
   0x6   : > { %v1988_v0 = vld [vmem:[%s2663_s1 + $0x40] sm:$0xff] (!%p245_p3)   ;;  %s1506_s24 = sshll.u32 (!%p245_p3), %s2194_s18, 5  ;;  %v1990_v2 = vld [vmem:[%s2663_s1 + $0x48] sm:$0xff] (!%p245_p3)   ;;  %v1992_v4 = vld [vmem:[%s2663_s1 + $0x50] sm:$0xff] (!%p245_p3)  }
   0x7   : > { %248 = sbr.rel (%p245_p3) target bundleno = 360 (0x168), region = 40  ;;  %v1989_v1 = vld [vmem:[%s2663_s1] sm:$0xff] (!%p245_p3)   ;;  %1836 = vmatprep.subr.bf16.mxu0 (!%p245_p3), %v1988_v0  ;;  %1948 = vmatprep.subr.bf16.mxu1 (!%p245_p3), %v1988_v0  ;;  %v1991_v3 = vld [vmem:[%s2663_s1 + $0x8] sm:$0xff] (!%p245_p3)   ;;  %p295_p4 = scmp.lt.s32.totalorder (!%p245_p3), %s1506_s24, 63  ;;  %v1993_v5 = vld [vmem:[%s2663_s1 + $0x10] sm:$0xff] (!%p245_p3)  }
   0x8   : > { %1837 = vmatpush3.bf16.msra.mxu0 (!%p245_p3), %v1989_v1  ;;  %1956 = vmatpush3.bf16.msra.mxu1 (!%p245_p3), %v1989_v1  ;;  %v1994_v6 = vld [vmem:[%s2663_s1 + $0x58] sm:$0xff] (!%p245_p3)   ;;  %v1996_v8 = vld [vmem:[%s2663_s1 + $0x60] sm:$0xff] (!%p245_p3)   ;;  %v1998_v10 = vld [vmem:[%s2663_s1 + $0x68] sm:$0xff] (!%p245_p3)  }
   0x9   : > { %1838 = vmatprep.subr.bf16.mxu0 (!%p245_p3), %v1990_v2  ;;  %1949 = vmatprep.subr.bf16.mxu1 (!%p245_p3), %v1990_v2  ;;  %v1995_v7 = vld [vmem:[%s2663_s1 + $0x18] sm:$0xff] (!%p245_p3)   ;;  %v1997_v9 = vld [vmem:[%s2663_s1 + $0x20] sm:$0xff] (!%p245_p3)   ;;  %v1999_v13 = vld [vmem:[%s2663_s1 + $0x28] sm:$0xff] (!%p245_p3)  }
   0xa   : > { %v2000_v14 = vld [vmem:[%s2663_s1 + $0x70] sm:$0xff] (!%p245_p3)   ;;  %v2002_v16 = vld [vmem:[%s2663_s1 + $0x78] sm:$0xff] (!%p245_p3)   ;;  %v2343_v51 = vld [vmem:[%s2664_s2] ss:$0 sm:$0xff] (!%p245_p3) }
   0xb   : > { %v2001_v15 = vld [vmem:[%s2663_s1 + $0x30] sm:$0xff] (!%p245_p3)   ;;  %v2003_v17 = vld [vmem:[%s2663_s1 + $0x38] sm:$0xff] (!%p245_p3)   ;;  %v2348_v57 = vld [vmem:[%s2665_s3] ss:$0 sm:$0xff] (!%p245_p3) }
   0xc   : > { %1839 = vmatpush3.bf16.msra.mxu0 (!%p245_p3), %v1991_v3  ;;  %1957 = vmatpush3.bf16.msra.mxu1 (!%p245_p3), %v1991_v3 }
   0xd   : > { %1840 = vmatprep.subr.bf16.mxu0 (!%p245_p3), %v1992_v4  ;;  %1950 = vmatprep.subr.bf16.mxu1 (!%p245_p3), %v1992_v4 }
   0xe   : > { %s2673_s24 = smov (!%p295_p4, %s1506_s24), 63 }
   0xf   : > { %s1629_s14 = sshll.u32 %s2673_s24, 3  ;;  %s1510_s17 = sshll.u32 %s2673_s24, 2 }
  0x10   : > { %1841 = vmatpush3.bf16.msra.mxu0 %v1993_v5  ;;  %1958 = vmatpush3.bf16.msra.mxu1 %v1993_v5  ;;  %s2285_s22 = scalar_lea.vmem %s2662_s0, %s1629_s14  ;;  %s2374_s23 = scalar_lea.vmem %s2666_s4, %s1510_s17 }
  0x11   : > { %1842 = vmatprep.subr.bf16.mxu0 %v1994_v6  ;;  %1951 = vmatprep.subr.bf16.mxu1 %v1994_v6  ;;  %v2006_v11 = vld [vmem:[%s2285_s22 + $0x4] ss:$8 sps:$4 sm:$0xff]   ;;  %v2004_v18 = vld [vmem:[%s2285_s22] ss:$8 sps:$4 sm:$0xff]   ;;  %v2010_v20 = vld [vmem:[%s2285_s22 + $0x14] ss:$8 sps:$4 sm:$0xff]   ;;  %s2497_s27 = scalar_lea.vmem %s2667_s5, %s1510_s17 }
  0x12   : > { %v2009_v12 = vld [vmem:[%s2285_s22 + $0x84] ss:$8 sps:$4 sm:$0xff]   ;;  %682 = vmatprep.mubr.bf16.mxu0 %v2006_v11  ;;  %v2007_v19 = vld [vmem:[%s2285_s22 + $0x80] ss:$8 sps:$4 sm:$0xff]   ;;  %v2012_v21 = vld [vmem:[%s2285_s22 + $0x94] ss:$8 sps:$4 sm:$0xff]  }
  0x13   : > { %746 = vmatprep.mubr.bf16.mxu1 %v2009_v12  ;;  %v2014_v22 = vld [vmem:[%s2285_s22 + $0x10] ss:$8 sps:$4 sm:$0xff]   ;;  %v2016_v24 = vld [vmem:[%s2285_s22 + $0x24] ss:$8 sps:$4 sm:$0xff]   ;;  %v2020_v26 = vld [vmem:[%s2285_s22 + $0x20] ss:$8 sps:$4 sm:$0xff]  }
  0x14   : > { %1843 = vmatpush3.bf16.msra.mxu0 %v1995_v7  ;;  %1959 = vmatpush3.bf16.msra.mxu1 %v1995_v7  ;;  %v2015_v23 = vld [vmem:[%s2285_s22 + $0x90] ss:$8 sps:$4 sm:$0xff]   ;;  %v2018_v25 = vld [vmem:[%s2285_s22 + $0xa4] ss:$8 sps:$4 sm:$0xff]   ;;  %v2021_v27 = vld [vmem:[%s2285_s22 + $0xa0] ss:$8 sps:$4 sm:$0xff]  }
  0x15   : > { %1844 = vmatprep.subr.bf16.mxu0 %v1996_v8  ;;  %1952 = vmatprep.subr.bf16.mxu1 %v1996_v8  ;;  %v2022_v28 = vld [vmem:[%s2285_s22 + $0x34] ss:$8 sps:$4 sm:$0xff]   ;;  %v2026_v30 = vld [vmem:[%s2285_s22 + $0x30] ss:$8 sps:$4 sm:$0xff]   ;;  %v2028_v32 = vld [vmem:[%s2285_s22 + $0x44] ss:$8 sps:$4 sm:$0xff]  }
  0x16   : > { %v2024_v29 = vld [vmem:[%s2285_s22 + $0xb4] ss:$8 sps:$4 sm:$0xff]   ;;  %v2027_v31 = vld [vmem:[%s2285_s22 + $0xb0] ss:$8 sps:$4 sm:$0xff]   ;;  %v2030_v33 = vld [vmem:[%s2285_s22 + $0xc4] ss:$8 sps:$4 sm:$0xff]  }
  0x17   : > { %v2032_v34 = vld [vmem:[%s2285_s22 + $0x40] ss:$8 sps:$4 sm:$0xff]   ;;  %v2034_v36 = vld [vmem:[%s2285_s22 + $0x54] ss:$8 sps:$4 sm:$0xff]   ;;  %v2038_v38 = vld [vmem:[%s2285_s22 + $0x50] ss:$8 sps:$4 sm:$0xff]  }
  0x18   : > { %1845 = vmatpush3.bf16.msra.mxu0 %v1997_v9  ;;  %1960 = vmatpush3.bf16.msra.mxu1 %v1997_v9  ;;  %v2033_v35 = vld [vmem:[%s2285_s22 + $0xc0] ss:$8 sps:$4 sm:$0xff]   ;;  %v2036_v37 = vld [vmem:[%s2285_s22 + $0xd4] ss:$8 sps:$4 sm:$0xff]   ;;  %v2039_v39 = vld [vmem:[%s2285_s22 + $0xd0] ss:$8 sps:$4 sm:$0xff]  }
  0x19   : > { %1846 = vmatprep.subr.bf16.mxu0 %v1998_v10  ;;  %1953 = vmatprep.subr.bf16.mxu1 %v1998_v10  ;;  %v2040_v40 = vld [vmem:[%s2285_s22 + $0x64] ss:$8 sps:$4 sm:$0xff]   ;;  %v2044_v42 = vld [vmem:[%s2285_s22 + $0x60] ss:$8 sps:$4 sm:$0xff]   ;;  %v2046_v44 = vld [vmem:[%s2285_s22 + $0x74] ss:$8 sps:$4 sm:$0xff]  }
  0x1a   : > { %v2042_v41 = vld [vmem:[%s2285_s22 + $0xe4] ss:$8 sps:$4 sm:$0xff]   ;;  %v2045_v43 = vld [vmem:[%s2285_s22 + $0xe0] ss:$8 sps:$4 sm:$0xff]   ;;  %v2048_v45 = vld [vmem:[%s2285_s22 + $0xf4] ss:$8 sps:$4 sm:$0xff]  }
  0x1b   : > { %v2050_v46 = vld [vmem:[%s2285_s22 + $0x70] ss:$8 sps:$4 sm:$0xff]  }
  0x1c   : > { %1847 = vmatpush3.bf16.msra.mxu0 %v1999_v13  ;;  %1961 = vmatpush3.bf16.msra.mxu1 %v1999_v13  ;;  %v2051_v47 = vld [vmem:[%s2285_s22 + $0xf0] ss:$8 sps:$4 sm:$0xff]  }
  0x1d   : > { %1848 = vmatprep.subr.bf16.mxu0 %v2000_v14  ;;  %1954 = vmatprep.subr.bf16.mxu1 %v2000_v14 }
  0x20   : > { %1849 = vmatpush3.bf16.msra.mxu0 %v2001_v15  ;;  %1962 = vmatpush3.bf16.msra.mxu1 %v2001_v15 }
  0x21   : > { %1850 = vmatprep.subr.bf16.mxu0 %v2002_v16  ;;  %1955 = vmatprep.subr.bf16.mxu1 %v2002_v16 }
  0x24   : > { %1851 = vmatpush3.bf16.msra.mxu0 %v2003_v17  ;;  %1963 = vmatpush3.bf16.msra.mxu1 %v2003_v17 }
  0x27   : > { %683 = vmatmul.mubr.bf16.vlgmr.msra.gmra.mrb[0].mxu0 %v2004_v18  ;;  %747 = vmatmul.mubr.bf16.vlgmr.msra.gmra.mrb[0].mxu1 %v2007_v19 }
  0x28   : > { %690 = vmatprep.mubr.bf16.mxu0 %v2010_v20  ;;  %754 = vmatprep.mubr.bf16.mxu1 %v2012_v21  ;;  %v2379_v20 = vld [vmem:[%s2374_s23] sm:$0xff]  }
  0x29   : > { %v2382_v21 = vld [vmem:[%s2374_s23 + $0x40] sm:$0xff]  }
  0x2f   : > { %691 = vmatmul.mubr.bf16.gmra.mrb[4].mxu0 %v2014_v22  ;;  %755 = vmatmul.mubr.bf16.gmra.mrb[4].mxu1 %v2015_v23 }
  0x30   : > { %698 = vmatprep.mubr.bf16.mxu0 %v2016_v24  ;;  %762 = vmatprep.mubr.bf16.mxu1 %v2018_v25 }
  0x37   : > { %699 = vmatmul.mubr.bf16.gmra.mrb[8].mxu0 %v2020_v26  ;;  %763 = vmatmul.mubr.bf16.gmra.mrb[8].mxu1 %v2021_v27  ;;  %v2390_v27 = vld [vmem:[%s2374_s23 + $0x8] sm:$0xff]  }
  0x38   : > { %706 = vmatprep.mubr.bf16.mxu0 %v2022_v28  ;;  %770 = vmatprep.mubr.bf16.mxu1 %v2024_v29  ;;  %v2393_v28 = vld [vmem:[%s2374_s23 + $0x48] sm:$0xff]  }
  0x3f   : > { %707 = vmatmul.mubr.bf16.gmra.mrb[12].mxu0 %v2026_v30  ;;  %771 = vmatmul.mubr.bf16.gmra.mrb[12].mxu1 %v2027_v31  ;;  %v1664_v31 = vunpack.c.l.bf16 %v2379_v20 }
  0x40   : > { %714 = vmatprep.mubr.bf16.mxu0 %v2028_v32  ;;  %778 = vmatprep.mubr.bf16.mxu1 %v2030_v33  ;;  %v1696_v32 = vunpack.c.l.bf16 %v2382_v21 }
  0x47   : > { %715 = vmatmul.mubr.bf16.gmra.mrb[16].mxu0 %v2032_v34  ;;  %779 = vmatmul.mubr.bf16.gmra.mrb[16].mxu1 %v2033_v35  ;;  %v1665_v34 = vunpack.c.h.bf16 %v2379_v20 }
  0x48   : > { %722 = vmatprep.mubr.bf16.mxu0 %v2034_v36  ;;  %786 = vmatprep.mubr.bf16.mxu1 %v2036_v37 }
  0x4f   : > { %723 = vmatmul.mubr.bf16.gmra.mrb[20].mxu0 %v2038_v38  ;;  %787 = vmatmul.mubr.bf16.gmra.mrb[20].mxu1 %v2039_v39 }
  0x50   : > { %730 = vmatprep.mubr.bf16.mxu0 %v2040_v40  ;;  %794 = vmatprep.mubr.bf16.mxu1 %v2042_v41  ;;  %v1697_v40 = vunpack.c.h.bf16 %v2382_v21  ;;  %v1668_v41 = vunpack.c.l.bf16 %v2390_v27 }
  0x57   : > { %731 = vmatmul.mubr.bf16.gmra.mrb[24].mxu0 %v2044_v42  ;;  %795 = vmatmul.mubr.bf16.gmra.mrb[24].mxu1 %v2045_v43  ;;  %v1700_v43 = vunpack.c.l.bf16 %v2393_v28 }
  0x58   : > { %738 = vmatprep.mubr.bf16.mxu0 %v2046_v44  ;;  %802 = vmatprep.mubr.bf16.mxu1 %v2048_v45  ;;  %v2415_v45 = vld [vmem:[%s2374_s23 + $0x10] sm:$0xff]  }
  0x5f   : > { %739 = vmatmul.mubr.bf16.gmra.mrb[28].mxu0 %v2050_v46  ;;  %803 = vmatmul.mubr.bf16.gmra.mrb[28].mxu1 %v2051_v47 }
  0xfa   : > { %v1852_v48 = vpop.f32.mrb[0].mxu0  ;;  %v1900_v49 = vpop.f32.mrb[0].mxu1 }
  0xfb   : > { %v1853_v50 = vpop.f32.mrb[1].mxu0  ;;  %v1901_v52 = vpop.f32.mrb[1].mxu1 }
  0xfc   : > { %v1854_v53 = vadd.f32 %v1853_v50, %v1852_v48  ;;  %v1902_v54 = vadd.f32 %v1901_v52, %v1900_v49  ;;  %v1855_v55 = vpop.f32.mrb[2].mxu0  ;;  %v1903_v56 = vpop.f32.mrb[2].mxu1 }
  0xfd   : > { %v1856_v58 = vpop.f32.mrb[3].mxu0  ;;  %v1904_v59 = vpop.f32.mrb[3].mxu1 }
  0xfe   : > { %v818_v60 = vmul.f32 %v1854_v53, %v2343_v51  ;;  %v834_v61 = vmul.f32 %v1902_v54, %v2343_v51  ;;  %v1857_v62 = vadd.f32 %v1856_v58, %v1855_v55  ;;  %v1905_v63 = vadd.f32 %v1904_v59, %v1903_v56 }
  0xff   : > { %v1669_v53 = vunpack.c.h.bf16 %v2390_v27  ;;  %v1701_v54 = vunpack.c.h.bf16 %v2393_v28 }
 0x100   : > { %v2354_v0 = vadd.f32 %v2348_v57, %v818_v60  ;;  %v2357_v1 = vadd.f32 %v2348_v57, %v834_v61  ;;  %v819_v2 = vmul.f32 %v1857_v62, %v2343_v51  ;;  %v835_v3 = vmul.f32 %v1905_v63, %v2343_v51  ;;  %v2423_v61 = vld [vmem:[%s2374_s23 + $0x50] sm:$0xff]  }
 0x102   : > { %v1563_v4 = vmul.f32 -1.442695, %v2354_v0  ;;  %v1579_v5 = vmul.f32 -1.442695, %v2357_v1  ;;  %v2364_v6 = vadd.f32 %v2348_v57, %v819_v2  ;;  %v2367_v7 = vadd.f32 %v2348_v57, %v835_v3  ;;  %v1858_v8 = vpop.f32.mrb[4].mxu0  ;;  %v1906_v9 = vpop.f32.mrb[4].mxu1 }
 0x103   : > { %v1859_v10 = vpop.f32.mrb[5].mxu0  ;;  %v1907_v11 = vpop.f32.mrb[5].mxu1 }
 0x104   : > { %2052 = vpow2.f32 %v1563_v4  ;;  %v1564_v12 = vmul.f32 -1.442695, %v2364_v6  ;;  %v1580_v13 = vmul.f32 -1.442695, %v2367_v7  ;;  %v1860_v14 = vadd.f32 %v1859_v10, %v1858_v8  ;;  %v1861_v15 = vpop.f32.mrb[6].mxu0  ;;  %v1909_v16 = vpop.f32.mrb[6].mxu1 }
 0x105   : > { %2054 = vpow2.f32 %v1579_v5  ;;  %v1908_v17 = vadd.f32 %v1907_v11, %v1906_v9  ;;  %v1862_v18 = vpop.f32.mrb[7].mxu0  ;;  %v1910_v19 = vpop.f32.mrb[7].mxu1  ;;  %v1672_v4 = vunpack.c.l.bf16 %v2415_v45 }
 0x106   : > { %2056 = vpow2.f32 %v1564_v12  ;;  %v820_v22 = vmul.f32 %v1860_v14, %v2343_v51  ;;  %v1863_v23 = vadd.f32 %v1862_v18, %v1861_v15  ;;  %v1911_v24 = vadd.f32 %v1910_v19, %v1909_v16 }
 0x107   : > { %2058 = vpow2.f32 %v1580_v13  ;;  %v836_v25 = vmul.f32 %v1908_v17, %v2343_v51  ;;  %v1704_v16 = vunpack.c.l.bf16 %v2423_v61 }
 0x108   : > { %v2387_v26 = vadd.f32 %v2348_v57, %v820_v22  ;;  %v821_v29 = vmul.f32 %v1863_v23, %v2343_v51  ;;  %v837_v30 = vmul.f32 %v1911_v24, %v2343_v51  ;;  %v2441_v24 = vld [vmem:[%s2374_s23 + $0x18] sm:$0xff]  }
 0x109   : > { %v2400_v33 = vadd.f32 %v2348_v57, %v836_v25 }
 0x10a   : > { %v1565_v35 = vmul.f32 -1.442695, %v2387_v26  ;;  %v2405_v36 = vadd.f32 %v2348_v57, %v821_v29  ;;  %v2408_v37 = vadd.f32 %v2348_v57, %v837_v30  ;;  %v1864_v38 = vpop.f32.mrb[8].mxu0  ;;  %v1912_v39 = vpop.f32.mrb[8].mxu1  ;;  %v1673_v29 = vunpack.c.h.bf16 %v2415_v45 }
 0x10b   : > { %v1581_v42 = vmul.f32 -1.442695, %v2400_v33  ;;  %v1865_v44 = vpop.f32.mrb[9].mxu0  ;;  %v1913_v46 = vpop.f32.mrb[9].mxu1 }
 0x10c   : > { %2060 = vpow2.f32 %v1565_v35  ;;  %v1566_v47 = vmul.f32 -1.442695, %v2405_v36  ;;  %v1582_v48 = vmul.f32 -1.442695, %v2408_v37  ;;  %v1866_v49 = vadd.f32 %v1865_v44, %v1864_v38  ;;  %v1867_v50 = vpop.f32.mrb[10].mxu0  ;;  %v1915_v52 = vpop.f32.mrb[10].mxu1 }
 0x10d   : > { %2062 = vpow2.f32 %v1581_v42  ;;  %v1914_v55 = vadd.f32 %v1913_v46, %v1912_v39  ;;  %v1868_v56 = vpop.f32.mrb[11].mxu0  ;;  %v1916_v58 = vpop.f32.mrb[11].mxu1  ;;  %v2450_v46 = vld [vmem:[%s2374_s23 + $0x58] sm:$0xff]  }
 0x10e   : > { %v2053_v59 = vpop.eup %2052  ;;  %2064 = vpow2.f32 %v1566_v47  ;;  %v822_v60 = vmul.f32 %v1866_v49, %v2343_v51  ;;  %v1869_v62 = vadd.f32 %v1868_v56, %v1867_v50  ;;  %v1917_v63 = vadd.f32 %v1916_v58, %v1915_v52 }
 0x10f   : > { %v2055_v2 = vpop.eup %2054  ;;  %v985_v3 = vadd.f32 1.0, %v2053_v59  ;;  %2066 = vpow2.f32 %v1582_v48  ;;  %v838_v5 = vmul.f32 %v1914_v55, %v2343_v51  ;;  %v1705_v50 = vunpack.c.h.bf16 %v2423_v61 }
 0x110   : > { %v2057_v8 = vpop.eup %2056  ;;  %v1001_v9 = vadd.f32 1.0, %v2055_v2  ;;  %v2428_v10 = vadd.f32 %v2348_v57, %v822_v60  ;;  %v823_v11 = vmul.f32 %v1869_v62, %v2343_v51  ;;  %v839_v12 = vmul.f32 %v1917_v63, %v2343_v51 }
 0x111   : > { %v2059_v13 = vpop.eup %2058  ;;  %2068 = vrcp.f32 %v985_v3  ;;  %v986_v14 = vadd.f32 1.0, %v2057_v8  ;;  %v2433_v15 = vadd.f32 %v2348_v57, %v838_v5  ;;  %v1676_v52 = vunpack.c.l.bf16 %v2441_v24 }
 0x112   : > { %2070 = vrcp.f32 %v1001_v9  ;;  %v1002_v17 = vadd.f32 1.0, %v2059_v13  ;;  %v1567_v18 = vmul.f32 -1.442695, %v2428_v10  ;;  %v2438_v19 = vadd.f32 %v2348_v57, %v823_v11  ;;  %v1870_v22 = vpop.f32.mrb[12].mxu0  ;;  %v1918_v23 = vpop.f32.mrb[12].mxu1 }
 0x113   : > { %2072 = vrcp.f32 %v986_v14  ;;  %v1583_v25 = vmul.f32 -1.442695, %v2433_v15  ;;  %v2446_v30 = vadd.f32 %v2348_v57, %v839_v12  ;;  %v1871_v35 = vpop.f32.mrb[13].mxu0  ;;  %v1919_v38 = vpop.f32.mrb[13].mxu1  ;;  %v1708_v3 = vunpack.c.l.bf16 %v2450_v46 }
 0x114   : > { %2074 = vrcp.f32 %v1002_v17  ;;  %v1568_v39 = vmul.f32 -1.442695, %v2438_v19  ;;  %v1872_v42 = vadd.f32 %v1871_v35, %v1870_v22  ;;  %v1920_v44 = vadd.f32 %v1919_v38, %v1918_v23  ;;  %v1873_v47 = vpop.f32.mrb[14].mxu0  ;;  %v1921_v48 = vpop.f32.mrb[14].mxu1 }
 0x115   : > { %2076 = vpow2.f32 %v1567_v18  ;;  %v1584_v49 = vmul.f32 -1.442695, %v2446_v30  ;;  %v1874_v55 = vpop.f32.mrb[15].mxu0  ;;  %v1922_v56 = vpop.f32.mrb[15].mxu1 }
 0x116   : > { %v2061_v58 = vpop.eup %2060  ;;  %2078 = vpow2.f32 %v1583_v25  ;;  %v824_v59 = vmul.f32 %v1872_v42, %v2343_v51  ;;  %v840_v60 = vmul.f32 %v1920_v44, %v2343_v51  ;;  %v1875_v62 = vadd.f32 %v1874_v55, %v1873_v47 }
 0x117   : > { %v2063_v63 = vpop.eup %2062  ;;  %v987_v2 = vadd.f32 1.0, %v2061_v58  ;;  %2080 = vpow2.f32 %v1568_v39  ;;  %v1923_v5 = vadd.f32 %v1922_v56, %v1921_v48  ;;  %v1677_v42 = vunpack.c.h.bf16 %v2441_v24 }
 0x118   : > { %v2065_v8 = vpop.eup %2064  ;;  %v1003_v9 = vadd.f32 1.0, %v2063_v63  ;;  %2082 = vpow2.f32 %v1584_v49  ;;  %v2459_v11 = vadd.f32 %v2348_v57, %v824_v59  ;;  %v2462_v12 = vadd.f32 %v2348_v57, %v840_v60 }
 0x119   : > { %v2067_v13 = vpop.eup %2066  ;;  %2084 = vrcp.f32 %v987_v2  ;;  %v988_v14 = vadd.f32 1.0, %v2065_v8  ;;  %v825_v17 = vmul.f32 %v1875_v62, %v2343_v51  ;;  %v841_v18 = vmul.f32 %v1923_v5, %v2343_v51 }
 0x11a   : > { %2086 = vrcp.f32 %v1003_v9  ;;  %v1004_v22 = vadd.f32 1.0, %v2067_v13  ;;  %v1569_v23 = vmul.f32 -1.442695, %v2459_v11  ;;  %v1585_v25 = vmul.f32 -1.442695, %v2462_v12  ;;  %v1876_v35 = vpop.f32.mrb[16].mxu0 }
 0x11b   : > { %v2069_v38 = vpop.eup %2068  ;;  %2088 = vrcp.f32 %v988_v14  ;;  %v2469_v39 = vadd.f32 %v2348_v57, %v825_v17  ;;  %v2473_v44 = vadd.f32 %v2348_v57, %v841_v18  ;;  %v1924_v47 = vpop.f32.mrb[16].mxu1  ;;  %v1709_v56 = vunpack.c.h.bf16 %v2450_v46 }
 0x11c   : > { %v1877_v48 = vpop.f32.mrb[17].mxu0  ;;  %v2071_v49 = vpop.eup %2070  ;;  %v1081_v55 = vmul.f32 %v2069_v38, %v2354_v0  ;;  %2090 = vrcp.f32 %v1004_v22 }
 0x11d   : > { %v1878_v58 = vadd.f32 %v1877_v48, %v1876_v35  ;;  %v1925_v59 = vpop.f32.mrb[17].mxu1  ;;  %v1879_v60 = vpop.f32.mrb[18].mxu0  ;;  %v1097_v63 = vmul.f32 %v2071_v49, %v2357_v1  ;;  %2092 = vpow2.f32 %v1569_v23  ;;  %v1570_v2 = vmul.f32 -1.442695, %v2469_v39 }
 0x11e   : > { %v2073_v62 = vpop.eup %2072  ;;  %v1586_v5 = vmul.f32 -1.442695, %v2473_v44  ;;  %v1927_v8 = vpop.f32.mrb[18].mxu1  ;;  %v1177_v0 = vadd.f32 %v1664_v31, %v1081_v55  ;;  %2094 = vpow2.f32 %v1585_v25  ;;  %v1926_v35 = vadd.f32 %v1925_v59, %v1924_v47 }
 0x11f   : > { %v1880_v9 = vpop.f32.mrb[19].mxu0  ;;  %v2075_v13 = vpop.eup %2074  ;;  %v1082_v14 = vmul.f32 %v2073_v62, %v2364_v6  ;;  %v826_v17 = vmul.f32 %v1878_v58, %v2343_v51  ;;  %v1193_v1 = vadd.f32 %v1696_v32, %v1097_v63  ;;  %2096 = vpow2.f32 %v1570_v2 }
 0x120   : > { %v1928_v18 = vpop.f32.mrb[19].mxu1  ;;  %v2077_v22 = vpop.eup %2076  ;;  %v1098_v23 = vmul.f32 %v2075_v13, %v2367_v7  ;;  %2098 = vpow2.f32 %v1586_v5  ;;  %v842_v47 = vmul.f32 %v1926_v35, %v2343_v51  ;;  %v1881_v20 = vadd.f32 %v1880_v9, %v1879_v60 }
 0x121   : > { %v2079_v38 = vpop.eup %2078  ;;  %v1178_v48 = vadd.f32 %v1665_v34, %v1082_v14  ;;  %v989_v31 = vadd.f32 1.0, %v2077_v22  ;;  %v2490_v6 = vadd.f32 %v2348_v57, %v826_v17  ;;  %v1929_v14 = vadd.f32 %v1928_v18, %v1927_v8 }
 0x122   : > { %v2081_v25 = vpop.eup %2080  ;;  %v1194_v7 = vadd.f32 %v1697_v40, %v1098_v23  ;;  %v1005_v32 = vadd.f32 1.0, %v2079_v38  ;;  %v1882_v59 = vpop.f32.mrb[20].mxu0  ;;  %v2504_v21 = vadd.f32 %v2348_v57, %v842_v47 }
 0x123   : > { %v2083_v34 = vpop.eup %2082  ;;  %v1729_v49 = vpack.c.bf16 %v1178_v48, %v1177_v0  ;;  %2100 = vrcp.f32 %v989_v31  ;;  %v990_v55 = vadd.f32 1.0, %v2081_v25  ;;  %v1571_v58 = vmul.f32 -1.442695, %v2490_v6  ;;  %v1930_v62 = vpop.f32.mrb[20].mxu1 }
 0x124   : > { %v2085_v63 = vpop.eup %2084  ;;  %v1769_v2 = vpack.c.bf16 %v1194_v7, %v1193_v1  ;;  %2102 = vrcp.f32 %v1005_v32  ;;  %v1006_v5 = vadd.f32 1.0, %v2083_v34  ;;  %v1883_v40 = vpop.f32.mrb[21].mxu0  ;;  %v827_v0 = vmul.f32 %v1881_v20, %v2343_v51 }
 0x125   : > { %v1931_v13 = vpop.f32.mrb[21].mxu1  ;;  %v2087_v60 = vpop.eup %2086  ;;  %1730 = vst [vmem:[%s2497_s27] sm:$0xff] %v1729_v49   ;;  %v1083_v9 = vmul.f32 %v2085_v63, %v2387_v26  ;;  %2104 = vrcp.f32 %v990_v55  ;;  %v1587_v35 = vmul.f32 -1.442695, %v2504_v21  ;;  %v1884_v38 = vadd.f32 %v1883_v40, %v1882_v59 }
 0x126   : > { %v1885_v17 = vpop.f32.mrb[22].mxu0  ;;  %v1933_v22 = vpop.f32.mrb[22].mxu1  ;;  %1828 = vst [vmem:[%s2497_s27 + $0x40] sm:$0xff] %v1769_v2   ;;  %v1099_v1 = vmul.f32 %v2087_v60, %v2400_v33  ;;  %2106 = vrcp.f32 %v1006_v5  ;;  %v2516_v8 = vadd.f32 %v2348_v57, %v827_v0  ;;  %v843_v47 = vmul.f32 %v1929_v14, %v2343_v51 }
 0x127   : > { %v2089_v23 = vpop.eup %2088  ;;  %v1886_v48 = vpop.f32.mrb[23].mxu0  ;;  %v1179_v26 = vadd.f32 %v1668_v41, %v1083_v9  ;;  %2108 = vpow2.f32 %v1571_v58  ;;  %v828_v49 = vmul.f32 %v1884_v38, %v2343_v51 }
 0x128   : > { %v1934_v31 = vpop.f32.mrb[23].mxu1  ;;  %v2091_v25 = vpop.eup %2090  ;;  %v1084_v7 = vmul.f32 %v2089_v23, %v2405_v36  ;;  %v1195_v33 = vadd.f32 %v1700_v43, %v1099_v1  ;;  %2110 = vpow2.f32 %v1587_v35  ;;  %v1572_v36 = vmul.f32 -1.442695, %v2516_v8 }
 0x129   : > { %v2093_v18 = vpop.eup %2092  ;;  %v1100_v32 = vmul.f32 %v2091_v25, %v2408_v37  ;;  %v2529_v43 = vadd.f32 %v2348_v57, %v843_v47  ;;  %v1932_v37 = vadd.f32 %v1931_v13, %v1930_v62  ;;  %v1887_v23 = vadd.f32 %v1886_v48, %v1885_v17 }
 0x12a   : > { %v2095_v20 = vpop.eup %2094  ;;  %v1180_v34 = vadd.f32 %v1669_v53, %v1084_v7  ;;  %v991_v41 = vadd.f32 1.0, %v2093_v18  ;;  %v2532_v53 = vadd.f32 %v2348_v57, %v828_v49  ;;  %v1888_v5 = vpop.f32.mrb[24].mxu0 }
 0x12b   : > { %v2097_v55 = vpop.eup %2096  ;;  %v1196_v58 = vadd.f32 %v1701_v54, %v1100_v32  ;;  %v1007_v59 = vadd.f32 1.0, %v2095_v20  ;;  %v1936_v40 = vpop.f32.mrb[24].mxu1  ;;  %v1588_v54 = vmul.f32 -1.442695, %v2529_v43  ;;  %v844_v13 = vmul.f32 %v1932_v37, %v2343_v51 }
 0x12c   : > { %v2099_v63 = vpop.eup %2098  ;;  %v1734_v2 = vpack.c.bf16 %v1180_v34, %v1179_v26  ;;  %2112 = vrcp.f32 %v991_v41  ;;  %v992_v27 = vadd.f32 1.0, %v2097_v55  ;;  %v1889_v9 = vpop.f32.mrb[25].mxu0  ;;  %v1573_v62 = vmul.f32 -1.442695, %v2532_v53 }
 0x12d   : > { %v1774_v60 = vpack.c.bf16 %v1196_v58, %v1195_v33  ;;  %2114 = vrcp.f32 %v1007_v59  ;;  %v1008_v28 = vadd.f32 1.0, %v2099_v63  ;;  %v1937_v0 = vpop.f32.mrb[25].mxu1  ;;  %v2101_v14 = vpop.eup %2100  ;;  %v1935_v26 = vadd.f32 %v1934_v31, %v1933_v22 }
 0x12e   : > { %1821 = vst [vmem:[%s2497_s27 + $0x8] sm:$0xff] %v1734_v2   ;;  %2116 = vrcp.f32 %v992_v27  ;;  %v1891_v1 = vpop.f32.mrb[26].mxu0  ;;  %v1939_v35 = vpop.f32.mrb[26].mxu1  ;;  %v1085_v25 = vmul.f32 %v2101_v14, %v2428_v10  ;;  %v1890_v7 = vadd.f32 %v1889_v9, %v1888_v5  ;;  %v2542_v20 = vadd.f32 %v2348_v57, %v844_v13 }
 0x12f   : > { %v2103_v38 = vpop.eup %2102  ;;  %1829 = vst [vmem:[%s2497_s27 + $0x48] sm:$0xff] %v1774_v60   ;;  %2118 = vrcp.f32 %v1008_v28  ;;  %v1892_v18 = vpop.f32.mrb[27].mxu0  ;;  %v829_v17 = vmul.f32 %v1887_v23, %v2343_v51  ;;  %v845_v22 = vmul.f32 %v1935_v26, %v2343_v51 }
 0x130   : > { %v1940_v33 = vpop.f32.mrb[27].mxu1  ;;  %v2105_v32 = vpop.eup %2104  ;;  %v1101_v47 = vmul.f32 %v2103_v38, %v2433_v15  ;;  %2120 = vpow2.f32 %v1572_v36  ;;  %v1181_v34 = vadd.f32 %v1672_v4, %v1085_v25  ;;  %v1589_v36 = vmul.f32 -1.442695, %v2542_v20 }
 0x131   : > { %v2107_v48 = vpop.eup %2106  ;;  %v1086_v10 = vmul.f32 %v2105_v32, %v2438_v19  ;;  %2122 = vpow2.f32 %v1588_v54  ;;  %v2556_v4 = vadd.f32 %v2348_v57, %v829_v17  ;;  %v2559_v19 = vadd.f32 %v2348_v57, %v845_v22 }
 0x132   : > { %v2109_v31 = vpop.eup %2108  ;;  %v1197_v41 = vadd.f32 %v1704_v16, %v1101_v47  ;;  %v1102_v15 = vmul.f32 %v2107_v48, %v2446_v30  ;;  %2124 = vpow2.f32 %v1573_v62  ;;  %v830_v30 = vmul.f32 %v1890_v7, %v2343_v51  ;;  %v1894_v37 = vpop.f32.mrb[28].mxu0 }
 0x133   : > { %v2111_v49 = vpop.eup %2110  ;;  %v1182_v55 = vadd.f32 %v1673_v29, %v1086_v10  ;;  %v993_v58 = vadd.f32 1.0, %v2109_v31  ;;  %2126 = vpow2.f32 %v1589_v36  ;;  %v1942_v63 = vpop.f32.mrb[28].mxu1  ;;  %v1574_v45 = vmul.f32 -1.442695, %v2556_v4 }
 0x134   : > { %v1198_v59 = vadd.f32 %v1705_v50, %v1102_v15  ;;  %v1009_v16 = vadd.f32 1.0, %v2111_v49  ;;  %v1590_v29 = vmul.f32 -1.442695, %v2559_v19  ;;  %v1895_v27 = vpop.f32.mrb[29].mxu0  ;;  %v1943_v5 = vpop.f32.mrb[29].mxu1  ;;  %v2567_v61 = vadd.f32 %v2348_v57, %v830_v30 }
 0x135   : > { %v1739_v2 = vpack.c.bf16 %v1182_v55, %v1181_v34  ;;  %2128 = vrcp.f32 %v993_v58  ;;  %v1938_v50 = vadd.f32 %v1937_v0, %v1936_v40  ;;  %v1897_v54 = vpop.f32.mrb[30].mxu0  ;;  %v1945_v9 = vpop.f32.mrb[30].mxu1  ;;  %v1893_v13 = vadd.f32 %v1892_v18, %v1891_v1 }
 0x136   : > { %v2113_v60 = vpop.eup %2112  ;;  %v1779_v28 = vpack.c.bf16 %v1198_v59, %v1197_v41  ;;  %2130 = vrcp.f32 %v1009_v16  ;;  %v1941_v23 = vadd.f32 %v1940_v33, %v1939_v35  ;;  %v1898_v38 = vpop.f32.mrb[31].mxu0  ;;  %v1575_v32 = vmul.f32 -1.442695, %v2567_v61 }
 0x137   : > { %v2115_v14 = vpop.eup %2114  ;;  %1822 = vst [vmem:[%s2497_s27 + $0x10] sm:$0xff] %v1739_v2   ;;  %v1087_v62 = vmul.f32 %v2113_v60, %v2459_v11  ;;  %2132 = vpow2.f32 %v1574_v45  ;;  %v1946_v25 = vpop.f32.mrb[31].mxu1  ;;  %v846_v40 = vmul.f32 %v1938_v50, %v2343_v51  ;;  %v831_v1 = vmul.f32 %v1893_v13, %v2343_v51 }
 0x138   : > { %v2117_v26 = vpop.eup %2116  ;;  %1830 = vst [vmem:[%s2497_s27 + $0x50] sm:$0xff] %v1779_v28   ;;  %v1103_v7 = vmul.f32 %v2115_v14, %v2462_v12  ;;  %2134 = vpow2.f32 %v1590_v29  ;;  %v847_v35 = vmul.f32 %v1941_v23, %v2343_v51  ;;  %v1896_v41 = vadd.f32 %v1895_v27, %v1894_v37  ;;  %v1809_v28 = vld [vmem:[%s2374_s23 + $0x20] sm:$0xff]  }
 0x139   : > { %v2119_v0 = vpop.eup %2118  ;;  %v1183_v47 = vadd.f32 %v1676_v52, %v1087_v62  ;;  %v1088_v11 = vmul.f32 %v2117_v26, %v2469_v39  ;;  %2136 = vpow2.f32 %v1575_v32  ;;  %v2584_v17 = vadd.f32 %v2348_v57, %v846_v40  ;;  %v1817_v62 = vld [vmem:[%s2374_s23 + $0x60] sm:$0xff]  }
 0x13a   : > { %v2121_v18 = vpop.eup %2120  ;;  %v1199_v33 = vadd.f32 %v1708_v3, %v1103_v7  ;;  %v1104_v12 = vmul.f32 %v2119_v0, %v2473_v44  ;;  %v2589_v39 = vadd.f32 %v2348_v57, %v831_v1  ;;  %v2592_v10 = vadd.f32 %v2348_v57, %v847_v35 }
 0x13b   : > { %v2123_v48 = vpop.eup %2122  ;;  %v1184_v52 = vadd.f32 %v1677_v42, %v1088_v11  ;;  %v994_v34 = vadd.f32 1.0, %v2121_v18  ;;  %v1591_v31 = vmul.f32 -1.442695, %v2584_v17  ;;  %v832_v58 = vmul.f32 %v1896_v41, %v2343_v51 }
 0x13c   : > { %v2125_v22 = vpop.eup %2124  ;;  %v1200_v3 = vadd.f32 %v1709_v56, %v1104_v12  ;;  %v1010_v44 = vadd.f32 1.0, %v2123_v48  ;;  %v1576_v42 = vmul.f32 -1.442695, %v2589_v39  ;;  %v1592_v55 = vmul.f32 -1.442695, %v2592_v10  ;;  %v1810_v12 = vld [vmem:[%s2374_s23 + $0x28] sm:$0xff]  }
 0x13d   : > { %v1744_v15 = vpack.c.bf16 %v1184_v52, %v1183_v47  ;;  %2138 = vrcp.f32 %v994_v34  ;;  %v995_v24 = vadd.f32 1.0, %v2125_v22  ;;  %v2127_v36 = vpop.eup %2126  ;;  %v1944_v56 = vadd.f32 %v1943_v5, %v1942_v63 }
 0x13e   : > { %v1784_v49 = vpack.c.bf16 %v1200_v3, %v1199_v33  ;;  %2140 = vrcp.f32 %v1010_v44  ;;  %v1011_v46 = vadd.f32 1.0, %v2127_v36  ;;  %v1899_v16 = vadd.f32 %v1898_v38, %v1897_v54  ;;  %v1818_v3 = vld [vmem:[%s2374_s23 + $0x68] sm:$0xff]  }
 0x13f   : > { %v2129_v59 = vpop.eup %2128  ;;  %1823 = vst [vmem:[%s2497_s27 + $0x18] sm:$0xff] %v1744_v15   ;;  %2142 = vrcp.f32 %v995_v24  ;;  %v2603_v37 = vadd.f32 %v2348_v57, %v832_v58  ;;  %v1947_v2 = vadd.f32 %v1946_v25, %v1945_v9  ;;  %v848_v29 = vmul.f32 %v1944_v56, %v2343_v51 }
 0x140   : > { %v2131_v30 = vpop.eup %2130  ;;  %1831 = vst [vmem:[%s2497_s27 + $0x58] sm:$0xff] %v1784_v49   ;;  %2144 = vpow2.f32 %v1591_v31  ;;  %v833_v27 = vmul.f32 %v1899_v16, %v2343_v51  ;;  %v1680_v23 = vunpack.c.l.bf16 %v1809_v28  ;;  %v1681_v38 = vunpack.c.h.bf16 %v1809_v28 }
 0x141   : > { %v2133_v45 = vpop.eup %2132  ;;  %2146 = vrcp.f32 %v1011_v46  ;;  %v1577_v63 = vmul.f32 -1.442695, %v2603_v37  ;;  %v2610_v54 = vadd.f32 %v2348_v57, %v848_v29  ;;  %v849_v13 = vmul.f32 %v1947_v2, %v2343_v51 }
 0x142   : > { %v2135_v60 = vpop.eup %2134  ;;  %v996_v50 = vadd.f32 1.0, %v2133_v45  ;;  %2148 = vpow2.f32 %v1576_v42  ;;  %v2614_v9 = vadd.f32 %v2348_v57, %v833_v27  ;;  %v1089_v26 = vmul.f32 %v2129_v59, %v2490_v6 }
 0x143   : > { %v1012_v5 = vadd.f32 1.0, %v2135_v60  ;;  %2150 = vpow2.f32 %v1592_v55  ;;  %v2137_v14 = vpop.eup %2136  ;;  %v1593_v25 = vmul.f32 -1.442695, %v2610_v54  ;;  %v2621_v32 = vadd.f32 %v2348_v57, %v849_v13 }
 0x144   : > { %2152 = vrcp.f32 %v996_v50  ;;  %v1578_v7 = vmul.f32 -1.442695, %v2614_v9  ;;  %v1105_v0 = vmul.f32 %v2131_v30, %v2504_v21  ;;  %v1712_v47 = vunpack.c.l.bf16 %v1817_v62 }
 0x145   : > { %2154 = vrcp.f32 %v1012_v5  ;;  %v1713_v11 = vunpack.c.h.bf16 %v1817_v62  ;;  %v997_v51 = vadd.f32 1.0, %v2137_v14  ;;  %v1594_v18 = vmul.f32 -1.442695, %v2621_v32 }
 0x146   : > { %2156 = vpow2.f32 %v1577_v63  ;;  %v1185_v48 = vadd.f32 %v1680_v23, %v1089_v26  ;;  %v1201_v34 = vadd.f32 %v1712_v47, %v1105_v0  ;;  %v1684_v41 = vunpack.c.l.bf16 %v1810_v12  ;;  %v1819_v23 = vld [vmem:[%s2374_s23 + $0x70] sm:$0xff]  }
 0x147   : > { %v2139_v40 = vpop.eup %2138  ;;  %2158 = vpow2.f32 %v1593_v25  ;;  %v1685_v15 = vunpack.c.h.bf16 %v1810_v12  ;;  %v1716_v58 = vunpack.c.l.bf16 %v1818_v3  ;;  %v1717_v59 = vunpack.c.h.bf16 %v1818_v3 }
 0x148   : > { %v2141_v1 = vpop.eup %2140  ;;  %v1090_v35 = vmul.f32 %v2139_v40, %v2516_v8  ;;  %2160 = vpow2.f32 %v1578_v7  ;;  %v1720_v47 = vunpack.c.l.bf16 %v1819_v23 }
 0x149   : > { %v2143_v6 = vpop.eup %2142  ;;  %v1106_v33 = vmul.f32 %v2141_v1, %v2529_v43  ;;  %2162 = vpow2.f32 %v1594_v18 }
 0x14a   : > { %v2145_v57 = vpop.eup %2144  ;;  %v1186_v52 = vadd.f32 %v1681_v38, %v1090_v35  ;;  %2164 = vrcp.f32 %v997_v51  ;;  %v1091_v42 = vmul.f32 %v2143_v6, %v2532_v53 }
 0x14b   : > { %v2147_v21 = vpop.eup %2146  ;;  %v1202_v22 = vadd.f32 %v1713_v11, %v1106_v33  ;;  %v1013_v44 = vadd.f32 1.0, %v2145_v57  ;;  %v1721_v11 = vunpack.c.h.bf16 %v1819_v23  ;;  %v1812_v33 = vld [vmem:[%s2374_s23 + $0x38] sm:$0xff]  }
 0x14c   : > { %v2149_v8 = vpop.eup %2148  ;;  %v1749_v31 = vpack.c.bf16 %v1186_v52, %v1185_v48  ;;  %v1107_v55 = vmul.f32 %v2147_v21, %v2542_v20  ;;  %v1187_v53 = vadd.f32 %v1684_v41, %v1091_v42  ;;  %v1820_v48 = vld [vmem:[%s2374_s23 + $0x78] sm:$0xff]   ;;  %v1693_v3 = vunpack.c.h.bf16 %v1812_v33 }
 0x14d   : > { %v2151_v24 = vpop.eup %2150  ;;  %v1789_v43 = vpack.c.bf16 %v1202_v22, %v1201_v34  ;;  %2166 = vrcp.f32 %v1013_v44  ;;  %v998_v36 = vadd.f32 1.0, %v2149_v8  ;;  %v1692_v22 = vunpack.c.l.bf16 %v1812_v33 }
 0x14e   : > { %v2153_v49 = vpop.eup %2152  ;;  %1824 = vst [vmem:[%s2497_s27 + $0x20] sm:$0xff] %v1749_v31   ;;  %v1014_v46 = vadd.f32 1.0, %v2151_v24  ;;  %v1203_v20 = vadd.f32 %v1716_v58, %v1107_v55  ;;  %v1724_v44 = vunpack.c.l.bf16 %v1820_v48  ;;  %v1725_v8 = vunpack.c.h.bf16 %v1820_v48 }
 0x14f   : > { %v2155_v56 = vpop.eup %2154  ;;  %1832 = vst [vmem:[%s2497_s27 + $0x60] sm:$0xff] %v1789_v43   ;;  %v1092_v16 = vmul.f32 %v2153_v49, %v2556_v4  ;;  %2168 = vrcp.f32 %v998_v36 }
 0x150   : > { %v2157_v30 = vpop.eup %2156  ;;  %v1108_v2 = vmul.f32 %v2155_v56, %v2559_v19  ;;  %2170 = vrcp.f32 %v1014_v46  ;;  %v1811_v19 = vld [vmem:[%s2374_s23 + $0x30] sm:$0xff]  }
 0x151   : > { %v1188_v45 = vadd.f32 %v1685_v15, %v1092_v16  ;;  %v999_v29 = vadd.f32 1.0, %v2157_v30  ;;  %v2159_v27 = vpop.eup %2158  ;;  %v1688_v26 = vunpack.c.l.bf16 %v1811_v19  ;;  %v1689_v7 = vunpack.c.h.bf16 %v1811_v19 }
 0x152   : > { %v1204_v60 = vadd.f32 %v1717_v59, %v1108_v2  ;;  %v2161_v28 = vpop.eup %2160  ;;  %v1015_v63 = vadd.f32 1.0, %v2159_v27 }
 0x153   : > { %v1754_v50 = vpack.c.bf16 %v1188_v45, %v1187_v53  ;;  %2172 = vrcp.f32 %v999_v29  ;;  %v2163_v4 = vpop.eup %2162  ;;  %v1000_v14 = vadd.f32 1.0, %v2161_v28 }
 0x154   : > { %v1794_v5 = vpack.c.bf16 %v1204_v60, %v1203_v20  ;;  %v2165_v62 = vpop.eup %2164  ;;  %2174 = vrcp.f32 %v1015_v63  ;;  %v1016_v13 = vadd.f32 1.0, %v2163_v4 }
 0x155   : > { %1825 = vst [vmem:[%s2497_s27 + $0x28] sm:$0xff] %v1754_v50   ;;  %2176 = vrcp.f32 %v1000_v14  ;;  %v1093_v25 = vmul.f32 %v2165_v62, %v2567_v61 }
 0x156   : > { %1833 = vst [vmem:[%s2497_s27 + $0x68] sm:$0xff] %v1794_v5   ;;  %2178 = vrcp.f32 %v1016_v13 }
 0x157   : > { %v2167_v38 = vpop.eup %2166  ;;  %v1189_v18 = vadd.f32 %v1688_v26, %v1093_v25 }
 0x158   : > { %v1109_v0 = vmul.f32 %v2167_v38, %v2584_v17 }
 0x159   : > { %v2169_v40 = vpop.eup %2168 }
 0x15a   : > { %v2171_v51 = vpop.eup %2170  ;;  %v1094_v1 = vmul.f32 %v2169_v40, %v2589_v39  ;;  %v1205_v61 = vadd.f32 %v1720_v47, %v1109_v0 }
 0x15b   : > { %v1110_v35 = vmul.f32 %v2171_v51, %v2592_v10 }
 0x15c   : > { %v1190_v6 = vadd.f32 %v1689_v7, %v1094_v1 }
 0x15d   : > { %v2173_v12 = vpop.eup %2172  ;;  %v1206_v57 = vadd.f32 %v1721_v11, %v1110_v35 }
 0x15e   : > { %v1759_v52 = vpack.c.bf16 %v1190_v6, %v1189_v18  ;;  %v2175_v21 = vpop.eup %2174  ;;  %v1095_v17 = vmul.f32 %v2173_v12, %v2603_v37 }
 0x15f   : > { %v1799_v34 = vpack.c.bf16 %v1206_v57, %v1205_v61  ;;  %v2177_v39 = vpop.eup %2176  ;;  %v1111_v10 = vmul.f32 %v2175_v21, %v2610_v54 }
 0x160   : > { %1826 = vst [vmem:[%s2497_s27 + $0x30] sm:$0xff] %v1759_v52   ;;  %v2179_v31 = vpop.eup %2178  ;;  %v1096_v41 = vmul.f32 %v2177_v39, %v2614_v9  ;;  %v1191_v24 = vadd.f32 %v1692_v22, %v1095_v17 }
 0x161   : > { %1834 = vst [vmem:[%s2497_s27 + $0x70] sm:$0xff] %v1799_v34   ;;  %v1112_v15 = vmul.f32 %v2179_v31, %v2621_v32  ;;  %v1207_v42 = vadd.f32 %v1724_v44, %v1111_v10 }
 0x162   : > { %v1192_v43 = vadd.f32 %v1693_v3, %v1096_v41 }
 0x163   : > { %v1208_v37 = vadd.f32 %v1725_v8, %v1112_v15 }
 0x164   : > { %v1764_v36 = vpack.c.bf16 %v1192_v43, %v1191_v24 }
 0x165   : > { %v1804_v49 = vpack.c.bf16 %v1208_v37, %v1207_v42 }
 0x166   : > { %1827 = vst [vmem:[%s2497_s27 + $0x38] sm:$0xff] %v1764_v36  }
 0x167   : > { %1835 = vst [vmem:[%s2497_s27 + $0x78] sm:$0xff] %v1804_v49  }
 0x168 PF: > { %s15_s20 = sadd.s32 1, %s2202_s20   ;;  %s2668_s18 = smov %s2198_s19 }
 0x169   : > { %p12_p5 = scmp.ge.s32.totalorder %s15_s20, 4   ;;  %s2669_s19 = smov %s2671_s21 }
 0x16b   :  { %14 = sbr.rel (!%p12_p5) target bundleno = 2 (0x2), region = 82 }

// kernel: _lambda_.62
= control target key start
LH: loop header
LB: loop body
LE: loop exit
PB: predicated region body
PF: predicated region fallthrough
CT: control target
= control target key end

     0   :  { %s912_s15 = smov 0   ;;  %s914_s16 = smov 0   ;;  %s992_s0 = inlined_call_operand.vmem [shape: bf16[128,128], index: 0, kind: input, shape index: {}]   ;;  %s993_s1 = inlined_call_operand.vmem [shape: bf16[128,128], index: 1, kind: input, shape index: {}]   ;;  %s994_s2 = inlined_call_operand.vmem [shape: f32[1,128], index: 2, kind: input, shape index: {}]   ;;  %s995_s3 = inlined_call_operand.vmem [shape: f32[1,128], index: 3, kind: input, shape index: {}]   ;;  %s996_s4 = inlined_call_operand.vmem [shape: bf16[128,128], index: 4, kind: output, shape index: {}]  }
   0x1   :  { %s916_s17 = smov 0  }
   0x2 LB: > { %s26_s18 = sadd.s32 1, %s881_s16  ;;  %p675_p0 = scmp.ge.s32.totalorder %s885_s17, 1  ;;  %s885_s17 = sphi %s916_s17, %s14_s17   ;;  %s881_s16 = sphi %s914_s16, %s998_s16   ;;  %s877_s15 = sphi %s912_s15, %s997_s15  }
   0x3   : > { %p28_p1 = scmp.ge.s32.totalorder %s26_s18, 2  ;;  %p202_p2 = scmp.lt.s32.totalorder %s885_s17, 3 }
   0x5   : > { %s1000_s18 = smov (%p28_p1, %s26_s18), 0  ;;  %p203_p3 = pnand %p675_p0, %p202_p2 }
   0x6   : > { %v819_v0 = vld [vmem:[%s993_s1] sm:$0xff] (!%p203_p3)   ;;  %s676_s21 = sshll.u32 (!%p203_p3), %s877_s15, 3  ;;  %v820_v1 = vld [vmem:[%s993_s1 + $0x8] sm:$0xff] (!%p203_p3)   ;;  %v821_v2 = vld [vmem:[%s993_s1 + $0x10] sm:$0xff] (!%p203_p3)  }
   0x7   : > { %206 = sbr.rel (%p203_p3) target bundleno = 293 (0x125), region = 36  ;;  %p242_p4 = scmp.lt.s32.totalorder (!%p203_p3), %s676_s21, 15  ;;  %755 = vmatprep.subr.bf16.mxu0 (!%p203_p3), %v819_v0  ;;  %779 = vmatprep.subr.bf16.mxu1 (!%p203_p3), %v819_v0  ;;  %v822_v3 = vld [vmem:[%s993_s1 + $0x18] sm:$0xff] (!%p203_p3)   ;;  %v823_v6 = vld [vmem:[%s993_s1 + $0x20] sm:$0xff] (!%p203_p3)   ;;  %v824_v7 = vld [vmem:[%s993_s1 + $0x28] sm:$0xff] (!%p203_p3)  }
   0x8   : > { %756 = vmatpush3.bf16.msra.mxu0 (!%p203_p3), %v819_v0  ;;  %787 = vmatpush3.bf16.msra.mxu1 (!%p203_p3), %v819_v0  ;;  %v825_v8 = vld [vmem:[%s993_s1 + $0x30] sm:$0xff] (!%p203_p3)   ;;  %v826_v9 = vld [vmem:[%s993_s1 + $0x38] sm:$0xff] (!%p203_p3)   ;;  %v692_v12 = vld [vmem:[%s994_s2] ss:$0 sm:$0xff] (!%p203_p3) }
   0x9   : > { %757 = vmatprep.subr.bf16.mxu0 (!%p203_p3), %v820_v1  ;;  %780 = vmatprep.subr.bf16.mxu1 (!%p203_p3), %v820_v1  ;;  %v693_v14 = vld [vmem:[%s995_s3] ss:$0 sm:$0xff] (!%p203_p3) }
   0xc   : > { %758 = vmatpush3.bf16.msra.mxu0 (!%p203_p3), %v820_v1  ;;  %788 = vmatpush3.bf16.msra.mxu1 (!%p203_p3), %v820_v1 }
   0xd   : > { %759 = vmatprep.subr.bf16.mxu0 (!%p203_p3), %v821_v2  ;;  %781 = vmatprep.subr.bf16.mxu1 (!%p203_p3), %v821_v2 }
   0xe   : > { %s1002_s21 = smov (!%p242_p4, %s676_s21), 15 }
   0xf   : > { %s677_s26 = sshll.u32 %s1002_s21, 2 }
  0x10   : > { %s947_s29 = scalar_lea.vmem %s992_s0, %s677_s26  ;;  %760 = vmatpush3.bf16.msra.mxu0 %v821_v2  ;;  %789 = vmatpush3.bf16.msra.mxu1 %v821_v2  ;;  %s264_s24 = scalar_lea.vmem %s996_s4, %s677_s26 }
  0x11   : > { %v827_v4 = vld [vmem:[%s947_s29] sm:$0xff]   ;;  %v828_v5 = vld [vmem:[%s947_s29 + $0x10] sm:$0xff]   ;;  %761 = vmatprep.subr.bf16.mxu0 %v822_v3  ;;  %782 = vmatprep.subr.bf16.mxu1 %v822_v3  ;;  %v829_v10 = vld [vmem:[%s947_s29 + $0x8] sm:$0xff]  }
  0x12   : > { %771 = vmatprep.mubr.bf16.mxu0 %v827_v4  ;;  %775 = vmatprep.mubr.bf16.mxu1 %v828_v5  ;;  %v830_v11 = vld [vmem:[%s947_s29 + $0x18] sm:$0xff]  }
  0x14   : > { %762 = vmatpush3.bf16.msra.mxu0 %v822_v3  ;;  %790 = vmatpush3.bf16.msra.mxu1 %v822_v3 }
  0x15   : > { %763 = vmatprep.subr.bf16.mxu0 %v823_v6  ;;  %783 = vmatprep.subr.bf16.mxu1 %v823_v6 }
  0x18   : > { %764 = vmatpush3.bf16.msra.mxu0 %v823_v6  ;;  %791 = vmatpush3.bf16.msra.mxu1 %v823_v6 }
  0x19   : > { %765 = vmatprep.subr.bf16.mxu0 %v824_v7  ;;  %784 = vmatprep.subr.bf16.mxu1 %v824_v7 }
  0x1c   : > { %766 = vmatpush3.bf16.msra.mxu0 %v824_v7  ;;  %792 = vmatpush3.bf16.msra.mxu1 %v824_v7 }
  0x1d   : > { %767 = vmatprep.subr.bf16.mxu0 %v825_v8  ;;  %785 = vmatprep.subr.bf16.mxu1 %v825_v8 }
  0x20   : > { %768 = vmatpush3.bf16.msra.mxu0 %v825_v8  ;;  %793 = vmatpush3.bf16.msra.mxu1 %v825_v8 }
  0x21   : > { %769 = vmatprep.subr.bf16.mxu0 %v826_v9  ;;  %786 = vmatprep.subr.bf16.mxu1 %v826_v9 }
  0x24   : > { %770 = vmatpush3.bf16.msra.mxu0 %v826_v9  ;;  %794 = vmatpush3.bf16.msra.mxu1 %v826_v9 }
  0x27   : > { %772 = vmatmul.mubr.bf16.vlgmr.msra.gmra.mrb[0].mxu0 %v829_v10  ;;  %776 = vmatmul.mubr.bf16.vlgmr.msra.gmra.mrb[0].mxu1 %v830_v11 }
  0xfa   : > { %v773_v13 = vpop.f32.mrb[0].mxu0  ;;  %v777_v15 = vpop.f32.mrb[0].mxu1 }
  0xfb   : > { %v437_v16 = vmul.f32 %v773_v13, %v692_v12  ;;  %v441_v17 = vmul.f32 %v777_v15, %v692_v12  ;;  %v397_v18 = vpop.f32.mrb[1].mxu0  ;;  %v413_v19 = vpop.f32.mrb[1].mxu1 }
  0xfc   : > { %v435_v20 = vmul.f32 %v692_v12, %v397_v18  ;;  %v439_v21 = vmul.f32 %v692_v12, %v413_v19  ;;  %v774_v22 = vpop.f32.mrb[2].mxu0  ;;  %v778_v23 = vpop.f32.mrb[2].mxu1 }
  0xfd   : > { %v452_v24 = vadd.f32 %v693_v14, %v437_v16  ;;  %v456_v25 = vadd.f32 %v693_v14, %v441_v17  ;;  %v438_v26 = vmul.f32 %v774_v22, %v692_v12  ;;  %v442_v27 = vmul.f32 %v778_v23, %v692_v12  ;;  %v400_v28 = vpop.f32.mrb[3].mxu0  ;;  %v416_v29 = vpop.f32.mrb[3].mxu1 }
  0xfe   : > { %v450_v30 = vadd.f32 %v693_v14, %v435_v20  ;;  %v974_v31 = vadd.f32 %v693_v14, %v439_v21  ;;  %v436_v32 = vmul.f32 %v692_v12, %v400_v28  ;;  %v440_v33 = vmul.f32 %v692_v12, %v416_v29 }
  0xff   : > { %v696_v34 = vmul.f32 -1.442695, %v452_v24  ;;  %v700_v35 = vmul.f32 -1.442695, %v456_v25  ;;  %v453_v36 = vadd.f32 %v693_v14, %v438_v26  ;;  %v457_v37 = vadd.f32 %v693_v14, %v442_v27 }
 0x100   : > { %v694_v38 = vmul.f32 -1.442695, %v450_v30  ;;  %v698_v39 = vmul.f32 -1.442695, %v974_v31  ;;  %v451_v40 = vadd.f32 %v693_v14, %v436_v32  ;;  %v455_v41 = vadd.f32 %v693_v14, %v440_v33 }
 0x101   : > { %831 = vpow2.f32 %v696_v34  ;;  %v697_v42 = vmul.f32 -1.442695, %v453_v36  ;;  %v701_v43 = vmul.f32 -1.442695, %v457_v37 }
 0x102   : > { %833 = vpow2.f32 %v700_v35  ;;  %v695_v44 = vmul.f32 -1.442695, %v451_v40  ;;  %v699_v45 = vmul.f32 -1.442695, %v455_v41 }
 0x103   : > { %835 = vpow2.f32 %v694_v38 }
 0x104   : > { %837 = vpow2.f32 %v698_v39 }
 0x105   : > { %839 = vpow2.f32 %v697_v42 }
 0x106   : > { %841 = vpow2.f32 %v701_v43 }
 0x107   : > { %843 = vpow2.f32 %v695_v44 }
 0x108   : > { %845 = vpow2.f32 %v699_v45 }
 0x10b   : > { %v832_v46 = vpop.eup %831 }
 0x10c   : > { %v834_v47 = vpop.eup %833  ;;  %v484_v48 = vadd.f32 1.0, %v832_v46 }
 0x10d   : > { %v836_v49 = vpop.eup %835  ;;  %v488_v50 = vadd.f32 1.0, %v834_v47 }
 0x10e   : > { %v838_v51 = vpop.eup %837  ;;  %847 = vrcp.f32 %v484_v48  ;;  %v482_v52 = vadd.f32 1.0, %v836_v49 }
 0x10f   : > { %v840_v53 = vpop.eup %839  ;;  %849 = vrcp.f32 %v488_v50  ;;  %v486_v54 = vadd.f32 1.0, %v838_v51 }
 0x110   : > { %v842_v55 = vpop.eup %841  ;;  %851 = vrcp.f32 %v482_v52  ;;  %v485_v56 = vadd.f32 1.0, %v840_v53 }
 0x111   : > { %v844_v57 = vpop.eup %843  ;;  %853 = vrcp.f32 %v486_v54  ;;  %v489_v58 = vadd.f32 1.0, %v842_v55 }
 0x112   : > { %v846_v59 = vpop.eup %845  ;;  %855 = vrcp.f32 %v485_v56  ;;  %v483_v60 = vadd.f32 1.0, %v844_v57 }
 0x113   : > { %857 = vrcp.f32 %v489_v58  ;;  %v487_v61 = vadd.f32 1.0, %v846_v59 }
 0x114   : > { %859 = vrcp.f32 %v483_v60 }
 0x115   : > { %861 = vrcp.f32 %v487_v61 }
 0x118   : > { %v848_v62 = vpop.eup %847 }
 0x119   : > { %v850_v63 = vpop.eup %849  ;;  %v508_v4 = vmul.f32 %v848_v62, %v452_v24 }
 0x11a   : > { %v852_v0 = vpop.eup %851  ;;  %v512_v7 = vmul.f32 %v850_v63, %v456_v25 }
 0x11b   : > { %v854_v1 = vpop.eup %853  ;;  %v506_v10 = vmul.f32 %v852_v0, %v450_v30 }
 0x11c   : > { %v856_v2 = vpop.eup %855  ;;  %v510_v13 = vmul.f32 %v854_v1, %v974_v31 }
 0x11d   : > { %v858_v3 = vpop.eup %857  ;;  %v509_v5 = vmul.f32 %v856_v2, %v453_v36 }
 0x11e   : > { %v860_v6 = vpop.eup %859  ;;  %v513_v8 = vmul.f32 %v858_v3, %v457_v37 }
 0x11f   : > { %v862_v9 = vpop.eup %861  ;;  %v728_v11 = vpack.c.bf16 %v509_v5, %v508_v4  ;;  %v507_v12 = vmul.f32 %v860_v6, %v451_v40 }
 0x120   : > { %v738_v14 = vpack.c.bf16 %v513_v8, %v512_v7  ;;  %v511_v15 = vmul.f32 %v862_v9, %v455_v41 }
 0x121   : > { %740 = vst [vmem:[%s264_s24 + $0x8] sm:$0xff] %v728_v11   ;;  %v723_v16 = vpack.c.bf16 %v507_v12, %v506_v10 }
 0x122   : > { %742 = vst [vmem:[%s264_s24 + $0x18] sm:$0xff] %v738_v14   ;;  %v733_v17 = vpack.c.bf16 %v511_v15, %v510_v13 }
 0x123   : > { %724 = vst [vmem:[%s264_s24] sm:$0xff] %v723_v16  }
 0x124   : > { %741 = vst [vmem:[%s264_s24 + $0x10] sm:$0xff] %v733_v17  }
 0x125 PF: > { %s14_s17 = sadd.s32 1, %s885_s17   ;;  %s997_s15 = smov %s881_s16 }
 0x126   : > { %p11_p5 = scmp.ge.s32.totalorder %s14_s17, 4   ;;  %s998_s16 = smov %s1000_s18 }
 0x128   :  { %13 = sbr.rel (!%p11_p5) target bundleno = 2 (0x2), region = 75 }

// kernel: _lambda_.61
= control target key start
LH: loop header
LB: loop body
LE: loop exit
PB: predicated region body
PF: predicated region fallthrough
CT: control target
= control target key end

     0   :  { %s1143_s15 = smov 0   ;;  %s1145_s16 = smov 0   ;;  %s1265_s0 = inlined_call_operand.vmem [shape: bf16[128,384], index: 0, kind: input, shape index: {}]   ;;  %s1266_s1 = inlined_call_operand.vmem [shape: bf16[384,128], index: 1, kind: input, shape index: {}]   ;;  %s1267_s2 = inlined_call_operand.vmem [shape: f32[1,128], index: 2, kind: input, shape index: {}]   ;;  %s1268_s3 = inlined_call_operand.vmem [shape: f32[1,128], index: 3, kind: input, shape index: {}]   ;;  %s1269_s4 = inlined_call_operand.vmem [shape: bf16[128,128], index: 4, kind: output, shape index: {}]  }
   0x1   :  { %s1147_s17 = smov 0   ;;  %s1149_s18 = smov 0  }
   0x2   :  { %s1151_s19 = smov 0   ;;  %s1153_s20 = smov 0  }
   0x3   :  { %s1155_s21 = smov 0  }
   0x4 LB: > { %s26_s22 = sadd.s32 1, %s1107_s19  ;;  %s33_s23 = sadd.s32 1, %s1111_s20  ;;  %s1115_s21 = sphi %s1155_s21, %s14_s21   ;;  %s1111_s20 = sphi %s1153_s20, %s1275_s20   ;;  %s1107_s19 = sphi %s1151_s19, %s1274_s19   ;;  %s1103_s18 = sphi %s1149_s18, %s1273_s18   ;;  %s1099_s17 = sphi %s1147_s17, %s1272_s17   ;;  %s1095_s16 = sphi %s1145_s16, %s1271_s16   ;;  %s1091_s15 = sphi %s1143_s15, %s1270_s15  }
   0x5   : > { %p27_p0 = scmp.ge.s32.totalorder %s26_s22, 3  ;;  %p49_p1 = scmp.ne.s32.totalorder %s1095_s16, %s1091_s15 }
   0x6   : > { %p50_p2 = scmp.eq.s32.totalorder %s1115_s21, 0  ;;  %s42_s27 = sadd.s32 1, %s1095_s16 }
   0x7   : > { %s1277_s22 = smov (%p27_p0, %s26_s22), 0  ;;  %s1279_s23 = smov (!%p27_p0, %s33_s23), %s1111_s20 }
   0x8   : > { %p51_p3 = por %p50_p2, %p49_p1  ;;  %p35_p4 = scmp.ge.s32.totalorder %s1279_s23, 2 }
   0x9   : > { %s38_s24 = ssub.s32 %s1107_s19, %s1277_s22  ;;  %p831_p6 = scmp.ge.s32.totalorder %s1115_s21, 6 }
   0xa   : > { %s1281_s23 = smov (%p35_p4, %s1279_s23), 0 }
   0xb   : > { %s37_s25 = ssub.s32 %s1111_s20, %s1281_s23  ;;  %195 = sbr.rel (%p831_p6) target bundleno = 30 (0x1e), region = 24 }
   0xc   : > { %s39_s26 = sor.u32 %s38_s24, %s37_s25 }
   0xd   : > { %p40_p5 = scmp.eq.s32.totalorder %s39_s26, 0 }
   0xf   : > { %s1194_s28 = scalar_select %p40_p5, %s1095_s16, %s42_s27  }
  0x12   : > { %198 = sbr.rel (!%p51_p3) target bundleno = 30 (0x1e), region = 28  ;;  %s200_s29 = sand.u32 (%p51_p3), 1, %s1095_s16  }
  0x13   : > { %s959_s30 = smul.u32 (%p51_p3), 24, %s1111_s20  ;;  %s832_s5 = sshll.u32 (%p51_p3), %s200_s29, 5 }
  0x14   : > { %s202_s11 = scalar_lea.vmem (%p51_p3), [#allocation3], %s832_s5 }
  0x15   : > { %s205_s6 = sadd.s32 (%p51_p3), %s1107_s19, %s959_s30 }
  0x16   : > { %s835_s7 = sshll.u32 (%p51_p3), %s205_s6, 2 }
  0x17   : > { %s207_s10 = scalar_lea.vmem (%p51_p3), %s1265_s0, %s835_s7 }
  0x18   : > { %v223_v0 = vld [vmem:[%s207_s10] sm:$0xf] (%p51_p3)  ;;  %v225_v1 = vld [vmem:[%s207_s10 + $0xc] sm:$0xf] (%p51_p3)  ;;  %v227_v2 = vld [vmem:[%s207_s10 + $0x18] sm:$0xf] (%p51_p3) }
  0x19   : > { %224 = vst [vmem:[%s202_s11] sm:$0xf] %v223_v0  ;;  %226 = vst [vmem:[%s202_s11 + $0x4] sm:$0xf] %v225_v1  ;;  %v229_v3 = vld [vmem:[%s207_s10 + $0x24] sm:$0xf] }
  0x1a   : > { %228 = vst [vmem:[%s202_s11 + $0x8] sm:$0xf] %v227_v2  ;;  %v231_v4 = vld [vmem:[%s207_s10 + $0x30] sm:$0xf]  ;;  %v233_v5 = vld [vmem:[%s207_s10 + $0x3c] sm:$0xf] }
  0x1b   : > { %230 = vst [vmem:[%s202_s11 + $0xc] sm:$0xf] %v229_v3  ;;  %232 = vst [vmem:[%s202_s11 + $0x10] sm:$0xf] %v231_v4  ;;  %v235_v6 = vld [vmem:[%s207_s10 + $0x48] sm:$0xf] }
  0x1c   : > { %234 = vst [vmem:[%s202_s11 + $0x14] sm:$0xf] %v233_v5  ;;  %v237_v7 = vld [vmem:[%s207_s10 + $0x54] sm:$0xf]  ;;  %236 = vst [vmem:[%s202_s11 + $0x18] sm:$0xf] %v235_v6 }
  0x1d   : > { %238 = vst [vmem:[%s202_s11 + $0x1c] sm:$0xf] %v237_v7 }
  0x1e PF: > { %p836_p7 = scmp.ge.s32.totalorder %s1115_s21, 1  ;;  %p288_p8 = scmp.lt.s32.totalorder %s1115_s21, 7 }
  0x20   : > { %p289_p9 = pnand %p836_p7, %p288_p8 }
  0x21   : > { %s295_s12 = sand.u32 (!%p289_p9), 1, %s1091_s15   ;;  %s838_s13 = sshll.u32 (!%p289_p9), %s1099_s17, 4 }
  0x22   : > { %292 = sbr.rel (%p289_p9) target bundleno = 350 (0x15e), region = 73  ;;  %s837_s14 = sshll.u32 (!%p289_p9), %s295_s12, 5 }
  0x23   : > { %p339_p10 = scmp.lt.s32.totalorder (!%p289_p9), %s838_s13, 47  ;;  %s840_s24 = sshll.u32 (!%p289_p9), %s1103_s18, 3 }
  0x24   : > { %p354_p11 = scmp.lt.s32.totalorder (!%p289_p9), %s840_s24, 15  ;;  %s1218_s15 = scalar_lea.vmem (!%p289_p9), [#allocation3], %s837_s14 }
  0x25   : > { %p842_p12 = scmp.ne.s32.totalorder (!%p289_p9), %s1099_s17, 0 }
  0x29   : > { %s1283_s13 = smov (!%p339_p10, %s838_s13), 47  ;;  %s1285_s24 = smov (!%p354_p11, %s840_s24), 15 }
  0x2a   : > { %s839_s25 = sshll.u32 %s1283_s13, 2  ;;  %s841_s30 = sshll.u32 %s1285_s24, 2  ;;  %v1117_v8 = vmov (!%p842_p12), 0.0  }
  0x2b   : > { %s1211_s29 = scalar_lea.vmem %s1266_s1, %s839_s25  ;;  %s1216_s7 = scalar_lea.vmem %s1269_s4, %s841_s30  ;;  %367 = vst [vmem:[#allocation2] sm:$0xff] (!%p842_p12), %v1117_v8  ;;  %368 = vst [vmem:[#allocation2 + $0x8] sm:$0xff] (!%p842_p12), %v1117_v8 }
  0x2c   : > { %366 = sbr.rel (%p842_p12) target bundleno = 51 (0x33), region = 81  ;;  %369 = vst [vmem:[#allocation2 + $0x10] sm:$0xff] (!%p842_p12), %v1117_v8  ;;  %370 = vst [vmem:[#allocation2 + $0x18] sm:$0xff] (!%p842_p12), %v1117_v8 }
  0x2d   : > { %371 = vst [vmem:[#allocation2 + $0x20] sm:$0xff] (!%p842_p12), %v1117_v8  ;;  %372 = vst [vmem:[#allocation2 + $0x28] sm:$0xff] (!%p842_p12), %v1117_v8 }
  0x2e   : > { %373 = vst [vmem:[#allocation2 + $0x30] sm:$0xff] (!%p842_p12), %v1117_v8  ;;  %374 = vst [vmem:[#allocation2 + $0x38] sm:$0xff] (!%p842_p12), %v1117_v8 }
  0x33 PF: > { %v1017_v9 = vld [vmem:[%s1211_s29] sm:$0xff]   ;;  %v1018_v10 = vld [vmem:[%s1211_s29 + $0x8] sm:$0xff]   ;;  %v1019_v11 = vld [vmem:[%s1211_s29 + $0x10] sm:$0xff]   ;;  %p855_p13 = scmp.ne.s32.totalorder %s1099_s17, 2 }
  0x34   : > { %919 = vmatprep.subr.bf16.mxu0 %v1017_v9  ;;  %943 = vmatprep.subr.bf16.mxu1 %v1017_v9  ;;  %v1020_v12 = vld [vmem:[%s1211_s29 + $0x18] sm:$0xff]   ;;  %v1025_v13 = vld [vmem:[%s1218_s15] sm:$0xff]   ;;  %v1026_v14 = vld [vmem:[%s1218_s15 + $0x10] sm:$0xff]  }
  0x35   : > { %920 = vmatpush3.bf16.msra.mxu0 %v1017_v9  ;;  %951 = vmatpush3.bf16.msra.mxu1 %v1017_v9  ;;  %v1021_v15 = vld [vmem:[%s1211_s29 + $0x20] sm:$0xff]   ;;  %v1022_v16 = vld [vmem:[%s1211_s29 + $0x28] sm:$0xff]   ;;  %v1023_v17 = vld [vmem:[%s1211_s29 + $0x30] sm:$0xff]  }
  0x36   : > { %921 = vmatprep.subr.bf16.mxu0 %v1018_v10  ;;  %944 = vmatprep.subr.bf16.mxu1 %v1018_v10  ;;  %v1024_v18 = vld [vmem:[%s1211_s29 + $0x38] sm:$0xff]   ;;  %v1027_v19 = vld [vmem:[%s1218_s15 + $0x8] sm:$0xff]   ;;  %v377_v21 = vld [vmem:[#allocation2 + $0x10] sm:$0xff] }
  0x37   : > { %935 = vmatprep.mubr.bf16.mxu0 %v1025_v13  ;;  %939 = vmatprep.mubr.bf16.mxu1 %v1026_v14  ;;  %v1028_v20 = vld [vmem:[%s1218_s15 + $0x18] sm:$0xff]   ;;  %v381_v22 = vld [vmem:[#allocation2 + $0x30] sm:$0xff]  ;;  %v375_v23 = vld [vmem:[#allocation2] sm:$0xff] }
  0x38   : > { %v379_v24 = vld [vmem:[#allocation2 + $0x20] sm:$0xff]  ;;  %v378_v27 = vld [vmem:[#allocation2 + $0x18] sm:$0xff]  ;;  %v376_v33 = vld [vmem:[#allocation2 + $0x8] sm:$0xff] }
  0x39   : > { %922 = vmatpush3.bf16.msra.mxu0 %v1018_v10  ;;  %952 = vmatpush3.bf16.msra.mxu1 %v1018_v10  ;;  %v382_v28 = vld [vmem:[#allocation2 + $0x38] sm:$0xff]  ;;  %v380_v34 = vld [vmem:[#allocation2 + $0x28] sm:$0xff]  ;;  %v856_v47 = vld [vmem:[%s1267_s2] ss:$0 sm:$0xff] (!%p855_p13) }
  0x3a   : > { %923 = vmatprep.subr.bf16.mxu0 %v1019_v11  ;;  %945 = vmatprep.subr.bf16.mxu1 %v1019_v11  ;;  %v857_v50 = vld [vmem:[%s1268_s3] ss:$0 sm:$0xff] (!%p855_p13) }
  0x3d   : > { %924 = vmatpush3.bf16.msra.mxu0 %v1019_v11  ;;  %953 = vmatpush3.bf16.msra.mxu1 %v1019_v11 }
  0x3e   : > { %925 = vmatprep.subr.bf16.mxu0 %v1020_v12  ;;  %946 = vmatprep.subr.bf16.mxu1 %v1020_v12 }
  0x41   : > { %926 = vmatpush3.bf16.msra.mxu0 %v1020_v12  ;;  %954 = vmatpush3.bf16.msra.mxu1 %v1020_v12 }
  0x42   : > { %927 = vmatprep.subr.bf16.mxu0 %v1021_v15  ;;  %947 = vmatprep.subr.bf16.mxu1 %v1021_v15 }
  0x45   : > { %928 = vmatpush3.bf16.msra.mxu0 %v1021_v15  ;;  %955 = vmatpush3.bf16.msra.mxu1 %v1021_v15 }
  0x46   : > { %929 = vmatprep.subr.bf16.mxu0 %v1022_v16  ;;  %948 = vmatprep.subr.bf16.mxu1 %v1022_v16 }
  0x49   : > { %930 = vmatpush3.bf16.msra.mxu0 %v1022_v16  ;;  %956 = vmatpush3.bf16.msra.mxu1 %v1022_v16 }
  0x4a   : > { %931 = vmatprep.subr.bf16.mxu0 %v1023_v17  ;;  %949 = vmatprep.subr.bf16.mxu1 %v1023_v17 }
  0x4d   : > { %932 = vmatpush3.bf16.msra.mxu0 %v1023_v17  ;;  %957 = vmatpush3.bf16.msra.mxu1 %v1023_v17 }
  0x4e   : > { %933 = vmatprep.subr.bf16.mxu0 %v1024_v18  ;;  %950 = vmatprep.subr.bf16.mxu1 %v1024_v18 }
  0x51   : > { %934 = vmatpush3.bf16.msra.mxu0 %v1024_v18  ;;  %958 = vmatpush3.bf16.msra.mxu1 %v1024_v18 }
  0x54   : > { %936 = vmatmul.mubr.bf16.vlgmr.msra.gmra.mrb[0].mxu0 %v1027_v19  ;;  %940 = vmatmul.mubr.bf16.vlgmr.msra.gmra.mrb[0].mxu1 %v1028_v20 }
 0x127   : > { %v937_v25 = vpop.f32.mrb[0].mxu0  ;;  %v941_v26 = vpop.f32.mrb[0].mxu1  ;;  %563 = sbr.rel (%p855_p13) target bundleno = 350 (0x15e), region = 85 }
 0x128   : > { %v546_v29 = vadd.f32 %v937_v25, %v377_v21  ;;  %v550_v30 = vadd.f32 %v941_v26, %v381_v22  ;;  %v513_v31 = vpop.f32.mrb[1].mxu0  ;;  %v529_v32 = vpop.f32.mrb[1].mxu1 }
 0x129   : > { %v544_v35 = vadd.f32 %v513_v31, %v375_v23  ;;  %v548_v36 = vadd.f32 %v529_v32, %v379_v24  ;;  %v938_v37 = vpop.f32.mrb[2].mxu0  ;;  %v942_v38 = vpop.f32.mrb[2].mxu1 }
 0x12a   : > { %554 = vst [vmem:[#allocation2 + $0x10] sm:$0xff] %v546_v29  ;;  %558 = vst [vmem:[#allocation2 + $0x30] sm:$0xff] %v550_v30  ;;  %v547_v39 = vadd.f32 %v938_v37, %v378_v27  ;;  %v551_v40 = vadd.f32 %v942_v38, %v382_v28  ;;  %v516_v41 = vpop.f32.mrb[3].mxu0  ;;  %v532_v42 = vpop.f32.mrb[3].mxu1 }
 0x12b   : > { %552 = vst [vmem:[#allocation2] sm:$0xff] %v544_v35  ;;  %556 = vst [vmem:[#allocation2 + $0x20] sm:$0xff] %v548_v36  ;;  %v545_v43 = vadd.f32 %v516_v41, %v376_v33  ;;  %v549_v44 = vadd.f32 %v532_v42, %v380_v34 }
 0x12c   : > { %555 = vst [vmem:[#allocation2 + $0x18] sm:$0xff] %v547_v39  ;;  %559 = vst [vmem:[#allocation2 + $0x38] sm:$0xff] %v551_v40 }
 0x12d   : > { %553 = vst [vmem:[#allocation2 + $0x8] sm:$0xff] %v545_v43  ;;  %557 = vst [vmem:[#allocation2 + $0x28] sm:$0xff] %v549_v44 }
 0x131   : > { %v566_v51 = vld [vmem:[#allocation2 + $0x10] sm:$0xff] }
 0x132   : > { %v564_v45 = vld [vmem:[#allocation2] sm:$0xff]  ;;  %v581_v53 = vmul.f32 %v856_v47, %v566_v51  ;;  %v570_v57 = vld [vmem:[#allocation2 + $0x30] sm:$0xff] }
 0x133   : > { %v579_v48 = vmul.f32 %v856_v47, %v564_v45  ;;  %v567_v52 = vld [vmem:[#allocation2 + $0x18] sm:$0xff]  ;;  %v568_v55 = vld [vmem:[#allocation2 + $0x20] sm:$0xff]  ;;  %v585_v1 = vmul.f32 %v856_v47, %v570_v57 }
 0x134   : > { %v565_v46 = vld [vmem:[#allocation2 + $0x8] sm:$0xff]  ;;  %v582_v54 = vmul.f32 %v856_v47, %v567_v52  ;;  %v583_v60 = vmul.f32 %v856_v47, %v568_v55  ;;  %v571_v62 = vld [vmem:[#allocation2 + $0x38] sm:$0xff]  ;;  %v596_v63 = vadd.f32 %v857_v50, %v581_v53 }
 0x135   : > { %v580_v49 = vmul.f32 %v856_v47, %v565_v46  ;;  %v569_v56 = vld [vmem:[#allocation2 + $0x28] sm:$0xff]  ;;  %v594_v58 = vadd.f32 %v857_v50, %v579_v48  ;;  %v586_v2 = vmul.f32 %v856_v47, %v571_v62  ;;  %v600_v9 = vadd.f32 %v857_v50, %v585_v1 }
 0x136   : > { %v584_v61 = vmul.f32 %v856_v47, %v569_v56  ;;  %v597_v0 = vadd.f32 %v857_v50, %v582_v54  ;;  %v598_v5 = vadd.f32 %v857_v50, %v583_v60  ;;  %v860_v7 = vmul.f32 -1.442695, %v596_v63 }
 0x137   : > { %v595_v59 = vadd.f32 %v857_v50, %v580_v49  ;;  %v858_v3 = vmul.f32 -1.442695, %v594_v58  ;;  %v601_v10 = vadd.f32 %v857_v50, %v586_v2  ;;  %v864_v13 = vmul.f32 -1.442695, %v600_v9 }
 0x138   : > { %v599_v6 = vadd.f32 %v857_v50, %v584_v61  ;;  %v861_v8 = vmul.f32 -1.442695, %v597_v0  ;;  %v862_v11 = vmul.f32 -1.442695, %v598_v5 }
 0x139   : > { %v859_v4 = vmul.f32 -1.442695, %v595_v59  ;;  %1029 = vpow2.f32 %v858_v3  ;;  %v865_v14 = vmul.f32 -1.442695, %v601_v10 }
 0x13a   : > { %v863_v12 = vmul.f32 -1.442695, %v599_v6 }
 0x13b   : > { %1031 = vpow2.f32 %v859_v4 }
 0x13c   : > { %1033 = vpow2.f32 %v860_v7 }
 0x13d   : > { %1035 = vpow2.f32 %v861_v8 }
 0x13e   : > { %1037 = vpow2.f32 %v862_v11 }
 0x13f   : > { %1039 = vpow2.f32 %v863_v12 }
 0x140   : > { %1041 = vpow2.f32 %v864_v13 }
 0x141   : > { %1043 = vpow2.f32 %v865_v14 }
 0x143   : > { %v1030_v15 = vpop.eup %1029 }
 0x144   : > { %v626_v17 = vadd.f32 1.0, %v1030_v15 }
 0x145   : > { %v1032_v16 = vpop.eup %1031 }
 0x146   : > { %v1034_v18 = vpop.eup %1033  ;;  %v627_v19 = vadd.f32 1.0, %v1032_v16  ;;  %1045 = vrcp.f32 %v626_v17 }
 0x147   : > { %v1036_v20 = vpop.eup %1035  ;;  %v628_v21 = vadd.f32 1.0, %v1034_v18 }
 0x148   : > { %v1038_v22 = vpop.eup %1037  ;;  %1047 = vrcp.f32 %v627_v19  ;;  %v629_v23 = vadd.f32 1.0, %v1036_v20 }
 0x149   : > { %v1040_v24 = vpop.eup %1039  ;;  %1049 = vrcp.f32 %v628_v21  ;;  %v630_v25 = vadd.f32 1.0, %v1038_v22 }
 0x14a   : > { %v1042_v26 = vpop.eup %1041  ;;  %1051 = vrcp.f32 %v629_v23  ;;  %v631_v27 = vadd.f32 1.0, %v1040_v24 }
 0x14b   : > { %v1044_v28 = vpop.eup %1043  ;;  %1053 = vrcp.f32 %v630_v25  ;;  %v632_v29 = vadd.f32 1.0, %v1042_v26 }
 0x14c   : > { %1055 = vrcp.f32 %v631_v27  ;;  %v633_v30 = vadd.f32 1.0, %v1044_v28 }
 0x14d   : > { %1057 = vrcp.f32 %v632_v29 }
 0x14e   : > { %1059 = vrcp.f32 %v633_v30 }
 0x150   : > { %v1046_v31 = vpop.eup %1045 }
 0x151   : > { %v650_v33 = vmul.f32 %v1046_v31, %v594_v58 }
 0x152   : > { %v1048_v32 = vpop.eup %1047 }
 0x153   : > { %v1050_v34 = vpop.eup %1049  ;;  %v651_v35 = vmul.f32 %v1048_v32, %v595_v59 }
 0x154   : > { %v1052_v36 = vpop.eup %1051  ;;  %v652_v37 = vmul.f32 %v1050_v34, %v596_v63 }
 0x155   : > { %v1054_v38 = vpop.eup %1053  ;;  %v887_v39 = vpack.c.bf16 %v651_v35, %v650_v33  ;;  %v653_v40 = vmul.f32 %v1052_v36, %v597_v0 }
 0x156   : > { %v1056_v41 = vpop.eup %1055  ;;  %v654_v42 = vmul.f32 %v1054_v38, %v598_v5 }
 0x157   : > { %v1058_v43 = vpop.eup %1057  ;;  %888 = vst [vmem:[%s1216_s7] sm:$0xff] %v887_v39   ;;  %v892_v44 = vpack.c.bf16 %v653_v40, %v652_v37  ;;  %v655_v45 = vmul.f32 %v1056_v41, %v599_v6 }
 0x158   : > { %v1060_v46 = vpop.eup %1059  ;;  %v656_v47 = vmul.f32 %v1058_v43, %v600_v9 }
 0x159   : > { %904 = vst [vmem:[%s1216_s7 + $0x8] sm:$0xff] %v892_v44   ;;  %v897_v48 = vpack.c.bf16 %v655_v45, %v654_v42  ;;  %v657_v49 = vmul.f32 %v1060_v46, %v601_v10 }
 0x15b   : > { %905 = vst [vmem:[%s1216_s7 + $0x10] sm:$0xff] %v897_v48   ;;  %v902_v50 = vpack.c.bf16 %v657_v49, %v656_v47 }
 0x15d   : > { %906 = vst [vmem:[%s1216_s7 + $0x18] sm:$0xff] %v902_v50  }
 0x15e PF: > { %s14_s21 = sadd.s32 1, %s1115_s21   ;;  %s1270_s15 = smov %s1095_s16 }
 0x15f   : > { %p11_p0 = scmp.ge.s32.totalorder %s14_s21, 8   ;;  %s1271_s16 = smov %s1194_s28 }
 0x160   : > { %s1272_s17 = smov %s1107_s19  ;;  %s1273_s18 = smov %s1111_s20 }
 0x161   : > { %s1274_s19 = smov %s1277_s22  ;;  %s1275_s20 = smov %s1281_s23 }
 0x162   :  { %13 = sbr.rel (!%p11_p0) target bundleno = 4 (0x4), region = 129 }

// kernel: _lambda_.64
= control target key start
LH: loop header
LB: loop body
LE: loop exit
PB: predicated region body
PF: predicated region fallthrough
CT: control target
= control target key end

     0   :  { %s1268_s18 = smov 0   ;;  %s1270_s19 = smov 0   ;;  %s1431_s0 = inlined_call_operand.vmem [shape: bf16[128,384], index: 0, kind: input, shape index: {}]   ;;  %s1432_s1 = inlined_call_operand.vmem [shape: bf16[384,128], index: 1, kind: input, shape index: {}]   ;;  %s1433_s2 = inlined_call_operand.vmem [shape: f32[1,128], index: 2, kind: input, shape index: {}]   ;;  %s1434_s3 = inlined_call_operand.vmem [shape: f32[1,128], index: 3, kind: input, shape index: {}]   ;;  %s1435_s4 = inlined_call_operand.vmem [shape: bf16[128,128], index: 4, kind: input, shape index: {}]   ;;  %s1436_s5 = inlined_call_operand.vmem [shape: bf16[128,128], index: 5, kind: output, shape index: {}]  }
   0x1   :  { %s1272_s20 = smov 0   ;;  %s1274_s21 = smov 0  }
   0x2   :  { %s1276_s22 = smov 0   ;;  %s1278_s23 = smov 0  }
   0x3   :  { %s1280_s24 = smov 0  }
   0x4 LB: > { %s27_s25 = sadd.s32 1, %s1227_s22  ;;  %s34_s26 = sadd.s32 1, %s1231_s23  ;;  %s1235_s24 = sphi %s1280_s24, %s15_s24   ;;  %s1231_s23 = sphi %s1278_s23, %s1442_s23   ;;  %s1227_s22 = sphi %s1276_s22, %s1441_s22   ;;  %s1223_s21 = sphi %s1274_s21, %s1440_s21   ;;  %s1219_s20 = sphi %s1272_s20, %s1439_s20   ;;  %s1215_s19 = sphi %s1270_s19, %s1438_s19   ;;  %s1211_s18 = sphi %s1268_s18, %s1437_s18  }
   0x5   : > { %p28_p0 = scmp.ge.s32.totalorder %s27_s25, 3  ;;  %p50_p1 = scmp.ne.s32.totalorder %s1215_s19, %s1211_s18 }
   0x6   : > { %p51_p2 = scmp.eq.s32.totalorder %s1235_s24, 0  ;;  %s43_s30 = sadd.s32 1, %s1215_s19 }
   0x7   : > { %s1444_s25 = smov (%p28_p0, %s27_s25), 0  ;;  %s1446_s26 = smov (!%p28_p0, %s34_s26), %s1231_s23 }
   0x8   : > { %p52_p3 = por %p51_p2, %p50_p1  ;;  %p36_p4 = scmp.ge.s32.totalorder %s1446_s26, 2 }
   0x9   : > { %s39_s27 = ssub.s32 %s1227_s22, %s1444_s25  ;;  %p930_p6 = scmp.ge.s32.totalorder %s1235_s24, 6 }
   0xa   : > { %s1448_s26 = smov (%p36_p4, %s1446_s26), 0 }
   0xb   : > { %s38_s28 = ssub.s32 %s1231_s23, %s1448_s26  ;;  %224 = sbr.rel (%p930_p6) target bundleno = 30 (0x1e), region = 24 }
   0xc   : > { %s40_s29 = sor.u32 %s39_s27, %s38_s28 }
   0xd   : > { %p41_p5 = scmp.eq.s32.totalorder %s40_s29, 0 }
   0xf   : > { %s1319_s6 = scalar_select %p41_p5, %s1215_s19, %s43_s30  }
  0x12   : > { %227 = sbr.rel (!%p52_p3) target bundleno = 30 (0x1e), region = 28  ;;  %s229_s7 = sand.u32 (%p52_p3), 1, %s1215_s19  }
  0x13   : > { %s1079_s8 = smul.u32 (%p52_p3), 24, %s1231_s23  ;;  %s931_s9 = sshll.u32 (%p52_p3), %s229_s7, 5 }
  0x14   : > { %s231_s15 = scalar_lea.vmem (%p52_p3), [#allocation3], %s931_s9 }
  0x15   : > { %s234_s10 = sadd.s32 (%p52_p3), %s1227_s22, %s1079_s8 }
  0x16   : > { %s934_s11 = sshll.u32 (%p52_p3), %s234_s10, 2 }
  0x17   : > { %s236_s14 = scalar_lea.vmem (%p52_p3), %s1431_s0, %s934_s11 }
  0x18   : > { %v252_v0 = vld [vmem:[%s236_s14] sm:$0xf] (%p52_p3)  ;;  %v254_v1 = vld [vmem:[%s236_s14 + $0xc] sm:$0xf] (%p52_p3)  ;;  %v256_v2 = vld [vmem:[%s236_s14 + $0x18] sm:$0xf] (%p52_p3) }
  0x19   : > { %253 = vst [vmem:[%s231_s15] sm:$0xf] %v252_v0  ;;  %255 = vst [vmem:[%s231_s15 + $0x4] sm:$0xf] %v254_v1  ;;  %v258_v3 = vld [vmem:[%s236_s14 + $0x24] sm:$0xf] }
  0x1a   : > { %257 = vst [vmem:[%s231_s15 + $0x8] sm:$0xf] %v256_v2  ;;  %v260_v4 = vld [vmem:[%s236_s14 + $0x30] sm:$0xf]  ;;  %v262_v5 = vld [vmem:[%s236_s14 + $0x3c] sm:$0xf] }
  0x1b   : > { %259 = vst [vmem:[%s231_s15 + $0xc] sm:$0xf] %v258_v3  ;;  %261 = vst [vmem:[%s231_s15 + $0x10] sm:$0xf] %v260_v4  ;;  %v264_v6 = vld [vmem:[%s236_s14 + $0x48] sm:$0xf] }
  0x1c   : > { %263 = vst [vmem:[%s231_s15 + $0x14] sm:$0xf] %v262_v5  ;;  %v266_v7 = vld [vmem:[%s236_s14 + $0x54] sm:$0xf]  ;;  %265 = vst [vmem:[%s231_s15 + $0x18] sm:$0xf] %v264_v6 }
  0x1d   : > { %267 = vst [vmem:[%s231_s15 + $0x1c] sm:$0xf] %v266_v7 }
  0x1e PF: > { %p935_p7 = scmp.ge.s32.totalorder %s1235_s24, 1  ;;  %p329_p8 = scmp.lt.s32.totalorder %s1235_s24, 7 }
  0x20   : > { %p330_p9 = pnand %p935_p7, %p329_p8 }
  0x21   : > { %s336_s16 = sand.u32 (!%p330_p9), 1, %s1211_s18   ;;  %s937_s17 = sshll.u32 (!%p330_p9), %s1219_s20, 4 }
  0x22   : > { %333 = sbr.rel (%p330_p9) target bundleno = 352 (0x160), region = 77  ;;  %s936_s27 = sshll.u32 (!%p330_p9), %s336_s16, 5 }
  0x23   : > { %p390_p10 = scmp.lt.s32.totalorder (!%p330_p9), %s937_s17, 47  ;;  %s939_s28 = sshll.u32 (!%p330_p9), %s1223_s21, 3 }
  0x24   : > { %p405_p11 = scmp.lt.s32.totalorder (!%p330_p9), %s939_s28, 15  ;;  %s1348_s21 = scalar_lea.vmem (!%p330_p9), [#allocation3], %s936_s27 }
  0x25   : > { %p943_p12 = scmp.ne.s32.totalorder (!%p330_p9), %s1219_s20, 0 }
  0x29   : > { %s1450_s17 = smov (!%p390_p10, %s937_s17), 47  ;;  %s1452_s28 = smov (!%p405_p11, %s939_s28), 15 }
  0x2a   : > { %s938_s29 = sshll.u32 %s1450_s17, 2  ;;  %s940_s9 = sshll.u32 %s1452_s28, 2  ;;  %v1237_v8 = vmov (!%p943_p12), 0.0  }
  0x2b   : > { %s1336_s8 = scalar_lea.vmem %s1432_s1, %s938_s29  ;;  %s1341_s12 = scalar_lea.vmem %s1435_s4, %s940_s9  ;;  %427 = vst [vmem:[#allocation2] sm:$0xff] (!%p943_p12), %v1237_v8  ;;  %428 = vst [vmem:[#allocation2 + $0x8] sm:$0xff] (!%p943_p12), %v1237_v8 }
  0x2c   : > { %s1346_s14 = scalar_lea.vmem %s1436_s5, %s940_s9  ;;  %426 = sbr.rel (%p943_p12) target bundleno = 51 (0x33), region = 85  ;;  %429 = vst [vmem:[#allocation2 + $0x10] sm:$0xff] (!%p943_p12), %v1237_v8  ;;  %430 = vst [vmem:[#allocation2 + $0x18] sm:$0xff] (!%p943_p12), %v1237_v8 }
  0x2d   : > { %431 = vst [vmem:[#allocation2 + $0x20] sm:$0xff] (!%p943_p12), %v1237_v8  ;;  %432 = vst [vmem:[#allocation2 + $0x28] sm:$0xff] (!%p943_p12), %v1237_v8 }
  0x2e   : > { %433 = vst [vmem:[#allocation2 + $0x30] sm:$0xff] (!%p943_p12), %v1237_v8  ;;  %434 = vst [vmem:[#allocation2 + $0x38] sm:$0xff] (!%p943_p12), %v1237_v8 }
  0x33 PF: > { %v1137_v9 = vld [vmem:[%s1336_s8] sm:$0xff]   ;;  %v1138_v10 = vld [vmem:[%s1336_s8 + $0x8] sm:$0xff]   ;;  %v1139_v11 = vld [vmem:[%s1336_s8 + $0x10] sm:$0xff]   ;;  %p956_p13 = scmp.ne.s32.totalorder %s1219_s20, 2 }
  0x34   : > { %1039 = vmatprep.subr.bf16.mxu0 %v1137_v9  ;;  %1063 = vmatprep.subr.bf16.mxu1 %v1137_v9  ;;  %v1140_v12 = vld [vmem:[%s1336_s8 + $0x18] sm:$0xff]   ;;  %v1145_v13 = vld [vmem:[%s1348_s21] sm:$0xff]   ;;  %v1146_v14 = vld [vmem:[%s1348_s21 + $0x10] sm:$0xff]  }
  0x35   : > { %1040 = vmatpush3.bf16.msra.mxu0 %v1137_v9  ;;  %1071 = vmatpush3.bf16.msra.mxu1 %v1137_v9  ;;  %v1141_v15 = vld [vmem:[%s1336_s8 + $0x20] sm:$0xff]   ;;  %v1142_v16 = vld [vmem:[%s1336_s8 + $0x28] sm:$0xff]   ;;  %v1143_v17 = vld [vmem:[%s1336_s8 + $0x30] sm:$0xff]  }
  0x36   : > { %1041 = vmatprep.subr.bf16.mxu0 %v1138_v10  ;;  %1064 = vmatprep.subr.bf16.mxu1 %v1138_v10  ;;  %v1144_v18 = vld [vmem:[%s1336_s8 + $0x38] sm:$0xff]   ;;  %v1147_v19 = vld [vmem:[%s1348_s21 + $0x8] sm:$0xff]   ;;  %v437_v21 = vld [vmem:[#allocation2 + $0x10] sm:$0xff] }
  0x37   : > { %1055 = vmatprep.mubr.bf16.mxu0 %v1145_v13  ;;  %1059 = vmatprep.mubr.bf16.mxu1 %v1146_v14  ;;  %v1148_v20 = vld [vmem:[%s1348_s21 + $0x18] sm:$0xff]   ;;  %v441_v22 = vld [vmem:[#allocation2 + $0x30] sm:$0xff]  ;;  %v435_v23 = vld [vmem:[#allocation2] sm:$0xff] }
  0x38   : > { %v439_v24 = vld [vmem:[#allocation2 + $0x20] sm:$0xff]  ;;  %v438_v27 = vld [vmem:[#allocation2 + $0x18] sm:$0xff]  ;;  %v436_v33 = vld [vmem:[#allocation2 + $0x8] sm:$0xff] }
  0x39   : > { %1042 = vmatpush3.bf16.msra.mxu0 %v1138_v10  ;;  %1072 = vmatpush3.bf16.msra.mxu1 %v1138_v10  ;;  %v442_v28 = vld [vmem:[#allocation2 + $0x38] sm:$0xff]  ;;  %v440_v34 = vld [vmem:[#allocation2 + $0x28] sm:$0xff]  ;;  %v957_v47 = vld [vmem:[%s1433_s2] ss:$0 sm:$0xff] (!%p956_p13) }
  0x3a   : > { %1043 = vmatprep.subr.bf16.mxu0 %v1139_v11  ;;  %1065 = vmatprep.subr.bf16.mxu1 %v1139_v11  ;;  %v958_v50 = vld [vmem:[%s1434_s3] ss:$0 sm:$0xff] (!%p956_p13) }
  0x3d   : > { %1044 = vmatpush3.bf16.msra.mxu0 %v1139_v11  ;;  %1073 = vmatpush3.bf16.msra.mxu1 %v1139_v11 }
  0x3e   : > { %1045 = vmatprep.subr.bf16.mxu0 %v1140_v12  ;;  %1066 = vmatprep.subr.bf16.mxu1 %v1140_v12 }
  0x41   : > { %1046 = vmatpush3.bf16.msra.mxu0 %v1140_v12  ;;  %1074 = vmatpush3.bf16.msra.mxu1 %v1140_v12 }
  0x42   : > { %1047 = vmatprep.subr.bf16.mxu0 %v1141_v15  ;;  %1067 = vmatprep.subr.bf16.mxu1 %v1141_v15 }
  0x45   : > { %1048 = vmatpush3.bf16.msra.mxu0 %v1141_v15  ;;  %1075 = vmatpush3.bf16.msra.mxu1 %v1141_v15 }
  0x46   : > { %1049 = vmatprep.subr.bf16.mxu0 %v1142_v16  ;;  %1068 = vmatprep.subr.bf16.mxu1 %v1142_v16 }
  0x49   : > { %1050 = vmatpush3.bf16.msra.mxu0 %v1142_v16  ;;  %1076 = vmatpush3.bf16.msra.mxu1 %v1142_v16 }
  0x4a   : > { %1051 = vmatprep.subr.bf16.mxu0 %v1143_v17  ;;  %1069 = vmatprep.subr.bf16.mxu1 %v1143_v17 }
  0x4d   : > { %1052 = vmatpush3.bf16.msra.mxu0 %v1143_v17  ;;  %1077 = vmatpush3.bf16.msra.mxu1 %v1143_v17 }
  0x4e   : > { %1053 = vmatprep.subr.bf16.mxu0 %v1144_v18  ;;  %1070 = vmatprep.subr.bf16.mxu1 %v1144_v18 }
  0x51   : > { %1054 = vmatpush3.bf16.msra.mxu0 %v1144_v18  ;;  %1078 = vmatpush3.bf16.msra.mxu1 %v1144_v18 }
  0x54   : > { %1056 = vmatmul.mubr.bf16.vlgmr.msra.gmra.mrb[0].mxu0 %v1147_v19  ;;  %1060 = vmatmul.mubr.bf16.vlgmr.msra.gmra.mrb[0].mxu1 %v1148_v20 }
 0x127   : > { %v1057_v25 = vpop.f32.mrb[0].mxu0  ;;  %v1061_v26 = vpop.f32.mrb[0].mxu1  ;;  %623 = sbr.rel (%p956_p13) target bundleno = 352 (0x160), region = 89 }
 0x128   : > { %v606_v29 = vadd.f32 %v1057_v25, %v437_v21  ;;  %v610_v30 = vadd.f32 %v1061_v26, %v441_v22  ;;  %v573_v31 = vpop.f32.mrb[1].mxu0  ;;  %v589_v32 = vpop.f32.mrb[1].mxu1 }
 0x129   : > { %v604_v35 = vadd.f32 %v573_v31, %v435_v23  ;;  %v608_v36 = vadd.f32 %v589_v32, %v439_v24  ;;  %v1058_v37 = vpop.f32.mrb[2].mxu0  ;;  %v1062_v38 = vpop.f32.mrb[2].mxu1  ;;  %v986_v31 = vld [vmem:[%s1341_s12] sm:$0xff] (!%p956_p13)   ;;  %v1021_v32 = vld [vmem:[%s1341_s12 + $0x8] sm:$0xff] (!%p956_p13)  }
 0x12a   : > { %614 = vst [vmem:[#allocation2 + $0x10] sm:$0xff] %v606_v29  ;;  %618 = vst [vmem:[#allocation2 + $0x30] sm:$0xff] %v610_v30  ;;  %v607_v39 = vadd.f32 %v1058_v37, %v438_v27  ;;  %v611_v40 = vadd.f32 %v1062_v38, %v442_v28  ;;  %v576_v41 = vpop.f32.mrb[3].mxu0  ;;  %v592_v42 = vpop.f32.mrb[3].mxu1 }
 0x12b   : > { %612 = vst [vmem:[#allocation2] sm:$0xff] %v604_v35  ;;  %616 = vst [vmem:[#allocation2 + $0x20] sm:$0xff] %v608_v36  ;;  %v605_v43 = vadd.f32 %v576_v41, %v436_v33  ;;  %v609_v44 = vadd.f32 %v592_v42, %v440_v34  ;;  %v987_v33 = vunpack.c.l.bf16 (!%p956_p13), %v986_v31  ;;  %v988_v35 = vunpack.c.h.bf16 (!%p956_p13), %v986_v31  ;;  %v1022_v36 = vld [vmem:[%s1341_s12 + $0x10] sm:$0xff] (!%p956_p13)  }
 0x12c   : > { %615 = vst [vmem:[#allocation2 + $0x18] sm:$0xff] %v607_v39  ;;  %619 = vst [vmem:[#allocation2 + $0x38] sm:$0xff] %v611_v40  ;;  %v991_v39 = vunpack.c.l.bf16 (!%p956_p13), %v1021_v32  ;;  %v992_v42 = vunpack.c.h.bf16 (!%p956_p13), %v1021_v32 }
 0x12d   : > { %613 = vst [vmem:[#allocation2 + $0x8] sm:$0xff] %v605_v43  ;;  %617 = vst [vmem:[#allocation2 + $0x28] sm:$0xff] %v609_v44  ;;  %v1023_v43 = vld [vmem:[%s1341_s12 + $0x18] sm:$0xff] (!%p956_p13)  }
 0x131   : > { %v626_v51 = vld [vmem:[#allocation2 + $0x10] sm:$0xff] }
 0x132   : > { %v624_v45 = vld [vmem:[#allocation2] sm:$0xff]  ;;  %v641_v53 = vmul.f32 %v957_v47, %v626_v51  ;;  %v630_v62 = vld [vmem:[#allocation2 + $0x30] sm:$0xff]  ;;  %v996_v51 = vunpack.c.h.bf16 %v1022_v36 }
 0x133   : > { %v639_v48 = vmul.f32 %v957_v47, %v624_v45  ;;  %v627_v52 = vld [vmem:[#allocation2 + $0x18] sm:$0xff]  ;;  %v628_v54 = vld [vmem:[#allocation2 + $0x20] sm:$0xff]  ;;  %v645_v7 = vmul.f32 %v957_v47, %v630_v62 }
 0x134   : > { %v625_v46 = vld [vmem:[#allocation2 + $0x8] sm:$0xff]  ;;  %v642_v57 = vmul.f32 %v957_v47, %v627_v52  ;;  %v1374_v59 = vadd.f32 %v958_v50, %v641_v53  ;;  %v643_v60 = vmul.f32 %v957_v47, %v628_v54  ;;  %v631_v63 = vld [vmem:[#allocation2 + $0x38] sm:$0xff] }
 0x135   : > { %v640_v49 = vmul.f32 %v957_v47, %v625_v46  ;;  %v1370_v55 = vadd.f32 %v958_v50, %v639_v48  ;;  %v629_v58 = vld [vmem:[#allocation2 + $0x28] sm:$0xff]  ;;  %v646_v8 = vmul.f32 %v957_v47, %v631_v63  ;;  %v1388_v11 = vadd.f32 %v958_v50, %v645_v7 }
 0x136   : > { %v644_v61 = vmul.f32 %v957_v47, %v629_v58  ;;  %v1378_v2 = vadd.f32 %v958_v50, %v642_v57  ;;  %v961_v3 = vmul.f32 -1.442695, %v1374_v59  ;;  %v1381_v4 = vadd.f32 %v958_v50, %v643_v60 }
 0x137   : > { %v1372_v56 = vadd.f32 %v958_v50, %v640_v49  ;;  %v959_v0 = vmul.f32 -1.442695, %v1370_v55  ;;  %v1390_v12 = vadd.f32 %v958_v50, %v646_v8  ;;  %v965_v13 = vmul.f32 -1.442695, %v1388_v11 }
 0x138   : > { %v1383_v5 = vadd.f32 %v958_v50, %v644_v61  ;;  %v962_v6 = vmul.f32 -1.442695, %v1378_v2  ;;  %v963_v9 = vmul.f32 -1.442695, %v1381_v4  ;;  %v995_v47 = vunpack.c.l.bf16 %v1022_v36 }
 0x139   : > { %v960_v1 = vmul.f32 -1.442695, %v1372_v56  ;;  %1149 = vpow2.f32 %v959_v0  ;;  %v966_v14 = vmul.f32 -1.442695, %v1390_v12  ;;  %v1000_v60 = vunpack.c.h.bf16 %v1023_v43 }
 0x13a   : > { %v964_v10 = vmul.f32 -1.442695, %v1383_v5 }
 0x13b   : > { %1151 = vpow2.f32 %v960_v1 }
 0x13c   : > { %1153 = vpow2.f32 %v961_v3 }
 0x13d   : > { %1155 = vpow2.f32 %v962_v6 }
 0x13e   : > { %1157 = vpow2.f32 %v963_v9 }
 0x13f   : > { %1159 = vpow2.f32 %v964_v10 }
 0x140   : > { %1161 = vpow2.f32 %v965_v13 }
 0x141   : > { %1163 = vpow2.f32 %v966_v14 }
 0x143   : > { %v1150_v15 = vpop.eup %1149 }
 0x144   : > { %v686_v17 = vadd.f32 1.0, %v1150_v15 }
 0x145   : > { %v1152_v16 = vpop.eup %1151 }
 0x146   : > { %v1154_v18 = vpop.eup %1153  ;;  %v687_v19 = vadd.f32 1.0, %v1152_v16  ;;  %1165 = vrcp.f32 %v686_v17 }
 0x147   : > { %v1156_v20 = vpop.eup %1155  ;;  %v688_v21 = vadd.f32 1.0, %v1154_v18 }
 0x148   : > { %v1158_v22 = vpop.eup %1157  ;;  %1167 = vrcp.f32 %v687_v19  ;;  %v689_v23 = vadd.f32 1.0, %v1156_v20 }
 0x149   : > { %v1160_v24 = vpop.eup %1159  ;;  %1169 = vrcp.f32 %v688_v21  ;;  %v690_v25 = vadd.f32 1.0, %v1158_v22 }
 0x14a   : > { %v1162_v26 = vpop.eup %1161  ;;  %1171 = vrcp.f32 %v689_v23  ;;  %v691_v27 = vadd.f32 1.0, %v1160_v24 }
 0x14b   : > { %v1164_v28 = vpop.eup %1163  ;;  %1173 = vrcp.f32 %v690_v25  ;;  %v692_v29 = vadd.f32 1.0, %v1162_v26 }
 0x14c   : > { %1175 = vrcp.f32 %v691_v27  ;;  %v693_v30 = vadd.f32 1.0, %v1164_v28 }
 0x14d   : > { %1177 = vrcp.f32 %v692_v29 }
 0x14e   : > { %1179 = vrcp.f32 %v693_v30 }
 0x150   : > { %v1166_v34 = vpop.eup %1165 }
 0x151   : > { %v710_v38 = vmul.f32 %v1166_v34, %v1370_v55  ;;  %v999_v55 = vunpack.c.l.bf16 %v1023_v43 }
 0x152   : > { %v1168_v37 = vpop.eup %1167 }
 0x153   : > { %v1170_v40 = vpop.eup %1169  ;;  %v711_v41 = vmul.f32 %v1168_v37, %v1372_v56  ;;  %v734_v45 = vadd.f32 %v987_v33, %v710_v38 }
 0x154   : > { %v1172_v44 = vpop.eup %1171  ;;  %v712_v46 = vmul.f32 %v1170_v40, %v1374_v59 }
 0x155   : > { %v1174_v48 = vpop.eup %1173  ;;  %v735_v49 = vadd.f32 %v988_v35, %v711_v41  ;;  %v713_v50 = vmul.f32 %v1172_v44, %v1378_v2 }
 0x156   : > { %v1176_v52 = vpop.eup %1175  ;;  %v736_v53 = vadd.f32 %v991_v39, %v712_v46  ;;  %v714_v54 = vmul.f32 %v1174_v48, %v1381_v4 }
 0x157   : > { %v1178_v56 = vpop.eup %1177  ;;  %v1004_v57 = vpack.c.bf16 %v735_v49, %v734_v45  ;;  %v737_v58 = vadd.f32 %v992_v42, %v713_v50  ;;  %v715_v59 = vmul.f32 %v1176_v52, %v1383_v5 }
 0x158   : > { %v1180_v61 = vpop.eup %1179  ;;  %v738_v62 = vadd.f32 %v995_v47, %v714_v54  ;;  %v716_v63 = vmul.f32 %v1178_v56, %v1388_v11 }
 0x159   : > { %1005 = vst [vmem:[%s1346_s14] sm:$0xff] %v1004_v57   ;;  %v1009_v0 = vpack.c.bf16 %v737_v58, %v736_v53  ;;  %v739_v1 = vadd.f32 %v996_v51, %v715_v59  ;;  %v717_v2 = vmul.f32 %v1180_v61, %v1390_v12 }
 0x15a   : > { %v740_v3 = vadd.f32 %v999_v55, %v716_v63 }
 0x15b   : > { %1024 = vst [vmem:[%s1346_s14 + $0x8] sm:$0xff] %v1009_v0   ;;  %v1014_v4 = vpack.c.bf16 %v739_v1, %v738_v62  ;;  %v741_v6 = vadd.f32 %v1000_v60, %v717_v2 }
 0x15d   : > { %1025 = vst [vmem:[%s1346_s14 + $0x10] sm:$0xff] %v1014_v4   ;;  %v1019_v7 = vpack.c.bf16 %v741_v6, %v740_v3 }
 0x15f   : > { %1026 = vst [vmem:[%s1346_s14 + $0x18] sm:$0xff] %v1019_v7  }
 0x160 PF: > { %s15_s24 = sadd.s32 1, %s1235_s24   ;;  %s1437_s18 = smov %s1215_s19 }
 0x161   : > { %p12_p0 = scmp.ge.s32.totalorder %s15_s24, 8   ;;  %s1438_s19 = smov %s1319_s6 }
 0x162   : > { %s1439_s20 = smov %s1227_s22  ;;  %s1440_s21 = smov %s1231_s23 }
 0x163   : > { %s1441_s22 = smov %s1444_s25  ;;  %s1442_s23 = smov %s1448_s26 }
 0x164   :  { %14 = sbr.rel (!%p12_p0) target bundleno = 4 (0x4), region = 136 }

// kernel: _lambda_.71
= control target key start
LH: loop header
LB: loop body
LE: loop exit
PB: predicated region body
PF: predicated region fallthrough
CT: control target
= control target key end

     0   :  { %s695_s15 = smov 0   ;;  %s697_s16 = smov 0   ;;  %s765_s0 = inlined_call_operand.vmem [shape: bf16[32,128], index: 0, kind: input, shape index: {}]   ;;  %s766_s1 = inlined_call_operand.vmem [shape: bf16[128,128], index: 1, kind: input, shape index: {}]   ;;  %s767_s2 = inlined_call_operand.vmem [shape: f32[1,128], index: 2, kind: input, shape index: {}]   ;;  %s768_s3 = inlined_call_operand.vmem [shape: f32[1,128], index: 3, kind: input, shape index: {}]   ;;  %s769_s4 = inlined_call_operand.vmem [shape: bf16[32,128], index: 4, kind: output, shape index: {}]  }
   0x1   :  { %s699_s17 = smov 0  }
   0x2 LB: > { %s26_s18 = sadd.s32 1, %s662_s16  ;;  %p543_p0 = scmp.ge.s32.totalorder %s666_s17, 1  ;;  %s666_s17 = sphi %s699_s17, %s14_s17   ;;  %s662_s16 = sphi %s697_s16, %s771_s16   ;;  %s658_s15 = sphi %s695_s15, %s770_s15  }
   0x3   : > { %p28_p1 = scmp.ge.s32.totalorder %s26_s18, 2  ;;  %p202_p2 = scmp.lt.s32.totalorder %s666_s17, 3 }
   0x5   : > { %s773_s18 = smov (%p28_p1, %s26_s18), 0  ;;  %p203_p3 = pnand %p543_p0, %p202_p2 }
   0x6   : > { %v627_v0 = vld [vmem:[%s766_s1] sm:$0xff] (!%p203_p3)   ;;  %v668_v1 = vmov (!%p203_p3), 0.0   ;;  %v628_v2 = vld [vmem:[%s766_s1 + $0x8] sm:$0xff] (!%p203_p3)   ;;  %vm669_vm0 = vmmov (!%p203_p3), 0   ;;  %s544_s23 = sshll.u32 (!%p203_p3), %s658_s15, 1  ;;  %v629_v3 = vld [vmem:[%s766_s1 + $0x10] sm:$0xff] (!%p203_p3)  }
   0x7   : > { %206 = sbr.rel (%p203_p3) target bundleno = 288 (0x120), region = 36  ;;  %581 = vmatprep.subr.bf16.mxu0 (!%p203_p3), %v668_v1  ;;  %597 = vmatprep.mubr.msk.bf16.mxu0 (!%p203_p3), %vm669_vm0, %v668_v1  ;;  %p242_p4 = scmp.lt.s32.totalorder (!%p203_p3), %s544_s23, 3  ;;  %v630_v4 = vld [vmem:[%s766_s1 + $0x18] sm:$0xff] (!%p203_p3)   ;;  %v631_v5 = vld [vmem:[%s766_s1 + $0x20] sm:$0xff] (!%p203_p3)   ;;  %v632_v6 = vld [vmem:[%s766_s1 + $0x28] sm:$0xff] (!%p203_p3)  }
   0x8   : > { %582 = vmatpush3.bf16.msra.mxu0 (!%p203_p3), %v627_v0  ;;  %v633_v7 = vld [vmem:[%s766_s1 + $0x30] sm:$0xff] (!%p203_p3)   ;;  %v634_v8 = vld [vmem:[%s766_s1 + $0x38] sm:$0xff] (!%p203_p3)   ;;  %v557_v10 = vld [vmem:[%s767_s2] ss:$0 sm:$0xff] (!%p203_p3) }
   0x9   : > { %583 = vmatprep.subr.bf16.mxu0 (!%p203_p3), %v668_v1  ;;  %v558_v12 = vld [vmem:[%s768_s3] ss:$0 sm:$0xff] (!%p203_p3) }
   0xc   : > { %584 = vmatpush3.bf16.msra.mxu0 (!%p203_p3), %v628_v2 }
   0xd   : > { %585 = vmatprep.subr.bf16.mxu0 (!%p203_p3), %v668_v1 }
   0xe   : > { %s775_s23 = smov (!%p242_p4, %s544_s23), 3 }
   0xf   : > { %s545_s26 = sshll.u32 %s775_s23, 2 }
  0x10   : > { %s245_s29 = scalar_lea.vmem %s765_s0, %s545_s26  ;;  %586 = vmatpush3.bf16.msra.mxu0 %v629_v3  ;;  %s264_s24 = scalar_lea.vmem %s769_s4, %s545_s26 }
  0x11   : > { %587 = vmatprep.subr.bf16.mxu0 %v668_v1  ;;  %v635_v9 = vld [vmem:[%s245_s29] sm:$0xff]  }
  0x14   : > { %588 = vmatpush3.bf16.msra.mxu0 %v630_v4 }
  0x15   : > { %589 = vmatprep.subr.bf16.mxu0 %v668_v1 }
  0x18   : > { %590 = vmatpush3.bf16.msra.mxu0 %v631_v5 }
  0x19   : > { %591 = vmatprep.subr.bf16.mxu0 %v668_v1 }
  0x1c   : > { %592 = vmatpush3.bf16.msra.mxu0 %v632_v6 }
  0x1d   : > { %593 = vmatprep.subr.bf16.mxu0 %v668_v1 }
  0x20   : > { %594 = vmatpush3.bf16.msra.mxu0 %v633_v7 }
  0x21   : > { %595 = vmatprep.subr.bf16.mxu0 %v668_v1 }
  0x24   : > { %596 = vmatpush3.bf16.msra.mxu0 %v634_v8 }
  0x27   : > { %598 = vmatmul.mubr.bf16.vlgmr.msra.gmra.mrb[0].mxu0 %v635_v9 }
  0xfa   : > { %v373_v11 = vpop.f32.mrb[0].mxu0 }
  0xfb   : > { %v387_v13 = vmul.f32 %v557_v10, %v373_v11  ;;  %v599_v14 = vpop.f32.mrb[1].mxu0 }
  0xfc   : > { %v376_v15 = vpop.f32.mrb[2].mxu0 }
  0xfd   : > { %v396_v16 = vadd.f32 %v558_v12, %v387_v13  ;;  %v388_v17 = vmul.f32 %v557_v10, %v376_v15  ;;  %v600_v18 = vpop.f32.mrb[3].mxu0 }
  0xff   : > { %v559_v19 = vmul.f32 -1.442695, %v396_v16  ;;  %v397_v20 = vadd.f32 %v558_v12, %v388_v17 }
 0x101   : > { %636 = vpow2.f32 %v559_v19  ;;  %v560_v21 = vmul.f32 -1.442695, %v397_v20 }
 0x103   : > { %638 = vpow2.f32 %v560_v21 }
 0x10b   : > { %v637_v22 = vpop.eup %636 }
 0x10c   : > { %v404_v23 = vadd.f32 1.0, %v637_v22 }
 0x10d   : > { %v639_v24 = vpop.eup %638 }
 0x10e   : > { %640 = vrcp.f32 %v404_v23  ;;  %v405_v25 = vadd.f32 1.0, %v639_v24 }
 0x110   : > { %642 = vrcp.f32 %v405_v25 }
 0x118   : > { %v641_v26 = vpop.eup %640 }
 0x119   : > { %v410_v28 = vmul.f32 %v641_v26, %v396_v16 }
 0x11a   : > { %v643_v27 = vpop.eup %642 }
 0x11b   : > { %v411_v29 = vmul.f32 %v643_v27, %v397_v20 }
 0x11d   : > { %v570_v30 = vpack.c.bf16 %v411_v29, %v410_v28 }
 0x11f   : > { %571 = vst [vmem:[%s264_s24] sm:$0xff] %v570_v30  }
 0x120 PF: > { %s14_s17 = sadd.s32 1, %s666_s17   ;;  %s770_s15 = smov %s662_s16 }
 0x121   : > { %p11_p5 = scmp.ge.s32.totalorder %s14_s17, 4   ;;  %s771_s16 = smov %s773_s18 }
 0x123   :  { %13 = sbr.rel (!%p11_p5) target bundleno = 2 (0x2), region = 75 }

// kernel: _lambda_.70
= control target key start
LH: loop header
LB: loop body
LE: loop exit
PB: predicated region body
PF: predicated region fallthrough
CT: control target
= control target key end

     0   :  { %s872_s15 = smov 0   ;;  %s874_s16 = smov 0   ;;  %s990_s0 = inlined_call_operand.vmem [shape: bf16[32,640], index: 0, kind: input, shape index: {}]   ;;  %s991_s1 = inlined_call_operand.vmem [shape: bf16[640,128], index: 1, kind: input, shape index: {}]   ;;  %s992_s2 = inlined_call_operand.vmem [shape: f32[1,128], index: 2, kind: input, shape index: {}]   ;;  %s993_s3 = inlined_call_operand.vmem [shape: f32[1,128], index: 3, kind: input, shape index: {}]   ;;  %s994_s4 = inlined_call_operand.vmem [shape: bf16[32,128], index: 4, kind: output, shape index: {}]  }
   0x1   :  { %s876_s17 = smov 0   ;;  %s878_s18 = smov 0  }
   0x2   :  { %s880_s19 = smov 0   ;;  %s882_s20 = smov 0  }
   0x3   :  { %s884_s21 = smov 0  }
   0x4 LB: > { %s26_s22 = sadd.s32 1, %s834_s19  ;;  %s33_s23 = sadd.s32 1, %s838_s20  ;;  %s842_s21 = sphi %s884_s21, %s14_s21   ;;  %s838_s20 = sphi %s882_s20, %s1000_s20   ;;  %s834_s19 = sphi %s880_s19, %s999_s19   ;;  %s830_s18 = sphi %s878_s18, %s998_s18   ;;  %s826_s17 = sphi %s876_s17, %s997_s17   ;;  %s822_s16 = sphi %s874_s16, %s996_s16   ;;  %s818_s15 = sphi %s872_s15, %s995_s15  }
   0x5   : > { %p27_p0 = scmp.ge.s32.totalorder %s26_s22, 5  ;;  %p49_p1 = scmp.ne.s32.totalorder %s822_s16, %s818_s15 }
   0x6   : > { %p50_p2 = scmp.eq.s32.totalorder %s842_s21, 0  ;;  %s42_s27 = sadd.s32 1, %s822_s16 }
   0x7   : > { %s1002_s22 = smov (%p27_p0, %s26_s22), 0  ;;  %s1004_s23 = smov (!%p27_p0, %s33_s23), %s838_s20 }
   0x8   : > { %p51_p3 = por %p50_p2, %p49_p1  ;;  %p35_p4 = scmp.ge.s32.totalorder %s1004_s23, 2 }
   0x9   : > { %s38_s24 = ssub.s32 %s834_s19, %s1002_s22  ;;  %p645_p6 = scmp.ge.s32.totalorder %s842_s21, 10 }
   0xa   : > { %s1006_s23 = smov (%p35_p4, %s1004_s23), 0 }
   0xb   : > { %s37_s25 = ssub.s32 %s838_s20, %s1006_s23  ;;  %195 = sbr.rel (%p645_p6) target bundleno = 26 (0x1a), region = 24 }
   0xc   : > { %s39_s26 = sor.u32 %s38_s24, %s37_s25 }
   0xd   : > { %p40_p5 = scmp.eq.s32.totalorder %s39_s26, 0 }
   0xf   : > { %s923_s28 = scalar_select %p40_p5, %s822_s16, %s42_s27  }
  0x12   : > { %198 = sbr.rel (!%p51_p3) target bundleno = 26 (0x1a), region = 28  ;;  %s200_s29 = sand.u32 (%p51_p3), 1, %s822_s16  }
  0x13   : > { %s711_s30 = smul.u32 (%p51_p3), 10, %s838_s20  ;;  %s646_s5 = sshll.u32 (%p51_p3), %s200_s29, 3 }
  0x14   : > { %s202_s11 = scalar_lea.vmem (%p51_p3), [#allocation3], %s646_s5 }
  0x15   : > { %s205_s6 = sadd.s32 (%p51_p3), %s834_s19, %s711_s30 }
  0x16   : > { %s649_s7 = sshll.u32 (%p51_p3), %s205_s6, 2 }
  0x17   : > { %s207_s10 = scalar_lea.vmem (%p51_p3), %s990_s0, %s649_s7 }
  0x18   : > { %v223_v0 = vld [vmem:[%s207_s10] sm:$0xf] (%p51_p3)  ;;  %v225_v1 = vld [vmem:[%s207_s10 + $0x14] sm:$0xf] (%p51_p3) }
  0x19   : > { %224 = vst [vmem:[%s202_s11] sm:$0xf] %v223_v0  ;;  %226 = vst [vmem:[%s202_s11 + $0x4] sm:$0xf] %v225_v1 }
  0x1a PF: > { %p650_p7 = scmp.ge.s32.totalorder %s842_s21, 1  ;;  %p264_p8 = scmp.lt.s32.totalorder %s842_s21, 11 }
  0x1c   : > { %p265_p9 = pnand %p650_p7, %p264_p8 }
  0x1d   : > { %s271_s12 = sand.u32 (!%p265_p9), 1, %s818_s15   ;;  %s652_s13 = sshll.u32 (!%p265_p9), %s826_s17, 4 }
  0x1e   : > { %268 = sbr.rel (%p265_p9) target bundleno = 339 (0x153), region = 73  ;;  %s936_s14 = sshll.u32 (!%p265_p9), %s271_s12, 3 }
  0x1f   : > { %p315_p10 = scmp.lt.s32.totalorder (!%p265_p9), %s652_s13, 79  ;;  %s654_s24 = sshll.u32 (!%p265_p9), %s830_s18, 1 }
  0x20   : > { %p330_p11 = scmp.lt.s32.totalorder (!%p265_p9), %s654_s24, 3  ;;  %s273_s7 = scalar_lea.vmem (!%p265_p9), [#allocation3], %s936_s14 }
  0x21   : > { %p656_p12 = scmp.ne.s32.totalorder (!%p265_p9), %s826_s17, 0 }
  0x25   : > { %s1008_s13 = smov (!%p315_p10, %s652_s13), 79  ;;  %s1010_s24 = smov (!%p330_p11, %s654_s24), 3 }
  0x26   : > { %s653_s25 = sshll.u32 %s1008_s13, 2  ;;  %s655_s30 = sshll.u32 %s1010_s24, 2  ;;  %v844_v2 = vmov (!%p656_p12), 0.0  }
  0x27   : > { %s942_s29 = scalar_lea.vmem %s991_s1, %s653_s25  ;;  %s947_s15 = scalar_lea.vmem %s994_s4, %s655_s30  ;;  %343 = vst [vmem:[#allocation2] sm:$0xff] (!%p656_p12), %v844_v2  ;;  %344 = vst [vmem:[#allocation2 + $0x8] sm:$0xff] (!%p656_p12), %v844_v2 }
  0x28   : > { %342 = sbr.rel (%p656_p12) target bundleno = 47 (0x2f), region = 81 }
  0x2f PF: > { %v771_v3 = vld [vmem:[%s942_s29] sm:$0xff]   ;;  %v845_v4 = vmov 0.0   ;;  %v772_v5 = vld [vmem:[%s942_s29 + $0x8] sm:$0xff]   ;;  %vm846_vm0 = vmmov 0   ;;  %v773_v6 = vld [vmem:[%s942_s29 + $0x10] sm:$0xff]   ;;  %p666_p13 = scmp.ne.s32.totalorder %s826_s17, 4 }
  0x30   : > { %691 = vmatprep.subr.bf16.mxu0 %v845_v4  ;;  %707 = vmatprep.mubr.msk.bf16.mxu0 %vm846_vm0, %v845_v4  ;;  %v774_v7 = vld [vmem:[%s942_s29 + $0x18] sm:$0xff]   ;;  %v775_v8 = vld [vmem:[%s942_s29 + $0x20] sm:$0xff]   ;;  %v776_v9 = vld [vmem:[%s942_s29 + $0x28] sm:$0xff]  }
  0x31   : > { %692 = vmatpush3.bf16.msra.mxu0 %v771_v3  ;;  %v777_v10 = vld [vmem:[%s942_s29 + $0x30] sm:$0xff]   ;;  %v778_v11 = vld [vmem:[%s942_s29 + $0x38] sm:$0xff]   ;;  %v345_v13 = vld [vmem:[#allocation2] sm:$0xff] }
  0x32   : > { %693 = vmatprep.subr.bf16.mxu0 %v845_v4  ;;  %v779_v12 = vld [vmem:[%s273_s7] sm:$0xff]   ;;  %v346_v15 = vld [vmem:[#allocation2 + $0x8] sm:$0xff]  ;;  %v667_v23 = vld [vmem:[%s992_s2] ss:$0 sm:$0xff] (!%p666_p13) }
  0x33   : > { %v668_v26 = vld [vmem:[%s993_s3] ss:$0 sm:$0xff] (!%p666_p13) }
  0x35   : > { %694 = vmatpush3.bf16.msra.mxu0 %v772_v5 }
  0x36   : > { %695 = vmatprep.subr.bf16.mxu0 %v845_v4 }
  0x39   : > { %696 = vmatpush3.bf16.msra.mxu0 %v773_v6 }
  0x3a   : > { %697 = vmatprep.subr.bf16.mxu0 %v845_v4 }
  0x3d   : > { %698 = vmatpush3.bf16.msra.mxu0 %v774_v7 }
  0x3e   : > { %699 = vmatprep.subr.bf16.mxu0 %v845_v4 }
  0x41   : > { %700 = vmatpush3.bf16.msra.mxu0 %v775_v8 }
  0x42   : > { %701 = vmatprep.subr.bf16.mxu0 %v845_v4 }
  0x45   : > { %702 = vmatpush3.bf16.msra.mxu0 %v776_v9 }
  0x46   : > { %703 = vmatprep.subr.bf16.mxu0 %v845_v4 }
  0x49   : > { %704 = vmatpush3.bf16.msra.mxu0 %v777_v10 }
  0x4a   : > { %705 = vmatprep.subr.bf16.mxu0 %v845_v4 }
  0x4d   : > { %706 = vmatpush3.bf16.msra.mxu0 %v778_v11 }
  0x50   : > { %708 = vmatmul.mubr.bf16.vlgmr.msra.gmra.mrb[0].mxu0 %v779_v12 }
 0x122   : > { %467 = sbr.rel (%p666_p13) target bundleno = 339 (0x153), region = 85 }
 0x123   : > { %v453_v14 = vpop.f32.mrb[0].mxu0 }
 0x124   : > { %v460_v16 = vadd.f32 %v453_v14, %v345_v13  ;;  %v709_v17 = vpop.f32.mrb[1].mxu0 }
 0x125   : > { %v456_v18 = vpop.f32.mrb[2].mxu0 }
 0x126   : > { %462 = vst [vmem:[#allocation2] sm:$0xff] %v460_v16  ;;  %v461_v19 = vadd.f32 %v456_v18, %v346_v15  ;;  %v710_v20 = vpop.f32.mrb[3].mxu0 }
 0x128   : > { %463 = vst [vmem:[#allocation2 + $0x8] sm:$0xff] %v461_v19 }
 0x12d   : > { %v468_v21 = vld [vmem:[#allocation2] sm:$0xff] }
 0x12e   : > { %v477_v24 = vmul.f32 %v667_v23, %v468_v21 }
 0x12f   : > { %v469_v22 = vld [vmem:[#allocation2 + $0x8] sm:$0xff] }
 0x130   : > { %v478_v25 = vmul.f32 %v667_v23, %v469_v22  ;;  %v486_v27 = vadd.f32 %v668_v26, %v477_v24 }
 0x132   : > { %v487_v28 = vadd.f32 %v668_v26, %v478_v25  ;;  %v669_v29 = vmul.f32 -1.442695, %v486_v27 }
 0x134   : > { %v670_v30 = vmul.f32 -1.442695, %v487_v28  ;;  %780 = vpow2.f32 %v669_v29 }
 0x136   : > { %782 = vpow2.f32 %v670_v30 }
 0x13e   : > { %v781_v31 = vpop.eup %780 }
 0x13f   : > { %v494_v33 = vadd.f32 1.0, %v781_v31 }
 0x140   : > { %v783_v32 = vpop.eup %782 }
 0x141   : > { %v495_v34 = vadd.f32 1.0, %v783_v32  ;;  %784 = vrcp.f32 %v494_v33 }
 0x143   : > { %786 = vrcp.f32 %v495_v34 }
 0x14b   : > { %v785_v35 = vpop.eup %784 }
 0x14c   : > { %v500_v37 = vmul.f32 %v785_v35, %v486_v27 }
 0x14d   : > { %v787_v36 = vpop.eup %786 }
 0x14e   : > { %v501_v38 = vmul.f32 %v787_v36, %v487_v28 }
 0x150   : > { %v680_v39 = vpack.c.bf16 %v501_v38, %v500_v37 }
 0x152   : > { %681 = vst [vmem:[%s947_s15] sm:$0xff] %v680_v39  }
 0x153 PF: > { %s14_s21 = sadd.s32 1, %s842_s21   ;;  %s995_s15 = smov %s822_s16 }
 0x154   : > { %p11_p0 = scmp.ge.s32.totalorder %s14_s21, 12   ;;  %s996_s16 = smov %s923_s28 }
 0x155   : > { %s997_s17 = smov %s834_s19  ;;  %s998_s18 = smov %s838_s20 }
 0x156   : > { %s999_s19 = smov %s1002_s22  ;;  %s1000_s20 = smov %s1006_s23 }
 0x157   :  { %13 = sbr.rel (!%p11_p0) target bundleno = 4 (0x4), region = 129 }

// kernel: _lambda_.73
= control target key start
LH: loop header
LB: loop body
LE: loop exit
PB: predicated region body
PF: predicated region fallthrough
CT: control target
= control target key end

     0   :  { %s964_s18 = smov 0   ;;  %s966_s19 = smov 0   ;;  %s1088_s0 = inlined_call_operand.vmem [shape: bf16[32,640], index: 0, kind: input, shape index: {}]   ;;  %s1089_s1 = inlined_call_operand.vmem [shape: bf16[640,128], index: 1, kind: input, shape index: {}]   ;;  %s1090_s2 = inlined_call_operand.vmem [shape: f32[1,128], index: 2, kind: input, shape index: {}]   ;;  %s1091_s3 = inlined_call_operand.vmem [shape: f32[1,128], index: 3, kind: input, shape index: {}]   ;;  %s1092_s4 = inlined_call_operand.vmem [shape: bf16[32,128], index: 4, kind: input, shape index: {}]   ;;  %s1093_s5 = inlined_call_operand.vmem [shape: bf16[32,128], index: 5, kind: output, shape index: {}]  }
   0x1   :  { %s968_s20 = smov 0   ;;  %s970_s21 = smov 0  }
   0x2   :  { %s972_s22 = smov 0   ;;  %s974_s23 = smov 0  }
   0x3   :  { %s976_s24 = smov 0  }
   0x4 LB: > { %s27_s25 = sadd.s32 1, %s921_s22  ;;  %s34_s26 = sadd.s32 1, %s925_s23  ;;  %s929_s24 = sphi %s976_s24, %s15_s24   ;;  %s925_s23 = sphi %s974_s23, %s1099_s23   ;;  %s921_s22 = sphi %s972_s22, %s1098_s22   ;;  %s917_s21 = sphi %s970_s21, %s1097_s21   ;;  %s913_s20 = sphi %s968_s20, %s1096_s20   ;;  %s909_s19 = sphi %s966_s19, %s1095_s19   ;;  %s905_s18 = sphi %s964_s18, %s1094_s18  }
   0x5   : > { %p28_p0 = scmp.ge.s32.totalorder %s27_s25, 5  ;;  %p50_p1 = scmp.ne.s32.totalorder %s909_s19, %s905_s18 }
   0x6   : > { %p51_p2 = scmp.eq.s32.totalorder %s929_s24, 0  ;;  %s43_s30 = sadd.s32 1, %s909_s19 }
   0x7   : > { %s1101_s25 = smov (%p28_p0, %s27_s25), 0  ;;  %s1103_s26 = smov (!%p28_p0, %s34_s26), %s925_s23 }
   0x8   : > { %p52_p3 = por %p51_p2, %p50_p1  ;;  %p36_p4 = scmp.ge.s32.totalorder %s1103_s26, 2 }
   0x9   : > { %s39_s27 = ssub.s32 %s921_s22, %s1101_s25  ;;  %p726_p6 = scmp.ge.s32.totalorder %s929_s24, 10 }
   0xa   : > { %s1105_s26 = smov (%p36_p4, %s1103_s26), 0 }
   0xb   : > { %s38_s28 = ssub.s32 %s925_s23, %s1105_s26  ;;  %224 = sbr.rel (%p726_p6) target bundleno = 26 (0x1a), region = 24 }
   0xc   : > { %s40_s29 = sor.u32 %s39_s27, %s38_s28 }
   0xd   : > { %p41_p5 = scmp.eq.s32.totalorder %s40_s29, 0 }
   0xf   : > { %s1015_s6 = scalar_select %p41_p5, %s909_s19, %s43_s30  }
  0x12   : > { %227 = sbr.rel (!%p52_p3) target bundleno = 26 (0x1a), region = 28  ;;  %s229_s7 = sand.u32 (%p52_p3), 1, %s909_s19  }
  0x13   : > { %s798_s8 = smul.u32 (%p52_p3), 10, %s925_s23  ;;  %s727_s9 = sshll.u32 (%p52_p3), %s229_s7, 3 }
  0x14   : > { %s231_s15 = scalar_lea.vmem (%p52_p3), [#allocation3], %s727_s9 }
  0x15   : > { %s234_s10 = sadd.s32 (%p52_p3), %s921_s22, %s798_s8 }
  0x16   : > { %s730_s11 = sshll.u32 (%p52_p3), %s234_s10, 2 }
  0x17   : > { %s236_s14 = scalar_lea.vmem (%p52_p3), %s1088_s0, %s730_s11 }
  0x18   : > { %v252_v0 = vld [vmem:[%s236_s14] sm:$0xf] (%p52_p3)  ;;  %v254_v1 = vld [vmem:[%s236_s14 + $0x14] sm:$0xf] (%p52_p3) }
  0x19   : > { %253 = vst [vmem:[%s231_s15] sm:$0xf] %v252_v0  ;;  %255 = vst [vmem:[%s231_s15 + $0x4] sm:$0xf] %v254_v1 }
  0x1a PF: > { %p731_p7 = scmp.ge.s32.totalorder %s929_s24, 1  ;;  %p305_p8 = scmp.lt.s32.totalorder %s929_s24, 11 }
  0x1c   : > { %p306_p9 = pnand %p731_p7, %p305_p8 }
  0x1d   : > { %s312_s16 = sand.u32 (!%p306_p9), 1, %s905_s18   ;;  %s733_s17 = sshll.u32 (!%p306_p9), %s913_s20, 4 }
  0x1e   : > { %309 = sbr.rel (%p306_p9) target bundleno = 341 (0x155), region = 77  ;;  %s1028_s27 = sshll.u32 (!%p306_p9), %s312_s16, 3 }
  0x1f   : > { %p366_p10 = scmp.lt.s32.totalorder (!%p306_p9), %s733_s17, 79  ;;  %s735_s28 = sshll.u32 (!%p306_p9), %s917_s21, 1 }
  0x20   : > { %p381_p11 = scmp.lt.s32.totalorder (!%p306_p9), %s735_s28, 3  ;;  %s314_s21 = scalar_lea.vmem (!%p306_p9), [#allocation3], %s1028_s27 }
  0x21   : > { %p739_p12 = scmp.ne.s32.totalorder (!%p306_p9), %s913_s20, 0 }
  0x25   : > { %s1107_s17 = smov (!%p366_p10, %s733_s17), 79  ;;  %s1109_s28 = smov (!%p381_p11, %s735_s28), 3 }
  0x26   : > { %s734_s29 = sshll.u32 %s1107_s17, 2  ;;  %s736_s9 = sshll.u32 %s1109_s28, 2  ;;  %v931_v2 = vmov (!%p739_p12), 0.0  }
  0x27   : > { %s1034_s8 = scalar_lea.vmem %s1089_s1, %s734_s29  ;;  %s1039_s18 = scalar_lea.vmem %s1092_s4, %s736_s9  ;;  %403 = vst [vmem:[#allocation2] sm:$0xff] (!%p739_p12), %v931_v2  ;;  %404 = vst [vmem:[#allocation2 + $0x8] sm:$0xff] (!%p739_p12), %v931_v2 }
  0x28   : > { %s1044_s14 = scalar_lea.vmem %s1093_s5, %s736_s9  ;;  %402 = sbr.rel (%p739_p12) target bundleno = 47 (0x2f), region = 85 }
  0x2f PF: > { %v858_v3 = vld [vmem:[%s1034_s8] sm:$0xff]   ;;  %v932_v4 = vmov 0.0   ;;  %v859_v5 = vld [vmem:[%s1034_s8 + $0x8] sm:$0xff]   ;;  %vm933_vm0 = vmmov 0   ;;  %v860_v6 = vld [vmem:[%s1034_s8 + $0x10] sm:$0xff]   ;;  %p749_p13 = scmp.ne.s32.totalorder %s913_s20, 4 }
  0x30   : > { %778 = vmatprep.subr.bf16.mxu0 %v932_v4  ;;  %794 = vmatprep.mubr.msk.bf16.mxu0 %vm933_vm0, %v932_v4  ;;  %v861_v7 = vld [vmem:[%s1034_s8 + $0x18] sm:$0xff]   ;;  %v862_v8 = vld [vmem:[%s1034_s8 + $0x20] sm:$0xff]   ;;  %v863_v9 = vld [vmem:[%s1034_s8 + $0x28] sm:$0xff]  }
  0x31   : > { %779 = vmatpush3.bf16.msra.mxu0 %v858_v3  ;;  %v864_v10 = vld [vmem:[%s1034_s8 + $0x30] sm:$0xff]   ;;  %v865_v11 = vld [vmem:[%s1034_s8 + $0x38] sm:$0xff]   ;;  %v405_v13 = vld [vmem:[#allocation2] sm:$0xff] }
  0x32   : > { %780 = vmatprep.subr.bf16.mxu0 %v932_v4  ;;  %v866_v12 = vld [vmem:[%s314_s21] sm:$0xff]   ;;  %v406_v15 = vld [vmem:[#allocation2 + $0x8] sm:$0xff]  ;;  %v750_v23 = vld [vmem:[%s1090_s2] ss:$0 sm:$0xff] (!%p749_p13) }
  0x33   : > { %v751_v26 = vld [vmem:[%s1091_s3] ss:$0 sm:$0xff] (!%p749_p13) }
  0x34   : > { %v761_v35 = vld [vmem:[%s1039_s18] sm:$0xff] (!%p749_p13)  }
  0x35   : > { %781 = vmatpush3.bf16.msra.mxu0 %v859_v5  ;;  %v762_v36 = vunpack.c.l.bf16 (!%p749_p13), %v761_v35  ;;  %v763_v38 = vunpack.c.h.bf16 (!%p749_p13), %v761_v35 }
  0x36   : > { %782 = vmatprep.subr.bf16.mxu0 %v932_v4 }
  0x39   : > { %783 = vmatpush3.bf16.msra.mxu0 %v860_v6 }
  0x3a   : > { %784 = vmatprep.subr.bf16.mxu0 %v932_v4 }
  0x3d   : > { %785 = vmatpush3.bf16.msra.mxu0 %v861_v7 }
  0x3e   : > { %786 = vmatprep.subr.bf16.mxu0 %v932_v4 }
  0x41   : > { %787 = vmatpush3.bf16.msra.mxu0 %v862_v8 }
  0x42   : > { %788 = vmatprep.subr.bf16.mxu0 %v932_v4 }
  0x45   : > { %789 = vmatpush3.bf16.msra.mxu0 %v863_v9 }
  0x46   : > { %790 = vmatprep.subr.bf16.mxu0 %v932_v4 }
  0x49   : > { %791 = vmatpush3.bf16.msra.mxu0 %v864_v10 }
  0x4a   : > { %792 = vmatprep.subr.bf16.mxu0 %v932_v4 }
  0x4d   : > { %793 = vmatpush3.bf16.msra.mxu0 %v865_v11 }
  0x50   : > { %795 = vmatmul.mubr.bf16.vlgmr.msra.gmra.mrb[0].mxu0 %v866_v12 }
 0x122   : > { %527 = sbr.rel (%p749_p13) target bundleno = 341 (0x155), region = 89 }
 0x123   : > { %v513_v14 = vpop.f32.mrb[0].mxu0 }
 0x124   : > { %v520_v16 = vadd.f32 %v513_v14, %v405_v13  ;;  %v796_v17 = vpop.f32.mrb[1].mxu0 }
 0x125   : > { %v516_v18 = vpop.f32.mrb[2].mxu0 }
 0x126   : > { %522 = vst [vmem:[#allocation2] sm:$0xff] %v520_v16  ;;  %v521_v19 = vadd.f32 %v516_v18, %v406_v15  ;;  %v797_v20 = vpop.f32.mrb[3].mxu0 }
 0x128   : > { %523 = vst [vmem:[#allocation2 + $0x8] sm:$0xff] %v521_v19 }
 0x12d   : > { %v528_v21 = vld [vmem:[#allocation2] sm:$0xff] }
 0x12e   : > { %v537_v24 = vmul.f32 %v750_v23, %v528_v21 }
 0x12f   : > { %v529_v22 = vld [vmem:[#allocation2 + $0x8] sm:$0xff] }
 0x130   : > { %v538_v25 = vmul.f32 %v750_v23, %v529_v22  ;;  %v546_v27 = vadd.f32 %v751_v26, %v537_v24 }
 0x132   : > { %v547_v28 = vadd.f32 %v751_v26, %v538_v25  ;;  %v752_v29 = vmul.f32 -1.442695, %v546_v27 }
 0x134   : > { %v753_v30 = vmul.f32 -1.442695, %v547_v28  ;;  %867 = vpow2.f32 %v752_v29 }
 0x136   : > { %869 = vpow2.f32 %v753_v30 }
 0x13e   : > { %v868_v31 = vpop.eup %867 }
 0x13f   : > { %v554_v33 = vadd.f32 1.0, %v868_v31 }
 0x140   : > { %v870_v32 = vpop.eup %869 }
 0x141   : > { %v555_v34 = vadd.f32 1.0, %v870_v32  ;;  %871 = vrcp.f32 %v554_v33 }
 0x143   : > { %873 = vrcp.f32 %v555_v34 }
 0x14b   : > { %v872_v37 = vpop.eup %871 }
 0x14c   : > { %v560_v40 = vmul.f32 %v872_v37, %v546_v27 }
 0x14d   : > { %v874_v39 = vpop.eup %873 }
 0x14e   : > { %v561_v41 = vmul.f32 %v874_v39, %v547_v28  ;;  %v566_v42 = vadd.f32 %v762_v36, %v560_v40 }
 0x150   : > { %v567_v43 = vadd.f32 %v763_v38, %v561_v41 }
 0x152   : > { %v767_v44 = vpack.c.bf16 %v567_v43, %v566_v42 }
 0x154   : > { %768 = vst [vmem:[%s1044_s14] sm:$0xff] %v767_v44  }
 0x155 PF: > { %s15_s24 = sadd.s32 1, %s929_s24   ;;  %s1094_s18 = smov %s909_s19 }
 0x156   : > { %p12_p0 = scmp.ge.s32.totalorder %s15_s24, 12   ;;  %s1095_s19 = smov %s1015_s6 }
 0x157   : > { %s1096_s20 = smov %s921_s22  ;;  %s1097_s21 = smov %s925_s23 }
 0x158   : > { %s1098_s22 = smov %s1101_s25  ;;  %s1099_s23 = smov %s1105_s26 }
 0x159   :  { %14 = sbr.rel (!%p12_p0) target bundleno = 4 (0x4), region = 136 }

// kernel: _lambda_.79
= control target key start
LH: loop header
LB: loop body
LE: loop exit
PB: predicated region body
PF: predicated region fallthrough
CT: control target
= control target key end

     0   :  { %s801_s15 = smov 0   ;;  %s803_s16 = smov 0   ;;  %s871_s0 = inlined_call_operand.vmem [shape: bf16[8,1152], index: 0, kind: input, shape index: {}]   ;;  %s872_s1 = inlined_call_operand.vmem [shape: bf16[1152,256], index: 1, kind: input, shape index: {}]   ;;  %s873_s2 = inlined_call_operand.vmem [shape: f32[1,256], index: 2, kind: input, shape index: {}]   ;;  %s874_s3 = inlined_call_operand.vmem [shape: f32[1,256], index: 3, kind: input, shape index: {}]   ;;  %s875_s4 = inlined_call_operand.vmem [shape: bf16[8,256], index: 4, kind: output, shape index: {}]  }
   0x1   :  { %s805_s17 = smov 0  }
   0x2 LB: > { %s26_s18 = sadd.s32 1, %s768_s16  ;;  %p660_p0 = scmp.ge.s32.totalorder %s772_s17, 1  ;;  %s772_s17 = sphi %s805_s17, %s14_s17   ;;  %s768_s16 = sphi %s803_s16, %s877_s16   ;;  %s764_s15 = sphi %s801_s15, %s876_s15  }
   0x3   : > { %p27_p1 = scmp.ge.s32.totalorder %s26_s18, 9  ;;  %p227_p2 = scmp.lt.s32.totalorder %s772_s17, 10 }
   0x5   : > { %s879_s18 = smov (%p27_p1, %s26_s18), 0  ;;  %p228_p3 = pnand %p660_p0, %p227_p2 }
   0x6   : > { %p280_p4 = scmp.lt.s32.totalorder (!%p228_p3), %s764_s15, 8  ;;  %s662_s19 = sshll.u32 (!%p228_p3), %s764_s15, 4 }
   0x7   : > { %231 = sbr.rel (%p228_p3) target bundleno = 313 (0x139), region = 36  ;;  %p288_p5 = scmp.lt.s32.totalorder (!%p228_p3), %s662_s19, 143 }
   0x8   : > { %p665_p6 = scmp.ne.s32.totalorder (!%p228_p3), %s764_s15, 0 }
   0xe   : > { %s281_s20 = scalar_select %p280_p4, %s764_s15, 8 }
   0xf   : > { %s881_s19 = smov (!%p288_p5, %s662_s19), 143  ;;  %322 = sbr.rel (%p665_p6) target bundleno = 22 (0x16), region = 40 }
  0x10   : > { %s661_s21 = sshll.u32 %s281_s20, 2  ;;  %s690_s25 = sshll.u32 %s881_s19, 3  ;;  %v774_v0 = vmov (!%p665_p6), 0.0  }
  0x11   : > { %s827_s24 = scalar_lea.vmem %s871_s0, %s661_s21  ;;  %s832_s28 = scalar_lea.vmem %s872_s1, %s690_s25  ;;  %323 = vst [vmem:[#allocation2] sm:$0xff] (!%p665_p6), %v774_v0  ;;  %324 = vst [vmem:[#allocation2 + $0x8] sm:$0xff] (!%p665_p6), %v774_v0 }
  0x16 PF: > { %v718_v1 = vld [vmem:[%s832_s28 + $0x4] ss:$8 sps:$4 sm:$0xff]   ;;  %v720_v2 = vld [vmem:[%s832_s28] ss:$8 sps:$4 sm:$0xff]   ;;  %v775_v3 = vmov 0   ;;  %p682_p7 = scmp.ne.s32.totalorder %s764_s15, 8 }
  0x17   : > { %456 = vmatprep.mubr.bf16.mxu0 %v775_v3  ;;  %424 = vmatprep.subr.bf16.mxu0 %v718_v1  ;;  %v721_v4 = vld [vmem:[%s832_s28 + $0x14] ss:$8 sps:$4 sm:$0xff]   ;;  %v723_v5 = vld [vmem:[%s832_s28 + $0x10] ss:$8 sps:$4 sm:$0xff]   ;;  %v724_v6 = vld [vmem:[%s832_s28 + $0x24] ss:$8 sps:$4 sm:$0xff]   ;;  %v477_v27 = vlaneseq (!%p682_p7) }
  0x18   : > { %425 = vmatpush1.bf16.msra.mxu0 %v720_v2  ;;  %v726_v7 = vld [vmem:[%s832_s28 + $0x20] ss:$8 sps:$4 sm:$0xff]   ;;  %v727_v8 = vld [vmem:[%s832_s28 + $0x34] ss:$8 sps:$4 sm:$0xff]   ;;  %v729_v9 = vld [vmem:[%s832_s28 + $0x30] ss:$8 sps:$4 sm:$0xff]  }
  0x19   : > { %426 = vmatprep.subr.bf16.mxu0 %v721_v4  ;;  %v730_v10 = vld [vmem:[%s832_s28 + $0x44] ss:$8 sps:$4 sm:$0xff]   ;;  %v732_v11 = vld [vmem:[%s832_s28 + $0x40] ss:$8 sps:$4 sm:$0xff]   ;;  %v733_v12 = vld [vmem:[%s832_s28 + $0x54] ss:$8 sps:$4 sm:$0xff]  }
  0x1a   : > { %v735_v13 = vld [vmem:[%s832_s28 + $0x50] ss:$8 sps:$4 sm:$0xff]   ;;  %v736_v14 = vld [vmem:[%s832_s28 + $0x64] ss:$8 sps:$4 sm:$0xff]   ;;  %v738_v15 = vld [vmem:[%s832_s28 + $0x60] ss:$8 sps:$4 sm:$0xff]  }
  0x1b   : > { %v739_v16 = vld [vmem:[%s832_s28 + $0x74] ss:$8 sps:$4 sm:$0xff]   ;;  %v741_v17 = vld [vmem:[%s832_s28 + $0x70] ss:$8 sps:$4 sm:$0xff]   ;;  %v327_v18 = vld [vmem:[%s827_s24] sm:$0xf] }
  0x1c   : > { %427 = vmatpush1.bf16.msra.mxu0 %v723_v5  ;;  %v325_v19 = vld [vmem:[#allocation2] sm:$0xff]  ;;  %v326_v20 = vld [vmem:[#allocation2 + $0x8] sm:$0xff]  ;;  %v478_v28 = vshrl.u32 (!%p682_p7), %v477_v27, 7 }
  0x1d   : > { %428 = vmatprep.subr.bf16.mxu0 %v724_v6  ;;  %v475_v29 = vld [vmem:[%s873_s2] sm:$0x3] (!%p682_p7) }
  0x1e   : > { %v489_v30 = vld [vmem:[%s874_s3] sm:$0x3] (!%p682_p7)  ;;  %v479_v31 = vsub.s32 (!%p682_p7), 0, %v478_v28  ;;  %v483_v32 = vsub.s32 (!%p682_p7), 1, %v478_v28 }
  0x20   : > { %429 = vmatpush1.bf16.msra.mxu0 %v726_v7  ;;  %v480_v35 = vrot.slane (!%p682_p7), %v475_v29, %v479_v31  ;;  %v484_v36 = vrot.slane (!%p682_p7), %v475_v29, %v483_v32  ;;  %v494_v37 = vrot.slane (!%p682_p7), %v489_v30, %v479_v31  ;;  %v498_v38 = vrot.slane (!%p682_p7), %v489_v30, %v483_v32 }
  0x21   : > { %430 = vmatprep.subr.bf16.mxu0 %v727_v8 }
  0x24   : > { %431 = vmatpush1.bf16.msra.mxu0 %v729_v9 }
  0x25   : > { %432 = vmatprep.subr.bf16.mxu0 %v730_v10 }
  0x28   : > { %433 = vmatpush1.bf16.msra.mxu0 %v732_v11 }
  0x29   : > { %434 = vmatprep.subr.bf16.mxu0 %v733_v12 }
  0x2c   : > { %435 = vmatpush1.bf16.msra.mxu0 %v735_v13 }
  0x2d   : > { %436 = vmatprep.subr.bf16.mxu0 %v736_v14 }
  0x30   : > { %437 = vmatpush1.bf16.msra.mxu0 %v738_v15 }
  0x31   : > { %438 = vmatprep.subr.bf16.mxu0 %v739_v16 }
  0x34   : > { %439 = vmatpush1.bf16.msra.mxu0 %v741_v17 }
  0x37   : > { %457 = vmatmul.mubr.bf16.vlgmr.msra.gmra.mrb[0].mxu0 %v327_v18 }
 0x108   : > { %472 = sbr.rel (%p682_p7) target bundleno = 313 (0x139), region = 44 }
 0x10a   : > { %v458_v21 = vpop.f32.mrb[0].mxu0 }
 0x10b   : > { %v465_v22 = vadd.f32 %v458_v21, %v325_v19  ;;  %v460_v23 = vpop.f32.mrb[1].mxu0 }
 0x10c   : > { %v466_v24 = vadd.f32 %v460_v23, %v326_v20  ;;  %v462_v25 = vpop.f32.mrb[2].mxu0 }
 0x10d   : > { %467 = vst [vmem:[#allocation2] sm:$0xff] %v465_v22  ;;  %v463_v26 = vpop.f32.mrb[3].mxu0 }
 0x10e   : > { %468 = vst [vmem:[#allocation2 + $0x8] sm:$0xff] %v466_v24 }
 0x114   : > { %v473_v33 = vld [vmem:[#allocation2] sm:$0xff] }
 0x115   : > { %v474_v34 = vld [vmem:[#allocation2 + $0x8] sm:$0xff]  ;;  %v487_v39 = vmul.f32 %v480_v35, %v473_v33 }
 0x116   : > { %v488_v40 = vmul.f32 %v484_v36, %v474_v34 }
 0x117   : > { %v501_v41 = vadd.f32 %v494_v37, %v487_v39 }
 0x118   : > { %v502_v42 = vadd.f32 %v498_v38, %v488_v40 }
 0x119   : > { %v683_v43 = vmul.f32 -1.442695, %v501_v41 }
 0x11a   : > { %v684_v44 = vmul.f32 -1.442695, %v502_v42 }
 0x11b   : > { %742 = vpow2.f32 %v683_v43 }
 0x11c   : > { %744 = vpow2.f32 %v684_v44 }
 0x125   : > { %v743_v45 = vpop.eup %742 }
 0x126   : > { %v745_v46 = vpop.eup %744  ;;  %v509_v47 = vadd.f32 1.0, %v743_v45 }
 0x127   : > { %v510_v48 = vadd.f32 1.0, %v745_v46 }
 0x128   : > { %746 = vrcp.f32 %v509_v47 }
 0x129   : > { %748 = vrcp.f32 %v510_v48 }
 0x132   : > { %v747_v49 = vpop.eup %746 }
 0x133   : > { %v749_v50 = vpop.eup %748  ;;  %v515_v51 = vmul.f32 %v747_v49, %v501_v41 }
 0x134   : > { %v516_v52 = vmul.f32 %v749_v50, %v502_v42 }
 0x136   : > { %v691_v53 = vpack.c.bf16 %v516_v52, %v515_v51 }
 0x138   : > { %525 = vst [vmem:[%s875_s4] sm:$0xff] %v691_v53 }
 0x139 PF: > { %s14_s17 = sadd.s32 1, %s772_s17   ;;  %s876_s15 = smov %s768_s16 }
 0x13a   : > { %p11_p8 = scmp.ge.s32.totalorder %s14_s17, 11   ;;  %s877_s16 = smov %s879_s18 }
 0x13c   :  { %13 = sbr.rel (!%p11_p8) target bundleno = 2 (0x2), region = 83 }

// kernel: _lambda_.80
= control target key start
LH: loop header
LB: loop body
LE: loop exit
PB: predicated region body
PF: predicated region fallthrough
CT: control target
= control target key end

     0   :  { %v260_v35 = vlaneseq  ;;  %s542_s1 = inlined_call_operand.vmem [shape: bf16[256,256], index: 1, kind: input, shape index: {}]   ;;  %s543_s0 = inlined_call_operand.vmem [shape: bf16[8,256], index: 0, kind: input, shape index: {}]   ;;  %s544_s2 = inlined_call_operand.vmem [shape: f32[1,256], index: 2, kind: input, shape index: {}]   ;;  %s545_s3 = inlined_call_operand.vmem [shape: f32[1,256], index: 3, kind: input, shape index: {}]   ;;  %s546_s4 = inlined_call_operand.vmem [shape: bf16[8,256], index: 4, kind: output, shape index: {}]  }
   0x1   :  { %v351_v0 = vld [vmem:[%s542_s1 + $0x4] ss:$8 sps:$4 sm:$0xff]   ;;  %v353_v1 = vld [vmem:[%s542_s1] ss:$8 sps:$4 sm:$0xff]   ;;  %v354_v2 = vld [vmem:[%s542_s1 + $0x14] ss:$8 sps:$4 sm:$0xff]  }
   0x2   :  { %217 = vmatprep.subr.bf16.mxu0 %v351_v0  ;;  %v356_v3 = vld [vmem:[%s542_s1 + $0x10] ss:$8 sps:$4 sm:$0xff]   ;;  %v357_v4 = vld [vmem:[%s542_s1 + $0x24] ss:$8 sps:$4 sm:$0xff]   ;;  %v359_v5 = vld [vmem:[%s542_s1 + $0x20] ss:$8 sps:$4 sm:$0xff]  }
   0x3   :  { %218 = vmatpush1.bf16.msra.mxu0 %v353_v1  ;;  %v360_v6 = vld [vmem:[%s542_s1 + $0x34] ss:$8 sps:$4 sm:$0xff]   ;;  %v362_v7 = vld [vmem:[%s542_s1 + $0x30] ss:$8 sps:$4 sm:$0xff]   ;;  %v363_v8 = vld [vmem:[%s542_s1 + $0x44] ss:$8 sps:$4 sm:$0xff]  }
   0x4   :  { %219 = vmatprep.subr.bf16.mxu0 %v354_v2  ;;  %v365_v9 = vld [vmem:[%s542_s1 + $0x40] ss:$8 sps:$4 sm:$0xff]   ;;  %v366_v10 = vld [vmem:[%s542_s1 + $0x54] ss:$8 sps:$4 sm:$0xff]   ;;  %v368_v11 = vld [vmem:[%s542_s1 + $0x50] ss:$8 sps:$4 sm:$0xff]  }
   0x5   :  { %v369_v12 = vld [vmem:[%s542_s1 + $0x64] ss:$8 sps:$4 sm:$0xff]   ;;  %v371_v15 = vld [vmem:[%s542_s1 + $0x60] ss:$8 sps:$4 sm:$0xff]   ;;  %v372_v16 = vld [vmem:[%s542_s1 + $0x74] ss:$8 sps:$4 sm:$0xff]  }
   0x6   :  { %v17_v13 = vld [vmem:[%s543_s0] sm:$0xff]  ;;  %v374_v17 = vld [vmem:[%s542_s1 + $0x70] ss:$8 sps:$4 sm:$0xff]   ;;  %v378_v20 = vld [vmem:[%s542_s1 + $0x94] ss:$8 sps:$4 sm:$0xff]   ;;  %v261_v36 = vshrl.u32 %v260_v35, 7 }
   0x7   :  { %220 = vmatpush1.bf16.msra.mxu0 %v356_v3  ;;  %v314_v14 = vcombine.high %v17_v13, %v17_v13  ;;  %v375_v18 = vld [vmem:[%s542_s1 + $0x84] ss:$8 sps:$4 sm:$0xff]   ;;  %v377_v19 = vld [vmem:[%s542_s1 + $0x80] ss:$8 sps:$4 sm:$0xff]   ;;  %v380_v21 = vld [vmem:[%s542_s1 + $0x90] ss:$8 sps:$4 sm:$0xff]   ;;  %v313_v34 = vcombine.low %v17_v13, %v17_v13 }
   0x8   :  { %221 = vmatprep.subr.bf16.mxu0 %v357_v4  ;;  %v381_v22 = vld [vmem:[%s542_s1 + $0xa4] ss:$8 sps:$4 sm:$0xff]   ;;  %v383_v23 = vld [vmem:[%s542_s1 + $0xa0] ss:$8 sps:$4 sm:$0xff]   ;;  %v384_v24 = vld [vmem:[%s542_s1 + $0xb4] ss:$8 sps:$4 sm:$0xff]  }
   0x9   :  { %249 = vmatprep.mubr.bf16.mxu0 %v314_v14  ;;  %v386_v25 = vld [vmem:[%s542_s1 + $0xb0] ss:$8 sps:$4 sm:$0xff]   ;;  %v387_v26 = vld [vmem:[%s542_s1 + $0xc4] ss:$8 sps:$4 sm:$0xff]   ;;  %v389_v27 = vld [vmem:[%s542_s1 + $0xc0] ss:$8 sps:$4 sm:$0xff]  }
   0xa   :  { %v390_v28 = vld [vmem:[%s542_s1 + $0xd4] ss:$8 sps:$4 sm:$0xff]   ;;  %v392_v29 = vld [vmem:[%s542_s1 + $0xd0] ss:$8 sps:$4 sm:$0xff]   ;;  %v393_v30 = vld [vmem:[%s542_s1 + $0xe4] ss:$8 sps:$4 sm:$0xff]  }
   0xb   :  { %222 = vmatpush1.bf16.msra.mxu0 %v359_v5  ;;  %v395_v31 = vld [vmem:[%s542_s1 + $0xe0] ss:$8 sps:$4 sm:$0xff]   ;;  %v396_v32 = vld [vmem:[%s542_s1 + $0xf4] ss:$8 sps:$4 sm:$0xff]   ;;  %v398_v33 = vld [vmem:[%s542_s1 + $0xf0] ss:$8 sps:$4 sm:$0xff]  }
   0xc   :  { %223 = vmatprep.subr.bf16.mxu0 %v360_v6  ;;  %v262_v37 = vsub.s32 0, %v261_v36  ;;  %v258_v38 = vld [vmem:[%s544_s2] sm:$0x3]  ;;  %v266_v39 = vsub.s32 1, %v261_v36 }
   0xd   :  { %v272_v40 = vld [vmem:[%s545_s3] sm:$0x3] }
   0xe   :  { %v263_v41 = vrot.slane %v258_v38, %v262_v37  ;;  %v267_v42 = vrot.slane %v258_v38, %v266_v39  ;;  %v277_v43 = vrot.slane %v272_v40, %v262_v37  ;;  %v281_v45 = vrot.slane %v272_v40, %v266_v39 }
   0xf   :  { %224 = vmatpush1.bf16.msra.mxu0 %v362_v7 }
  0x10   :  { %225 = vmatprep.subr.bf16.mxu0 %v363_v8 }
  0x13   :  { %226 = vmatpush1.bf16.msra.mxu0 %v365_v9 }
  0x14   :  { %227 = vmatprep.subr.bf16.mxu0 %v366_v10 }
  0x17   :  { %228 = vmatpush1.bf16.msra.mxu0 %v368_v11 }
  0x18   :  { %229 = vmatprep.subr.bf16.mxu0 %v369_v12 }
  0x1b   :  { %230 = vmatpush1.bf16.msra.mxu0 %v371_v15 }
  0x1c   :  { %231 = vmatprep.subr.bf16.mxu0 %v372_v16 }
  0x1f   :  { %232 = vmatpush1.bf16.msra.mxu0 %v374_v17 }
  0x20   :  { %233 = vmatprep.subr.bf16.mxu0 %v375_v18 }
  0x23   :  { %234 = vmatpush1.bf16.msra.mxu0 %v377_v19 }
  0x24   :  { %235 = vmatprep.subr.bf16.mxu0 %v378_v20 }
  0x27   :  { %236 = vmatpush1.bf16.msra.mxu0 %v380_v21 }
  0x28   :  { %237 = vmatprep.subr.bf16.mxu0 %v381_v22 }
  0x2b   :  { %238 = vmatpush1.bf16.msra.mxu0 %v383_v23 }
  0x2c   :  { %239 = vmatprep.subr.bf16.mxu0 %v384_v24 }
  0x2f   :  { %240 = vmatpush1.bf16.msra.mxu0 %v386_v25 }
  0x30   :  { %241 = vmatprep.subr.bf16.mxu0 %v387_v26 }
  0x33   :  { %242 = vmatpush1.bf16.msra.mxu0 %v389_v27 }
  0x34   :  { %243 = vmatprep.subr.bf16.mxu0 %v390_v28 }
  0x37   :  { %244 = vmatpush1.bf16.msra.mxu0 %v392_v29 }
  0x38   :  { %245 = vmatprep.subr.bf16.mxu0 %v393_v30 }
  0x3b   :  { %246 = vmatpush1.bf16.msra.mxu0 %v395_v31 }
  0x3c   :  { %247 = vmatprep.subr.bf16.mxu0 %v396_v32 }
  0x3f   :  { %248 = vmatpush1.bf16.msra.mxu0 %v398_v33 }
  0x42   :  { %250 = vmatmul.mubr.bf16.vlgmr.msra.gmra.mrb[0].mxu0 %v313_v34 }
 0x115   :  { %v251_v44 = vpop.f32.mrb[0].mxu0 }
 0x116   :  { %v270_v46 = vmul.f32 %v263_v41, %v251_v44  ;;  %v253_v47 = vpop.f32.mrb[1].mxu0 }
 0x117   :  { %v271_v48 = vmul.f32 %v267_v42, %v253_v47  ;;  %v255_v49 = vpop.f32.mrb[2].mxu0 }
 0x118   :  { %v284_v50 = vadd.f32 %v277_v43, %v270_v46  ;;  %v256_v51 = vpop.f32.mrb[3].mxu0 }
 0x119   :  { %v285_v52 = vadd.f32 %v281_v45, %v271_v48 }
 0x11a   :  { %v347_v53 = vmul.f32 -1.442695, %v284_v50 }
 0x11b   :  { %v348_v54 = vmul.f32 -1.442695, %v285_v52 }
 0x11c   :  { %401 = vpow2.f32 %v347_v53 }
 0x11d   :  { %403 = vpow2.f32 %v348_v54 }
 0x126   :  { %v402_v55 = vpop.eup %401 }
 0x127   :  { %v404_v56 = vpop.eup %403  ;;  %v292_v57 = vadd.f32 1.0, %v402_v55 }
 0x128   :  { %v293_v58 = vadd.f32 1.0, %v404_v56 }
 0x129   :  { %405 = vrcp.f32 %v292_v57 }
 0x12a   :  { %407 = vrcp.f32 %v293_v58 }
 0x133   :  { %v406_v59 = vpop.eup %405 }
 0x134   :  { %v408_v60 = vpop.eup %407  ;;  %v298_v61 = vmul.f32 %v406_v59, %v284_v50 }
 0x135   :  { %v299_v62 = vmul.f32 %v408_v60, %v285_v52 }
 0x137   :  { %v350_v63 = vpack.c.bf16 %v299_v62, %v298_v61 }
 0x139   :  { %308 = vst [vmem:[%s546_s4] sm:$0xff] %v350_v63 }

// kernel: _lambda_.81
= control target key start
LH: loop header
LB: loop body
LE: loop exit
PB: predicated region body
PF: predicated region fallthrough
CT: control target
= control target key end

     0   :  { %v206_v0 = vmov 0.0   ;;  %vm207_vm0 = vmmov 0   ;;  %s269_s1 = inlined_call_operand.vmem [shape: bf16[128,128], index: 1, kind: input, shape index: {}]   ;;  %s270_s0 = inlined_call_operand.vmem [shape: bf16[8,128], index: 0, kind: input, shape index: {}]   ;;  %s271_s2 = inlined_call_operand.vmem [shape: f32[1,128], index: 2, kind: input, shape index: {}]   ;;  %s272_s3 = inlined_call_operand.vmem [shape: f32[1,128], index: 3, kind: input, shape index: {}]   ;;  %s273_s4 = inlined_call_operand.vmem [shape: bf16[8,128], index: 4, kind: output, shape index: {}]  }
   0x1   :  { %172 = vmatprep.subr.bf16.mxu0 %v206_v0  ;;  %v194_v1 = vld [vmem:[%s269_s1] sm:$0xff]   ;;  %188 = vmatprep.mubr.msk.bf16.mxu0 %vm207_vm0, %v206_v0  ;;  %v195_v2 = vld [vmem:[%s269_s1 + $0x8] sm:$0xff]   ;;  %v196_v3 = vld [vmem:[%s269_s1 + $0x10] sm:$0xff]  }
   0x2   :  { %173 = vmatpush3.bf16.msra.mxu0 %v194_v1  ;;  %v197_v4 = vld [vmem:[%s269_s1 + $0x18] sm:$0xff]   ;;  %v198_v5 = vld [vmem:[%s269_s1 + $0x20] sm:$0xff]   ;;  %v199_v6 = vld [vmem:[%s269_s1 + $0x28] sm:$0xff]  }
   0x3   :  { %174 = vmatprep.subr.bf16.mxu0 %v206_v0  ;;  %v200_v7 = vld [vmem:[%s269_s1 + $0x30] sm:$0xff]   ;;  %v201_v8 = vld [vmem:[%s269_s1 + $0x38] sm:$0xff]   ;;  %v18_v9 = vld [vmem:[%s270_s0] sm:$0xf] }
   0x4   :  { %v160_v10 = vld [vmem:[%s271_s2] ss:$0 sm:$0xff] }
   0x5   :  { %v161_v12 = vld [vmem:[%s272_s3] ss:$0 sm:$0xff] }
   0x6   :  { %175 = vmatpush3.bf16.msra.mxu0 %v195_v2 }
   0x7   :  { %176 = vmatprep.subr.bf16.mxu0 %v206_v0 }
   0xa   :  { %177 = vmatpush3.bf16.msra.mxu0 %v196_v3 }
   0xb   :  { %178 = vmatprep.subr.bf16.mxu0 %v206_v0 }
   0xe   :  { %179 = vmatpush3.bf16.msra.mxu0 %v197_v4 }
   0xf   :  { %180 = vmatprep.subr.bf16.mxu0 %v206_v0 }
  0x12   :  { %181 = vmatpush3.bf16.msra.mxu0 %v198_v5 }
  0x13   :  { %182 = vmatprep.subr.bf16.mxu0 %v206_v0 }
  0x16   :  { %183 = vmatpush3.bf16.msra.mxu0 %v199_v6 }
  0x17   :  { %184 = vmatprep.subr.bf16.mxu0 %v206_v0 }
  0x1a   :  { %185 = vmatpush3.bf16.msra.mxu0 %v200_v7 }
  0x1b   :  { %186 = vmatprep.subr.bf16.mxu0 %v206_v0 }
  0x1e   :  { %187 = vmatpush3.bf16.msra.mxu0 %v201_v8 }
  0x21   :  { %189 = vmatmul.mubr.bf16.vlgmr.msra.gmra.mrb[0].mxu0 %v18_v9 }
  0xf4   :  { %v117_v11 = vpop.f32.mrb[0].mxu0 }
  0xf5   :  { %v130_v13 = vmul.f32 %v160_v10, %v117_v11  ;;  %v190_v14 = vpop.f32.mrb[1].mxu0 }
  0xf6   :  { %v120_v15 = vpop.f32.mrb[2].mxu0 }
  0xf7   :  { %v138_v16 = vadd.f32 %v161_v12, %v130_v13  ;;  %v191_v17 = vpop.f32.mrb[3].mxu0 }
  0xf9   :  { %v162_v18 = vmul.f32 -1.442695, %v138_v16 }
  0xfb   :  { %202 = vpow2.f32 %v162_v18 }
 0x105   :  { %v203_v19 = vpop.eup %202 }
 0x106   :  { %v142_v20 = vadd.f32 1.0, %v203_v19 }
 0x108   :  { %204 = vrcp.f32 %v142_v20 }
 0x112   :  { %v205_v21 = vpop.eup %204 }
 0x113   :  { %v145_v22 = vmul.f32 %v205_v21, %v138_v16 }
 0x115   :  { %v146_v23 = vpack.c.bf16 %v145_v22, %v145_v22 }
 0x117   :  { %147 = vst [vmem:[%s273_s4] sm:$0xf] %v146_v23 }

// kernel: _lambda_.84
= control target key start
LH: loop header
LB: loop body
LE: loop exit
PB: predicated region body
PF: predicated region fallthrough
CT: control target
= control target key end

     0   :  { %s373_s1 = inlined_call_operand.vmem [shape: bf16[256,128], index: 1, kind: input, shape index: {}]   ;;  %s374_s0 = inlined_call_operand.vmem [shape: bf16[8,256], index: 0, kind: input, shape index: {}]   ;;  %s375_s2 = inlined_call_operand.vmem [shape: f32[1,128], index: 2, kind: input, shape index: {}]   ;;  %s376_s3 = inlined_call_operand.vmem [shape: f32[1,128], index: 3, kind: input, shape index: {}]   ;;  %s377_s4 = inlined_call_operand.vmem [shape: bf16[8,128], index: 4, kind: output, shape index: {}]  }
   0x1   :  { %v266_v0 = vld [vmem:[%s373_s1 + $0x40] sm:$0xff]   ;;  %v268_v2 = vld [vmem:[%s373_s1 + $0x48] sm:$0xff]   ;;  %v270_v4 = vld [vmem:[%s373_s1 + $0x50] sm:$0xff]  }
   0x2   :  { %v267_v1 = vld [vmem:[%s373_s1] sm:$0xff]   ;;  %244 = vmatprep.subr.bf16.mxu0 %v266_v0  ;;  %v269_v3 = vld [vmem:[%s373_s1 + $0x8] sm:$0xff]   ;;  %v271_v5 = vld [vmem:[%s373_s1 + $0x10] sm:$0xff]  }
   0x3   :  { %245 = vmatpush3.bf16.msra.mxu0 %v267_v1  ;;  %v272_v6 = vld [vmem:[%s373_s1 + $0x58] sm:$0xff]   ;;  %v274_v8 = vld [vmem:[%s373_s1 + $0x60] sm:$0xff]   ;;  %v276_v10 = vld [vmem:[%s373_s1 + $0x68] sm:$0xff]  }
   0x4   :  { %246 = vmatprep.subr.bf16.mxu0 %v268_v2  ;;  %v273_v7 = vld [vmem:[%s373_s1 + $0x18] sm:$0xff]   ;;  %v275_v9 = vld [vmem:[%s373_s1 + $0x20] sm:$0xff]   ;;  %v277_v13 = vld [vmem:[%s373_s1 + $0x28] sm:$0xff]  }
   0x5   :  { %v18_v11 = vld [vmem:[%s374_s0] sm:$0xff]  ;;  %v278_v14 = vld [vmem:[%s373_s1 + $0x70] sm:$0xff]   ;;  %v280_v16 = vld [vmem:[%s373_s1 + $0x78] sm:$0xff]  }
   0x6   :  { %v224_v12 = vcombine.high %v18_v11, %v18_v11  ;;  %v279_v15 = vld [vmem:[%s373_s1 + $0x30] sm:$0xff]   ;;  %v281_v17 = vld [vmem:[%s373_s1 + $0x38] sm:$0xff]   ;;  %v223_v18 = vcombine.low %v18_v11, %v18_v11  ;;  %v241_v21 = vld [vmem:[%s375_s2] ss:$0 sm:$0xff] }
   0x7   :  { %247 = vmatpush3.bf16.msra.mxu0 %v269_v3  ;;  %v242_v24 = vld [vmem:[%s376_s3] ss:$0 sm:$0xff] }
   0x8   :  { %248 = vmatprep.subr.bf16.mxu0 %v270_v4  ;;  %186 = vmatprep.mubr.bf16.mxu0 %v224_v12 }
   0xb   :  { %249 = vmatpush3.bf16.msra.mxu0 %v271_v5 }
   0xc   :  { %250 = vmatprep.subr.bf16.mxu0 %v272_v6 }
   0xf   :  { %251 = vmatpush3.bf16.msra.mxu0 %v273_v7 }
  0x10   :  { %252 = vmatprep.subr.bf16.mxu0 %v274_v8 }
  0x13   :  { %253 = vmatpush3.bf16.msra.mxu0 %v275_v9 }
  0x14   :  { %254 = vmatprep.subr.bf16.mxu0 %v276_v10 }
  0x17   :  { %255 = vmatpush3.bf16.msra.mxu0 %v277_v13 }
  0x18   :  { %256 = vmatprep.subr.bf16.mxu0 %v278_v14 }
  0x1b   :  { %257 = vmatpush3.bf16.msra.mxu0 %v279_v15 }
  0x1c   :  { %258 = vmatprep.subr.bf16.mxu0 %v280_v16 }
  0x1f   :  { %259 = vmatpush3.bf16.msra.mxu0 %v281_v17 }
  0x22   :  { %187 = vmatmul.mubr.bf16.vlgmr.msra.gmra.mrb[0].mxu0 %v223_v18 }
  0xf5   :  { %v260_v19 = vpop.f32.mrb[0].mxu0 }
  0xf6   :  { %v261_v20 = vpop.f32.mrb[1].mxu0 }
  0xf7   :  { %v262_v22 = vadd.f32 %v261_v20, %v260_v19  ;;  %v263_v23 = vpop.f32.mrb[2].mxu0 }
  0xf8   :  { %v264_v25 = vpop.f32.mrb[3].mxu0 }
  0xf9   :  { %v201_v26 = vmul.f32 %v262_v22, %v241_v21 }
  0xfb   :  { %v209_v27 = vadd.f32 %v242_v24, %v201_v26 }
  0xfd   :  { %v243_v28 = vmul.f32 -1.442695, %v209_v27 }
  0xff   :  { %284 = vpow2.f32 %v243_v28 }
 0x109   :  { %v285_v29 = vpop.eup %284 }
 0x10a   :  { %v213_v30 = vadd.f32 1.0, %v285_v29 }
 0x10c   :  { %286 = vrcp.f32 %v213_v30 }
 0x116   :  { %v287_v31 = vpop.eup %286 }
 0x117   :  { %v216_v32 = vmul.f32 %v287_v31, %v209_v27 }
 0x119   :  { %v217_v33 = vpack.c.bf16 %v216_v32, %v216_v32 }
 0x11b   :  { %218 = vst [vmem:[%s377_s4] sm:$0xf] %v217_v33 }

// kernel: _lambda_.82
= control target key start
LH: loop header
LB: loop body
LE: loop exit
PB: predicated region body
PF: predicated region fallthrough
CT: control target
= control target key end

     0   :  { %s783_s18 = smov 0   ;;  %s785_s19 = smov 0   ;;  %s838_s0 = inlined_call_operand.vmem [shape: bf16[8,1152], index: 0, kind: input, shape index: {}]   ;;  %s839_s1 = inlined_call_operand.vmem [shape: bf16[1152,128], index: 1, kind: input, shape index: {}]   ;;  %s840_s2 = inlined_call_operand.vmem [shape: f32[1,128], index: 2, kind: input, shape index: {}]   ;;  %s841_s3 = inlined_call_operand.vmem [shape: f32[1,128], index: 3, kind: input, shape index: {}]   ;;  %s842_s4 = inlined_call_operand.vmem [shape: bf16[8,128], index: 4, kind: input, shape index: {}]   ;;  %s843_s5 = inlined_call_operand.vmem [shape: bf16[8,128], index: 5, kind: output, shape index: {}]  }
   0x1   :  { %s787_s20 = smov 0  }
   0x2 LB: > { %s27_s21 = sadd.s32 1, %s744_s19  ;;  %p638_p0 = scmp.ge.s32.totalorder %s748_s20, 1  ;;  %s748_s20 = sphi %s787_s20, %s15_s20   ;;  %s744_s19 = sphi %s785_s19, %s845_s19   ;;  %s740_s18 = sphi %s783_s18, %s844_s18  }
   0x3   : > { %p28_p1 = scmp.ge.s32.totalorder %s27_s21, 9  ;;  %p259_p2 = scmp.lt.s32.totalorder %s748_s20, 10 }
   0x5   : > { %s847_s21 = smov (%p28_p1, %s27_s21), 0  ;;  %p260_p3 = pnand %p638_p0, %p259_p2 }
   0x6   : > { %p315_p4 = scmp.lt.s32.totalorder (!%p260_p3), %s740_s18, 8  ;;  %s640_s22 = sshll.u32 (!%p260_p3), %s740_s18, 4 }
   0x7   : > { %263 = sbr.rel (%p260_p3) target bundleno = 314 (0x13a), region = 40  ;;  %p322_p5 = scmp.lt.s32.totalorder (!%p260_p3), %s640_s22, 143 }
   0x8   : > { %p642_p6 = scmp.ne.s32.totalorder (!%p260_p3), %s740_s18, 0 }
   0xe   : > { %s316_s23 = scalar_select %p315_p4, %s740_s18, 8 }
   0xf   : > { %s849_s22 = smov (!%p322_p5, %s640_s22), 143  ;;  %354 = sbr.rel (%p642_p6) target bundleno = 22 (0x16), region = 44 }
  0x10   : > { %s639_s24 = sshll.u32 %s316_s23, 2  ;;  %s641_s28 = sshll.u32 %s849_s22, 2  ;;  %v750_v0 = vmov (!%p642_p6), 0.0  }
  0x11   : > { %s809_s27 = scalar_lea.vmem %s838_s0, %s639_s24  ;;  %s328_s6 = scalar_lea.vmem %s839_s1, %s641_s28  ;;  %355 = vst [vmem:[#allocation2] sm:$0xff] (!%p642_p6), %v750_v0 }
  0x16 PF: > { %v714_v1 = vld [vmem:[%s328_s6] sm:$0xff]   ;;  %v751_v2 = vmov 0.0   ;;  %v715_v3 = vld [vmem:[%s328_s6 + $0x8] sm:$0xff]   ;;  %vm752_vm0 = vmmov 0   ;;  %v716_v4 = vld [vmem:[%s328_s6 + $0x10] sm:$0xff]   ;;  %p651_p7 = scmp.ne.s32.totalorder %s740_s18, 8 }
  0x17   : > { %667 = vmatprep.subr.bf16.mxu0 %v751_v2  ;;  %683 = vmatprep.mubr.msk.bf16.mxu0 %vm752_vm0, %v751_v2  ;;  %v717_v5 = vld [vmem:[%s328_s6 + $0x18] sm:$0xff]   ;;  %v718_v6 = vld [vmem:[%s328_s6 + $0x20] sm:$0xff]   ;;  %v719_v7 = vld [vmem:[%s328_s6 + $0x28] sm:$0xff]  }
  0x18   : > { %668 = vmatpush3.bf16.msra.mxu0 %v714_v1  ;;  %v720_v8 = vld [vmem:[%s328_s6 + $0x30] sm:$0xff]   ;;  %v721_v9 = vld [vmem:[%s328_s6 + $0x38] sm:$0xff]   ;;  %v357_v10 = vld [vmem:[%s809_s27] sm:$0xf] }
  0x19   : > { %669 = vmatprep.subr.bf16.mxu0 %v751_v2  ;;  %v356_v11 = vld [vmem:[#allocation2] sm:$0xff] }
  0x1a   : > { %v652_v18 = vld [vmem:[%s840_s2] ss:$0 sm:$0xff] (!%p651_p7) }
  0x1b   : > { %v653_v19 = vld [vmem:[%s841_s3] ss:$0 sm:$0xff] (!%p651_p7) }
  0x1c   : > { %670 = vmatpush3.bf16.msra.mxu0 %v715_v3  ;;  %v492_v25 = vld [vmem:[%s842_s4] sm:$0xf] (!%p651_p7) }
  0x1d   : > { %671 = vmatprep.subr.bf16.mxu0 %v751_v2  ;;  %v493_v26 = vunpack.c.l.bf16 (!%p651_p7), %v492_v25 }
  0x20   : > { %672 = vmatpush3.bf16.msra.mxu0 %v716_v4 }
  0x21   : > { %673 = vmatprep.subr.bf16.mxu0 %v751_v2 }
  0x24   : > { %674 = vmatpush3.bf16.msra.mxu0 %v717_v5 }
  0x25   : > { %675 = vmatprep.subr.bf16.mxu0 %v751_v2 }
  0x28   : > { %676 = vmatpush3.bf16.msra.mxu0 %v718_v6 }
  0x29   : > { %677 = vmatprep.subr.bf16.mxu0 %v751_v2 }
  0x2c   : > { %678 = vmatpush3.bf16.msra.mxu0 %v719_v7 }
  0x2d   : > { %679 = vmatprep.subr.bf16.mxu0 %v751_v2 }
  0x30   : > { %680 = vmatpush3.bf16.msra.mxu0 %v720_v8 }
  0x31   : > { %681 = vmatprep.subr.bf16.mxu0 %v751_v2 }
  0x34   : > { %682 = vmatpush3.bf16.msra.mxu0 %v721_v9 }
  0x37   : > { %684 = vmatmul.mubr.bf16.vlgmr.msra.gmra.mrb[0].mxu0 %v357_v10 }
 0x107   : > { %467 = sbr.rel (%p651_p7) target bundleno = 314 (0x13a), region = 48 }
 0x10a   : > { %v456_v12 = vpop.f32.mrb[0].mxu0 }
 0x10b   : > { %v462_v13 = vadd.f32 %v456_v12, %v356_v11  ;;  %v685_v14 = vpop.f32.mrb[1].mxu0 }
 0x10c   : > { %v459_v15 = vpop.f32.mrb[2].mxu0 }
 0x10d   : > { %463 = vst [vmem:[#allocation2] sm:$0xff] %v462_v13  ;;  %v686_v16 = vpop.f32.mrb[3].mxu0 }
 0x114   : > { %v468_v17 = vld [vmem:[#allocation2] sm:$0xff] }
 0x115   : > { %v476_v20 = vmul.f32 %v652_v18, %v468_v17 }
 0x117   : > { %v484_v21 = vadd.f32 %v653_v19, %v476_v20 }
 0x119   : > { %v654_v22 = vmul.f32 -1.442695, %v484_v21 }
 0x11b   : > { %722 = vpow2.f32 %v654_v22 }
 0x125   : > { %v723_v23 = vpop.eup %722 }
 0x126   : > { %v488_v24 = vadd.f32 1.0, %v723_v23 }
 0x128   : > { %724 = vrcp.f32 %v488_v24 }
 0x132   : > { %v725_v27 = vpop.eup %724 }
 0x133   : > { %v491_v28 = vmul.f32 %v725_v27, %v484_v21 }
 0x135   : > { %v494_v29 = vadd.f32 %v493_v26, %v491_v28 }
 0x137   : > { %v495_v30 = vpack.c.bf16 %v494_v29, %v494_v29 }
 0x139   : > { %496 = vst [vmem:[%s843_s5] sm:$0xf] %v495_v30 }
 0x13a PF: > { %s15_s20 = sadd.s32 1, %s748_s20   ;;  %s844_s18 = smov %s744_s19 }
 0x13b   : > { %p12_p8 = scmp.ge.s32.totalorder %s15_s20, 11   ;;  %s845_s19 = smov %s847_s21 }
 0x13d   :  { %14 = sbr.rel (!%p12_p8) target bundleno = 2 (0x2), region = 90 }

// kernel: _lambda_.86
= control target key start
LH: loop header
LB: loop body
LE: loop exit
PB: predicated region body
PF: predicated region fallthrough
CT: control target
= control target key end

     0   :  { %s968_s1 = inlined_call_operand.vmem [shape: bf16[512,256], index: 1, kind: input, shape index: {}]   ;;  %s969_s0 = inlined_call_operand.vmem [shape: bf16[8,512], index: 0, kind: input, shape index: {}]   ;;  %s970_s2 = inlined_call_operand.vmem [shape: f32[1,256], index: 2, kind: input, shape index: {}]   ;;  %s971_s3 = inlined_call_operand.vmem [shape: f32[1,256], index: 3, kind: input, shape index: {}]   ;;  %s972_s4 = inlined_call_operand.vmem [shape: bf16[8,256], index: 4, kind: output, shape index: {}]  }
   0x1   :  { %v628_v0 = vld [vmem:[%s968_s1 + $0x4] ss:$8 sps:$4 sm:$0xff]   ;;  %v632_v2 = vld [vmem:[%s968_s1] ss:$8 sps:$4 sm:$0xff]   ;;  %v634_v4 = vld [vmem:[%s968_s1 + $0x14] ss:$8 sps:$4 sm:$0xff]  }
   0x2   :  { %v630_v1 = vld [vmem:[%s968_s1 + $0x104] ss:$8 sps:$4 sm:$0xff]   ;;  %417 = vmatprep.subr.bf16.mxu1 %v628_v0  ;;  %v633_v3 = vld [vmem:[%s968_s1 + $0x100] ss:$8 sps:$4 sm:$0xff]   ;;  %v636_v5 = vld [vmem:[%s968_s1 + $0x114] ss:$8 sps:$4 sm:$0xff]  }
   0x3   :  { %458 = vmatprep.subr.bf16.mxu0 %v630_v1  ;;  %418 = vmatpush1.bf16.msra.mxu1 %v632_v2  ;;  %v638_v6 = vld [vmem:[%s968_s1 + $0x10] ss:$8 sps:$4 sm:$0xff]   ;;  %v640_v8 = vld [vmem:[%s968_s1 + $0x24] ss:$8 sps:$4 sm:$0xff]   ;;  %v644_v10 = vld [vmem:[%s968_s1 + $0x20] ss:$8 sps:$4 sm:$0xff]  }
   0x4   :  { %459 = vmatpush1.bf16.msra.mxu0 %v633_v3  ;;  %419 = vmatprep.subr.bf16.mxu1 %v634_v4  ;;  %v639_v7 = vld [vmem:[%s968_s1 + $0x110] ss:$8 sps:$4 sm:$0xff]   ;;  %v642_v9 = vld [vmem:[%s968_s1 + $0x124] ss:$8 sps:$4 sm:$0xff]   ;;  %v645_v11 = vld [vmem:[%s968_s1 + $0x120] ss:$8 sps:$4 sm:$0xff]  }
   0x5   :  { %460 = vmatprep.subr.bf16.mxu0 %v636_v5  ;;  %v646_v12 = vld [vmem:[%s968_s1 + $0x34] ss:$8 sps:$4 sm:$0xff]   ;;  %v650_v14 = vld [vmem:[%s968_s1 + $0x30] ss:$8 sps:$4 sm:$0xff]   ;;  %v652_v16 = vld [vmem:[%s968_s1 + $0x44] ss:$8 sps:$4 sm:$0xff]  }
   0x6   :  { %v648_v13 = vld [vmem:[%s968_s1 + $0x134] ss:$8 sps:$4 sm:$0xff]   ;;  %v651_v15 = vld [vmem:[%s968_s1 + $0x130] ss:$8 sps:$4 sm:$0xff]   ;;  %v654_v17 = vld [vmem:[%s968_s1 + $0x144] ss:$8 sps:$4 sm:$0xff]  }
   0x7   :  { %420 = vmatpush1.bf16.msra.mxu1 %v638_v6  ;;  %v656_v18 = vld [vmem:[%s968_s1 + $0x40] ss:$8 sps:$4 sm:$0xff]   ;;  %v658_v20 = vld [vmem:[%s968_s1 + $0x54] ss:$8 sps:$4 sm:$0xff]   ;;  %v662_v22 = vld [vmem:[%s968_s1 + $0x50] ss:$8 sps:$4 sm:$0xff]   ;;  %v501_v6 = vlaneseq }
   0x8   :  { %461 = vmatpush1.bf16.msra.mxu0 %v639_v7  ;;  %421 = vmatprep.subr.bf16.mxu1 %v640_v8  ;;  %v657_v19 = vld [vmem:[%s968_s1 + $0x140] ss:$8 sps:$4 sm:$0xff]   ;;  %v660_v21 = vld [vmem:[%s968_s1 + $0x154] ss:$8 sps:$4 sm:$0xff]   ;;  %v663_v23 = vld [vmem:[%s968_s1 + $0x150] ss:$8 sps:$4 sm:$0xff]  }
   0x9   :  { %462 = vmatprep.subr.bf16.mxu0 %v642_v9  ;;  %v664_v24 = vld [vmem:[%s968_s1 + $0x64] ss:$8 sps:$4 sm:$0xff]   ;;  %v668_v26 = vld [vmem:[%s968_s1 + $0x60] ss:$8 sps:$4 sm:$0xff]   ;;  %v670_v28 = vld [vmem:[%s968_s1 + $0x74] ss:$8 sps:$4 sm:$0xff]  }
   0xa   :  { %v666_v25 = vld [vmem:[%s968_s1 + $0x164] ss:$8 sps:$4 sm:$0xff]   ;;  %v669_v27 = vld [vmem:[%s968_s1 + $0x160] ss:$8 sps:$4 sm:$0xff]   ;;  %v672_v29 = vld [vmem:[%s968_s1 + $0x174] ss:$8 sps:$4 sm:$0xff]  }
   0xb   :  { %422 = vmatpush1.bf16.msra.mxu1 %v644_v10  ;;  %v674_v30 = vld [vmem:[%s968_s1 + $0x70] ss:$8 sps:$4 sm:$0xff]   ;;  %v676_v32 = vld [vmem:[%s968_s1 + $0x84] ss:$8 sps:$4 sm:$0xff]   ;;  %v680_v34 = vld [vmem:[%s968_s1 + $0x80] ss:$8 sps:$4 sm:$0xff]  }
   0xc   :  { %463 = vmatpush1.bf16.msra.mxu0 %v645_v11  ;;  %423 = vmatprep.subr.bf16.mxu1 %v646_v12  ;;  %v675_v31 = vld [vmem:[%s968_s1 + $0x170] ss:$8 sps:$4 sm:$0xff]   ;;  %v678_v33 = vld [vmem:[%s968_s1 + $0x184] ss:$8 sps:$4 sm:$0xff]   ;;  %v681_v35 = vld [vmem:[%s968_s1 + $0x180] ss:$8 sps:$4 sm:$0xff]  }
   0xd   :  { %464 = vmatprep.subr.bf16.mxu0 %v648_v13  ;;  %v682_v36 = vld [vmem:[%s968_s1 + $0x94] ss:$8 sps:$4 sm:$0xff]   ;;  %v686_v38 = vld [vmem:[%s968_s1 + $0x90] ss:$8 sps:$4 sm:$0xff]   ;;  %v688_v40 = vld [vmem:[%s968_s1 + $0xa4] ss:$8 sps:$4 sm:$0xff]  }
   0xe   :  { %v684_v37 = vld [vmem:[%s968_s1 + $0x194] ss:$8 sps:$4 sm:$0xff]   ;;  %v687_v39 = vld [vmem:[%s968_s1 + $0x190] ss:$8 sps:$4 sm:$0xff]   ;;  %v690_v41 = vld [vmem:[%s968_s1 + $0x1a4] ss:$8 sps:$4 sm:$0xff]  }
   0xf   :  { %424 = vmatpush1.bf16.msra.mxu1 %v650_v14  ;;  %v692_v42 = vld [vmem:[%s968_s1 + $0xa0] ss:$8 sps:$4 sm:$0xff]   ;;  %v694_v44 = vld [vmem:[%s968_s1 + $0xb4] ss:$8 sps:$4 sm:$0xff]   ;;  %v698_v49 = vld [vmem:[%s968_s1 + $0xb0] ss:$8 sps:$4 sm:$0xff]  }
  0x10   :  { %465 = vmatpush1.bf16.msra.mxu0 %v651_v15  ;;  %425 = vmatprep.subr.bf16.mxu1 %v652_v16  ;;  %v693_v43 = vld [vmem:[%s968_s1 + $0x1a0] ss:$8 sps:$4 sm:$0xff]   ;;  %v696_v45 = vld [vmem:[%s968_s1 + $0x1b4] ss:$8 sps:$4 sm:$0xff]   ;;  %v699_v50 = vld [vmem:[%s968_s1 + $0x1b0] ss:$8 sps:$4 sm:$0xff]  }
  0x11   :  { %466 = vmatprep.subr.bf16.mxu0 %v654_v17  ;;  %v17_v46 = vld [vmem:[%s969_s0] sm:$0xff]  ;;  %v18_v48 = vld [vmem:[%s969_s0 + $0x8] sm:$0xff]  ;;  %v706_v56 = vld [vmem:[%s968_s1 + $0xd4] ss:$8 sps:$4 sm:$0xff]   ;;  %v502_v7 = vshrl.u32 %v501_v6, 7 }
  0x12   :  { %v555_v47 = vcombine.high %v17_v46, %v17_v46  ;;  %v557_v51 = vcombine.high %v18_v48, %v18_v48  ;;  %v700_v52 = vld [vmem:[%s968_s1 + $0xc4] ss:$8 sps:$4 sm:$0xff]   ;;  %v704_v54 = vld [vmem:[%s968_s1 + $0xc0] ss:$8 sps:$4 sm:$0xff]   ;;  %v708_v57 = vld [vmem:[%s968_s1 + $0x1d4] ss:$8 sps:$4 sm:$0xff]   ;;  %v554_v4 = vcombine.low %v17_v46, %v17_v46  ;;  %v556_v5 = vcombine.low %v18_v48, %v18_v48 }
  0x13   :  { %426 = vmatpush1.bf16.msra.mxu1 %v656_v18  ;;  %v702_v53 = vld [vmem:[%s968_s1 + $0x1c4] ss:$8 sps:$4 sm:$0xff]   ;;  %v705_v55 = vld [vmem:[%s968_s1 + $0x1c0] ss:$8 sps:$4 sm:$0xff]   ;;  %v710_v58 = vld [vmem:[%s968_s1 + $0xd0] ss:$8 sps:$4 sm:$0xff]  }
  0x14   :  { %467 = vmatpush1.bf16.msra.mxu0 %v657_v19  ;;  %427 = vmatprep.subr.bf16.mxu1 %v658_v20  ;;  %v711_v59 = vld [vmem:[%s968_s1 + $0x1d0] ss:$8 sps:$4 sm:$0xff]   ;;  %v712_v60 = vld [vmem:[%s968_s1 + $0xe4] ss:$8 sps:$4 sm:$0xff]   ;;  %v716_v62 = vld [vmem:[%s968_s1 + $0xe0] ss:$8 sps:$4 sm:$0xff]  }
  0x15   :  { %468 = vmatprep.subr.bf16.mxu0 %v660_v21  ;;  %449 = vmatprep.mubr.bf16.mxu1 %v555_v47  ;;  %v714_v61 = vld [vmem:[%s968_s1 + $0x1e4] ss:$8 sps:$4 sm:$0xff]   ;;  %v717_v63 = vld [vmem:[%s968_s1 + $0x1e0] ss:$8 sps:$4 sm:$0xff]   ;;  %v718_v0 = vld [vmem:[%s968_s1 + $0xf4] ss:$8 sps:$4 sm:$0xff]  }
  0x16   :  { %490 = vmatprep.mubr.bf16.mxu0 %v557_v51  ;;  %v720_v1 = vld [vmem:[%s968_s1 + $0x1f4] ss:$8 sps:$4 sm:$0xff]   ;;  %v722_v2 = vld [vmem:[%s968_s1 + $0xf0] ss:$8 sps:$4 sm:$0xff]   ;;  %v503_v8 = vsub.s32 0, %v502_v7  ;;  %v507_v10 = vsub.s32 1, %v502_v7 }
  0x17   :  { %428 = vmatpush1.bf16.msra.mxu1 %v662_v22  ;;  %v723_v3 = vld [vmem:[%s968_s1 + $0x1f0] ss:$8 sps:$4 sm:$0xff]   ;;  %v499_v9 = vld [vmem:[%s970_s2] sm:$0x3] }
  0x18   :  { %469 = vmatpush1.bf16.msra.mxu0 %v663_v23  ;;  %429 = vmatprep.subr.bf16.mxu1 %v664_v24  ;;  %v513_v11 = vld [vmem:[%s971_s3] sm:$0x3]  ;;  %v504_v12 = vrot.slane %v499_v9, %v503_v8  ;;  %v508_v15 = vrot.slane %v499_v9, %v507_v10 }
  0x19   :  { %470 = vmatprep.subr.bf16.mxu0 %v666_v25  ;;  %v518_v17 = vrot.slane %v513_v11, %v503_v8  ;;  %v522_v21 = vrot.slane %v513_v11, %v507_v10 }
  0x1b   :  { %430 = vmatpush1.bf16.msra.mxu1 %v668_v26 }
  0x1c   :  { %471 = vmatpush1.bf16.msra.mxu0 %v669_v27  ;;  %431 = vmatprep.subr.bf16.mxu1 %v670_v28 }
  0x1d   :  { %472 = vmatprep.subr.bf16.mxu0 %v672_v29 }
  0x1f   :  { %432 = vmatpush1.bf16.msra.mxu1 %v674_v30 }
  0x20   :  { %473 = vmatpush1.bf16.msra.mxu0 %v675_v31  ;;  %433 = vmatprep.subr.bf16.mxu1 %v676_v32 }
  0x21   :  { %474 = vmatprep.subr.bf16.mxu0 %v678_v33 }
  0x23   :  { %434 = vmatpush1.bf16.msra.mxu1 %v680_v34 }
  0x24   :  { %475 = vmatpush1.bf16.msra.mxu0 %v681_v35  ;;  %435 = vmatprep.subr.bf16.mxu1 %v682_v36 }
  0x25   :  { %476 = vmatprep.subr.bf16.mxu0 %v684_v37 }
  0x27   :  { %436 = vmatpush1.bf16.msra.mxu1 %v686_v38 }
  0x28   :  { %477 = vmatpush1.bf16.msra.mxu0 %v687_v39  ;;  %437 = vmatprep.subr.bf16.mxu1 %v688_v40 }
  0x29   :  { %478 = vmatprep.subr.bf16.mxu0 %v690_v41 }
  0x2b   :  { %438 = vmatpush1.bf16.msra.mxu1 %v692_v42 }
  0x2c   :  { %479 = vmatpush1.bf16.msra.mxu0 %v693_v43  ;;  %439 = vmatprep.subr.bf16.mxu1 %v694_v44 }
  0x2d   :  { %480 = vmatprep.subr.bf16.mxu0 %v696_v45 }
  0x2f   :  { %440 = vmatpush1.bf16.msra.mxu1 %v698_v49 }
  0x30   :  { %481 = vmatpush1.bf16.msra.mxu0 %v699_v50  ;;  %441 = vmatprep.subr.bf16.mxu1 %v700_v52 }
  0x31   :  { %482 = vmatprep.subr.bf16.mxu0 %v702_v53 }
  0x33   :  { %442 = vmatpush1.bf16.msra.mxu1 %v704_v54 }
  0x34   :  { %483 = vmatpush1.bf16.msra.mxu0 %v705_v55  ;;  %443 = vmatprep.subr.bf16.mxu1 %v706_v56 }
  0x35   :  { %484 = vmatprep.subr.bf16.mxu0 %v708_v57 }
  0x37   :  { %444 = vmatpush1.bf16.msra.mxu1 %v710_v58 }
  0x38   :  { %485 = vmatpush1.bf16.msra.mxu0 %v711_v59  ;;  %445 = vmatprep.subr.bf16.mxu1 %v712_v60 }
  0x39   :  { %486 = vmatprep.subr.bf16.mxu0 %v714_v61 }
  0x3b   :  { %446 = vmatpush1.bf16.msra.mxu1 %v716_v62 }
  0x3c   :  { %487 = vmatpush1.bf16.msra.mxu0 %v717_v63  ;;  %447 = vmatprep.subr.bf16.mxu1 %v718_v0 }
  0x3d   :  { %488 = vmatprep.subr.bf16.mxu0 %v720_v1 }
  0x3f   :  { %448 = vmatpush1.bf16.msra.mxu1 %v722_v2 }
  0x40   :  { %489 = vmatpush1.bf16.msra.mxu0 %v723_v3 }
  0x42   :  { %450 = vmatmul.mubr.bf16.vlgmr.msra.gmra.mrb[0].mxu1 %v554_v4 }
  0x43   :  { %491 = vmatmul.mubr.bf16.vlgmr.msra.gmra.mrb[0].mxu0 %v556_v5 }
 0x115   :  { %v451_v13 = vpop.f32.mrb[0].mxu1 }
 0x116   :  { %v492_v14 = vpop.f32.mrb[0].mxu0  ;;  %v453_v18 = vpop.f32.mrb[1].mxu1 }
 0x117   :  { %v493_v16 = vadd.f32 %v492_v14, %v451_v13  ;;  %v494_v19 = vpop.f32.mrb[1].mxu0  ;;  %v455_v22 = vpop.f32.mrb[2].mxu1 }
 0x118   :  { %v495_v20 = vadd.f32 %v494_v19, %v453_v18  ;;  %v496_v23 = vpop.f32.mrb[2].mxu0  ;;  %v456_v25 = vpop.f32.mrb[3].mxu1 }
 0x119   :  { %v511_v24 = vmul.f32 %v504_v12, %v493_v16  ;;  %v497_v26 = vpop.f32.mrb[3].mxu0 }
 0x11a   :  { %v512_v27 = vmul.f32 %v508_v15, %v495_v20 }
 0x11b   :  { %v525_v28 = vadd.f32 %v518_v17, %v511_v24 }
 0x11c   :  { %v526_v29 = vadd.f32 %v522_v21, %v512_v27 }
 0x11d   :  { %v622_v30 = vmul.f32 -1.442695, %v525_v28 }
 0x11e   :  { %v623_v31 = vmul.f32 -1.442695, %v526_v29 }
 0x11f   :  { %728 = vpow2.f32 %v622_v30 }
 0x120   :  { %730 = vpow2.f32 %v623_v31 }
 0x129   :  { %v729_v32 = vpop.eup %728 }
 0x12a   :  { %v731_v33 = vpop.eup %730  ;;  %v533_v34 = vadd.f32 1.0, %v729_v32 }
 0x12b   :  { %v534_v35 = vadd.f32 1.0, %v731_v33 }
 0x12c   :  { %732 = vrcp.f32 %v533_v34 }
 0x12d   :  { %734 = vrcp.f32 %v534_v35 }
 0x136   :  { %v733_v36 = vpop.eup %732 }
 0x137   :  { %v735_v37 = vpop.eup %734  ;;  %v539_v38 = vmul.f32 %v733_v36, %v525_v28 }
 0x138   :  { %v540_v39 = vmul.f32 %v735_v37, %v526_v29 }
 0x13a   :  { %v625_v40 = vpack.c.bf16 %v540_v39, %v539_v38 }
 0x13c   :  { %549 = vst [vmem:[%s972_s4] sm:$0xff] %v625_v40 }

// kernel: _lambda_.85
= control target key start
LH: loop header
LB: loop body
LE: loop exit
PB: predicated region body
PF: predicated region fallthrough
CT: control target
= control target key end

     0   :  { %s1001_s6 = smov 0   ;;  %s1422_s0 = inlined_call_operand.vmem [shape: bf16[2,14,14,128], index: 0, kind: input, shape index: {}]   ;;  %s1423_s1 = inlined_call_operand.vmem [shape: bf16[2,2,2,512], index: 1, kind: output, shape index: {}]  }
   0x1 LB: > { %s959_s7 = sadd.s32 4294967295, %s988_s6   ;;  %p963_p0 = scmp.ge.s32.totalorder %s988_s6, 1  ;;  %s988_s6 = sphi %s1001_s6, %s11_s6  }
   0x2   : > { %p87_p1 = scmp.lt.s32.totalorder %s988_s6, 3 }
   0x4   : > { %p88_p2 = pnand %p963_p0, %p87_p1 }
   0x5   : > { %p106_p3 = scmp.lt.s32.totalorder (!%p88_p2), %s959_s7, 1  ;;  %v759_v0 = vlaneseq (!%p88_p2)  ;;  %v990_v1 = vmov (!%p88_p2), 1966171168   ;;  %vm283_vm0 = vcmask (!%p88_p2), 1044480  }
   0x6   : > { %91 = sbr.rel (%p88_p2) target bundleno = 153 (0x99), region = 24  ;;  %v757_v2 = vunpack.c.l.s4 (!%p88_p2), %v990_v1 }
   0x7   : > { %v760_v3 = vshrl.u32 (!%p88_p2), %v759_v0, 7 }
   0x8   : > { %v758_v4 = vunpack.c.0.s8 (!%p88_p2), %v757_v2 }
   0xa   : > { %v1017_v5 = vsub.s32 (!%p88_p2), %v758_v4, %v760_v3 }
   0xd   : > { %s1428_s7 = smov (!%p106_p3, %s959_s7), 1 }
   0xe   : > { %s970_s8 = smul.u32 112, %s1428_s7  ;;  %s965_s12 = sshll.u32 %s1428_s7, 3 }
   0xf   : > { %s1069_s15 = scalar_lea.vmem %s1423_s1, %s965_s12 }
  0x10   : > { %s1015_s11 = scalar_lea.vmem %s1422_s0, %s970_s8 }
  0x11   : > { %v127_v6 = vld [vmem:[%s1015_s11 + $0x30] sm:$0xf]  ;;  %v129_v7 = vld [vmem:[%s1015_s11 + $0x38] sm:$0xf]  ;;  %v123_v8 = vld [vmem:[%s1015_s11 + $0x20] ss:$8 sps:$4 sm:$0xff]  }
  0x12   : > { %v1022_v9 = vunpack.c.l.bf16 %v127_v6  ;;  %v966_v10 = vcombine.low %v127_v6, %v127_v6  ;;  %v1024_v11 = vunpack.c.l.bf16 %v129_v7  ;;  %v967_v12 = vcombine.low %v129_v7, %v129_v7  ;;  %v124_v13 = vld [vmem:[%s1015_s11 + $0x24] sm:$0x7]  ;;  %v126_v14 = vld [vmem:[%s1015_s11 + $0x2c] sm:$0x7]  ;;  %v128_v15 = vld [vmem:[%s1015_s11 + $0x34] sm:$0x7] }
  0x13   : > { %v130_v16 = vld [vmem:[%s1015_s11 + $0x3c] sm:$0x7]  ;;  %v1031_v17 = vld [vmem:[%s1015_s11 + $0x40] ss:$8 sps:$4 sm:$0xff]   ;;  %v132_v18 = vld [vmem:[%s1015_s11 + $0x44] sm:$0x7]  ;;  %v1034_v19 = vunpack.c.l.bf16 %v123_v8  ;;  %v1036_v20 = vunpack.c.l.bf16 %v124_v13  ;;  %v1038_v21 = vunpack.c.h.bf16 %v123_v8  ;;  %v1040_v22 = vunpack.c.l.bf16 %v126_v14 }
  0x14   : > { %v762_v23 = vrot.slane %v966_v10, %v1017_v5  ;;  %v778_v24 = vrot.slane %v967_v12, %v1017_v5  ;;  %v1044_v25 = vunpack.c.l.bf16 %v128_v15  ;;  %v1046_v26 = vunpack.c.l.bf16 %v130_v16 }
  0x15   : > { %v1049_v27 = vunpack.c.l.bf16 %v1031_v17  ;;  %v1051_v28 = vunpack.c.l.bf16 %v132_v18  ;;  %v189_v29 = vrot.slane %v1034_v19, 1  ;;  %v190_v30 = vrot.slane %v1038_v21, 1 }
  0x16   : > { %v763_v31 = vcombine.high %v762_v23, %v762_v23  ;;  %v779_v32 = vcombine.high %v778_v24, %v778_v24  ;;  %v191_v33 = vrot.slane %v1022_v9, 1  ;;  %v192_v34 = vrot.slane %v1024_v11, 1 }
  0x17   : > { %v193_v35 = vrot.slane %v1049_v27, 1  ;;  %v217_v36 = vmax.f32 %v1034_v19, %v189_v29  ;;  %v218_v37 = vmax.f32 %v1038_v21, %v190_v30  ;;  %v231_v38 = vrot.slane %v1034_v19, 2 }
  0x18   : > { %v770_v39 = vrot.slane %v763_v31, %v1017_v5  ;;  %v786_v40 = vrot.slane %v779_v32, %v1017_v5  ;;  %v219_v41 = vmax.f32 %v1022_v9, %v191_v33  ;;  %v220_v42 = vmax.f32 %v1024_v11, %v192_v34 }
  0x19   : > { %v221_v43 = vmax.f32 %v1049_v27, %v193_v35  ;;  %v232_v44 = vrot.slane %v1038_v21, 2  ;;  %v233_v45 = vrot.slane %v1022_v9, 2  ;;  %v234_v46 = vrot.slane %v1024_v11, 2 }
  0x1a   : > { %v771_v47 = vcombine.high %v770_v39, %v770_v39  ;;  %v787_v48 = vcombine.high %v786_v40, %v786_v40  ;;  %v235_v49 = vrot.slane %v1049_v27, 2  ;;  %v259_v50 = vmax.f32 %v217_v36, %v231_v38 }
  0x1b   : > { %v260_v51 = vmax.f32 %v218_v37, %v232_v44  ;;  %v261_v52 = vmax.f32 %v219_v41, %v233_v45  ;;  %v262_v53 = vmax.f32 %v220_v42, %v234_v46  ;;  %v296_v54 = vrot.slane %v1034_v19, 3  ;;  %v134_v42 = vld [vmem:[%s1015_s11 + $0x4c] sm:$0x7] }
  0x1c   : > { %790 = vst [vmem:[%s1069_s15] sm:$0x1] %v771_v47  ;;  %791 = vst [vmem:[%s1069_s15 + $0x4] sm:$0x1] %v787_v48  ;;  %v263_v55 = vmax.f32 %v221_v43, %v235_v49  ;;  %v297_v56 = vrot.slane %v1036_v20, 3  ;;  %v299_v57 = vrot.slane %v1038_v21, 3  ;;  %v300_v58 = vrot.slane %v1040_v22, 3 }
  0x1d   : > { %v302_v59 = vrot.slane %v1022_v9, 3  ;;  %v303_v60 = vrot.slane %v1044_v25, 3  ;;  %v305_v61 = vrot.slane %v1024_v11, 3  ;;  %v306_v62 = vrot.slane %v1046_v26, 3 }
  0x1e   : > { %v298_v63 = vsel %vm283_vm0, %v296_v54, %v297_v56  ;;  %v301_v0 = vsel %vm283_vm0, %v299_v57, %v300_v58  ;;  %v308_v1 = vrot.slane %v1049_v27, 3  ;;  %v309_v2 = vrot.slane %v1051_v28, 3  ;;  %v120_v58 = vld [vmem:[%s1015_s11 + $0x14] sm:$0x7] }
  0x1f   : > { %v304_v3 = vsel %vm283_vm0, %v302_v59, %v303_v60  ;;  %v307_v4 = vsel %vm283_vm0, %v305_v61, %v306_v62  ;;  %v344_v6 = vmax.f32 %v259_v50, %v298_v63  ;;  %v345_v8 = vmax.f32 %v260_v51, %v301_v0  ;;  %v122_v62 = vld [vmem:[%s1015_s11 + $0x1c] sm:$0x7] }
  0x20   : > { %v310_v7 = vsel %vm283_vm0, %v308_v1, %v309_v2  ;;  %v346_v10 = vmax.f32 %v261_v52, %v304_v3  ;;  %v358_v12 = vrot.slane %v1036_v20, 4  ;;  %v347_v13 = vmax.f32 %v262_v53, %v307_v4  ;;  %v119_v53 = vld [vmem:[%s1015_s11 + $0x10] ss:$8 sps:$4 sm:$0xff]   ;;  %v136_v3 = vld [vmem:[%s1015_s11 + $0x54] sm:$0x7] }
  0x21   : > { %v359_v14 = vrot.slane %v1040_v22, 4  ;;  %v360_v15 = vrot.slane %v1044_v25, 4  ;;  %v361_v16 = vrot.slane %v1046_v26, 4  ;;  %v348_v18 = vmax.f32 %v263_v55, %v310_v7  ;;  %v1136_v2 = vld [vmem:[%s1015_s11 + $0x50] ss:$8 sps:$4 sm:$0xff]  }
  0x22   : > { %v362_v23 = vrot.slane %v1051_v28, 4  ;;  %v386_v24 = vmax.f32 %v344_v6, %v358_v12  ;;  %v400_v29 = vrot.slane %v1034_v19, 6  ;;  %v401_v31 = vrot.slane %v1038_v21, 6 }
  0x23   : > { %v387_v30 = vmax.f32 %v345_v8, %v359_v14  ;;  %v388_v32 = vmax.f32 %v346_v10, %v360_v15  ;;  %v389_v33 = vmax.f32 %v347_v13, %v361_v16  ;;  %v402_v34 = vrot.slane %v1022_v9, 6 }
  0x24   : > { %v403_v35 = vrot.slane %v1024_v11, 6  ;;  %v1102_v36 = vmax.f32 %v348_v18, %v362_v23  ;;  %v404_v37 = vrot.slane %v1049_v27, 6  ;;  %v428_v38 = vmax.f32 %v386_v24, %v400_v29 }
  0x25   : > { %v442_v39 = vrot.slane %v1034_v19, 7  ;;  %v429_v40 = vmax.f32 %v387_v30, %v401_v31  ;;  %v443_v41 = vrot.slane %v1038_v21, 7  ;;  %v430_v43 = vmax.f32 %v388_v32, %v402_v34 }
  0x26   : > { %v431_v44 = vmax.f32 %v389_v33, %v403_v35  ;;  %v1109_v45 = vmax.f32 %v1102_v36, %v404_v37  ;;  %v444_v46 = vrot.slane %v1022_v9, 7  ;;  %v445_v47 = vrot.slane %v1024_v11, 7 }
  0x27   : > { %v704_v48 = vmax.f32 %v386_v24, %v387_v30  ;;  %v446_v49 = vrot.slane %v1049_v27, 7  ;;  %v1114_v50 = vmax.f32 %v428_v38, %v442_v39  ;;  %v1117_v51 = vunpack.c.h.bf16 %v1031_v17 }
  0x28   : > { %v1119_v52 = vunpack.c.l.bf16 %v134_v42  ;;  %v1122_v54 = vmax.f32 %v429_v40, %v443_v41  ;;  %v484_v55 = vrot.slane %v1036_v20, 5  ;;  %v705_v57 = vmax.f32 %v387_v30, %v388_v32 }
  0x29   : > { %v706_v56 = vmax.f32 %v704_v48, %v388_v32  ;;  %v194_v59 = vrot.slane %v1117_v51, 1  ;;  %v236_v60 = vrot.slane %v1117_v51, 2  ;;  %v311_v61 = vrot.slane %v1117_v51, 3 }
  0x2a   : > { %v312_v17 = vrot.slane %v1119_v52, 3  ;;  %v1131_v63 = vmax.f32 %v430_v43, %v444_v46  ;;  %v1133_v0 = vmax.f32 %v431_v44, %v445_v47  ;;  %v1139_v4 = vunpack.c.l.bf16 %v119_v53 }
  0x2b   : > { %v708_v1 = vmax.f32 %v706_v56, %v389_v33  ;;  %v222_v6 = vmax.f32 %v1117_v51, %v194_v59  ;;  %v363_v8 = vrot.slane %v1119_v52, 4  ;;  %v707_v10 = vmax.f32 %v705_v57, %v389_v33 }
  0x2c   : > { %v313_v7 = vsel %vm283_vm0, %v311_v61, %v312_v17  ;;  %v1145_v13 = vunpack.c.l.bf16 %v120_v58  ;;  %v1147_v14 = vunpack.c.h.bf16 %v119_v53  ;;  %v1149_v15 = vunpack.c.l.bf16 %v122_v62 }
  0x2d   : > { %v710_v12 = vmax.f32 %v708_v1, %v1102_v36  ;;  %v264_v16 = vmax.f32 %v222_v6, %v236_v60  ;;  %v709_v18 = vmax.f32 %v707_v10, %v1102_v36  ;;  %v1153_v23 = vunpack.c.l.bf16 %v1136_v2 }
  0x2e   : > { %v1155_v24 = vunpack.c.l.bf16 %v136_v3  ;;  %v187_v30 = vrot.slane %v1139_v4, 1  ;;  %v188_v31 = vrot.slane %v1147_v14, 1  ;;  %v229_v32 = vrot.slane %v1139_v4, 2 }
  0x2f   : > { %v792_v29 = vpack.c.bf16 %v710_v12, %v710_v12  ;;  %v349_v33 = vmax.f32 %v264_v16, %v313_v7  ;;  %v195_v34 = vrot.slane %v1153_v23, 1  ;;  %v230_v35 = vrot.slane %v1147_v14, 2 }
  0x30   : > { %v237_v37 = vrot.slane %v1153_v23, 2  ;;  %v215_v38 = vmax.f32 %v1139_v4, %v187_v30  ;;  %v216_v39 = vmax.f32 %v1147_v14, %v188_v31  ;;  %v290_v40 = vrot.slane %v1139_v4, 3 }
  0x31   : > { %v802_v36 = vrot.slane %v792_v29, %v1017_v5  ;;  %v391_v41 = vmax.f32 %v349_v33, %v363_v8  ;;  %v223_v42 = vmax.f32 %v1153_v23, %v195_v34  ;;  %v291_v43 = vrot.slane %v1145_v13, 3 }
  0x32   : > { %v293_v44 = vrot.slane %v1147_v14, 3  ;;  %v257_v47 = vmax.f32 %v215_v38, %v229_v32  ;;  %v258_v48 = vmax.f32 %v216_v39, %v230_v35  ;;  %v294_v53 = vrot.slane %v1149_v15, 3 }
  0x33   : > { %v809_v46 = vrot.slane %v802_v36, %v1017_v5  ;;  %v405_v56 = vrot.slane %v1117_v51, 6  ;;  %v711_v57 = vmax.f32 %v709_v18, %v391_v41  ;;  %v265_v58 = vmax.f32 %v223_v42, %v237_v37 }
  0x34   : > { %v292_v59 = vsel %vm283_vm0, %v290_v40, %v291_v43  ;;  %v295_v61 = vsel %vm283_vm0, %v293_v44, %v294_v53  ;;  %v314_v17 = vrot.slane %v1153_v23, 3  ;;  %v315_v62 = vrot.slane %v1155_v24, 3 }
  0x35   : > { %v810_v60 = vcombine.high %v809_v46, %v809_v46  ;;  %v447_v1 = vrot.slane %v1117_v51, 7  ;;  %v793_v3 = vpack.c.bf16 %v711_v57, %v711_v57  ;;  %v342_v6 = vmax.f32 %v257_v47, %v292_v59 }
  0x36   : > { %v343_v7 = vmax.f32 %v258_v48, %v295_v61  ;;  %v316_v8 = vsel %vm283_vm0, %v314_v17, %v315_v62  ;;  %v356_v10 = vrot.slane %v1145_v13, 4  ;;  %v357_v12 = vrot.slane %v1149_v15, 4 }
  0x37   : > { %828 = vst [vmem:[%s1069_s15 + $0x1] sm:$0x1] %v810_v60  ;;  %v364_v16 = vrot.slane %v1155_v24, 4  ;;  %v433_v18 = vmax.f32 %v391_v41, %v405_v56  ;;  %v817_v29 = vrot.slane %v793_v3, %v1017_v5  ;;  %v350_v30 = vmax.f32 %v265_v58, %v316_v8 }
  0x38   : > { %v398_v31 = vrot.slane %v1139_v4, 6  ;;  %v384_v32 = vmax.f32 %v342_v6, %v356_v10  ;;  %v385_v33 = vmax.f32 %v343_v7, %v357_v12  ;;  %v399_v34 = vrot.slane %v1147_v14, 6 }
  0x39   : > { %v406_v35 = vrot.slane %v1153_v23, 6  ;;  %v824_v37 = vrot.slane %v817_v29, %v1017_v5  ;;  %v392_v36 = vmax.f32 %v350_v30, %v364_v16  ;;  %v440_v38 = vrot.slane %v1139_v4, 7 }
  0x3a   : > { %v441_v39 = vrot.slane %v1147_v14, 7  ;;  %v485_v40 = vrot.slane %v1040_v22, 5  ;;  %v426_v41 = vmax.f32 %v384_v32, %v398_v31  ;;  %v427_v42 = vmax.f32 %v385_v33, %v399_v34 }
  0x3b   : > { %v448_v43 = vrot.slane %v1153_v23, 7  ;;  %v486_v44 = vrot.slane %v1044_v25, 5  ;;  %v825_v46 = vcombine.high %v824_v37, %v824_v37  ;;  %v434_v47 = vmax.f32 %v392_v36, %v406_v35 }
  0x3c   : > { %v482_v48 = vrot.slane %v1145_v13, 5  ;;  %v487_v53 = vrot.slane %v1046_v26, 5  ;;  %v468_v56 = vmax.f32 %v426_v41, %v440_v38  ;;  %v469_v57 = vmax.f32 %v427_v42, %v441_v39 }
  0x3d   : > { %v483_v58 = vrot.slane %v1149_v15, 5  ;;  %v474_v59 = vmax.f32 %v1109_v45, %v446_v49  ;;  %v488_v60 = vrot.slane %v1051_v28, 5  ;;  %v475_v61 = vmax.f32 %v433_v18, %v447_v1  ;;  %829 = vst [vmem:[%s1069_s15 + $0x5] sm:$0x1] %v825_v46 }
  0x3e   : > { %v489_v17 = vrot.slane %v1119_v52, 5  ;;  %v512_v62 = vmax.f32 %v1114_v50, %v484_v55  ;;  %v513_v3 = vmax.f32 %v1122_v54, %v485_v40  ;;  %v476_v6 = vmax.f32 %v434_v47, %v448_v43  ;;  %v138_v47 = vld [vmem:[%s1015_s11 + $0x5c] sm:$0x7] }
  0x3f   : > { %v490_v7 = vrot.slane %v1155_v24, 5  ;;  %v514_v8 = vmax.f32 %v1131_v63, %v486_v44  ;;  %v526_v10 = vrot.slane %v1036_v20, 6  ;;  %v510_v45 = vmax.f32 %v468_v56, %v482_v48 }
  0x40   : > { %v524_v49 = vrot.slane %v1145_v13, 6  ;;  %v515_v1 = vmax.f32 %v1133_v0, %v487_v53  ;;  %v511_v12 = vmax.f32 %v469_v57, %v483_v58  ;;  %v525_v16 = vrot.slane %v1149_v15, 6 }
  0x41   : > { %v528_v18 = vrot.slane %v1044_v25, 6  ;;  %v516_v50 = vmax.f32 %v474_v59, %v488_v60  ;;  %v517_v55 = vmax.f32 %v475_v61, %v489_v17  ;;  %v527_v54 = vrot.slane %v1040_v22, 6  ;;  %v115_v17 = vld [vmem:[%s1015_s11] ss:$8 sps:$4 sm:$0xff]  }
  0x42   : > { %v529_v29 = vrot.slane %v1046_v26, 6  ;;  %v518_v30 = vmax.f32 %v476_v6, %v490_v7  ;;  %v530_v63 = vrot.slane %v1051_v28, 6  ;;  %v531_v31 = vrot.slane %v1119_v52, 6 }
  0x43   : > { %v532_v32 = vrot.slane %v1155_v24, 6  ;;  %v552_v0 = vmax.f32 %v510_v45, %v524_v49  ;;  %v566_v33 = vrot.slane %v1139_v4, 4  ;;  %v1219_v34 = vmax.f32 %v511_v12, %v525_v16 }
  0x44   : > { %v556_v35 = vmax.f32 %v514_v8, %v528_v18  ;;  %v567_v37 = vrot.slane %v1147_v14, 4  ;;  %v570_v36 = vrot.slane %v1022_v9, 4  ;;  %v1223_v38 = vmax.f32 %v512_v62, %v526_v10  ;;  %v118_v18 = vld [vmem:[%s1015_s11 + $0xc] sm:$0x7] }
  0x45   : > { %v1225_v39 = vmax.f32 %v513_v3, %v527_v54  ;;  %v557_v40 = vmax.f32 %v515_v1, %v529_v29  ;;  %v571_v41 = vrot.slane %v1024_v11, 4  ;;  %v558_v42 = vmax.f32 %v516_v50, %v530_v63  ;;  %v116_v1 = vld [vmem:[%s1015_s11 + $0x4] sm:$0x7]  ;;  %v1265_v50 = vld [vmem:[%s1015_s11 + $0x60] ss:$8 sps:$4 sm:$0xff]  }
  0x46   : > { %v1228_v43 = vmax.f32 %v517_v55, %v531_v31  ;;  %v1230_v44 = vmax.f32 %v518_v30, %v532_v32  ;;  %v572_v46 = vrot.slane %v1049_v27, 4  ;;  %v1236_v56 = vmax.f32 %v552_v0, %v566_v33  ;;  %v140_v31 = vld [vmem:[%s1015_s11 + $0x64] sm:$0x7] }
  0x47   : > { %v712_v57 = vmax.f32 %v1223_v38, %v1225_v39  ;;  %v1241_v58 = vmax.f32 %v1219_v34, %v567_v37  ;;  %v1243_v59 = vmax.f32 %v556_v35, %v570_v36  ;;  %v1247_v61 = vunpack.c.h.bf16 %v1136_v2 }
  0x48   : > { %v1250_v62 = vmax.f32 %v557_v40, %v571_v41  ;;  %v1252_v6 = vunpack.c.l.bf16 %v138_v47  ;;  %v713_v7 = vmax.f32 %v1225_v39, %v556_v35  ;;  %v1255_v8 = vmax.f32 %v558_v42, %v572_v46 }
  0x49   : > { %v714_v3 = vmax.f32 %v712_v57, %v556_v35  ;;  %v196_v10 = vrot.slane %v1247_v61, 1  ;;  %v238_v45 = vrot.slane %v1247_v61, 2  ;;  %v317_v49 = vrot.slane %v1247_v61, 3 }
  0x4a   : > { %v318_v12 = vrot.slane %v1252_v6, 3  ;;  %v407_v16 = vrot.slane %v1247_v61, 6  ;;  %v1267_v55 = vunpack.c.l.bf16 %v115_v17  ;;  %v365_v29 = vrot.slane %v1252_v6, 4 }
  0x4b   : > { %v716_v2 = vmax.f32 %v714_v3, %v557_v40  ;;  %v224_v54 = vmax.f32 %v1247_v61, %v196_v10  ;;  %v449_v30 = vrot.slane %v1247_v61, 7  ;;  %v491_v63 = vrot.slane %v1252_v6, 5 }
  0x4c   : > { %v319_v33 = vsel %vm283_vm0, %v317_v49, %v318_v12  ;;  %v533_v35 = vrot.slane %v1252_v6, 6  ;;  %v715_v37 = vmax.f32 %v713_v7, %v557_v40  ;;  %v1276_v41 = vunpack.c.l.bf16 %v116_v1 }
  0x4d   : > { %v718_v32 = vmax.f32 %v716_v2, %v558_v42  ;;  %v266_v36 = vmax.f32 %v224_v54, %v238_v45  ;;  %v1278_v46 = vunpack.c.h.bf16 %v115_v17  ;;  %v1280_v47 = vunpack.c.l.bf16 %v118_v18 }
  0x4e   : > { %v717_v3 = vmax.f32 %v715_v37, %v558_v42  ;;  %v1283_v10 = vunpack.c.l.bf16 %v1265_v50  ;;  %v1285_v60 = vunpack.c.l.bf16 %v140_v31  ;;  %v185_v49 = vrot.slane %v1267_v55, 1 }
  0x4f   : > { %v720_v57 = vmax.f32 %v718_v32, %v552_v0  ;;  %v351_v2 = vmax.f32 %v266_v36, %v319_v33  ;;  %v186_v12 = vrot.slane %v1278_v46, 1  ;;  %v227_v40 = vrot.slane %v1267_v55, 2 }
  0x50   : > { %v719_v17 = vmax.f32 %v717_v3, %v1228_v43  ;;  %v197_v45 = vrot.slane %v1283_v10, 1  ;;  %v228_v0 = vrot.slane %v1278_v46, 2  ;;  %v213_v1 = vmax.f32 %v1267_v55, %v185_v49 }
  0x51   : > { %v722_v7 = vmax.f32 %v720_v57, %v1219_v34  ;;  %v393_v42 = vmax.f32 %v351_v2, %v365_v29  ;;  %v214_v18 = vmax.f32 %v1278_v46, %v186_v12  ;;  %v239_v54 = vrot.slane %v1283_v10, 2 }
  0x52   : > { %v721_v32 = vmax.f32 %v719_v17, %v1219_v34  ;;  %v225_v33 = vmax.f32 %v1283_v10, %v197_v45  ;;  %v284_v37 = vrot.slane %v1267_v55, 3  ;;  %v255_v57 = vmax.f32 %v213_v1, %v227_v40 }
  0x53   : > { %v724_v31 = vmax.f32 %v722_v7, %v1228_v43  ;;  %v435_v36 = vmax.f32 %v393_v42, %v407_v16  ;;  %v256_v3 = vmax.f32 %v214_v18, %v228_v0  ;;  %v285_v53 = vrot.slane %v1276_v41, 3 }
  0x54   : > { %v723_v2 = vmax.f32 %v721_v32, %v1223_v38  ;;  %v267_v49 = vmax.f32 %v225_v33, %v239_v54  ;;  %v287_v12 = vrot.slane %v1278_v46, 3  ;;  %v288_v34 = vrot.slane %v1280_v47, 3 }
  0x55   : > { %v726_v29 = vmax.f32 %v724_v31, %v1230_v44  ;;  %v477_v48 = vmax.f32 %v435_v36, %v449_v30  ;;  %v286_v7 = vsel %vm283_vm0, %v284_v37, %v285_v53  ;;  %v320_v17 = vrot.slane %v1283_v10, 3 }
  0x56   : > { %v725_v16 = vmax.f32 %v723_v2, %v1230_v44  ;;  %v321_v40 = vrot.slane %v1285_v60, 3  ;;  %v340_v0 = vmax.f32 %v255_v57, %v286_v7  ;;  %v289_v1 = vsel %vm283_vm0, %v287_v12, %v288_v34 }
  0x57   : > { %v830_v45 = vpack.c.bf16 %v726_v29, %v726_v29  ;;  %v519_v42 = vmax.f32 %v477_v48, %v491_v63  ;;  %v354_v18 = vrot.slane %v1276_v41, 4  ;;  %v355_v54 = vrot.slane %v1280_v47, 4 }
  0x58   : > { %v322_v53 = vsel %vm283_vm0, %v320_v17, %v321_v40  ;;  %v341_v31 = vmax.f32 %v256_v3, %v289_v1  ;;  %v366_v32 = vrot.slane %v1285_v60, 4  ;;  %v396_v29 = vrot.slane %v1267_v55, 6 }
  0x59   : > { %v840_v30 = vrot.slane %v830_v45, %v1017_v5  ;;  %v561_v33 = vmax.f32 %v519_v42, %v533_v35  ;;  %v352_v37 = vmax.f32 %v267_v49, %v322_v53  ;;  %v382_v36 = vmax.f32 %v340_v0, %v354_v18 }
  0x5a   : > { %v383_v63 = vmax.f32 %v341_v31, %v355_v54  ;;  %v397_v57 = vrot.slane %v1278_v46, 6  ;;  %v408_v2 = vrot.slane %v1283_v10, 6  ;;  %v1424_v12 = vrot.slane %v1117_v51, 4 }
  0x5b   : > { %v847_v48 = vrot.slane %v840_v30, %v1017_v5  ;;  %v727_v3 = vmax.f32 %v725_v16, %v561_v33  ;;  %v394_v34 = vmax.f32 %v352_v37, %v366_v32  ;;  %v424_v17 = vmax.f32 %v382_v36, %v396_v29 }
  0x5c   : > { %v601_v7 = vmax.f32 %v1228_v43, %v1424_v12  ;;  %v425_v49 = vmax.f32 %v383_v63, %v397_v57  ;;  %v438_v45 = vrot.slane %v1267_v55, 7  ;;  %v439_v40 = vrot.slane %v1278_v46, 7 }
  0x5d   : > { %v848_v35 = vcombine.high %v847_v48, %v847_v48  ;;  %v613_v0 = vrot.slane %v1024_v11, 5  ;;  %v831_v42 = vpack.c.bf16 %v727_v3, %v727_v3  ;;  %v436_v1 = vmax.f32 %v394_v34, %v408_v2 }
  0x5e   : > { %v450_v18 = vrot.slane %v1283_v10, 7  ;;  %v1425_v54 = vrot.slane %v1153_v23, 4  ;;  %v609_v43 = vrot.slane %v1147_v14, 5  ;;  %v466_v16 = vmax.f32 %v424_v17, %v438_v45 }
  0x5f   : > { %866 = vst [vmem:[%s1069_s15 + $0x2] sm:$0x1] %v848_v35  ;;  %v480_v53 = vrot.slane %v1276_v41, 5  ;;  %v614_v31 = vrot.slane %v1049_v27, 5  ;;  %v855_v32 = vrot.slane %v831_v42, %v1017_v5  ;;  %v467_v37 = vmax.f32 %v425_v49, %v439_v40 }
  0x60   : > { %v602_v30 = vmax.f32 %v1230_v44, %v1425_v54  ;;  %v481_v11 = vrot.slane %v1280_v47, 5  ;;  %v615_v36 = vrot.slane %v1117_v51, 5  ;;  %v616_v29 = vrot.slane %v1153_v23, 5 }
  0x61   : > { %v478_v48 = vmax.f32 %v436_v1, %v450_v18  ;;  %v492_v44 = vrot.slane %v1285_v60, 5  ;;  %v1426_v14 = vrot.slane %v1139_v4, 5  ;;  %v641_v57 = vmax.f32 %v1250_v62, %v613_v0 }
  0x62   : > { %v650_v27 = vrot.slane %v1145_v13, 7  ;;  %v862_v2 = vrot.slane %v855_v32, %v1017_v5  ;;  %v508_v12 = vmax.f32 %v466_v16, %v480_v53  ;;  %v522_v3 = vrot.slane %v1276_v41, 6 }
  0x63   : > { %v636_v63 = vmax.f32 %v1236_v56, %v1426_v14  ;;  %v568_v51 = vrot.slane %v1034_v19, 4  ;;  %v569_v23 = vrot.slane %v1038_v21, 4  ;;  %v575_v34 = vrot.slane %v1247_v61, 4 }
  0x64   : > { %v863_v17 = vcombine.high %v862_v2, %v862_v2  ;;  %v509_v4 = vmax.f32 %v467_v37, %v481_v11  ;;  %v523_v56 = vrot.slane %v1280_v47, 6  ;;  %v520_v35 = vmax.f32 %v478_v48, %v492_v44 }
  0x65   : > { %v534_v62 = vrot.slane %v1285_v60, 6  ;;  %v596_v49 = vmax.f32 %v1223_v38, %v568_v51  ;;  %v597_v45 = vmax.f32 %v1225_v39, %v569_v23  ;;  %v642_v40 = vmax.f32 %v1255_v8, %v614_v31 }
  0x66   : > { %v643_v0 = vmax.f32 %v601_v7, %v615_v36  ;;  %867 = vst [vmem:[%s1069_s15 + $0x6] sm:$0x1] %v863_v17  ;;  %v610_v42 = vrot.slane %v1034_v19, 5  ;;  %v611_v1 = vrot.slane %v1038_v21, 5  ;;  %v617_v18 = vrot.slane %v1247_v61, 5 }
  0x67   : > { %v550_v54 = vmax.f32 %v508_v12, %v522_v3  ;;  %v564_v16 = vrot.slane %v1267_v55, 4  ;;  %v612_v53 = vrot.slane %v1022_v9, 5  ;;  %v603_v32 = vmax.f32 %v561_v33, %v575_v34 }
  0x68   : > { %v551_v37 = vmax.f32 %v509_v4, %v523_v56  ;;  %v565_v38 = vrot.slane %v1278_v46, 4  ;;  %v638_v39 = vmax.f32 %v596_v49, %v610_v42  ;;  %v562_v11 = vmax.f32 %v520_v35, %v534_v62 }
  0x69   : > { %v639_v8 = vmax.f32 %v597_v45, %v611_v1  ;;  %v640_v7 = vmax.f32 %v1243_v59, %v612_v53  ;;  %v652_v19 = vrot.slane %v1036_v20, 7  ;;  %v653_v21 = vrot.slane %v1040_v22, 7  ;;  %v142_v1 = vld [vmem:[%s1015_s11 + $0x6c] sm:$0x7] }
  0x6a   : > { %v654_v61 = vrot.slane %v1044_v25, 7  ;;  %v655_v31 = vrot.slane %v1046_v26, 7  ;;  %v656_v36 = vrot.slane %v1051_v28, 7  ;;  %v576_v9 = vrot.slane %v1283_v10, 4 }
  0x6b   : > { %v592_v33 = vmax.f32 %v550_v54, %v564_v16  ;;  %v606_v48 = vrot.slane %v1267_v55, 5  ;;  %v657_v44 = vrot.slane %v1119_v52, 7  ;;  %v637_v14 = vmax.f32 %v1241_v58, %v609_v43 }
  0x6c   : > { %v593_v59 = vmax.f32 %v551_v37, %v565_v38  ;;  %v607_v2 = vrot.slane %v1278_v46, 5  ;;  %v680_v12 = vmax.f32 %v638_v39, %v652_v19  ;;  %v651_v3 = vrot.slane %v1149_v15, 7 }
  0x6d   : > { %v681_v51 = vmax.f32 %v639_v8, %v653_v21  ;;  %v682_v23 = vmax.f32 %v640_v7, %v654_v61  ;;  %v683_v34 = vmax.f32 %v641_v57, %v655_v31  ;;  %v644_v17 = vmax.f32 %v602_v30, %v616_v29 }
  0x6e   : > { %v678_v4 = vmax.f32 %v636_v63, %v650_v27  ;;  %v645_v56 = vmax.f32 %v603_v32, %v617_v18  ;;  %v684_v35 = vmax.f32 %v642_v40, %v656_v36  ;;  %v604_v62 = vmax.f32 %v562_v11, %v576_v9 }
  0x6f   : > { %v618_v55 = vrot.slane %v1283_v10, 5  ;;  %v634_v49 = vmax.f32 %v592_v33, %v606_v48  ;;  %v685_v45 = vmax.f32 %v643_v0, %v657_v44  ;;  %v694_v58 = vmax.f32 %v680_v12, %v1036_v20 }
  0x70   : > { %v695_v46 = vmax.f32 %v681_v51, %v1040_v22  ;;  %v696_v43 = vmax.f32 %v682_v23, %v1044_v25  ;;  %v697_v42 = vmax.f32 %v683_v34, %v1046_v26  ;;  %v635_v54 = vmax.f32 %v593_v59, %v607_v2 }
  0x71   : > { %v648_v30 = vrot.slane %v1276_v41, 7  ;;  %v658_v29 = vrot.slane %v1155_v24, 7  ;;  %v679_v63 = vmax.f32 %v637_v14, %v651_v3  ;;  %v698_v57 = vmax.f32 %v684_v35, %v1051_v28 }
  0x72   : > { %v728_v10 = vmax.f32 %v694_v58, %v695_v46  ;;  %v729_v27 = vmax.f32 %v695_v46, %v696_v43  ;;  %v1383_v40 = vunpack.c.h.bf16 %v1265_v50  ;;  %v649_v20 = vrot.slane %v1280_v47, 7 }
  0x73   : > { %v659_v22 = vrot.slane %v1252_v6, 7  ;;  %v699_v25 = vmax.f32 %v685_v45, %v1119_v52  ;;  %v1388_v26 = vunpack.c.l.bf16 %v142_v1  ;;  %v686_v28 = vmax.f32 %v644_v17, %v658_v29 }
  0x74   : > { %v730_v0 = vmax.f32 %v728_v10, %v696_v43  ;;  %v731_v18 = vmax.f32 %v729_v27, %v697_v42  ;;  %v198_v16 = vrot.slane %v1383_v40, 1  ;;  %v240_v53 = vrot.slane %v1383_v40, 2 }
  0x75   : > { %v692_v32 = vmax.f32 %v678_v4, %v1145_v13  ;;  %v323_v50 = vrot.slane %v1383_v40, 3  ;;  %v324_v37 = vrot.slane %v1388_v26, 3  ;;  %v693_v38 = vmax.f32 %v679_v63, %v1149_v15 }
  0x76   : > { %v732_v39 = vmax.f32 %v730_v0, %v697_v42  ;;  %v733_v11 = vmax.f32 %v731_v18, %v698_v57  ;;  %v226_v52 = vmax.f32 %v1383_v40, %v198_v16  ;;  %v646_v8 = vmax.f32 %v604_v62, %v618_v55 }
  0x77   : > { %v687_v7 = vmax.f32 %v645_v56, %v659_v22  ;;  %v325_v19 = vsel %vm283_vm0, %v323_v50, %v324_v37  ;;  %v367_v36 = vrot.slane %v1388_v26, 4  ;;  %v660_v13 = vrot.slane %v1285_v60, 7 }
  0x78   : > { %v734_v21 = vmax.f32 %v732_v39, %v698_v57  ;;  %v735_v61 = vmax.f32 %v733_v11, %v699_v25  ;;  %v268_v31 = vmax.f32 %v226_v52, %v240_v53  ;;  %v676_v9 = vmax.f32 %v634_v49, %v648_v30 }
  0x79   : > { %v677_v33 = vmax.f32 %v635_v54, %v649_v20  ;;  %v700_v48 = vmax.f32 %v686_v28, %v1155_v24  ;;  %v409_v59 = vrot.slane %v1383_v40, 6  ;;  %v701_v2 = vmax.f32 %v687_v7, %v1252_v6 }
  0x7a   : > { %v736_v15 = vmax.f32 %v734_v21, %v692_v32  ;;  %v737_v44 = vmax.f32 %v735_v61, %v693_v38  ;;  %v353_v14 = vmax.f32 %v268_v31, %v325_v19  ;;  %v451_v23 = vrot.slane %v1383_v40, 7 }
  0x7b   : > { %v688_v34 = vmax.f32 %v646_v8, %v660_v13  ;;  %v690_v17 = vmax.f32 %v676_v9, %v1276_v41  ;;  %v691_v4 = vmax.f32 %v677_v33, %v1280_v47  ;;  %v493_v62 = vrot.slane %v1388_v26, 5 }
  0x7c   : > { %v738_v12 = vmax.f32 %v736_v15, %v693_v38  ;;  %v739_v3 = vmax.f32 %v737_v44, %v694_v58  ;;  %v395_v51 = vmax.f32 %v353_v14, %v367_v36  ;;  %v535_v6 = vrot.slane %v1388_v26, 6 }
  0x7d   : > { %v702_v58 = vmax.f32 %v688_v34, %v1285_v60  ;;  %v577_v42 = vrot.slane %v1383_v40, 4  ;;  %v619_v47 = vrot.slane %v1383_v40, 5  ;;  %v661_v57 = vrot.slane %v1388_v26, 7 }
  0x7e   : > { %v740_v56 = vmax.f32 %v738_v12, %v699_v25  ;;  %v741_v35 = vmax.f32 %v739_v3, %v700_v48  ;;  %v437_v24 = vmax.f32 %v395_v51, %v409_v59 }
  0x80   : > { %v742_v55 = vmax.f32 %v740_v56, %v700_v48  ;;  %v743_v49 = vmax.f32 %v741_v35, %v701_v2  ;;  %v479_v45 = vmax.f32 %v437_v24, %v451_v23 }
  0x82   : > { %v744_v46 = vmax.f32 %v742_v55, %v690_v17  ;;  %v521_v43 = vmax.f32 %v479_v45, %v493_v62  ;;  %v745_v1 = vmax.f32 %v743_v49, %v691_v4 }
  0x84   : > { %v746_v41 = vmax.f32 %v744_v46, %v691_v4  ;;  %v563_v54 = vmax.f32 %v521_v43, %v535_v6  ;;  %v747_v30 = vmax.f32 %v745_v1, %v692_v32 }
  0x86   : > { %v748_v29 = vmax.f32 %v746_v41, %v701_v2  ;;  %v605_v63 = vmax.f32 %v563_v54, %v577_v42  ;;  %v749_v10 = vmax.f32 %v747_v30, %v702_v58 }
  0x88   : > { %v750_v27 = vmax.f32 %v748_v29, %v702_v58  ;;  %v647_v20 = vmax.f32 %v605_v63, %v619_v47 }
  0x8a   : > { %v868_v60 = vpack.c.bf16 %v750_v27, %v750_v27  ;;  %v689_v22 = vmax.f32 %v647_v20, %v661_v57 }
  0x8c   : > { %v878_v25 = vrot.slane %v868_v60, %v1017_v5  ;;  %v703_v0 = vmax.f32 %v689_v22, %v1388_v26 }
  0x8e   : > { %v885_v18 = vrot.slane %v878_v25, %v1017_v5  ;;  %v751_v16 = vmax.f32 %v749_v10, %v703_v0 }
  0x90   : > { %v886_v40 = vcombine.high %v885_v18, %v885_v18  ;;  %v869_v53 = vpack.c.bf16 %v751_v16, %v751_v16 }
  0x92   : > { %904 = vst [vmem:[%s1069_s15 + $0x3] sm:$0x1] %v886_v40  ;;  %v893_v28 = vrot.slane %v869_v53, %v1017_v5 }
  0x94   : > { %v900_v32 = vrot.slane %v893_v28, %v1017_v5 }
  0x96   : > { %v901_v50 = vcombine.high %v900_v32, %v900_v32 }
  0x98   : > { %905 = vst [vmem:[%s1069_s15 + $0x7] sm:$0x1] %v901_v50 }
  0x99 PF: > { %s11_s6 = sadd.s32 1, %s988_s6  }
  0x9a   : > { %p8_p4 = scmp.ge.s32.totalorder %s11_s6, 4  }
  0x9c   :  { %10 = sbr.rel (!%p8_p4) target bundleno = 1 (0x1), region = 54 }

// kernel: _lambda_.88
= control target key start
LH: loop header
LB: loop body
LE: loop exit
PB: predicated region body
PF: predicated region fallthrough
CT: control target
= control target key end

     0   :  { %s776_s15 = smov 0   ;;  %s778_s16 = smov 0   ;;  %s867_s0 = inlined_call_operand.vmem [shape: bf16[32,256], index: 0, kind: input, shape index: {}]   ;;  %s868_s1 = inlined_call_operand.vmem [shape: bf16[256,128], index: 1, kind: input, shape index: {}]   ;;  %s869_s2 = inlined_call_operand.vmem [shape: f32[1,128], index: 2, kind: input, shape index: {}]   ;;  %s870_s3 = inlined_call_operand.vmem [shape: f32[1,128], index: 3, kind: input, shape index: {}]   ;;  %s871_s4 = inlined_call_operand.vmem [shape: bf16[32,128], index: 4, kind: output, shape index: {}]  }
   0x1   :  { %s780_s17 = smov 0  }
   0x2 LB: > { %s26_s18 = sadd.s32 1, %s745_s16  ;;  %p614_p0 = scmp.ge.s32.totalorder %s749_s17, 1  ;;  %s749_s17 = sphi %s780_s17, %s14_s17   ;;  %s745_s16 = sphi %s778_s16, %s873_s16   ;;  %s741_s15 = sphi %s776_s15, %s872_s15  }
   0x3   : > { %p28_p1 = scmp.ge.s32.totalorder %s26_s18, 2  ;;  %p203_p2 = scmp.lt.s32.totalorder %s749_s17, 3 }
   0x5   : > { %s875_s18 = smov (%p28_p1, %s26_s18), 0  ;;  %p204_p3 = pnand %p614_p0, %p203_p2 }
   0x6   : > { %v700_v0 = vld [vmem:[%s868_s1 + $0x40] sm:$0xff] (!%p204_p3)   ;;  %s615_s21 = sshll.u32 (!%p204_p3), %s741_s15, 1  ;;  %v702_v2 = vld [vmem:[%s868_s1 + $0x48] sm:$0xff] (!%p204_p3)   ;;  %v704_v4 = vld [vmem:[%s868_s1 + $0x50] sm:$0xff] (!%p204_p3)  }
   0x7   : > { %207 = sbr.rel (%p204_p3) target bundleno = 291 (0x123), region = 36  ;;  %v701_v1 = vld [vmem:[%s868_s1] sm:$0xff] (!%p204_p3)   ;;  %654 = vmatprep.subr.bf16.mxu0 (!%p204_p3), %v700_v0  ;;  %v703_v3 = vld [vmem:[%s868_s1 + $0x8] sm:$0xff] (!%p204_p3)   ;;  %p244_p4 = scmp.lt.s32.totalorder (!%p204_p3), %s615_s21, 3  ;;  %v705_v5 = vld [vmem:[%s868_s1 + $0x10] sm:$0xff] (!%p204_p3)  }
   0x8   : > { %655 = vmatpush3.bf16.msra.mxu0 (!%p204_p3), %v701_v1  ;;  %v706_v6 = vld [vmem:[%s868_s1 + $0x58] sm:$0xff] (!%p204_p3)   ;;  %v708_v8 = vld [vmem:[%s868_s1 + $0x60] sm:$0xff] (!%p204_p3)   ;;  %v710_v10 = vld [vmem:[%s868_s1 + $0x68] sm:$0xff] (!%p204_p3)  }
   0x9   : > { %656 = vmatprep.subr.bf16.mxu0 (!%p204_p3), %v702_v2  ;;  %v707_v7 = vld [vmem:[%s868_s1 + $0x18] sm:$0xff] (!%p204_p3)   ;;  %v709_v9 = vld [vmem:[%s868_s1 + $0x20] sm:$0xff] (!%p204_p3)   ;;  %v711_v12 = vld [vmem:[%s868_s1 + $0x28] sm:$0xff] (!%p204_p3)  }
   0xa   : > { %v712_v13 = vld [vmem:[%s868_s1 + $0x70] sm:$0xff] (!%p204_p3)   ;;  %v714_v15 = vld [vmem:[%s868_s1 + $0x78] sm:$0xff] (!%p204_p3)   ;;  %v638_v20 = vld [vmem:[%s869_s2] ss:$0 sm:$0xff] (!%p204_p3) }
   0xb   : > { %v713_v14 = vld [vmem:[%s868_s1 + $0x30] sm:$0xff] (!%p204_p3)   ;;  %v715_v16 = vld [vmem:[%s868_s1 + $0x38] sm:$0xff] (!%p204_p3)   ;;  %v639_v23 = vld [vmem:[%s870_s3] ss:$0 sm:$0xff] (!%p204_p3) }
   0xc   : > { %657 = vmatpush3.bf16.msra.mxu0 (!%p204_p3), %v703_v3 }
   0xd   : > { %658 = vmatprep.subr.bf16.mxu0 (!%p204_p3), %v704_v4 }
   0xe   : > { %s877_s21 = smov (!%p244_p4, %s615_s21), 3 }
   0xf   : > { %s646_s10 = sshll.u32 %s877_s21, 3  ;;  %s619_s12 = sshll.u32 %s877_s21, 2 }
  0x10   : > { %659 = vmatpush3.bf16.msra.mxu0 %v705_v5  ;;  %s248_s15 = scalar_lea.vmem %s867_s0, %s646_s10 }
  0x11   : > { %660 = vmatprep.subr.bf16.mxu0 %v706_v6  ;;  %v718_v11 = vld [vmem:[%s248_s15 + $0x4] ss:$8 sps:$4 sm:$0xff]   ;;  %v716_v17 = vld [vmem:[%s248_s15] ss:$8 sps:$4 sm:$0xff]   ;;  %s267_s15 = scalar_lea.vmem %s871_s4, %s619_s12 }
  0x12   : > { %442 = vmatprep.mubr.bf16.mxu0 %v718_v11 }
  0x14   : > { %661 = vmatpush3.bf16.msra.mxu0 %v707_v7 }
  0x15   : > { %662 = vmatprep.subr.bf16.mxu0 %v708_v8 }
  0x18   : > { %663 = vmatpush3.bf16.msra.mxu0 %v709_v9 }
  0x19   : > { %664 = vmatprep.subr.bf16.mxu0 %v710_v10 }
  0x1c   : > { %665 = vmatpush3.bf16.msra.mxu0 %v711_v12 }
  0x1d   : > { %666 = vmatprep.subr.bf16.mxu0 %v712_v13 }
  0x20   : > { %667 = vmatpush3.bf16.msra.mxu0 %v713_v14 }
  0x21   : > { %668 = vmatprep.subr.bf16.mxu0 %v714_v15 }
  0x24   : > { %669 = vmatpush3.bf16.msra.mxu0 %v715_v16 }
  0x27   : > { %443 = vmatmul.mubr.bf16.vlgmr.msra.gmra.mrb[0].mxu0 %v716_v17 }
  0xfa   : > { %v670_v18 = vpop.f32.mrb[0].mxu0 }
  0xfb   : > { %v671_v19 = vpop.f32.mrb[1].mxu0 }
  0xfc   : > { %v672_v21 = vadd.f32 %v671_v19, %v670_v18  ;;  %v673_v22 = vpop.f32.mrb[2].mxu0 }
  0xfd   : > { %v674_v24 = vpop.f32.mrb[3].mxu0 }
  0xfe   : > { %v458_v25 = vmul.f32 %v672_v21, %v638_v20  ;;  %v675_v26 = vadd.f32 %v674_v24, %v673_v22 }
 0x100   : > { %v467_v27 = vadd.f32 %v639_v23, %v458_v25  ;;  %v459_v28 = vmul.f32 %v675_v26, %v638_v20 }
 0x102   : > { %v640_v29 = vmul.f32 -1.442695, %v467_v27  ;;  %v468_v30 = vadd.f32 %v639_v23, %v459_v28 }
 0x104   : > { %719 = vpow2.f32 %v640_v29  ;;  %v641_v31 = vmul.f32 -1.442695, %v468_v30 }
 0x106   : > { %721 = vpow2.f32 %v641_v31 }
 0x10e   : > { %v720_v32 = vpop.eup %719 }
 0x10f   : > { %v475_v33 = vadd.f32 1.0, %v720_v32 }
 0x110   : > { %v722_v34 = vpop.eup %721 }
 0x111   : > { %723 = vrcp.f32 %v475_v33  ;;  %v476_v35 = vadd.f32 1.0, %v722_v34 }
 0x113   : > { %725 = vrcp.f32 %v476_v35 }
 0x11b   : > { %v724_v36 = vpop.eup %723 }
 0x11c   : > { %v481_v38 = vmul.f32 %v724_v36, %v467_v27 }
 0x11d   : > { %v726_v37 = vpop.eup %725 }
 0x11e   : > { %v482_v39 = vmul.f32 %v726_v37, %v468_v30 }
 0x120   : > { %v652_v40 = vpack.c.bf16 %v482_v39, %v481_v38 }
 0x122   : > { %653 = vst [vmem:[%s267_s15] sm:$0xff] %v652_v40  }
 0x123 PF: > { %s14_s17 = sadd.s32 1, %s749_s17   ;;  %s872_s15 = smov %s745_s16 }
 0x124   : > { %p11_p5 = scmp.ge.s32.totalorder %s14_s17, 4   ;;  %s873_s16 = smov %s875_s18 }
 0x126   :  { %13 = sbr.rel (!%p11_p5) target bundleno = 2 (0x2), region = 75 }

// kernel: _lambda_.104
= control target key start
LH: loop header
LB: loop body
LE: loop exit
PB: predicated region body
PF: predicated region fallthrough
CT: control target
= control target key end

     0   :  { %s701_s15 = smov 0   ;;  %s703_s16 = smov 0   ;;  %s753_s0 = inlined_call_operand.vmem [shape: bf16[8,1152], index: 0, kind: input, shape index: {}]   ;;  %s754_s1 = inlined_call_operand.vmem [shape: bf16[1152,128], index: 1, kind: input, shape index: {}]   ;;  %s755_s2 = inlined_call_operand.vmem [shape: f32[1,128], index: 2, kind: input, shape index: {}]   ;;  %s756_s3 = inlined_call_operand.vmem [shape: f32[1,128], index: 3, kind: input, shape index: {}]   ;;  %s757_s4 = inlined_call_operand.vmem [shape: bf16[8,128], index: 4, kind: output, shape index: {}]  }
   0x1   :  { %s705_s17 = smov 0  }
   0x2 LB: > { %s26_s18 = sadd.s32 1, %s667_s16  ;;  %p561_p0 = scmp.ge.s32.totalorder %s671_s17, 1  ;;  %s671_s17 = sphi %s705_s17, %s14_s17   ;;  %s667_s16 = sphi %s703_s16, %s759_s16   ;;  %s663_s15 = sphi %s701_s15, %s758_s15  }
   0x3   : > { %p27_p1 = scmp.ge.s32.totalorder %s26_s18, 9  ;;  %p220_p2 = scmp.lt.s32.totalorder %s671_s17, 10 }
   0x5   : > { %s761_s18 = smov (%p27_p1, %s26_s18), 0  ;;  %p221_p3 = pnand %p561_p0, %p220_p2 }
   0x6   : > { %p267_p4 = scmp.lt.s32.totalorder (!%p221_p3), %s663_s15, 8  ;;  %s563_s19 = sshll.u32 (!%p221_p3), %s663_s15, 4 }
   0x7   : > { %224 = sbr.rel (%p221_p3) target bundleno = 312 (0x138), region = 36  ;;  %p274_p5 = scmp.lt.s32.totalorder (!%p221_p3), %s563_s19, 143 }
   0x8   : > { %p565_p6 = scmp.ne.s32.totalorder (!%p221_p3), %s663_s15, 0 }
   0xe   : > { %s268_s20 = scalar_select %p267_p4, %s663_s15, 8 }
   0xf   : > { %s763_s19 = smov (!%p274_p5, %s563_s19), 143  ;;  %299 = sbr.rel (%p565_p6) target bundleno = 22 (0x16), region = 40 }
  0x10   : > { %s562_s21 = sshll.u32 %s268_s20, 2  ;;  %s564_s25 = sshll.u32 %s763_s19, 2  ;;  %v673_v0 = vmov (!%p565_p6), 0.0  }
  0x11   : > { %s727_s24 = scalar_lea.vmem %s753_s0, %s562_s21  ;;  %s280_s28 = scalar_lea.vmem %s754_s1, %s564_s25  ;;  %300 = vst [vmem:[#allocation2] sm:$0xff] (!%p565_p6), %v673_v0 }
  0x16 PF: > { %v637_v1 = vld [vmem:[%s280_s28] sm:$0xff]   ;;  %v674_v2 = vmov 0.0   ;;  %v638_v3 = vld [vmem:[%s280_s28 + $0x8] sm:$0xff]   ;;  %vm675_vm0 = vmmov 0   ;;  %v639_v4 = vld [vmem:[%s280_s28 + $0x10] sm:$0xff]   ;;  %p574_p7 = scmp.ne.s32.totalorder %s663_s15, 8 }
  0x17   : > { %590 = vmatprep.subr.bf16.mxu0 %v674_v2  ;;  %606 = vmatprep.mubr.msk.bf16.mxu0 %vm675_vm0, %v674_v2  ;;  %v640_v5 = vld [vmem:[%s280_s28 + $0x18] sm:$0xff]   ;;  %v641_v6 = vld [vmem:[%s280_s28 + $0x20] sm:$0xff]   ;;  %v642_v7 = vld [vmem:[%s280_s28 + $0x28] sm:$0xff]  }
  0x18   : > { %591 = vmatpush3.bf16.msra.mxu0 %v637_v1  ;;  %v643_v8 = vld [vmem:[%s280_s28 + $0x30] sm:$0xff]   ;;  %v644_v9 = vld [vmem:[%s280_s28 + $0x38] sm:$0xff]   ;;  %v302_v10 = vld [vmem:[%s727_s24] sm:$0xf] }
  0x19   : > { %592 = vmatprep.subr.bf16.mxu0 %v674_v2  ;;  %v301_v11 = vld [vmem:[#allocation2] sm:$0xff] }
  0x1a   : > { %v575_v18 = vld [vmem:[%s755_s2] ss:$0 sm:$0xff] (!%p574_p7) }
  0x1b   : > { %v576_v19 = vld [vmem:[%s756_s3] ss:$0 sm:$0xff] (!%p574_p7) }
  0x1c   : > { %593 = vmatpush3.bf16.msra.mxu0 %v638_v3 }
  0x1d   : > { %594 = vmatprep.subr.bf16.mxu0 %v674_v2 }
  0x20   : > { %595 = vmatpush3.bf16.msra.mxu0 %v639_v4 }
  0x21   : > { %596 = vmatprep.subr.bf16.mxu0 %v674_v2 }
  0x24   : > { %597 = vmatpush3.bf16.msra.mxu0 %v640_v5 }
  0x25   : > { %598 = vmatprep.subr.bf16.mxu0 %v674_v2 }
  0x28   : > { %599 = vmatpush3.bf16.msra.mxu0 %v641_v6 }
  0x29   : > { %600 = vmatprep.subr.bf16.mxu0 %v674_v2 }
  0x2c   : > { %601 = vmatpush3.bf16.msra.mxu0 %v642_v7 }
  0x2d   : > { %602 = vmatprep.subr.bf16.mxu0 %v674_v2 }
  0x30   : > { %603 = vmatpush3.bf16.msra.mxu0 %v643_v8 }
  0x31   : > { %604 = vmatprep.subr.bf16.mxu0 %v674_v2 }
  0x34   : > { %605 = vmatpush3.bf16.msra.mxu0 %v644_v9 }
  0x37   : > { %607 = vmatmul.mubr.bf16.vlgmr.msra.gmra.mrb[0].mxu0 %v302_v10 }
 0x107   : > { %412 = sbr.rel (%p574_p7) target bundleno = 312 (0x138), region = 44 }
 0x10a   : > { %v401_v12 = vpop.f32.mrb[0].mxu0 }
 0x10b   : > { %v407_v13 = vadd.f32 %v401_v12, %v301_v11  ;;  %v608_v14 = vpop.f32.mrb[1].mxu0 }
 0x10c   : > { %v404_v15 = vpop.f32.mrb[2].mxu0 }
 0x10d   : > { %408 = vst [vmem:[#allocation2] sm:$0xff] %v407_v13  ;;  %v609_v16 = vpop.f32.mrb[3].mxu0 }
 0x114   : > { %v413_v17 = vld [vmem:[#allocation2] sm:$0xff] }
 0x115   : > { %v421_v20 = vmul.f32 %v575_v18, %v413_v17 }
 0x117   : > { %v429_v21 = vadd.f32 %v576_v19, %v421_v20 }
 0x119   : > { %v577_v22 = vmul.f32 -1.442695, %v429_v21 }
 0x11b   : > { %645 = vpow2.f32 %v577_v22 }
 0x125   : > { %v646_v23 = vpop.eup %645 }
 0x126   : > { %v433_v24 = vadd.f32 1.0, %v646_v23 }
 0x128   : > { %647 = vrcp.f32 %v433_v24 }
 0x132   : > { %v648_v25 = vpop.eup %647 }
 0x133   : > { %v436_v26 = vmul.f32 %v648_v25, %v429_v21 }
 0x135   : > { %v437_v27 = vpack.c.bf16 %v436_v26, %v436_v26 }
 0x137   : > { %438 = vst [vmem:[%s757_s4] sm:$0xf] %v437_v27 }
 0x138 PF: > { %s14_s17 = sadd.s32 1, %s671_s17   ;;  %s758_s15 = smov %s667_s16 }
 0x139   : > { %p11_p8 = scmp.ge.s32.totalorder %s14_s17, 11   ;;  %s759_s16 = smov %s761_s18 }
 0x13b   :  { %13 = sbr.rel (!%p11_p8) target bundleno = 2 (0x2), region = 83 }

// kernel: _lambda_.109
= control target key start
LH: loop header
LB: loop body
LE: loop exit
PB: predicated region body
PF: predicated region fallthrough
CT: control target
= control target key end

     0   :  { %s406_s0 = inlined_call_operand.vmem [shape: bf16[8,256], index: 0, kind: input, shape index: {}]   ;;  %s407_s1 = inlined_call_operand.vmem [shape: bf16[256,128], index: 1, kind: input, shape index: {}]   ;;  %s408_s2 = inlined_call_operand.vmem [shape: f32[1,128], index: 2, kind: input, shape index: {}]   ;;  %s409_s3 = inlined_call_operand.vmem [shape: f32[1,128], index: 3, kind: input, shape index: {}]   ;;  %s410_s4 = inlined_call_operand.hbm [shape: f32[8,128], index: 4, kind: output, shape index: {}]  }
   0x1   :  { %v269_v0 = vld [vmem:[%s407_s1 + $0x40] sm:$0xff]   ;;  %v271_v2 = vld [vmem:[%s407_s1 + $0x48] sm:$0xff]   ;;  %v273_v4 = vld [vmem:[%s407_s1 + $0x50] sm:$0xff]  }
   0x2   :  { %v270_v1 = vld [vmem:[%s407_s1] sm:$0xff]   ;;  %246 = vmatprep.subr.bf16.mxu0 %v269_v0  ;;  %v272_v3 = vld [vmem:[%s407_s1 + $0x8] sm:$0xff]   ;;  %v274_v5 = vld [vmem:[%s407_s1 + $0x10] sm:$0xff]  }
   0x3   :  { %247 = vmatpush3.bf16.msra.mxu0 %v270_v1  ;;  %v275_v6 = vld [vmem:[%s407_s1 + $0x58] sm:$0xff]   ;;  %v277_v8 = vld [vmem:[%s407_s1 + $0x60] sm:$0xff]   ;;  %v279_v10 = vld [vmem:[%s407_s1 + $0x68] sm:$0xff]  }
   0x4   :  { %248 = vmatprep.subr.bf16.mxu0 %v271_v2  ;;  %v276_v7 = vld [vmem:[%s407_s1 + $0x18] sm:$0xff]   ;;  %v278_v9 = vld [vmem:[%s407_s1 + $0x20] sm:$0xff]  }
   0x5   :  { %v19_v11 = vld [vmem:[%s406_s0] sm:$0xff] }
   0x7   :  { %249 = vmatpush3.bf16.msra.mxu0 %v272_v3 }
   0x8   :  { %250 = vmatprep.subr.bf16.mxu0 %v273_v4 }
   0xb   :  { %251 = vmatpush3.bf16.msra.mxu0 %v274_v5 }
   0xc   :  { %252 = vmatprep.subr.bf16.mxu0 %v275_v6 }
   0xf   :  { %253 = vmatpush3.bf16.msra.mxu0 %v276_v7 }
  0x10   :  { %254 = vmatprep.subr.bf16.mxu0 %v277_v8 }
  0x11   :  { %9 = vsyncpa [#allocation3], 0  ;;  %v227_v12 = vcombine.high %v19_v11, %v19_v11  ;;  %v280_v13 = vld [vmem:[%s407_s1 + $0x28] sm:$0xff]   ;;  %v281_v14 = vld [vmem:[%s407_s1 + $0x70] sm:$0xff]   ;;  %v226_v18 = vcombine.low %v19_v11, %v19_v11  ;;  %s311_s26 = smov [#allocation2]  }
  0x12   :  { %v282_v15 = vld [vmem:[%s407_s1 + $0x30] sm:$0xff]   ;;  %v283_v16 = vld [vmem:[%s407_s1 + $0x78] sm:$0xff]   ;;  %v244_v21 = vld [vmem:[%s408_s2] ss:$0 sm:$0xff]  ;;  %s218_s27 = sshll.u32 %s311_s26, 4  ;;  %s219_s27 = int_to_ptr.vmem [resolvable:$true] %s218_s27 }
  0x13   :  { %255 = vmatpush3.bf16.msra.mxu0 %v278_v9  ;;  %187 = vmatprep.mubr.bf16.mxu0 %v227_v12  ;;  %v284_v17 = vld [vmem:[%s407_s1 + $0x38] sm:$0xff]   ;;  %v245_v25 = vld [vmem:[%s409_s3] ss:$0 sm:$0xff]  ;;  %s287_s1 = scalar_lea.vmem %s219_s27, 128  ;;  %p292_p1 = scmp.lt.s32.totalorder %s219_s27, %s219_s27 }
  0x14   :  { %256 = vmatprep.subr.bf16.mxu0 %v279_v10  ;;  %p288_p0 = scmp.ne.s32.totalorder %s219_s27, %s287_s1  ;;  %p293_p2 = scmp.lt.s32.totalorder %s287_s1, %s287_s1 }
  0x16   :  { %p294_p3 = por %p293_p2, %p292_p1 }
  0x17   :  { %257 = vmatpush3.bf16.msra.mxu0 %v280_v13 }
  0x18   :  { %258 = vmatprep.subr.bf16.mxu0 %v281_v14  ;;  %p295_p4 = pnand %p294_p3, %p288_p0 }
  0x1b   :  { %259 = vmatpush3.bf16.msra.mxu0 %v282_v15 }
  0x1c   :  { %260 = vmatprep.subr.bf16.mxu0 %v283_v16 }
  0x1f   :  { %261 = vmatpush3.bf16.msra.mxu0 %v284_v17 }
  0x22   :  { %188 = vmatmul.mubr.bf16.vlgmr.msra.gmra.mrb[0].mxu0 %v226_v18 }
  0xf5   :  { %v262_v19 = vpop.f32.mrb[0].mxu0 }
  0xf6   :  { %v263_v20 = vpop.f32.mrb[1].mxu0 }
  0xf7   :  { %v264_v22 = vadd.f32 %v263_v20, %v262_v19  ;;  %v265_v23 = vpop.f32.mrb[2].mxu0 }
  0xf8   :  { %v266_v24 = vpop.f32.mrb[3].mxu0 }
  0xf9   :  { %v202_v26 = vmul.f32 %v264_v22, %v244_v21 }
  0xfb   :  { %v210_v27 = vadd.f32 %v245_v25, %v202_v26 }
  0xfd   :  { %211 = vst [vmem:[#allocation2] sm:$0xff] %v210_v27 }
  0xfe   :  { %298 = shalt.err (!%p295_p4)
}
  0xff   :  { %s299_s29 = scalar_lea.hbm %s410_s4, 128 }
 0x100   :  { %p300_p5 = scmp.ne.s32.totalorder %s410_s4, %s299_s29  ;;  %p303_p6 = scmp.lt.u32.totalorder %s299_s29, %s410_s4 }
 0x102   :  { %p305_p7 = pnand %p303_p6, %p300_p5 }
 0x104   :  { %308 = shalt.err (!%p305_p7)
}
 0x105   :  { %221 = dma.vmem_to_hbm [thread:$0]  %s219_s27, 128, %s410_s4, [#allocation3]  }
 0x106   :  { %309 = dma.done.wait [#allocation3], 128  }
 0x107   :  { %310 = vsyncadd [#allocation3], 4294967168 }
 0x108   :  { %225 = vsyncpa [#allocation3], 1 }

// kernel: _lambda_.97
= control target key start
LH: loop header
LB: loop body
LE: loop exit
PB: predicated region body
PF: predicated region fallthrough
CT: control target
= control target key end

     0   :  { %9 = vsyncpa [#allocation3], 0  ;;  %s998_s0 = inlined_call_operand.vmem [shape: bf16[128,128], index: 0, kind: input, shape index: {}]   ;;  %s999_s1 = inlined_call_operand.vmem [shape: bf16[128,128], index: 1, kind: input, shape index: {}]   ;;  %s1000_s2 = inlined_call_operand.vmem [shape: f32[1,128], index: 2, kind: input, shape index: {}]   ;;  %s1001_s3 = inlined_call_operand.vmem [shape: f32[1,128], index: 3, kind: input, shape index: {}]   ;;  %s1002_s4 = inlined_call_operand.hbm [shape: f32[128,128], index: 4, kind: output, shape index: {}]  }
   0x1   :  { %11 = vsyncpa [#allocation3 + $0x1], 0  ;;  %s844_s15 = smov 0   ;;  %s846_s16 = smov 0  }
   0x2   :  { %s848_s17 = smov 0   ;;  %s850_s18 = smov 0  }
   0x3   :  { %s852_s19 = smov 0   ;;  %s854_s20 = smov 0  }
   0x4 LB: > { %s584_s21 = sadd.s32 4294967295, %s814_s20   ;;  %s585_s22 = sadd.s32 4294967294, %s814_s20   ;;  %s814_s20 = sphi %s854_s20, %s17_s20   ;;  %s810_s19 = sphi %s852_s19, %s1009_s19   ;;  %s806_s18 = sphi %s850_s18, %s1008_s18   ;;  %s802_s17 = sphi %s848_s17, %s1007_s17   ;;  %s798_s16 = sphi %s846_s16, %s1006_s16   ;;  %s794_s15 = sphi %s844_s15, %s1005_s15  }
   0x5   : > { %s29_s23 = sadd.s32 1, %s810_s19  ;;  %s142_s24 = sadd.s32 1, %s802_s17 }
   0x6   : > { %p31_p0 = scmp.ge.s32.totalorder %s29_s23, 2  ;;  %p152_p1 = scmp.ne.s32.totalorder %s802_s17, %s798_s16 }
   0x7   : > { %p153_p2 = scmp.eq.s32.totalorder %s584_s21, 1  ;;  %p158_p3 = scmp.ne.s32.totalorder %s798_s16, %s794_s15 }
   0x8   : > { %s1011_s23 = smov (%p31_p0, %s29_s23), 0  ;;  %p159_p5 = scmp.eq.s32.totalorder %s585_s22, 1 }
   0x9   : > { %p884_p4 = por %p153_p2, %p152_p1  ;;  %s137_s26 = ssub.s32 %s810_s19, %s1011_s23 }
   0xa   : > { %p591_p6 = scmp.ge.s32.totalorder %s814_s20, 1  ;;  %p140_p7 = scmp.eq.s32.totalorder %s137_s26, 0 }
   0xb   : > { %p891_p8 = por %p159_p5, %p158_p3  ;;  %p205_p9 = scmp.lt.s32.totalorder %s814_s20, 3 }
   0xc   : > { %s897_s28 = scalar_select %p140_p7, %s802_s17, %s142_s24  }
   0xd   : > { %p206_p10 = pnand %p591_p6, %p205_p9 }
   0xe   : > { %v724_v0 = vld [vmem:[%s999_s1] sm:$0xff] (!%p206_p10)   ;;  %s593_s5 = sshll.u32 (!%p206_p10), %s806_s18, 3  ;;  %v725_v1 = vld [vmem:[%s999_s1 + $0x8] sm:$0xff] (!%p206_p10)   ;;  %v726_v2 = vld [vmem:[%s999_s1 + $0x10] sm:$0xff] (!%p206_p10)   ;;  %s238_s8 = sand.u32 (!%p206_p10), 1, %s798_s16  }
   0xf   : > { %209 = sbr.rel (%p206_p10) target bundleno = 281 (0x119), region = 36  ;;  %p242_p11 = scmp.lt.s32.totalorder (!%p206_p10), %s593_s5, 15  ;;  %627 = vmatprep.subr.bf16.mxu0 (!%p206_p10), %v724_v0  ;;  %651 = vmatprep.subr.bf16.mxu1 (!%p206_p10), %v724_v0  ;;  %v727_v3 = vld [vmem:[%s999_s1 + $0x18] sm:$0xff] (!%p206_p10)   ;;  %v728_v6 = vld [vmem:[%s999_s1 + $0x20] sm:$0xff] (!%p206_p10)   ;;  %v729_v7 = vld [vmem:[%s999_s1 + $0x28] sm:$0xff] (!%p206_p10)  }
  0x10   : > { %628 = vmatpush3.bf16.msra.mxu0 (!%p206_p10), %v724_v0  ;;  %659 = vmatpush3.bf16.msra.mxu1 (!%p206_p10), %v724_v0  ;;  %v730_v8 = vld [vmem:[%s999_s1 + $0x30] sm:$0xff] (!%p206_p10)   ;;  %v731_v9 = vld [vmem:[%s999_s1 + $0x38] sm:$0xff] (!%p206_p10)   ;;  %s592_s9 = sshll.u32 (!%p206_p10), %s238_s8, 6  ;;  %v607_v12 = vld [vmem:[%s1000_s2] ss:$0 sm:$0xff] (!%p206_p10)  ;;  %s952_s29 = scalar_lea.sflag (!%p206_p10), [#allocation3], %s238_s8 }
  0x11   : > { %629 = vmatprep.subr.bf16.mxu0 (!%p206_p10), %v725_v1  ;;  %652 = vmatprep.subr.bf16.mxu1 (!%p206_p10), %v725_v1  ;;  %v608_v14 = vld [vmem:[%s1001_s3] ss:$0 sm:$0xff] (!%p206_p10)  ;;  %s240_s21 = scalar_lea.vmem (!%p206_p10), [#allocation2], %s592_s9 }
  0x12   : > { %s473_s22 = sshll.u32 (!%p206_p10), %s240_s21, 4  ;;  %s948_s22 = int_to_ptr.vmem [resolvable:$true] %s473_s22 }
  0x13   : > { %s736_s30 = scalar_lea.vmem (!%p206_p10), %s948_s22, 1024 }
  0x14   : > { %630 = vmatpush3.bf16.msra.mxu0 (!%p206_p10), %v725_v1  ;;  %660 = vmatpush3.bf16.msra.mxu1 (!%p206_p10), %v725_v1  ;;  %p737_p12 = scmp.ne.s32.totalorder (!%p206_p10), %s948_s22, %s736_s30 }
  0x15   : > { %631 = vmatprep.subr.bf16.mxu0 (!%p206_p10), %v726_v2  ;;  %653 = vmatprep.subr.bf16.mxu1 (!%p206_p10), %v726_v2 }
  0x16   : > { %s1013_s5 = smov (!%p242_p11, %s593_s5), 15  ;;  %p738_p13 = pnand %p737_p12, %p884_p4 }
  0x17   : > { %s594_s10 = sshll.u32 %s1013_s5, 2  ;;  %s816_s5 = smov [#allocation2]  }
  0x18   : > { %s912_s13 = scalar_lea.vmem %s998_s0, %s594_s10  ;;  %632 = vmatpush3.bf16.msra.mxu0 %v726_v2  ;;  %661 = vmatpush3.bf16.msra.mxu1 %v726_v2  ;;  %p739_p0 = pneg %p738_p13 }
  0x19   : > { %v732_v4 = vld [vmem:[%s912_s13] sm:$0xff]   ;;  %v733_v5 = vld [vmem:[%s912_s13 + $0x10] sm:$0xff]   ;;  %633 = vmatprep.subr.bf16.mxu0 %v727_v3  ;;  %654 = vmatprep.subr.bf16.mxu1 %v727_v3  ;;  %v734_v10 = vld [vmem:[%s912_s13 + $0x8] sm:$0xff]   ;;  %s740_s6 = sshll.u32 %s816_s5, 4  ;;  %s741_s6 = int_to_ptr.vmem [resolvable:$false] %s740_s6 }
  0x1a   : > { %643 = vmatprep.mubr.bf16.mxu0 %v732_v4  ;;  %647 = vmatprep.mubr.bf16.mxu1 %v733_v5  ;;  %v735_v11 = vld [vmem:[%s912_s13 + $0x18] sm:$0xff]   ;;  %s614_s13 = sshll.u32 %s806_s18, 10  ;;  %s742_s7 = scalar_lea.vmem %s741_s6, 2048 }
  0x1b   : > { %s946_s26 = scalar_lea.hbm %s1002_s4, %s614_s13  ;;  %p743_p1 = scmp.lt.s32.totalorder %s948_s22, %s741_s6 }
  0x1c   : > { %634 = vmatpush3.bf16.msra.mxu0 %v727_v3  ;;  %662 = vmatpush3.bf16.msra.mxu1 %v727_v3  ;;  %p744_p2 = scmp.lt.s32.totalorder %s742_s7, %s736_s30 }
  0x1d   : > { %635 = vmatprep.subr.bf16.mxu0 %v728_v6  ;;  %655 = vmatprep.subr.bf16.mxu1 %v728_v6 }
  0x1e   : > { %p745_p3 = por %p744_p2, %p743_p1 }
  0x20   : > { %636 = vmatpush3.bf16.msra.mxu0 %v728_v6  ;;  %663 = vmatpush3.bf16.msra.mxu1 %v728_v6  ;;  %p746_p5 = pnand %p745_p3, %p739_p0 }
  0x21   : > { %637 = vmatprep.subr.bf16.mxu0 %v729_v7  ;;  %656 = vmatprep.subr.bf16.mxu1 %v729_v7 }
  0x24   : > { %638 = vmatpush3.bf16.msra.mxu0 %v729_v7  ;;  %664 = vmatpush3.bf16.msra.mxu1 %v729_v7 }
  0x25   : > { %639 = vmatprep.subr.bf16.mxu0 %v730_v8  ;;  %657 = vmatprep.subr.bf16.mxu1 %v730_v8 }
  0x28   : > { %640 = vmatpush3.bf16.msra.mxu0 %v730_v8  ;;  %665 = vmatpush3.bf16.msra.mxu1 %v730_v8 }
  0x29   : > { %641 = vmatprep.subr.bf16.mxu0 %v731_v9  ;;  %658 = vmatprep.subr.bf16.mxu1 %v731_v9 }
  0x2c   : > { %642 = vmatpush3.bf16.msra.mxu0 %v731_v9  ;;  %666 = vmatpush3.bf16.msra.mxu1 %v731_v9 }
  0x2f   : > { %644 = vmatmul.mubr.bf16.vlgmr.msra.gmra.mrb[0].mxu0 %v734_v10  ;;  %648 = vmatmul.mubr.bf16.vlgmr.msra.gmra.mrb[0].mxu1 %v735_v11 }
 0x102   : > { %v645_v13 = vpop.f32.mrb[0].mxu0  ;;  %v649_v15 = vpop.f32.mrb[0].mxu1 }
 0x103   : > { %v429_v16 = vmul.f32 %v645_v13, %v607_v12  ;;  %v433_v17 = vmul.f32 %v649_v15, %v607_v12  ;;  %v389_v18 = vpop.f32.mrb[1].mxu0  ;;  %v405_v19 = vpop.f32.mrb[1].mxu1 }
 0x104   : > { %v427_v20 = vmul.f32 %v607_v12, %v389_v18  ;;  %v431_v21 = vmul.f32 %v607_v12, %v405_v19  ;;  %v646_v22 = vpop.f32.mrb[2].mxu0  ;;  %v650_v23 = vpop.f32.mrb[2].mxu1 }
 0x105   : > { %v444_v24 = vadd.f32 %v608_v14, %v429_v16  ;;  %v448_v25 = vadd.f32 %v608_v14, %v433_v17  ;;  %v430_v26 = vmul.f32 %v646_v22, %v607_v12  ;;  %v434_v27 = vmul.f32 %v650_v23, %v607_v12  ;;  %v392_v28 = vpop.f32.mrb[3].mxu0  ;;  %v408_v29 = vpop.f32.mrb[3].mxu1 }
 0x106   : > { %v442_v30 = vadd.f32 %v608_v14, %v427_v20  ;;  %v446_v31 = vadd.f32 %v608_v14, %v431_v21  ;;  %v428_v32 = vmul.f32 %v607_v12, %v392_v28  ;;  %v432_v33 = vmul.f32 %v607_v12, %v408_v29 }
 0x107   : > { %452 = vst [vmem:[%s240_s21 + $0x10] sm:$0xff] %v444_v24  ;;  %456 = vst [vmem:[%s240_s21 + $0x30] sm:$0xff] %v448_v25  ;;  %v445_v34 = vadd.f32 %v608_v14, %v430_v26  ;;  %v449_v35 = vadd.f32 %v608_v14, %v434_v27 }
 0x108   : > { %450 = vst [vmem:[%s240_s21] sm:$0xff] %v442_v30  ;;  %454 = vst [vmem:[%s240_s21 + $0x20] sm:$0xff] %v446_v31  ;;  %v443_v36 = vadd.f32 %v608_v14, %v428_v32  ;;  %v447_v37 = vadd.f32 %v608_v14, %v432_v33 }
 0x109   : > { %453 = vst [vmem:[%s240_s21 + $0x18] sm:$0xff] %v445_v34  ;;  %457 = vst [vmem:[%s240_s21 + $0x38] sm:$0xff] %v449_v35 }
 0x10a   : > { %451 = vst [vmem:[%s240_s21 + $0x8] sm:$0xff] %v443_v36  ;;  %455 = vst [vmem:[%s240_s21 + $0x28] sm:$0xff] %v447_v37 }
 0x10b   : > { %749 = shalt.err (!%p746_p5)
}
 0x10c   : > { %s750_s8 = scalar_lea.hbm %s946_s26, 1024  ;;  %s754_s11 = scalar_lea.hbm %s1002_s4, 2048 }
 0x10d   : > { %p751_p6 = scmp.ne.s32.totalorder %s946_s26, %s750_s8  ;;  %p755_p10 = scmp.lt.u32.totalorder %s946_s26, %s1002_s4 }
 0x10e   : > { %p756_p11 = scmp.lt.u32.totalorder %s754_s11, %s750_s8  ;;  %p758_p13 = scmp.lt.u32.totalorder %s750_s8, %s946_s26 }
 0x10f   : > { %p752_p7 = pnand %p751_p6, %p884_p4 }
 0x110   : > { %p757_p12 = por %p756_p11, %p755_p10 }
 0x111   : > { %p753_p9 = pneg %p752_p7 }
 0x112   : > { %p759_p0 = por %p758_p13, %p757_p12 }
 0x114   : > { %p760_p1 = pnand %p759_p0, %p753_p9 }
 0x116   : > { %763 = shalt.err (!%p760_p1)
}
 0x117   : > { %s817_s13 = smov 128   ;;  %s818_s21 = smov 8  }
 0x118   : > { %667 = dma.vmem_to_hbm [thread:$0]  (%p884_p4), %s948_s22, 1024, %s946_s26, %s952_s29, %s817_s13, %s817_s13, %s818_s21  }
 0x119 PF: > { %p673_p2 = scmp.ge.s32.totalorder %s814_s20, 2  ;;  %s488_s24 = sand.u32 1, %s794_s15  }
 0x11a   : > { %s489_s18 = scalar_lea.sflag [#allocation3], %s488_s24 }
 0x11b   : > { %p670_p3 = pnand %p673_p2, %p891_p8 }
 0x11d   : > { %789 = dma.done.wait (!%p670_p3), %s489_s18, 1024  }
 0x11e   : > { %791 = vsyncadd (!%p670_p3), %s489_s18, 4294966272  ;;  %s17_s20 = sadd.s32 1, %s814_s20   ;;  %s1005_s15 = smov %s798_s16 }
 0x11f   : > { %p14_p5 = scmp.ge.s32.totalorder %s17_s20, 4   ;;  %s1006_s16 = smov %s802_s17 }
 0x120   : > { %s1007_s17 = smov %s897_s28  ;;  %s1008_s18 = smov %s810_s19 }
 0x121   : > { %s1009_s19 = smov %s1011_s23  ;;  %16 = sbr.rel (!%p14_p5) target bundleno = 4 (0x4), region = 80 }
 0x128   :  { %494 = vsyncpa [#allocation3], 1 }
 0x129   :  { %496 = vsyncpa [#allocation3 + $0x1], 1 }

// kernel: _lambda_.103
= control target key start
LH: loop header
LB: loop body
LE: loop exit
PB: predicated region body
PF: predicated region fallthrough
CT: control target
= control target key end

     0   :  { %9 = vsyncpa [#allocation3], 0  ;;  %s897_s0 = inlined_call_operand.vmem [shape: bf16[32,128], index: 0, kind: input, shape index: {}]   ;;  %s898_s1 = inlined_call_operand.vmem [shape: bf16[128,128], index: 1, kind: input, shape index: {}]   ;;  %s899_s2 = inlined_call_operand.vmem [shape: f32[1,128], index: 2, kind: input, shape index: {}]   ;;  %s900_s3 = inlined_call_operand.vmem [shape: f32[1,128], index: 3, kind: input, shape index: {}]   ;;  %s901_s4 = inlined_call_operand.hbm [shape: f32[32,128], index: 4, kind: output, shape index: {}]  }
   0x1   :  { %11 = vsyncpa [#allocation3 + $0x1], 0  ;;  %s753_s15 = smov 0   ;;  %s755_s16 = smov 0  }
   0x2   :  { %s757_s17 = smov 0   ;;  %s759_s18 = smov 0  }
   0x3   :  { %s761_s19 = smov 0   ;;  %s763_s20 = smov 0  }
   0x4 LB: > { %s518_s21 = sadd.s32 4294967295, %s721_s20   ;;  %s519_s22 = sadd.s32 4294967294, %s721_s20   ;;  %s721_s20 = sphi %s763_s20, %s17_s20   ;;  %s717_s19 = sphi %s761_s19, %s908_s19   ;;  %s713_s18 = sphi %s759_s18, %s907_s18   ;;  %s709_s17 = sphi %s757_s17, %s906_s17   ;;  %s705_s16 = sphi %s755_s16, %s905_s16   ;;  %s701_s15 = sphi %s753_s15, %s904_s15  }
   0x5   : > { %s29_s23 = sadd.s32 1, %s717_s19  ;;  %s142_s24 = sadd.s32 1, %s709_s17 }
   0x6   : > { %p31_p0 = scmp.ge.s32.totalorder %s29_s23, 2  ;;  %p152_p1 = scmp.ne.s32.totalorder %s709_s17, %s705_s16 }
   0x7   : > { %p153_p2 = scmp.eq.s32.totalorder %s518_s21, 1  ;;  %p158_p3 = scmp.ne.s32.totalorder %s705_s16, %s701_s15 }
   0x8   : > { %s910_s23 = smov (%p31_p0, %s29_s23), 0  ;;  %p159_p5 = scmp.eq.s32.totalorder %s519_s22, 1 }
   0x9   : > { %p793_p4 = por %p153_p2, %p152_p1  ;;  %s137_s26 = ssub.s32 %s717_s19, %s910_s23 }
   0xa   : > { %p525_p6 = scmp.ge.s32.totalorder %s721_s20, 1  ;;  %p140_p7 = scmp.eq.s32.totalorder %s137_s26, 0 }
   0xb   : > { %p800_p8 = por %p159_p5, %p158_p3  ;;  %p205_p9 = scmp.lt.s32.totalorder %s721_s20, 3 }
   0xc   : > { %s806_s28 = scalar_select %p140_p7, %s709_s17, %s142_s24  }
   0xd   : > { %p206_p10 = pnand %p525_p6, %p205_p9 }
   0xe   : > { %v634_v0 = vld [vmem:[%s898_s1] sm:$0xff] (!%p206_p10)   ;;  %v723_v1 = vmov (!%p206_p10), 0.0   ;;  %v635_v2 = vld [vmem:[%s898_s1 + $0x8] sm:$0xff] (!%p206_p10)   ;;  %vm724_vm0 = vmmov (!%p206_p10), 0   ;;  %s527_s7 = sshll.u32 (!%p206_p10), %s713_s18, 1  ;;  %v636_v3 = vld [vmem:[%s898_s1 + $0x10] sm:$0xff] (!%p206_p10)  }
   0xf   : > { %209 = sbr.rel (%p206_p10) target bundleno = 280 (0x118), region = 36  ;;  %555 = vmatprep.subr.bf16.mxu0 (!%p206_p10), %v723_v1  ;;  %571 = vmatprep.mubr.msk.bf16.mxu0 (!%p206_p10), %vm724_vm0, %v723_v1  ;;  %p242_p11 = scmp.lt.s32.totalorder (!%p206_p10), %s527_s7, 3  ;;  %v637_v4 = vld [vmem:[%s898_s1 + $0x18] sm:$0xff] (!%p206_p10)   ;;  %v638_v5 = vld [vmem:[%s898_s1 + $0x20] sm:$0xff] (!%p206_p10)   ;;  %v639_v6 = vld [vmem:[%s898_s1 + $0x28] sm:$0xff] (!%p206_p10)  }
  0x10   : > { %556 = vmatpush3.bf16.msra.mxu0 (!%p206_p10), %v634_v0  ;;  %v640_v7 = vld [vmem:[%s898_s1 + $0x30] sm:$0xff] (!%p206_p10)   ;;  %v641_v8 = vld [vmem:[%s898_s1 + $0x38] sm:$0xff] (!%p206_p10)   ;;  %s238_s8 = sand.u32 (!%p206_p10), 1, %s705_s16   ;;  %v538_v10 = vld [vmem:[%s899_s2] ss:$0 sm:$0xff] (!%p206_p10)  ;;  %s545_s24 = sshll.u32 (!%p206_p10), %s713_s18, 8 }
  0x11   : > { %557 = vmatprep.subr.bf16.mxu0 (!%p206_p10), %v723_v1  ;;  %s526_s9 = sshll.u32 (!%p206_p10), %s238_s8, 4  ;;  %v539_v12 = vld [vmem:[%s900_s3] ss:$0 sm:$0xff] (!%p206_p10)  ;;  %s849_s29 = scalar_lea.hbm (!%p206_p10), %s901_s4, %s545_s24 }
  0x12   : > { %s240_s21 = scalar_lea.vmem (!%p206_p10), [#allocation2], %s526_s9  ;;  %s851_s30 = scalar_lea.sflag (!%p206_p10), [#allocation3], %s238_s8 }
  0x13   : > { %s407_s22 = sshll.u32 (!%p206_p10), %s240_s21, 4  ;;  %s725_s5 = smov (!%p206_p10), [#allocation2]   ;;  %s844_s22 = int_to_ptr.vmem [resolvable:$true] %s407_s22 }
  0x14   : > { %558 = vmatpush3.bf16.msra.mxu0 (!%p206_p10), %v635_v2  ;;  %s643_s18 = scalar_lea.vmem (!%p206_p10), %s844_s22, 256  ;;  %s647_s6 = sshll.u32 (!%p206_p10), %s725_s5, 4  ;;  %s648_s6 = int_to_ptr.vmem [resolvable:$false] %s647_s6 }
  0x15   : > { %559 = vmatprep.subr.bf16.mxu0 (!%p206_p10), %v723_v1  ;;  %p644_p12 = scmp.ne.s32.totalorder (!%p206_p10), %s844_s22, %s643_s18  ;;  %p650_p1 = scmp.lt.s32.totalorder (!%p206_p10), %s844_s22, %s648_s6 }
  0x16   : > { %s912_s7 = smov (!%p242_p11, %s527_s7), 3 }
  0x17   : > { %s528_s10 = sshll.u32 %s912_s7, 2  ;;  %p645_p13 = pnand %p644_p12, %p793_p4 }
  0x18   : > { %s245_s13 = scalar_lea.vmem %s897_s0, %s528_s10  ;;  %560 = vmatpush3.bf16.msra.mxu0 %v636_v3  ;;  %s649_s7 = scalar_lea.vmem %s648_s6, 512 }
  0x19   : > { %561 = vmatprep.subr.bf16.mxu0 %v723_v1  ;;  %v642_v9 = vld [vmem:[%s245_s13] sm:$0xff]   ;;  %p646_p0 = pneg %p645_p13  ;;  %p651_p2 = scmp.lt.s32.totalorder %s649_s7, %s643_s18 }
  0x1b   : > { %p652_p3 = por %p651_p2, %p650_p1 }
  0x1c   : > { %562 = vmatpush3.bf16.msra.mxu0 %v637_v4 }
  0x1d   : > { %563 = vmatprep.subr.bf16.mxu0 %v723_v1  ;;  %p653_p5 = pnand %p652_p3, %p646_p0 }
  0x20   : > { %564 = vmatpush3.bf16.msra.mxu0 %v638_v5 }
  0x21   : > { %565 = vmatprep.subr.bf16.mxu0 %v723_v1 }
  0x24   : > { %566 = vmatpush3.bf16.msra.mxu0 %v639_v6 }
  0x25   : > { %567 = vmatprep.subr.bf16.mxu0 %v723_v1 }
  0x28   : > { %568 = vmatpush3.bf16.msra.mxu0 %v640_v7 }
  0x29   : > { %569 = vmatprep.subr.bf16.mxu0 %v723_v1 }
  0x2c   : > { %570 = vmatpush3.bf16.msra.mxu0 %v641_v8 }
  0x2f   : > { %572 = vmatmul.mubr.bf16.vlgmr.msra.gmra.mrb[0].mxu0 %v642_v9 }
 0x102   : > { %v365_v11 = vpop.f32.mrb[0].mxu0 }
 0x103   : > { %v379_v13 = vmul.f32 %v538_v10, %v365_v11  ;;  %v573_v14 = vpop.f32.mrb[1].mxu0 }
 0x104   : > { %v368_v15 = vpop.f32.mrb[2].mxu0 }
 0x105   : > { %v388_v16 = vadd.f32 %v539_v12, %v379_v13  ;;  %v380_v17 = vmul.f32 %v538_v10, %v368_v15  ;;  %v574_v18 = vpop.f32.mrb[3].mxu0 }
 0x107   : > { %390 = vst [vmem:[%s240_s21] sm:$0xff] %v388_v16  ;;  %v389_v19 = vadd.f32 %v539_v12, %v380_v17 }
 0x109   : > { %391 = vst [vmem:[%s240_s21 + $0x8] sm:$0xff] %v389_v19 }
 0x10a   : > { %656 = shalt.err (!%p653_p5)
}
 0x10b   : > { %s657_s8 = scalar_lea.hbm %s849_s29, 256  ;;  %s661_s11 = scalar_lea.hbm %s901_s4, 512 }
 0x10c   : > { %p658_p6 = scmp.ne.s32.totalorder %s849_s29, %s657_s8  ;;  %p662_p10 = scmp.lt.u32.totalorder %s849_s29, %s901_s4 }
 0x10d   : > { %p663_p11 = scmp.lt.u32.totalorder %s661_s11, %s657_s8  ;;  %p665_p13 = scmp.lt.u32.totalorder %s657_s8, %s849_s29 }
 0x10e   : > { %p659_p7 = pnand %p658_p6, %p793_p4 }
 0x10f   : > { %p664_p12 = por %p663_p11, %p662_p10 }
 0x110   : > { %p660_p9 = pneg %p659_p7 }
 0x111   : > { %p666_p0 = por %p665_p13, %p664_p12 }
 0x113   : > { %p667_p1 = pnand %p666_p0, %p660_p9 }
 0x115   : > { %670 = shalt.err (!%p667_p1)
}
 0x116   : > { %s726_s21 = smov 128   ;;  %s727_s24 = smov 8  }
 0x117   : > { %575 = dma.vmem_to_hbm [thread:$0]  (%p793_p4), %s844_s22, 256, %s849_s29, %s851_s30, %s726_s21, %s726_s21, %s727_s24  }
 0x118 PF: > { %p581_p2 = scmp.ge.s32.totalorder %s721_s20, 2  ;;  %s422_s13 = sand.u32 1, %s701_s15  }
 0x119   : > { %s423_s26 = scalar_lea.sflag [#allocation3], %s422_s13 }
 0x11a   : > { %p578_p3 = pnand %p581_p2, %p800_p8 }
 0x11c   : > { %696 = dma.done.wait (!%p578_p3), %s423_s26, 256  }
 0x11d   : > { %698 = vsyncadd (!%p578_p3), %s423_s26, 4294967040  ;;  %s17_s20 = sadd.s32 1, %s721_s20   ;;  %s904_s15 = smov %s705_s16 }
 0x11e   : > { %p14_p5 = scmp.ge.s32.totalorder %s17_s20, 4   ;;  %s905_s16 = smov %s709_s17 }
 0x11f   : > { %s906_s17 = smov %s806_s28  ;;  %s907_s18 = smov %s717_s19 }
 0x120   : > { %s908_s19 = smov %s910_s23  ;;  %16 = sbr.rel (!%p14_p5) target bundleno = 4 (0x4), region = 80 }
 0x127   :  { %428 = vsyncpa [#allocation3], 1 }
 0x128   :  { %430 = vsyncpa [#allocation3 + $0x1], 1 }

</bundles_post_ra>
